<compile_context>
chip_gen: v6e
topology: v6e:2x2x1
jax: 0.10.0
libtpu: 0.0.40
codegen_flags: <defaults>
</compile_context>

<pallas_src>
import functools

import jax
import jax.numpy as jnp
from jax.experimental import pallas as pl
from jax.experimental.pallas import tpu as pltpu

NUM_FEATURES = 16      # PyTorch spec uses 128; small here for the self-contained test.
BN_EPS = 1e-5
LANE = 128             # channel padding granularity (lane axis)
W_TILE = 16            # output-width padding granularity (bf16 sublane tile)


def _round_up(x, m):
    return ((x + m - 1) // m) * m


def _pick_band(ho):
    """Output-row band: small enough to bound per-step VMEM, divides ho exactly."""
    if ho <= 32:
        return ho
    for b in (32, 24, 16, 8):
        if ho % b == 0:
            return b
    return ho


# --------------------------------------------------------------------------------------
# Pallas kernels: fused 3x3 conv (tap-stacked MXU matmul) + BN affine + LeakyReLU(0.2)
# --------------------------------------------------------------------------------------
def _conv_epilogue(taps, w_ref, s_ref, b_ref, o_ref, *, band, wo_pad, wo, leaky, stack_k):
    cin = taps[0].shape[-1]
    ct = o_ref.shape[-1]
    m = band * wo_pad
    if stack_k:
        # One MXU call with K = 9*cin.  Each tap piece is 128-lane aligned (cin % 128 == 0) so
        # the channel-axis concat is a plain placement, no relayout.
        patch = jnp.concatenate(taps, axis=-1).reshape(m, 9 * cin)
        acc = jnp.dot(patch, w_ref[...], preferred_element_type=jnp.float32)
    else:
        # First layer only (cin_pad = 16): tap pieces are not lane aligned -> keep 9 matmuls.
        acc = jnp.zeros((m, ct), jnp.float32)
        for k, tap in enumerate(taps):
            acc = acc + jnp.dot(tap.reshape(m, cin),
                                w_ref[k * cin:(k + 1) * cin, :],
                                preferred_element_type=jnp.float32)
    y = acc * s_ref[...] + b_ref[...]          # f32 epilogue (v5e-safe)
    if leaky:
        y = jnp.maximum(y, 0.2 * y)            # LeakyReLU(0.2): one VPU op
    y = y.reshape(band, wo_pad, ct)
    if wo < wo_pad:
        # Keep the padded output columns exactly zero so the next layer can consume the padded
        # layout directly (its 3x3 halo then sees true zero padding).
        col = jax.lax.broadcasted_iota(jnp.int32, (band, wo_pad, ct), 1)
        y = jnp.where(col < wo, y, 0.0)
    o_ref[...] = y.astype(o_ref.dtype)


def _conv3x3_s1_kernel(x_ref, w_ref, s_ref, b_ref, o_ref, *, band, wo_pad, wo, leaky, stack_k):
    # x_ref: (H+2, wo_pad+2, cin)  zero-padded input image, bf16 (batch dim squeezed)
    # w_ref: (9*cin, ct)           tap-stacked weights, K ordered (kh, kw, cin), bf16
    # s_ref/b_ref: (1, ct)         folded BN scale / shift, f32
    # o_ref: (band, wo_pad, ct)    bf16, output rows [band*r, band*(r+1))
    r0 = pl.program_id(2) * band
    xb = x_ref[pl.ds(r0, band + 2), :, :]      # bf16 band + halo, no f32 round trip
    # NOTE: kw = 1, 2 are odd sublane offsets on packed bf16; if relayouts show up in the bundle
    # dump, switch to pltpu.roll(xb, -kw, axis=1) + a [0:wo_pad] slice (XLU slot, overlaps MXU).
    taps = [xb[kh:kh + band, kw:kw + wo_pad, :] for kh in range(3) for kw in range(3)]
    _conv_epilogue(taps, w_ref, s_ref, b_ref, o_ref, band=band, wo_pad=wo_pad, wo=wo,
                   leaky=leaky, stack_k=stack_k)


def _conv3x3_s2_kernel(xee_ref, xeo_ref, xoe_ref, xoo_ref, w_ref, s_ref, b_ref, o_ref,
                       *, band, wo_pad, wo, leaky, stack_k):
    # Stride-2 variant: inputs are the 4 even/odd row/column phases of the padded image, each
    # (ho+1, wo_pad+1, cin), so every tap is a unit-stride static slice.
    r0 = pl.program_id(2) * band
    ph = ((xee_ref[pl.ds(r0, band + 1), :, :], xeo_ref[pl.ds(r0, band + 1), :, :]),
          (xoe_ref[pl.ds(r0, band + 1), :, :], xoo_ref[pl.ds(r0, band + 1), :, :]))
    taps = []
    for kh in range(3):
        for kw in range(3):
            src = ph[kh % 2][kw % 2]
            ro, co = kh // 2, kw // 2
            taps.append(src[ro:ro + band, co:co + wo_pad, :])
    _conv_epilogue(taps, w_ref, s_ref, b_ref, o_ref, band=band, wo_pad=wo_pad, wo=wo,
                   leaky=leaky, stack_k=stack_k)


# --------------------------------------------------------------------------------------
# Layer wrapper
# --------------------------------------------------------------------------------------
def conv_layer_pallas(x, w_valid, w9, scale, bias, *, stride, leaky):
    """One fused conv3x3 + BN-affine + LeakyReLU layer.

    x: (N, H, Wp_in, Cin) bf16; columns >= w_valid and padded channels are exactly zero.
    w9: (9*Cin, Coutp) bf16 tap-stacked weights; scale/bias: (Coutp,) f32.
    Returns (y, wo): y is (N, Ho, Wo_pad, Coutp) bf16 with columns >= wo kept at zero.
    """
    n, h, wp_in, cin = x.shape
    coutp = w9.shape[-1]
    assert w9.shape[0] == 9 * cin

    # Cout tile: 256 fills the v6e/v7x 256-wide MXU when coutp allows it; 128 otherwise (and is
    # already the perfect fit for v5e's 4x128^2 MXU).
    ct = 256 if coutp % 256 == 0 else 128
    ct = min(ct, coutp)

    if stride == 1:
        ho, wo = h, w_valid
    else:
        assert h % 2 == 0 and w_valid % 2 == 0
        ho, wo = h // 2, w_valid // 2
    wo_pad = _round_up(wo, W_TILE)     # lane/sublane-friendly (zeroed) output width
    band = _pick_band(ho)
    n_bands = ho // band

    s2 = scale.reshape(1, coutp).astype(jnp.float32)
    b2 = bias.reshape(1, coutp).astype(jnp.float32)
    stack_k = (cin % 128 == 0)

    if stride == 1:
        wp_total = wo_pad + 2
        # Only a halo pad: the incoming padded columns are already zero.
        xp = jnp.pad(x, ((0, 0), (1, 1), (1, wp_total - 1 - wp_in), (0, 0)))
        x_in = (xp,)
        x_specs = [pl.BlockSpec((None, h + 2, wp_total, cin), lambda c, b, r: (b, 0, 0, 0))]
        in_block_bytes = (h + 2) * wp_total * cin * 2
        kernel = functools.partial(_conv3x3_s1_kernel, band=band, wo_pad=wo_pad, wo=wo,
                                   leaky=leaky, stack_k=stack_k)
    else:
        wp_total = 2 * wo_pad + 2
        xp = jnp.pad(x, ((0, 0), (1, 1), (1, wp_total - 1 - wp_in), (0, 0)))
        # TODO(synk): emit this even/odd phase split from the producing layer's store instead of
        # strided slicing in plain JAX (would save one HBM pass per stride-2 layer).
        rows_even, rows_odd = xp[:, 0::2], xp[:, 1::2]
        x_in = (rows_even[:, :, 0::2], rows_even[:, :, 1::2],
                rows_odd[:, :, 0::2], rows_odd[:, :, 1::2])
        ph_spec = pl.BlockSpec((None, ho + 1, wo_pad + 1, cin), lambda c, b, r: (b, 0, 0, 0))
        x_specs = [ph_spec] * 4
        in_block_bytes = 4 * (ho + 1) * (wo_pad + 1) * cin * 2
        kernel = functools.partial(_conv3x3_s2_kernel, band=band, wo_pad=wo_pad, wo=wo,
                                   leaky=leaky, stack_k=stack_k)

    # Per-step VMEM budget: double-buffered blocks + patch operand + f32 accumulator, clamped so
    # it stays well under v7x's 64 MiB physical VMEM (v5e/v6e have 128 MiB and could go higher).
    w_block_bytes = 9 * cin * ct * 2
    out_block_bytes = band * wo_pad * ct * 2
    scratch_bytes = band * wo_pad * (9 * cin * 2 + ct * 4)
    est = 2 * (in_block_bytes + w_block_bytes + out_block_bytes) + scratch_bytes + (1 << 20)
    vmem_limit = int(min(max(2 * est, 32 << 20), 48 << 20))

    flops = 2 * n * ho * wo * 9 * cin * coutp            # true output width, not wo_pad
    bytes_accessed = ((coutp // ct) * sum(int(a.size) for a in x_in) * 2
                      + int(w9.size) * 2 + 2 * coutp * 4
                      + n * ho * wo_pad * coutp * 2)

    out = pl.pallas_call(
        kernel,
        out_shape=jax.ShapeDtypeStruct((n, ho, wo_pad, coutp), jnp.bfloat16),
        grid_spec=pltpu.PrefetchScalarGridSpec(
            num_scalar_prefetch=0,
            # cout tiles outermost, batch next, row bands innermost: weights stay VMEM-resident
            # across the batch/bands; the image block is re-fetched only when batch changes.
            grid=(coutp // ct, n, n_bands),
            in_specs=list(x_specs) + [
                pl.BlockSpec((9 * cin, ct), lambda c, b, r: (0, c)),
                pl.BlockSpec((1, ct), lambda c, b, r: (0, c)),
                pl.BlockSpec((1, ct), lambda c, b, r: (0, c)),
            ],
            out_specs=pl.BlockSpec((None, band, wo_pad, ct), lambda c, b, r: (b, r, 0, c)),
        ),
        compiler_params=pltpu.CompilerParams(
            dimension_semantics=("parallel", "parallel", "parallel"),
            vmem_limit_bytes=vmem_limit,
        ),
        cost_estimate=pl.CostEstimate(flops=flops, transcendentals=0,
                                      bytes_accessed=bytes_accessed),
    )(*x_in, w9, s2, b2)
    return out, wo


# --------------------------------------------------------------------------------------
# Parameter construction (deterministic)
# --------------------------------------------------------------------------------------
def make_discriminator_params(key, in_channels, nf):
    """True-size parameters mirroring the PyTorch Sequential."""
    layer_defs = []   # (cin, cout, stride, has_bn, leaky)
    cin = in_channels
    for i, cout in enumerate([nf, nf * 2, nf * 4, nf * 8]):
        layer_defs.append((cin, cout, 1, i != 0, True))   # conv s1 (+BN if not first block)
        layer_defs.append((cout, cout, 2, True, True))    # conv s2 + BN
        cin = cout
    layer_defs.append((cin, 1, 1, False, False))          # final Conv2d(out, 1)

    params = []
    for (ci, co, stride, has_bn, leaky) in layer_defs:
        key, kw_, kb, kg, kbe, km, kv = jax.random.split(key, 7)
        w = 0.05 * jax.random.normal(kw_, (3, 3, ci, co), jnp.float32)
        b = 0.01 * jax.random.normal(kb, (co,), jnp.float32)
        if has_bn:
            # TODO(synk): BatchNorm2d is eval-mode only (running stats folded into a per-channel
            # affine); training-mode batch statistics are not computed in-kernel.
            gamma = 1.0 + 0.1 * jax.random.normal(kg, (co,), jnp.float32)
            beta = 0.1 * jax.random.normal(kbe, (co,), jnp.float32)
            mean = 0.1 * jax.random.normal(km, (co,), jnp.float32)
            var = 1.0 + jnp.abs(0.1 * jax.random.normal(kv, (co,), jnp.float32))
            scale = gamma / jnp.sqrt(var + BN_EPS)
            shift = scale * b + (beta - mean * scale)
        else:
            scale = jnp.ones((co,), jnp.float32)
            shift = b
        params.append(dict(w=w, scale=scale, bias=shift, stride=stride, leaky=leaky))
    return params


def pad_params_for_pallas(params, in_channels):
    """Zero-pad channels to lane-dense sizes and stack the 3x3 taps along the K axis."""
    pparams = []
    cin_pad = _round_up(in_channels, 16)      # image channels 3 -> 16 (zero rows in weights)
    for p in params:
        ci, co = p["w"].shape[2], p["w"].shape[3]
        coutp = _round_up(co, LANE)
        w_pad = jnp.zeros((3, 3, cin_pad, coutp), jnp.float32)
        w_pad = w_pad.at[:, :, :ci, :co].set(p["w"])
        pparams.append(dict(
            w9=w_pad.reshape(9 * cin_pad, coutp).astype(jnp.bfloat16),  # K ordered (kh, kw, cin)
            scale=jnp.zeros((coutp,), jnp.float32).at[:co].set(p["scale"]),
            bias=jnp.zeros((coutp,), jnp.float32).at[:co].set(p["bias"]),
            stride=p["stride"], leaky=p["leaky"], cin_pad=cin_pad, cout=co))
        cin_pad = coutp                        # padded activations flow to the next layer
    return pparams


# --------------------------------------------------------------------------------------
# Forward passes
# --------------------------------------------------------------------------------------
def discriminator_forward(img_nchw, pparams):
    x = jnp.transpose(img_nchw, (0, 2, 3, 1)).astype(jnp.bfloat16)   # NCHW -> NHWC, bf16
    pad_c = pparams[0]["cin_pad"] - x.shape[-1]
    if pad_c:
        x = jnp.pad(x, ((0, 0), (0, 0), (0, 0), (0, pad_c)))
    w_valid = x.shape[2]
    # TODO(synk): the small-spatial tail layers could be fused into one pallas_call (grid over
    # batch only) to remove their launch/DMA overhead; kept as one call per layer here.
    for p in pparams:
        x, w_valid = conv_layer_pallas(x, w_valid, p["w9"], p["scale"], p["bias"],
                                       stride=p["stride"], leaky=p["leaky"])
    x = x[:, :, :w_valid, :pparams[-1]["cout"]].astype(jnp.float32)  # drop kept padding once
    return jnp.transpose(x, (0, 3, 1, 2))                            # NHWC -> NCHW


def discriminator_forward_ref(img_nchw, params):
    """Pure-JAX reference (lax conv) with matching bf16 operand / f32 accumulate numerics."""
    x = jnp.transpose(img_nchw, (0, 2, 3, 1)).astype(jnp.bfloat16)
    for p in params:
        y = jax.lax.conv_general_dilated(
            x, p["w"].astype(jnp.bfloat16), (p["stride"], p["stride"]), ((1, 1), (1, 1)),
            dimension_numbers=("NHWC", "HWIO", "NHWC"),
            preferred_element_type=jnp.float32)
        y = y * p["scale"] + p["bias"]
        if p["leaky"]:
            y = jnp.maximum(y, 0.2 * y)
        x = y.astype(jnp.bfloat16)
    return jnp.transpose(x.astype(jnp.float32), (0, 3, 1, 2))


# --------------------------------------------------------------------------------------
if __name__ == "__main__":
    key = jax.random.PRNGKey(0)
    k_param, k_img = jax.random.split(key)

    batch, in_channels, height, width = 2, 3, 16, 16       # patch output = (1, 1, 1)
    params = make_discriminator_params(k_param, in_channels, NUM_FEATURES)
    pparams = pad_params_for_pallas(params, in_channels)

    img = jax.random.normal(k_img, (batch, in_channels, height, width), jnp.float32)

    fwd = jax.jit(lambda x: discriminator_forward(x, pparams))
    out = jax.block_until_ready(fwd(img))

    expected_shape = (batch, 1, height // 16, width // 16)
    assert out.shape == expected_shape, (out.shape, expected_shape)
    assert bool(jnp.all(jnp.isfinite(out)))

    ref = discriminator_forward_ref(img, params)
    assert bool(jnp.allclose(out, ref, atol=2e-2, rtol=2e-2)), \
        ("mismatch vs reference", float(jnp.max(jnp.abs(out - ref))))

    print("KERNEL_OK")
</pallas_src>

<mosaic_0001>
module attributes {stable_mosaic.version = 11 : i64} {
  func.func @_conv3x3_s1_kernel(%arg0: i32, %arg1: i32, %arg2: i32, %arg3: memref<1x18x18x16xbf16, #tpu.memory_space<vmem>>, %arg4: memref<144x128xbf16, #tpu.memory_space<vmem>>, %arg5: memref<1x128xf32, #tpu.memory_space<vmem>>, %arg6: memref<1x128xf32, #tpu.memory_space<vmem>>, %arg7: memref<1x16x16x128xbf16, #tpu.memory_space<vmem>>) attributes {dimension_semantics = [#tpu.dimension_semantics<parallel>, #tpu.dimension_semantics<parallel>, #tpu.dimension_semantics<parallel>], iteration_bounds = array<i64: 1, 2, 1>, scalar_prefetch = 0 : i64, scratch_operands = 0 : i64, tpu.core_type = #tpu.core_type<tc>, window_params = [{transform_indices = @transform_0, window_bounds = array<i64: 1, 18, 18, 16>}, {transform_indices = @transform_1, window_bounds = array<i64: 144, 128>}, {transform_indices = @transform_2, window_bounds = array<i64: 1, 128>}, {transform_indices = @transform_3, window_bounds = array<i64: 1, 128>}, {transform_indices = @transform_4, window_bounds = array<i64: 1, 16, 16, 128>}]} {
    %c16_i32 = arith.constant 16 : i32
    %0 = arith.muli %arg2, %c16_i32 : i32
    %c0 = arith.constant 0 : index
    %1 = arith.index_cast %0 : i32 to index
    %c0_0 = arith.constant 0 : index
    %c0_1 = arith.constant 0 : index
    %2 = vector.load %arg3[%c0, %1, %c0_0, %c0_1] : memref<1x18x18x16xbf16, #tpu.memory_space<vmem>>, vector<1x18x18x16xbf16>
    %3 = vector.shape_cast %2 : vector<1x18x18x16xbf16> to vector<18x18x16xbf16>
    %4 = vector.extract_strided_slice %3 {offsets = [0, 0, 0], sizes = [16, 16, 16], strides = [1, 1, 1]} : vector<18x18x16xbf16> to vector<16x16x16xbf16>
    %5 = vector.extract_strided_slice %3 {offsets = [0, 1, 0], sizes = [16, 16, 16], strides = [1, 1, 1]} : vector<18x18x16xbf16> to vector<16x16x16xbf16>
    %6 = vector.extract_strided_slice %3 {offsets = [0, 2, 0], sizes = [16, 16, 16], strides = [1, 1, 1]} : vector<18x18x16xbf16> to vector<16x16x16xbf16>
    %7 = vector.extract_strided_slice %3 {offsets = [1, 0, 0], sizes = [16, 16, 16], strides = [1, 1, 1]} : vector<18x18x16xbf16> to vector<16x16x16xbf16>
    %8 = vector.extract_strided_slice %3 {offsets = [1, 1, 0], sizes = [16, 16, 16], strides = [1, 1, 1]} : vector<18x18x16xbf16> to vector<16x16x16xbf16>
    %9 = vector.extract_strided_slice %3 {offsets = [1, 2, 0], sizes = [16, 16, 16], strides = [1, 1, 1]} : vector<18x18x16xbf16> to vector<16x16x16xbf16>
    %10 = vector.extract_strided_slice %3 {offsets = [2, 0, 0], sizes = [16, 16, 16], strides = [1, 1, 1]} : vector<18x18x16xbf16> to vector<16x16x16xbf16>
    %11 = vector.extract_strided_slice %3 {offsets = [2, 1, 0], sizes = [16, 16, 16], strides = [1, 1, 1]} : vector<18x18x16xbf16> to vector<16x16x16xbf16>
    %12 = vector.extract_strided_slice %3 {offsets = [2, 2, 0], sizes = [16, 16, 16], strides = [1, 1, 1]} : vector<18x18x16xbf16> to vector<16x16x16xbf16>
    %cst = arith.constant 0.000000e+00 : f32
    %13 = vector.broadcast %cst : f32 to vector<256x128xf32>
    %14 = vector.shape_cast %4 : vector<16x16x16xbf16> to vector<256x16xbf16>
    %c0_2 = arith.constant 0 : index
    %c0_3 = arith.constant 0 : index
    %15 = vector.load %arg4[%c0_2, %c0_3] : memref<144x128xbf16, #tpu.memory_space<vmem>>, vector<16x128xbf16>
    %cst_4 = arith.constant dense<0.000000e+00> : vector<256x128xf32>
    %16 = tpu.matmul %14, %15, %cst_4 {dimension_numbers = #tpu.dot_dimension_numbers<[1], [0], [0], [1], [0, 0, 1, 1], [], []>} : vector<256x16xbf16>, vector<16x128xbf16>, vector<256x128xf32> -> vector<256x128xf32>
    %17 = arith.addf %13, %16 : vector<256x128xf32>
    %18 = vector.shape_cast %5 : vector<16x16x16xbf16> to vector<256x16xbf16>
    %c16 = arith.constant 16 : index
    %c0_5 = arith.constant 0 : index
    %19 = vector.load %arg4[%c16, %c0_5] : memref<144x128xbf16, #tpu.memory_space<vmem>>, vector<16x128xbf16>
    %cst_6 = arith.constant dense<0.000000e+00> : vector<256x128xf32>
    %20 = tpu.matmul %18, %19, %cst_6 {dimension_numbers = #tpu.dot_dimension_numbers<[1], [0], [0], [1], [0, 0, 1, 1], [], []>} : vector<256x16xbf16>, vector<16x128xbf16>, vector<256x128xf32> -> vector<256x128xf32>
    %21 = arith.addf %17, %20 : vector<256x128xf32>
    %22 = vector.shape_cast %6 : vector<16x16x16xbf16> to vector<256x16xbf16>
    %c32 = arith.constant 32 : index
    %c0_7 = arith.constant 0 : index
    %23 = vector.load %arg4[%c32, %c0_7] : memref<144x128xbf16, #tpu.memory_space<vmem>>, vector<16x128xbf16>
    %cst_8 = arith.constant dense<0.000000e+00> : vector<256x128xf32>
    %24 = tpu.matmul %22, %23, %cst_8 {dimension_numbers = #tpu.dot_dimension_numbers<[1], [0], [0], [1], [0, 0, 1, 1], [], []>} : vector<256x16xbf16>, vector<16x128xbf16>, vector<256x128xf32> -> vector<256x128xf32>
    %25 = arith.addf %21, %24 : vector<256x128xf32>
    %26 = vector.shape_cast %7 : vector<16x16x16xbf16> to vector<256x16xbf16>
    %c48 = arith.constant 48 : index
    %c0_9 = arith.constant 0 : index
    %27 = vector.load %arg4[%c48, %c0_9] : memref<144x128xbf16, #tpu.memory_space<vmem>>, vector<16x128xbf16>
    %cst_10 = arith.constant dense<0.000000e+00> : vector<256x128xf32>
    %28 = tpu.matmul %26, %27, %cst_10 {dimension_numbers = #tpu.dot_dimension_numbers<[1], [0], [0], [1], [0, 0, 1, 1], [], []>} : vector<256x16xbf16>, vector<16x128xbf16>, vector<256x128xf32> -> vector<256x128xf32>
    %29 = arith.addf %25, %28 : vector<256x128xf32>
    %30 = vector.shape_cast %8 : vector<16x16x16xbf16> to vector<256x16xbf16>
    %c64 = arith.constant 64 : index
    %c0_11 = arith.constant 0 : index
    %31 = vector.load %arg4[%c64, %c0_11] : memref<144x128xbf16, #tpu.memory_space<vmem>>, vector<16x128xbf16>
    %cst_12 = arith.constant dense<0.000000e+00> : vector<256x128xf32>
    %32 = tpu.matmul %30, %31, %cst_12 {dimension_numbers = #tpu.dot_dimension_numbers<[1], [0], [0], [1], [0, 0, 1, 1], [], []>} : vector<256x16xbf16>, vector<16x128xbf16>, vector<256x128xf32> -> vector<256x128xf32>
    %33 = arith.addf %29, %32 : vector<256x128xf32>
    %34 = vector.shape_cast %9 : vector<16x16x16xbf16> to vector<256x16xbf16>
    %c80 = arith.constant 80 : index
    %c0_13 = arith.constant 0 : index
    %35 = vector.load %arg4[%c80, %c0_13] : memref<144x128xbf16, #tpu.memory_space<vmem>>, vector<16x128xbf16>
    %cst_14 = arith.constant dense<0.000000e+00> : vector<256x128xf32>
    %36 = tpu.matmul %34, %35, %cst_14 {dimension_numbers = #tpu.dot_dimension_numbers<[1], [0], [0], [1], [0, 0, 1, 1], [], []>} : vector<256x16xbf16>, vector<16x128xbf16>, vector<256x128xf32> -> vector<256x128xf32>
    %37 = arith.addf %33, %36 : vector<256x128xf32>
    %38 = vector.shape_cast %10 : vector<16x16x16xbf16> to vector<256x16xbf16>
    %c96 = arith.constant 96 : index
    %c0_15 = arith.constant 0 : index
    %39 = vector.load %arg4[%c96, %c0_15] : memref<144x128xbf16, #tpu.memory_space<vmem>>, vector<16x128xbf16>
    %cst_16 = arith.constant dense<0.000000e+00> : vector<256x128xf32>
    %40 = tpu.matmul %38, %39, %cst_16 {dimension_numbers = #tpu.dot_dimension_numbers<[1], [0], [0], [1], [0, 0, 1, 1], [], []>} : vector<256x16xbf16>, vector<16x128xbf16>, vector<256x128xf32> -> vector<256x128xf32>
    %41 = arith.addf %37, %40 : vector<256x128xf32>
    %42 = vector.shape_cast %11 : vector<16x16x16xbf16> to vector<256x16xbf16>
    %c112 = arith.constant 112 : index
    %c0_17 = arith.constant 0 : index
    %43 = vector.load %arg4[%c112, %c0_17] : memref<144x128xbf16, #tpu.memory_space<vmem>>, vector<16x128xbf16>
    %cst_18 = arith.constant dense<0.000000e+00> : vector<256x128xf32>
    %44 = tpu.matmul %42, %43, %cst_18 {dimension_numbers = #tpu.dot_dimension_numbers<[1], [0], [0], [1], [0, 0, 1, 1], [], []>} : vector<256x16xbf16>, vector<16x128xbf16>, vector<256x128xf32> -> vector<256x128xf32>
    %45 = arith.addf %41, %44 : vector<256x128xf32>
    %46 = vector.shape_cast %12 : vector<16x16x16xbf16> to vector<256x16xbf16>
    %c128 = arith.constant 128 : index
    %c0_19 = arith.constant 0 : index
    %47 = vector.load %arg4[%c128, %c0_19] : memref<144x128xbf16, #tpu.memory_space<vmem>>, vector<16x128xbf16>
    %cst_20 = arith.constant dense<0.000000e+00> : vector<256x128xf32>
    %48 = tpu.matmul %46, %47, %cst_20 {dimension_numbers = #tpu.dot_dimension_numbers<[1], [0], [0], [1], [0, 0, 1, 1], [], []>} : vector<256x16xbf16>, vector<16x128xbf16>, vector<256x128xf32> -> vector<256x128xf32>
    %49 = arith.addf %45, %48 : vector<256x128xf32>
    %c0_21 = arith.constant 0 : index
    %c0_22 = arith.constant 0 : index
    %50 = vector.load %arg5[%c0_21, %c0_22] : memref<1x128xf32, #tpu.memory_space<vmem>>, vector<1x128xf32>
    %51 = vector.broadcast %50 : vector<1x128xf32> to vector<256x128xf32>
    %52 = arith.mulf %49, %51 : vector<256x128xf32>
    %c0_23 = arith.constant 0 : index
    %c0_24 = arith.constant 0 : index
    %53 = vector.load %arg6[%c0_23, %c0_24] : memref<1x128xf32, #tpu.memory_space<vmem>>, vector<1x128xf32>
    %54 = vector.broadcast %53 : vector<1x128xf32> to vector<256x128xf32>
    %55 = arith.addf %52, %54 : vector<256x128xf32>
    %cst_25 = arith.constant 2.000000e-01 : f32
    %56 = vector.broadcast %cst_25 : f32 to vector<256x128xf32>
    %57 = arith.mulf %56, %55 : vector<256x128xf32>
    %58 = arith.maximumf %55, %57 : vector<256x128xf32>
    %59 = vector.shape_cast %58 : vector<256x128xf32> to vector<16x16x128xf32>
    %60 = arith.truncf %59 : vector<16x16x128xf32> to vector<16x16x128xbf16>
    %c0_26 = arith.constant 0 : index
    %c0_27 = arith.constant 0 : index
    %c0_28 = arith.constant 0 : index
    %c0_29 = arith.constant 0 : index
    %61 = vector.load %arg7[%c0_26, %c0_27, %c0_28, %c0_29] : memref<1x16x16x128xbf16, #tpu.memory_space<vmem>>, vector<1x16x16x128xbf16>
    %62 = vector.shape_cast %61 : vector<1x16x16x128xbf16> to vector<16x16x128xbf16>
    %63 = vector.shape_cast %60 : vector<16x16x128xbf16> to vector<1x16x16x128xbf16>
    tpu.vector_store %arg7[%c0_26, %c0_27, %c0_28, %c0_29], %63 {strides = array<i32>} : memref<1x16x16x128xbf16, #tpu.memory_space<vmem>>, vector<1x16x16x128xbf16>,
    return
  }
  func.func @transform_0(%arg0: i32, %arg1: i32, %arg2: i32) -> (i32, i32, i32, i32) {
    %c0_i32 = arith.constant 0 : i32
    %c0_i32_0 = arith.constant 0 : i32
    %c0_i32_1 = arith.constant 0 : i32
    %c0_i32_2 = arith.constant 0 : i32
    return %arg1, %c0_i32, %c0_i32_0, %c0_i32_1 : i32, i32, i32, i32
  }
  func.func @transform_1(%arg0: i32, %arg1: i32, %arg2: i32) -> (i32, i32) {
    %c0_i32 = arith.constant 0 : i32
    %c0_i32_0 = arith.constant 0 : i32
    return %c0_i32, %arg0 : i32, i32
  }
  func.func @transform_2(%arg0: i32, %arg1: i32, %arg2: i32) -> (i32, i32) {
    %c0_i32 = arith.constant 0 : i32
    %c0_i32_0 = arith.constant 0 : i32
    return %c0_i32, %arg0 : i32, i32
  }
  func.func @transform_3(%arg0: i32, %arg1: i32, %arg2: i32) -> (i32, i32) {
    %c0_i32 = arith.constant 0 : i32
    %c0_i32_0 = arith.constant 0 : i32
    return %c0_i32, %arg0 : i32, i32
  }
  func.func @transform_4(%arg0: i32, %arg1: i32, %arg2: i32) -> (i32, i32, i32, i32) {
    %c0_i32 = arith.constant 0 : i32
    %c0_i32_0 = arith.constant 0 : i32
    return %arg1, %arg2, %c0_i32, %arg0 : i32, i32, i32, i32
  }
}

module attributes {stable_mosaic.version = 11 : i64} {
  func.func @_conv3x3_s2_kernel(%arg0: i32, %arg1: i32, %arg2: i32, %arg3: memref<1x9x17x128xbf16, #tpu.memory_space<vmem>>, %arg4: memref<1x9x17x128xbf16, #tpu.memory_space<vmem>>, %arg5: memref<1x9x17x128xbf16, #tpu.memory_space<vmem>>, %arg6: memref<1x9x17x128xbf16, #tpu.memory_space<vmem>>, %arg7: memref<1152x128xbf16, #tpu.memory_space<vmem>>, %arg8: memref<1x128xf32, #tpu.memory_space<vmem>>, %arg9: memref<1x128xf32, #tpu.memory_space<vmem>>, %arg10: memref<1x8x16x128xbf16, #tpu.memory_space<vmem>>) attributes {dimension_semantics = [#tpu.dimension_semantics<parallel>, #tpu.dimension_semantics<parallel>, #tpu.dimension_semantics<parallel>], iteration_bounds = array<i64: 1, 2, 1>, scalar_prefetch = 0 : i64, scratch_operands = 0 : i64, tpu.core_type = #tpu.core_type<tc>, window_params = [{transform_indices = @transform_0, window_bounds = array<i64: 1, 9, 17, 128>}, {transform_indices = @transform_1, window_bounds = array<i64: 1, 9, 17, 128>}, {transform_indices = @transform_2, window_bounds = array<i64: 1, 9, 17, 128>}, {transform_indices = @transform_3, window_bounds = array<i64: 1, 9, 17, 128>}, {transform_indices = @transform_4, window_bounds = array<i64: 1152, 128>}, {transform_indices = @transform_5, window_bounds = array<i64: 1, 128>}, {transform_indices = @transform_6, window_bounds = array<i64: 1, 128>}, {transform_indices = @transform_7, window_bounds = array<i64: 1, 8, 16, 128>}]} {
    %c8_i32 = arith.constant 8 : i32
    %0 = arith.muli %arg2, %c8_i32 : i32
    %c0 = arith.constant 0 : index
    %1 = arith.index_cast %0 : i32 to index
    %c0_0 = arith.constant 0 : index
    %c0_1 = arith.constant 0 : index
    %2 = vector.load %arg3[%c0, %1, %c0_0, %c0_1] : memref<1x9x17x128xbf16, #tpu.memory_space<vmem>>, vector<1x9x17x128xbf16>
    %3 = vector.shape_cast %2 : vector<1x9x17x128xbf16> to vector<9x17x128xbf16>
    %c0_2 = arith.constant 0 : index
    %4 = arith.index_cast %0 : i32 to index
    %c0_3 = arith.constant 0 : index
    %c0_4 = arith.constant 0 : index
    %5 = vector.load %arg4[%c0_2, %4, %c0_3, %c0_4] : memref<1x9x17x128xbf16, #tpu.memory_space<vmem>>, vector<1x9x17x128xbf16>
    %6 = vector.shape_cast %5 : vector<1x9x17x128xbf16> to vector<9x17x128xbf16>
    %c0_5 = arith.constant 0 : index
    %7 = arith.index_cast %0 : i32 to index
    %c0_6 = arith.constant 0 : index
    %c0_7 = arith.constant 0 : index
    %8 = vector.load %arg5[%c0_5, %7, %c0_6, %c0_7] : memref<1x9x17x128xbf16, #tpu.memory_space<vmem>>, vector<1x9x17x128xbf16>
    %9 = vector.shape_cast %8 : vector<1x9x17x128xbf16> to vector<9x17x128xbf16>
    %c0_8 = arith.constant 0 : index
    %10 = arith.index_cast %0 : i32 to index
    %c0_9 = arith.constant 0 : index
    %c0_10 = arith.constant 0 : index
    %11 = vector.load %arg6[%c0_8, %10, %c0_9, %c0_10] : memref<1x9x17x128xbf16, #tpu.memory_space<vmem>>, vector<1x9x17x128xbf16>
    %12 = vector.shape_cast %11 : vector<1x9x17x128xbf16> to vector<9x17x128xbf16>
    %13 = vector.extract_strided_slice %3 {offsets = [0, 0, 0], sizes = [8, 16, 128], strides = [1, 1, 1]} : vector<9x17x128xbf16> to vector<8x16x128xbf16>
    %14 = vector.extract_strided_slice %6 {offsets = [0, 0, 0], sizes = [8, 16, 128], strides = [1, 1, 1]} : vector<9x17x128xbf16> to vector<8x16x128xbf16>
    %15 = vector.extract_strided_slice %3 {offsets = [0, 1, 0], sizes = [8, 16, 128], strides = [1, 1, 1]} : vector<9x17x128xbf16> to vector<8x16x128xbf16>
    %16 = vector.extract_strided_slice %9 {offsets = [0, 0, 0], sizes = [8, 16, 128], strides = [1, 1, 1]} : vector<9x17x128xbf16> to vector<8x16x128xbf16>
    %17 = vector.extract_strided_slice %12 {offsets = [0, 0, 0], sizes = [8, 16, 128], strides = [1, 1, 1]} : vector<9x17x128xbf16> to vector<8x16x128xbf16>
    %18 = vector.extract_strided_slice %9 {offsets = [0, 1, 0], sizes = [8, 16, 128], strides = [1, 1, 1]} : vector<9x17x128xbf16> to vector<8x16x128xbf16>
    %19 = vector.extract_strided_slice %3 {offsets = [1, 0, 0], sizes = [8, 16, 128], strides = [1, 1, 1]} : vector<9x17x128xbf16> to vector<8x16x128xbf16>
    %20 = vector.extract_strided_slice %6 {offsets = [1, 0, 0], sizes = [8, 16, 128], strides = [1, 1, 1]} : vector<9x17x128xbf16> to vector<8x16x128xbf16>
    %21 = vector.extract_strided_slice %3 {offsets = [1, 1, 0], sizes = [8, 16, 128], strides = [1, 1, 1]} : vector<9x17x128xbf16> to vector<8x16x128xbf16>
    %22 = tpu.concatenate %13, %14, %15, %16, %17, %18, %19, %20, %21 in 2 : vector<8x16x128xbf16>, vector<8x16x128xbf16>, vector<8x16x128xbf16>, vector<8x16x128xbf16>, vector<8x16x128xbf16>, vector<8x16x128xbf16>, vector<8x16x128xbf16>, vector<8x16x128xbf16>, vector<8x16x128xbf16> -> vector<8x16x1152xbf16>
    %23 = vector.shape_cast %22 : vector<8x16x1152xbf16> to vector<128x1152xbf16>
    %c0_11 = arith.constant 0 : index
    %c0_12 = arith.constant 0 : index
    %24 = vector.load %arg7[%c0_11, %c0_12] : memref<1152x128xbf16, #tpu.memory_space<vmem>>, vector<1152x128xbf16>
    %cst = arith.constant dense<0.000000e+00> : vector<128x128xf32>
    %25 = tpu.matmul %23, %24, %cst {dimension_numbers = #tpu.dot_dimension_numbers<[1], [0], [0], [1], [0, 0, 1, 1], [], []>} : vector<128x1152xbf16>, vector<1152x128xbf16>, vector<128x128xf32> -> vector<128x128xf32>
    %c0_13 = arith.constant 0 : index
    %c0_14 = arith.constant 0 : index
    %26 = vector.load %arg8[%c0_13, %c0_14] : memref<1x128xf32, #tpu.memory_space<vmem>>, vector<1x128xf32>
    %27 = vector.broadcast %26 : vector<1x128xf32> to vector<128x128xf32>
    %28 = arith.mulf %25, %27 : vector<128x128xf32>
    %c0_15 = arith.constant 0 : index
    %c0_16 = arith.constant 0 : index
    %29 = vector.load %arg9[%c0_15, %c0_16] : memref<1x128xf32, #tpu.memory_space<vmem>>, vector<1x128xf32>
    %30 = vector.broadcast %29 : vector<1x128xf32> to vector<128x128xf32>
    %31 = arith.addf %28, %30 : vector<128x128xf32>
    %cst_17 = arith.constant 2.000000e-01 : f32
    %32 = vector.broadcast %cst_17 : f32 to vector<128x128xf32>
    %33 = arith.mulf %32, %31 : vector<128x128xf32>
    %34 = arith.maximumf %31, %33 : vector<128x128xf32>
    %35 = vector.shape_cast %34 : vector<128x128xf32> to vector<8x16x128xf32>
    %36 = tpu.iota {dimensions = array<i32: 1>} : vector<8x16x128xi32>
    %c8_i32_18 = arith.constant 8 : i32
    %37 = vector.broadcast %c8_i32_18 : i32 to vector<8x16x128xi32>
    %38 = arith.cmpi slt, %36, %37 : vector<8x16x128xi32>
    %cst_19 = arith.constant 0.000000e+00 : f32
    %39 = vector.broadcast %cst_19 : f32 to vector<8x16x128xf32>
    %40 = arith.select %38, %35, %39 : vector<8x16x128xi1>, vector<8x16x128xf32>
    %41 = arith.truncf %40 : vector<8x16x128xf32> to vector<8x16x128xbf16>
    %c0_20 = arith.constant 0 : index
    %c0_21 = arith.constant 0 : index
    %c0_22 = arith.constant 0 : index
    %c0_23 = arith.constant 0 : index
    %42 = vector.load %arg10[%c0_20, %c0_21, %c0_22, %c0_23] : memref<1x8x16x128xbf16, #tpu.memory_space<vmem>>, vector<1x8x16x128xbf16>
    %43 = vector.shape_cast %42 : vector<1x8x16x128xbf16> to vector<8x16x128xbf16>
    %44 = vector.shape_cast %41 : vector<8x16x128xbf16> to vector<1x8x16x128xbf16>
    tpu.vector_store %arg10[%c0_20, %c0_21, %c0_22, %c0_23], %44 {strides = array<i32>} : memref<1x8x16x128xbf16, #tpu.memory_space<vmem>>, vector<1x8x16x128xbf16>,
    return
  }
  func.func @transform_0(%arg0: i32, %arg1: i32, %arg2: i32) -> (i32, i32, i32, i32) {
    %c0_i32 = arith.constant 0 : i32
    %c0_i32_0 = arith.constant 0 : i32
    %c0_i32_1 = arith.constant 0 : i32
    %c0_i32_2 = arith.constant 0 : i32
    return %arg1, %c0_i32, %c0_i32_0, %c0_i32_1 : i32, i32, i32, i32
  }
  func.func @transform_1(%arg0: i32, %arg1: i32, %arg2: i32) -> (i32, i32, i32, i32) {
    %c0_i32 = arith.constant 0 : i32
    %c0_i32_0 = arith.constant 0 : i32
    %c0_i32_1 = arith.constant 0 : i32
    %c0_i32_2 = arith.constant 0 : i32
    return %arg1, %c0_i32, %c0_i32_0, %c0_i32_1 : i32, i32, i32, i32
  }
  func.func @transform_2(%arg0: i32, %arg1: i32, %arg2: i32) -> (i32, i32, i32, i32) {
    %c0_i32 = arith.constant 0 : i32
    %c0_i32_0 = arith.constant 0 : i32
    %c0_i32_1 = arith.constant 0 : i32
    %c0_i32_2 = arith.constant 0 : i32
    return %arg1, %c0_i32, %c0_i32_0, %c0_i32_1 : i32, i32, i32, i32
  }
  func.func @transform_3(%arg0: i32, %arg1: i32, %arg2: i32) -> (i32, i32, i32, i32) {
    %c0_i32 = arith.constant 0 : i32
    %c0_i32_0 = arith.constant 0 : i32
    %c0_i32_1 = arith.constant 0 : i32
    %c0_i32_2 = arith.constant 0 : i32
    return %arg1, %c0_i32, %c0_i32_0, %c0_i32_1 : i32, i32, i32, i32
  }
  func.func @transform_4(%arg0: i32, %arg1: i32, %arg2: i32) -> (i32, i32) {
    %c0_i32 = arith.constant 0 : i32
    %c0_i32_0 = arith.constant 0 : i32
    return %c0_i32, %arg0 : i32, i32
  }
  func.func @transform_5(%arg0: i32, %arg1: i32, %arg2: i32) -> (i32, i32) {
    %c0_i32 = arith.constant 0 : i32
    %c0_i32_0 = arith.constant 0 : i32
    return %c0_i32, %arg0 : i32, i32
  }
  func.func @transform_6(%arg0: i32, %arg1: i32, %arg2: i32) -> (i32, i32) {
    %c0_i32 = arith.constant 0 : i32
    %c0_i32_0 = arith.constant 0 : i32
    return %c0_i32, %arg0 : i32, i32
  }
  func.func @transform_7(%arg0: i32, %arg1: i32, %arg2: i32) -> (i32, i32, i32, i32) {
    %c0_i32 = arith.constant 0 : i32
    %c0_i32_0 = arith.constant 0 : i32
    return %arg1, %arg2, %c0_i32, %arg0 : i32, i32, i32, i32
  }
}

module attributes {stable_mosaic.version = 11 : i64} {
  func.func @_conv3x3_s1_kernel(%arg0: i32, %arg1: i32, %arg2: i32, %arg3: memref<1x10x18x128xbf16, #tpu.memory_space<vmem>>, %arg4: memref<1152x128xbf16, #tpu.memory_space<vmem>>, %arg5: memref<1x128xf32, #tpu.memory_space<vmem>>, %arg6: memref<1x128xf32, #tpu.memory_space<vmem>>, %arg7: memref<1x8x16x128xbf16, #tpu.memory_space<vmem>>) attributes {dimension_semantics = [#tpu.dimension_semantics<parallel>, #tpu.dimension_semantics<parallel>, #tpu.dimension_semantics<parallel>], iteration_bounds = array<i64: 1, 2, 1>, scalar_prefetch = 0 : i64, scratch_operands = 0 : i64, tpu.core_type = #tpu.core_type<tc>, window_params = [{transform_indices = @transform_0, window_bounds = array<i64: 1, 10, 18, 128>}, {transform_indices = @transform_1, window_bounds = array<i64: 1152, 128>}, {transform_indices = @transform_2, window_bounds = array<i64: 1, 128>}, {transform_indices = @transform_3, window_bounds = array<i64: 1, 128>}, {transform_indices = @transform_4, window_bounds = array<i64: 1, 8, 16, 128>}]} {
    %c8_i32 = arith.constant 8 : i32
    %0 = arith.muli %arg2, %c8_i32 : i32
    %c0 = arith.constant 0 : index
    %1 = arith.index_cast %0 : i32 to index
    %c0_0 = arith.constant 0 : index
    %c0_1 = arith.constant 0 : index
    %2 = vector.load %arg3[%c0, %1, %c0_0, %c0_1] : memref<1x10x18x128xbf16, #tpu.memory_space<vmem>>, vector<1x10x18x128xbf16>
    %3 = vector.shape_cast %2 : vector<1x10x18x128xbf16> to vector<10x18x128xbf16>
    %4 = vector.extract_strided_slice %3 {offsets = [0, 0, 0], sizes = [8, 16, 128], strides = [1, 1, 1]} : vector<10x18x128xbf16> to vector<8x16x128xbf16>
    %5 = vector.extract_strided_slice %3 {offsets = [0, 1, 0], sizes = [8, 16, 128], strides = [1, 1, 1]} : vector<10x18x128xbf16> to vector<8x16x128xbf16>
    %6 = vector.extract_strided_slice %3 {offsets = [0, 2, 0], sizes = [8, 16, 128], strides = [1, 1, 1]} : vector<10x18x128xbf16> to vector<8x16x128xbf16>
    %7 = vector.extract_strided_slice %3 {offsets = [1, 0, 0], sizes = [8, 16, 128], strides = [1, 1, 1]} : vector<10x18x128xbf16> to vector<8x16x128xbf16>
    %8 = vector.extract_strided_slice %3 {offsets = [1, 1, 0], sizes = [8, 16, 128], strides = [1, 1, 1]} : vector<10x18x128xbf16> to vector<8x16x128xbf16>
    %9 = vector.extract_strided_slice %3 {offsets = [1, 2, 0], sizes = [8, 16, 128], strides = [1, 1, 1]} : vector<10x18x128xbf16> to vector<8x16x128xbf16>
    %10 = vector.extract_strided_slice %3 {offsets = [2, 0, 0], sizes = [8, 16, 128], strides = [1, 1, 1]} : vector<10x18x128xbf16> to vector<8x16x128xbf16>
    %11 = vector.extract_strided_slice %3 {offsets = [2, 1, 0], sizes = [8, 16, 128], strides = [1, 1, 1]} : vector<10x18x128xbf16> to vector<8x16x128xbf16>
    %12 = vector.extract_strided_slice %3 {offsets = [2, 2, 0], sizes = [8, 16, 128], strides = [1, 1, 1]} : vector<10x18x128xbf16> to vector<8x16x128xbf16>
    %13 = tpu.concatenate %4, %5, %6, %7, %8, %9, %10, %11, %12 in 2 : vector<8x16x128xbf16>, vector<8x16x128xbf16>, vector<8x16x128xbf16>, vector<8x16x128xbf16>, vector<8x16x128xbf16>, vector<8x16x128xbf16>, vector<8x16x128xbf16>, vector<8x16x128xbf16>, vector<8x16x128xbf16> -> vector<8x16x1152xbf16>
    %14 = vector.shape_cast %13 : vector<8x16x1152xbf16> to vector<128x1152xbf16>
    %c0_2 = arith.constant 0 : index
    %c0_3 = arith.constant 0 : index
    %15 = vector.load %arg4[%c0_2, %c0_3] : memref<1152x128xbf16, #tpu.memory_space<vmem>>, vector<1152x128xbf16>
    %cst = arith.constant dense<0.000000e+00> : vector<128x128xf32>
    %16 = tpu.matmul %14, %15, %cst {dimension_numbers = #tpu.dot_dimension_numbers<[1], [0], [0], [1], [0, 0, 1, 1], [], []>} : vector<128x1152xbf16>, vector<1152x128xbf16>, vector<128x128xf32> -> vector<128x128xf32>
    %c0_4 = arith.constant 0 : index
    %c0_5 = arith.constant 0 : index
    %17 = vector.load %arg5[%c0_4, %c0_5] : memref<1x128xf32, #tpu.memory_space<vmem>>, vector<1x128xf32>
    %18 = vector.broadcast %17 : vector<1x128xf32> to vector<128x128xf32>
    %19 = arith.mulf %16, %18 : vector<128x128xf32>
    %c0_6 = arith.constant 0 : index
    %c0_7 = arith.constant 0 : index
    %20 = vector.load %arg6[%c0_6, %c0_7] : memref<1x128xf32, #tpu.memory_space<vmem>>, vector<1x128xf32>
    %21 = vector.broadcast %20 : vector<1x128xf32> to vector<128x128xf32>
    %22 = arith.addf %19, %21 : vector<128x128xf32>
    %cst_8 = arith.constant 2.000000e-01 : f32
    %23 = vector.broadcast %cst_8 : f32 to vector<128x128xf32>
    %24 = arith.mulf %23, %22 : vector<128x128xf32>
    %25 = arith.maximumf %22, %24 : vector<128x128xf32>
    %26 = vector.shape_cast %25 : vector<128x128xf32> to vector<8x16x128xf32>
    %27 = tpu.iota {dimensions = array<i32: 1>} : vector<8x16x128xi32>
    %c8_i32_9 = arith.constant 8 : i32
    %28 = vector.broadcast %c8_i32_9 : i32 to vector<8x16x128xi32>
    %29 = arith.cmpi slt, %27, %28 : vector<8x16x128xi32>
    %cst_10 = arith.constant 0.000000e+00 : f32
    %30 = vector.broadcast %cst_10 : f32 to vector<8x16x128xf32>
    %31 = arith.select %29, %26, %30 : vector<8x16x128xi1>, vector<8x16x128xf32>
    %32 = arith.truncf %31 : vector<8x16x128xf32> to vector<8x16x128xbf16>
    %c0_11 = arith.constant 0 : index
    %c0_12 = arith.constant 0 : index
    %c0_13 = arith.constant 0 : index
    %c0_14 = arith.constant 0 : index
    %33 = vector.load %arg7[%c0_11, %c0_12, %c0_13, %c0_14] : memref<1x8x16x128xbf16, #tpu.memory_space<vmem>>, vector<1x8x16x128xbf16>
    %34 = vector.shape_cast %33 : vector<1x8x16x128xbf16> to vector<8x16x128xbf16>
    %35 = vector.shape_cast %32 : vector<8x16x128xbf16> to vector<1x8x16x128xbf16>
    tpu.vector_store %arg7[%c0_11, %c0_12, %c0_13, %c0_14], %35 {strides = array<i32>} : memref<1x8x16x128xbf16, #tpu.memory_space<vmem>>, vector<1x8x16x128xbf16>,
    return
  }
  func.func @transform_0(%arg0: i32, %arg1: i32, %arg2: i32) -> (i32, i32, i32, i32) {
    %c0_i32 = arith.constant 0 : i32
    %c0_i32_0 = arith.constant 0 : i32
    %c0_i32_1 = arith.constant 0 : i32
    %c0_i32_2 = arith.constant 0 : i32
    return %arg1, %c0_i32, %c0_i32_0, %c0_i32_1 : i32, i32, i32, i32
  }
  func.func @transform_1(%arg0: i32, %arg1: i32, %arg2: i32) -> (i32, i32) {
    %c0_i32 = arith.constant 0 : i32
    %c0_i32_0 = arith.constant 0 : i32
    return %c0_i32, %arg0 : i32, i32
  }
  func.func @transform_2(%arg0: i32, %arg1: i32, %arg2: i32) -> (i32, i32) {
    %c0_i32 = arith.constant 0 : i32
    %c0_i32_0 = arith.constant 0 : i32
    return %c0_i32, %arg0 : i32, i32
  }
  func.func @transform_3(%arg0: i32, %arg1: i32, %arg2: i32) -> (i32, i32) {
    %c0_i32 = arith.constant 0 : i32
    %c0_i32_0 = arith.constant 0 : i32
    return %c0_i32, %arg0 : i32, i32
  }
  func.func @transform_4(%arg0: i32, %arg1: i32, %arg2: i32) -> (i32, i32, i32, i32) {
    %c0_i32 = arith.constant 0 : i32
    %c0_i32_0 = arith.constant 0 : i32
    return %arg1, %arg2, %c0_i32, %arg0 : i32, i32, i32, i32
  }
}

module attributes {stable_mosaic.version = 11 : i64} {
  func.func @_conv3x3_s2_kernel(%arg0: i32, %arg1: i32, %arg2: i32, %arg3: memref<1x5x17x128xbf16, #tpu.memory_space<vmem>>, %arg4: memref<1x5x17x128xbf16, #tpu.memory_space<vmem>>, %arg5: memref<1x5x17x128xbf16, #tpu.memory_space<vmem>>, %arg6: memref<1x5x17x128xbf16, #tpu.memory_space<vmem>>, %arg7: memref<1152x128xbf16, #tpu.memory_space<vmem>>, %arg8: memref<1x128xf32, #tpu.memory_space<vmem>>, %arg9: memref<1x128xf32, #tpu.memory_space<vmem>>, %arg10: memref<1x4x16x128xbf16, #tpu.memory_space<vmem>>) attributes {dimension_semantics = [#tpu.dimension_semantics<parallel>, #tpu.dimension_semantics<parallel>, #tpu.dimension_semantics<parallel>], iteration_bounds = array<i64: 1, 2, 1>, scalar_prefetch = 0 : i64, scratch_operands = 0 : i64, tpu.core_type = #tpu.core_type<tc>, window_params = [{transform_indices = @transform_0, window_bounds = array<i64: 1, 5, 17, 128>}, {transform_indices = @transform_1, window_bounds = array<i64: 1, 5, 17, 128>}, {transform_indices = @transform_2, window_bounds = array<i64: 1, 5, 17, 128>}, {transform_indices = @transform_3, window_bounds = array<i64: 1, 5, 17, 128>}, {transform_indices = @transform_4, window_bounds = array<i64: 1152, 128>}, {transform_indices = @transform_5, window_bounds = array<i64: 1, 128>}, {transform_indices = @transform_6, window_bounds = array<i64: 1, 128>}, {transform_indices = @transform_7, window_bounds = array<i64: 1, 4, 16, 128>}]} {
    %c4_i32 = arith.constant 4 : i32
    %0 = arith.muli %arg2, %c4_i32 : i32
    %c0 = arith.constant 0 : index
    %1 = arith.index_cast %0 : i32 to index
    %c0_0 = arith.constant 0 : index
    %c0_1 = arith.constant 0 : index
    %2 = vector.load %arg3[%c0, %1, %c0_0, %c0_1] : memref<1x5x17x128xbf16, #tpu.memory_space<vmem>>, vector<1x5x17x128xbf16>
    %3 = vector.shape_cast %2 : vector<1x5x17x128xbf16> to vector<5x17x128xbf16>
    %c0_2 = arith.constant 0 : index
    %4 = arith.index_cast %0 : i32 to index
    %c0_3 = arith.constant 0 : index
    %c0_4 = arith.constant 0 : index
    %5 = vector.load %arg4[%c0_2, %4, %c0_3, %c0_4] : memref<1x5x17x128xbf16, #tpu.memory_space<vmem>>, vector<1x5x17x128xbf16>
    %6 = vector.shape_cast %5 : vector<1x5x17x128xbf16> to vector<5x17x128xbf16>
    %c0_5 = arith.constant 0 : index
    %7 = arith.index_cast %0 : i32 to index
    %c0_6 = arith.constant 0 : index
    %c0_7 = arith.constant 0 : index
    %8 = vector.load %arg5[%c0_5, %7, %c0_6, %c0_7] : memref<1x5x17x128xbf16, #tpu.memory_space<vmem>>, vector<1x5x17x128xbf16>
    %9 = vector.shape_cast %8 : vector<1x5x17x128xbf16> to vector<5x17x128xbf16>
    %c0_8 = arith.constant 0 : index
    %10 = arith.index_cast %0 : i32 to index
    %c0_9 = arith.constant 0 : index
    %c0_10 = arith.constant 0 : index
    %11 = vector.load %arg6[%c0_8, %10, %c0_9, %c0_10] : memref<1x5x17x128xbf16, #tpu.memory_space<vmem>>, vector<1x5x17x128xbf16>
    %12 = vector.shape_cast %11 : vector<1x5x17x128xbf16> to vector<5x17x128xbf16>
    %13 = vector.extract_strided_slice %3 {offsets = [0, 0, 0], sizes = [4, 16, 128], strides = [1, 1, 1]} : vector<5x17x128xbf16> to vector<4x16x128xbf16>
    %14 = vector.extract_strided_slice %6 {offsets = [0, 0, 0], sizes = [4, 16, 128], strides = [1, 1, 1]} : vector<5x17x128xbf16> to vector<4x16x128xbf16>
    %15 = vector.extract_strided_slice %3 {offsets = [0, 1, 0], sizes = [4, 16, 128], strides = [1, 1, 1]} : vector<5x17x128xbf16> to vector<4x16x128xbf16>
    %16 = vector.extract_strided_slice %9 {offsets = [0, 0, 0], sizes = [4, 16, 128], strides = [1, 1, 1]} : vector<5x17x128xbf16> to vector<4x16x128xbf16>
    %17 = vector.extract_strided_slice %12 {offsets = [0, 0, 0], sizes = [4, 16, 128], strides = [1, 1, 1]} : vector<5x17x128xbf16> to vector<4x16x128xbf16>
    %18 = vector.extract_strided_slice %9 {offsets = [0, 1, 0], sizes = [4, 16, 128], strides = [1, 1, 1]} : vector<5x17x128xbf16> to vector<4x16x128xbf16>
    %19 = vector.extract_strided_slice %3 {offsets = [1, 0, 0], sizes = [4, 16, 128], strides = [1, 1, 1]} : vector<5x17x128xbf16> to vector<4x16x128xbf16>
    %20 = vector.extract_strided_slice %6 {offsets = [1, 0, 0], sizes = [4, 16, 128], strides = [1, 1, 1]} : vector<5x17x128xbf16> to vector<4x16x128xbf16>
    %21 = vector.extract_strided_slice %3 {offsets = [1, 1, 0], sizes = [4, 16, 128], strides = [1, 1, 1]} : vector<5x17x128xbf16> to vector<4x16x128xbf16>
    %22 = tpu.concatenate %13, %14, %15, %16, %17, %18, %19, %20, %21 in 2 : vector<4x16x128xbf16>, vector<4x16x128xbf16>, vector<4x16x128xbf16>, vector<4x16x128xbf16>, vector<4x16x128xbf16>, vector<4x16x128xbf16>, vector<4x16x128xbf16>, vector<4x16x128xbf16>, vector<4x16x128xbf16> -> vector<4x16x1152xbf16>
    %23 = vector.shape_cast %22 : vector<4x16x1152xbf16> to vector<64x1152xbf16>
    %c0_11 = arith.constant 0 : index
    %c0_12 = arith.constant 0 : index
    %24 = vector.load %arg7[%c0_11, %c0_12] : memref<1152x128xbf16, #tpu.memory_space<vmem>>, vector<1152x128xbf16>
    %cst = arith.constant dense<0.000000e+00> : vector<64x128xf32>
    %25 = tpu.matmul %23, %24, %cst {dimension_numbers = #tpu.dot_dimension_numbers<[1], [0], [0], [1], [0, 0, 1, 1], [], []>} : vector<64x1152xbf16>, vector<1152x128xbf16>, vector<64x128xf32> -> vector<64x128xf32>
    %c0_13 = arith.constant 0 : index
    %c0_14 = arith.constant 0 : index
    %26 = vector.load %arg8[%c0_13, %c0_14] : memref<1x128xf32, #tpu.memory_space<vmem>>, vector<1x128xf32>
    %27 = vector.broadcast %26 : vector<1x128xf32> to vector<64x128xf32>
    %28 = arith.mulf %25, %27 : vector<64x128xf32>
    %c0_15 = arith.constant 0 : index
    %c0_16 = arith.constant 0 : index
    %29 = vector.load %arg9[%c0_15, %c0_16] : memref<1x128xf32, #tpu.memory_space<vmem>>, vector<1x128xf32>
    %30 = vector.broadcast %29 : vector<1x128xf32> to vector<64x128xf32>
    %31 = arith.addf %28, %30 : vector<64x128xf32>
    %cst_17 = arith.constant 2.000000e-01 : f32
    %32 = vector.broadcast %cst_17 : f32 to vector<64x128xf32>
    %33 = arith.mulf %32, %31 : vector<64x128xf32>
    %34 = arith.maximumf %31, %33 : vector<64x128xf32>
    %35 = vector.shape_cast %34 : vector<64x128xf32> to vector<4x16x128xf32>
    %36 = tpu.iota {dimensions = array<i32: 1>} : vector<4x16x128xi32>
    %c4_i32_18 = arith.constant 4 : i32
    %37 = vector.broadcast %c4_i32_18 : i32 to vector<4x16x128xi32>
    %38 = arith.cmpi slt, %36, %37 : vector<4x16x128xi32>
    %cst_19 = arith.constant 0.000000e+00 : f32
    %39 = vector.broadcast %cst_19 : f32 to vector<4x16x128xf32>
    %40 = arith.select %38, %35, %39 : vector<4x16x128xi1>, vector<4x16x128xf32>
    %41 = arith.truncf %40 : vector<4x16x128xf32> to vector<4x16x128xbf16>
    %c0_20 = arith.constant 0 : index
    %c0_21 = arith.constant 0 : index
    %c0_22 = arith.constant 0 : index
    %c0_23 = arith.constant 0 : index
    %42 = vector.load %arg10[%c0_20, %c0_21, %c0_22, %c0_23] : memref<1x4x16x128xbf16, #tpu.memory_space<vmem>>, vector<1x4x16x128xbf16>
    %43 = vector.shape_cast %42 : vector<1x4x16x128xbf16> to vector<4x16x128xbf16>
    %44 = vector.shape_cast %41 : vector<4x16x128xbf16> to vector<1x4x16x128xbf16>
    tpu.vector_store %arg10[%c0_20, %c0_21, %c0_22, %c0_23], %44 {strides = array<i32>} : memref<1x4x16x128xbf16, #tpu.memory_space<vmem>>, vector<1x4x16x128xbf16>,
    return
  }
  func.func @transform_0(%arg0: i32, %arg1: i32, %arg2: i32) -> (i32, i32, i32, i32) {
    %c0_i32 = arith.constant 0 : i32
    %c0_i32_0 = arith.constant 0 : i32
    %c0_i32_1 = arith.constant 0 : i32
    %c0_i32_2 = arith.constant 0 : i32
    return %arg1, %c0_i32, %c0_i32_0, %c0_i32_1 : i32, i32, i32, i32
  }
  func.func @transform_1(%arg0: i32, %arg1: i32, %arg2: i32) -> (i32, i32, i32, i32) {
    %c0_i32 = arith.constant 0 : i32
    %c0_i32_0 = arith.constant 0 : i32
    %c0_i32_1 = arith.constant 0 : i32
    %c0_i32_2 = arith.constant 0 : i32
    return %arg1, %c0_i32, %c0_i32_0, %c0_i32_1 : i32, i32, i32, i32
  }
  func.func @transform_2(%arg0: i32, %arg1: i32, %arg2: i32) -> (i32, i32, i32, i32) {
    %c0_i32 = arith.constant 0 : i32
    %c0_i32_0 = arith.constant 0 : i32
    %c0_i32_1 = arith.constant 0 : i32
    %c0_i32_2 = arith.constant 0 : i32
    return %arg1, %c0_i32, %c0_i32_0, %c0_i32_1 : i32, i32, i32, i32
  }
  func.func @transform_3(%arg0: i32, %arg1: i32, %arg2: i32) -> (i32, i32, i32, i32) {
    %c0_i32 = arith.constant 0 : i32
    %c0_i32_0 = arith.constant 0 : i32
    %c0_i32_1 = arith.constant 0 : i32
    %c0_i32_2 = arith.constant 0 : i32
    return %arg1, %c0_i32, %c0_i32_0, %c0_i32_1 : i32, i32, i32, i32
  }
  func.func @transform_4(%arg0: i32, %arg1: i32, %arg2: i32) -> (i32, i32) {
    %c0_i32 = arith.constant 0 : i32
    %c0_i32_0 = arith.constant 0 : i32
    return %c0_i32, %arg0 : i32, i32
  }
  func.func @transform_5(%arg0: i32, %arg1: i32, %arg2: i32) -> (i32, i32) {
    %c0_i32 = arith.constant 0 : i32
    %c0_i32_0 = arith.constant 0 : i32
    return %c0_i32, %arg0 : i32, i32
  }
  func.func @transform_6(%arg0: i32, %arg1: i32, %arg2: i32) -> (i32, i32) {
    %c0_i32 = arith.constant 0 : i32
    %c0_i32_0 = arith.constant 0 : i32
    return %c0_i32, %arg0 : i32, i32
  }
  func.func @transform_7(%arg0: i32, %arg1: i32, %arg2: i32) -> (i32, i32, i32, i32) {
    %c0_i32 = arith.constant 0 : i32
    %c0_i32_0 = arith.constant 0 : i32
    return %arg1, %arg2, %c0_i32, %arg0 : i32, i32, i32, i32
  }
}

module attributes {stable_mosaic.version = 11 : i64} {
  func.func @_conv3x3_s1_kernel(%arg0: i32, %arg1: i32, %arg2: i32, %arg3: memref<1x6x18x128xbf16, #tpu.memory_space<vmem>>, %arg4: memref<1152x128xbf16, #tpu.memory_space<vmem>>, %arg5: memref<1x128xf32, #tpu.memory_space<vmem>>, %arg6: memref<1x128xf32, #tpu.memory_space<vmem>>, %arg7: memref<1x4x16x128xbf16, #tpu.memory_space<vmem>>) attributes {dimension_semantics = [#tpu.dimension_semantics<parallel>, #tpu.dimension_semantics<parallel>, #tpu.dimension_semantics<parallel>], iteration_bounds = array<i64: 1, 2, 1>, scalar_prefetch = 0 : i64, scratch_operands = 0 : i64, tpu.core_type = #tpu.core_type<tc>, window_params = [{transform_indices = @transform_0, window_bounds = array<i64: 1, 6, 18, 128>}, {transform_indices = @transform_1, window_bounds = array<i64: 1152, 128>}, {transform_indices = @transform_2, window_bounds = array<i64: 1, 128>}, {transform_indices = @transform_3, window_bounds = array<i64: 1, 128>}, {transform_indices = @transform_4, window_bounds = array<i64: 1, 4, 16, 128>}]} {
    %c4_i32 = arith.constant 4 : i32
    %0 = arith.muli %arg2, %c4_i32 : i32
    %c0 = arith.constant 0 : index
    %1 = arith.index_cast %0 : i32 to index
    %c0_0 = arith.constant 0 : index
    %c0_1 = arith.constant 0 : index
    %2 = vector.load %arg3[%c0, %1, %c0_0, %c0_1] : memref<1x6x18x128xbf16, #tpu.memory_space<vmem>>, vector<1x6x18x128xbf16>
    %3 = vector.shape_cast %2 : vector<1x6x18x128xbf16> to vector<6x18x128xbf16>
    %4 = vector.extract_strided_slice %3 {offsets = [0, 0, 0], sizes = [4, 16, 128], strides = [1, 1, 1]} : vector<6x18x128xbf16> to vector<4x16x128xbf16>
    %5 = vector.extract_strided_slice %3 {offsets = [0, 1, 0], sizes = [4, 16, 128], strides = [1, 1, 1]} : vector<6x18x128xbf16> to vector<4x16x128xbf16>
    %6 = vector.extract_strided_slice %3 {offsets = [0, 2, 0], sizes = [4, 16, 128], strides = [1, 1, 1]} : vector<6x18x128xbf16> to vector<4x16x128xbf16>
    %7 = vector.extract_strided_slice %3 {offsets = [1, 0, 0], sizes = [4, 16, 128], strides = [1, 1, 1]} : vector<6x18x128xbf16> to vector<4x16x128xbf16>
    %8 = vector.extract_strided_slice %3 {offsets = [1, 1, 0], sizes = [4, 16, 128], strides = [1, 1, 1]} : vector<6x18x128xbf16> to vector<4x16x128xbf16>
    %9 = vector.extract_strided_slice %3 {offsets = [1, 2, 0], sizes = [4, 16, 128], strides = [1, 1, 1]} : vector<6x18x128xbf16> to vector<4x16x128xbf16>
    %10 = vector.extract_strided_slice %3 {offsets = [2, 0, 0], sizes = [4, 16, 128], strides = [1, 1, 1]} : vector<6x18x128xbf16> to vector<4x16x128xbf16>
    %11 = vector.extract_strided_slice %3 {offsets = [2, 1, 0], sizes = [4, 16, 128], strides = [1, 1, 1]} : vector<6x18x128xbf16> to vector<4x16x128xbf16>
    %12 = vector.extract_strided_slice %3 {offsets = [2, 2, 0], sizes = [4, 16, 128], strides = [1, 1, 1]} : vector<6x18x128xbf16> to vector<4x16x128xbf16>
    %13 = tpu.concatenate %4, %5, %6, %7, %8, %9, %10, %11, %12 in 2 : vector<4x16x128xbf16>, vector<4x16x128xbf16>, vector<4x16x128xbf16>, vector<4x16x128xbf16>, vector<4x16x128xbf16>, vector<4x16x128xbf16>, vector<4x16x128xbf16>, vector<4x16x128xbf16>, vector<4x16x128xbf16> -> vector<4x16x1152xbf16>
    %14 = vector.shape_cast %13 : vector<4x16x1152xbf16> to vector<64x1152xbf16>
    %c0_2 = arith.constant 0 : index
    %c0_3 = arith.constant 0 : index
    %15 = vector.load %arg4[%c0_2, %c0_3] : memref<1152x128xbf16, #tpu.memory_space<vmem>>, vector<1152x128xbf16>
    %cst = arith.constant dense<0.000000e+00> : vector<64x128xf32>
    %16 = tpu.matmul %14, %15, %cst {dimension_numbers = #tpu.dot_dimension_numbers<[1], [0], [0], [1], [0, 0, 1, 1], [], []>} : vector<64x1152xbf16>, vector<1152x128xbf16>, vector<64x128xf32> -> vector<64x128xf32>
    %c0_4 = arith.constant 0 : index
    %c0_5 = arith.constant 0 : index
    %17 = vector.load %arg5[%c0_4, %c0_5] : memref<1x128xf32, #tpu.memory_space<vmem>>, vector<1x128xf32>
    %18 = vector.broadcast %17 : vector<1x128xf32> to vector<64x128xf32>
    %19 = arith.mulf %16, %18 : vector<64x128xf32>
    %c0_6 = arith.constant 0 : index
    %c0_7 = arith.constant 0 : index
    %20 = vector.load %arg6[%c0_6, %c0_7] : memref<1x128xf32, #tpu.memory_space<vmem>>, vector<1x128xf32>
    %21 = vector.broadcast %20 : vector<1x128xf32> to vector<64x128xf32>
    %22 = arith.addf %19, %21 : vector<64x128xf32>
    %cst_8 = arith.constant 2.000000e-01 : f32
    %23 = vector.broadcast %cst_8 : f32 to vector<64x128xf32>
    %24 = arith.mulf %23, %22 : vector<64x128xf32>
    %25 = arith.maximumf %22, %24 : vector<64x128xf32>
    %26 = vector.shape_cast %25 : vector<64x128xf32> to vector<4x16x128xf32>
    %27 = tpu.iota {dimensions = array<i32: 1>} : vector<4x16x128xi32>
    %c4_i32_9 = arith.constant 4 : i32
    %28 = vector.broadcast %c4_i32_9 : i32 to vector<4x16x128xi32>
    %29 = arith.cmpi slt, %27, %28 : vector<4x16x128xi32>
    %cst_10 = arith.constant 0.000000e+00 : f32
    %30 = vector.broadcast %cst_10 : f32 to vector<4x16x128xf32>
    %31 = arith.select %29, %26, %30 : vector<4x16x128xi1>, vector<4x16x128xf32>
    %32 = arith.truncf %31 : vector<4x16x128xf32> to vector<4x16x128xbf16>
    %c0_11 = arith.constant 0 : index
    %c0_12 = arith.constant 0 : index
    %c0_13 = arith.constant 0 : index
    %c0_14 = arith.constant 0 : index
    %33 = vector.load %arg7[%c0_11, %c0_12, %c0_13, %c0_14] : memref<1x4x16x128xbf16, #tpu.memory_space<vmem>>, vector<1x4x16x128xbf16>
    %34 = vector.shape_cast %33 : vector<1x4x16x128xbf16> to vector<4x16x128xbf16>
    %35 = vector.shape_cast %32 : vector<4x16x128xbf16> to vector<1x4x16x128xbf16>
    tpu.vector_store %arg7[%c0_11, %c0_12, %c0_13, %c0_14], %35 {strides = array<i32>} : memref<1x4x16x128xbf16, #tpu.memory_space<vmem>>, vector<1x4x16x128xbf16>,
    return
  }
  func.func @transform_0(%arg0: i32, %arg1: i32, %arg2: i32) -> (i32, i32, i32, i32) {
    %c0_i32 = arith.constant 0 : i32
    %c0_i32_0 = arith.constant 0 : i32
    %c0_i32_1 = arith.constant 0 : i32
    %c0_i32_2 = arith.constant 0 : i32
    return %arg1, %c0_i32, %c0_i32_0, %c0_i32_1 : i32, i32, i32, i32
  }
  func.func @transform_1(%arg0: i32, %arg1: i32, %arg2: i32) -> (i32, i32) {
    %c0_i32 = arith.constant 0 : i32
    %c0_i32_0 = arith.constant 0 : i32
    return %c0_i32, %arg0 : i32, i32
  }
  func.func @transform_2(%arg0: i32, %arg1: i32, %arg2: i32) -> (i32, i32) {
    %c0_i32 = arith.constant 0 : i32
    %c0_i32_0 = arith.constant 0 : i32
    return %c0_i32, %arg0 : i32, i32
  }
  func.func @transform_3(%arg0: i32, %arg1: i32, %arg2: i32) -> (i32, i32) {
    %c0_i32 = arith.constant 0 : i32
    %c0_i32_0 = arith.constant 0 : i32
    return %c0_i32, %arg0 : i32, i32
  }
  func.func @transform_4(%arg0: i32, %arg1: i32, %arg2: i32) -> (i32, i32, i32, i32) {
    %c0_i32 = arith.constant 0 : i32
    %c0_i32_0 = arith.constant 0 : i32
    return %arg1, %arg2, %c0_i32, %arg0 : i32, i32, i32, i32
  }
}

module attributes {stable_mosaic.version = 11 : i64} {
  func.func @_conv3x3_s1_kernel(%arg0: i32, %arg1: i32, %arg2: i32, %arg3: memref<1x4x18x128xbf16, #tpu.memory_space<vmem>>, %arg4: memref<1152x128xbf16, #tpu.memory_space<vmem>>, %arg5: memref<1x128xf32, #tpu.memory_space<vmem>>, %arg6: memref<1x128xf32, #tpu.memory_space<vmem>>, %arg7: memref<1x2x16x128xbf16, #tpu.memory_space<vmem>>) attributes {dimension_semantics = [#tpu.dimension_semantics<parallel>, #tpu.dimension_semantics<parallel>, #tpu.dimension_semantics<parallel>], iteration_bounds = array<i64: 1, 2, 1>, scalar_prefetch = 0 : i64, scratch_operands = 0 : i64, tpu.core_type = #tpu.core_type<tc>, window_params = [{transform_indices = @transform_0, window_bounds = array<i64: 1, 4, 18, 128>}, {transform_indices = @transform_1, window_bounds = array<i64: 1152, 128>}, {transform_indices = @transform_2, window_bounds = array<i64: 1, 128>}, {transform_indices = @transform_3, window_bounds = array<i64: 1, 128>}, {transform_indices = @transform_4, window_bounds = array<i64: 1, 2, 16, 128>}]} {
    %c2_i32 = arith.constant 2 : i32
    %0 = arith.muli %arg2, %c2_i32 : i32
    %c0 = arith.constant 0 : index
    %1 = arith.index_cast %0 : i32 to index
    %c0_0 = arith.constant 0 : index
    %c0_1 = arith.constant 0 : index
    %2 = vector.load %arg3[%c0, %1, %c0_0, %c0_1] : memref<1x4x18x128xbf16, #tpu.memory_space<vmem>>, vector<1x4x18x128xbf16>
    %3 = vector.shape_cast %2 : vector<1x4x18x128xbf16> to vector<4x18x128xbf16>
    %4 = vector.extract_strided_slice %3 {offsets = [0, 0, 0], sizes = [2, 16, 128], strides = [1, 1, 1]} : vector<4x18x128xbf16> to vector<2x16x128xbf16>
    %5 = vector.extract_strided_slice %3 {offsets = [0, 1, 0], sizes = [2, 16, 128], strides = [1, 1, 1]} : vector<4x18x128xbf16> to vector<2x16x128xbf16>
    %6 = vector.extract_strided_slice %3 {offsets = [0, 2, 0], sizes = [2, 16, 128], strides = [1, 1, 1]} : vector<4x18x128xbf16> to vector<2x16x128xbf16>
    %7 = vector.extract_strided_slice %3 {offsets = [1, 0, 0], sizes = [2, 16, 128], strides = [1, 1, 1]} : vector<4x18x128xbf16> to vector<2x16x128xbf16>
    %8 = vector.extract_strided_slice %3 {offsets = [1, 1, 0], sizes = [2, 16, 128], strides = [1, 1, 1]} : vector<4x18x128xbf16> to vector<2x16x128xbf16>
    %9 = vector.extract_strided_slice %3 {offsets = [1, 2, 0], sizes = [2, 16, 128], strides = [1, 1, 1]} : vector<4x18x128xbf16> to vector<2x16x128xbf16>
    %10 = vector.extract_strided_slice %3 {offsets = [2, 0, 0], sizes = [2, 16, 128], strides = [1, 1, 1]} : vector<4x18x128xbf16> to vector<2x16x128xbf16>
    %11 = vector.extract_strided_slice %3 {offsets = [2, 1, 0], sizes = [2, 16, 128], strides = [1, 1, 1]} : vector<4x18x128xbf16> to vector<2x16x128xbf16>
    %12 = vector.extract_strided_slice %3 {offsets = [2, 2, 0], sizes = [2, 16, 128], strides = [1, 1, 1]} : vector<4x18x128xbf16> to vector<2x16x128xbf16>
    %13 = tpu.concatenate %4, %5, %6, %7, %8, %9, %10, %11, %12 in 2 : vector<2x16x128xbf16>, vector<2x16x128xbf16>, vector<2x16x128xbf16>, vector<2x16x128xbf16>, vector<2x16x128xbf16>, vector<2x16x128xbf16>, vector<2x16x128xbf16>, vector<2x16x128xbf16>, vector<2x16x128xbf16> -> vector<2x16x1152xbf16>
    %14 = vector.shape_cast %13 : vector<2x16x1152xbf16> to vector<32x1152xbf16>
    %c0_2 = arith.constant 0 : index
    %c0_3 = arith.constant 0 : index
    %15 = vector.load %arg4[%c0_2, %c0_3] : memref<1152x128xbf16, #tpu.memory_space<vmem>>, vector<1152x128xbf16>
    %cst = arith.constant dense<0.000000e+00> : vector<32x128xf32>
    %16 = tpu.matmul %14, %15, %cst {dimension_numbers = #tpu.dot_dimension_numbers<[1], [0], [0], [1], [0, 0, 1, 1], [], []>} : vector<32x1152xbf16>, vector<1152x128xbf16>, vector<32x128xf32> -> vector<32x128xf32>
    %c0_4 = arith.constant 0 : index
    %c0_5 = arith.constant 0 : index
    %17 = vector.load %arg5[%c0_4, %c0_5] : memref<1x128xf32, #tpu.memory_space<vmem>>, vector<1x128xf32>
    %18 = vector.broadcast %17 : vector<1x128xf32> to vector<32x128xf32>
    %19 = arith.mulf %16, %18 : vector<32x128xf32>
    %c0_6 = arith.constant 0 : index
    %c0_7 = arith.constant 0 : index
    %20 = vector.load %arg6[%c0_6, %c0_7] : memref<1x128xf32, #tpu.memory_space<vmem>>, vector<1x128xf32>
    %21 = vector.broadcast %20 : vector<1x128xf32> to vector<32x128xf32>
    %22 = arith.addf %19, %21 : vector<32x128xf32>
    %cst_8 = arith.constant 2.000000e-01 : f32
    %23 = vector.broadcast %cst_8 : f32 to vector<32x128xf32>
    %24 = arith.mulf %23, %22 : vector<32x128xf32>
    %25 = arith.maximumf %22, %24 : vector<32x128xf32>
    %26 = vector.shape_cast %25 : vector<32x128xf32> to vector<2x16x128xf32>
    %27 = tpu.iota {dimensions = array<i32: 1>} : vector<2x16x128xi32>
    %c2_i32_9 = arith.constant 2 : i32
    %28 = vector.broadcast %c2_i32_9 : i32 to vector<2x16x128xi32>
    %29 = arith.cmpi slt, %27, %28 : vector<2x16x128xi32>
    %cst_10 = arith.constant 0.000000e+00 : f32
    %30 = vector.broadcast %cst_10 : f32 to vector<2x16x128xf32>
    %31 = arith.select %29, %26, %30 : vector<2x16x128xi1>, vector<2x16x128xf32>
    %32 = arith.truncf %31 : vector<2x16x128xf32> to vector<2x16x128xbf16>
    %c0_11 = arith.constant 0 : index
    %c0_12 = arith.constant 0 : index
    %c0_13 = arith.constant 0 : index
    %c0_14 = arith.constant 0 : index
    %33 = vector.load %arg7[%c0_11, %c0_12, %c0_13, %c0_14] : memref<1x2x16x128xbf16, #tpu.memory_space<vmem>>, vector<1x2x16x128xbf16>
    %34 = vector.shape_cast %33 : vector<1x2x16x128xbf16> to vector<2x16x128xbf16>
    %35 = vector.shape_cast %32 : vector<2x16x128xbf16> to vector<1x2x16x128xbf16>
    tpu.vector_store %arg7[%c0_11, %c0_12, %c0_13, %c0_14], %35 {strides = array<i32>} : memref<1x2x16x128xbf16, #tpu.memory_space<vmem>>, vector<1x2x16x128xbf16>,
    return
  }
  func.func @transform_0(%arg0: i32, %arg1: i32, %arg2: i32) -> (i32, i32, i32, i32) {
    %c0_i32 = arith.constant 0 : i32
    %c0_i32_0 = arith.constant 0 : i32
    %c0_i32_1 = arith.constant 0 : i32
    %c0_i32_2 = arith.constant 0 : i32
    return %arg1, %c0_i32, %c0_i32_0, %c0_i32_1 : i32, i32, i32, i32
  }
  func.func @transform_1(%arg0: i32, %arg1: i32, %arg2: i32) -> (i32, i32) {
    %c0_i32 = arith.constant 0 : i32
    %c0_i32_0 = arith.constant 0 : i32
    return %c0_i32, %arg0 : i32, i32
  }
  func.func @transform_2(%arg0: i32, %arg1: i32, %arg2: i32) -> (i32, i32) {
    %c0_i32 = arith.constant 0 : i32
    %c0_i32_0 = arith.constant 0 : i32
    return %c0_i32, %arg0 : i32, i32
  }
  func.func @transform_3(%arg0: i32, %arg1: i32, %arg2: i32) -> (i32, i32) {
    %c0_i32 = arith.constant 0 : i32
    %c0_i32_0 = arith.constant 0 : i32
    return %c0_i32, %arg0 : i32, i32
  }
  func.func @transform_4(%arg0: i32, %arg1: i32, %arg2: i32) -> (i32, i32, i32, i32) {
    %c0_i32 = arith.constant 0 : i32
    %c0_i32_0 = arith.constant 0 : i32
    return %arg1, %arg2, %c0_i32, %arg0 : i32, i32, i32, i32
  }
}

module attributes {stable_mosaic.version = 11 : i64} {
  func.func @_conv3x3_s2_kernel(%arg0: i32, %arg1: i32, %arg2: i32, %arg3: memref<1x3x17x128xbf16, #tpu.memory_space<vmem>>, %arg4: memref<1x3x17x128xbf16, #tpu.memory_space<vmem>>, %arg5: memref<1x3x17x128xbf16, #tpu.memory_space<vmem>>, %arg6: memref<1x3x17x128xbf16, #tpu.memory_space<vmem>>, %arg7: memref<1152x128xbf16, #tpu.memory_space<vmem>>, %arg8: memref<1x128xf32, #tpu.memory_space<vmem>>, %arg9: memref<1x128xf32, #tpu.memory_space<vmem>>, %arg10: memref<1x2x16x128xbf16, #tpu.memory_space<vmem>>) attributes {dimension_semantics = [#tpu.dimension_semantics<parallel>, #tpu.dimension_semantics<parallel>, #tpu.dimension_semantics<parallel>], iteration_bounds = array<i64: 1, 2, 1>, scalar_prefetch = 0 : i64, scratch_operands = 0 : i64, tpu.core_type = #tpu.core_type<tc>, window_params = [{transform_indices = @transform_0, window_bounds = array<i64: 1, 3, 17, 128>}, {transform_indices = @transform_1, window_bounds = array<i64: 1, 3, 17, 128>}, {transform_indices = @transform_2, window_bounds = array<i64: 1, 3, 17, 128>}, {transform_indices = @transform_3, window_bounds = array<i64: 1, 3, 17, 128>}, {transform_indices = @transform_4, window_bounds = array<i64: 1152, 128>}, {transform_indices = @transform_5, window_bounds = array<i64: 1, 128>}, {transform_indices = @transform_6, window_bounds = array<i64: 1, 128>}, {transform_indices = @transform_7, window_bounds = array<i64: 1, 2, 16, 128>}]} {
    %c2_i32 = arith.constant 2 : i32
    %0 = arith.muli %arg2, %c2_i32 : i32
    %c0 = arith.constant 0 : index
    %1 = arith.index_cast %0 : i32 to index
    %c0_0 = arith.constant 0 : index
    %c0_1 = arith.constant 0 : index
    %2 = vector.load %arg3[%c0, %1, %c0_0, %c0_1] : memref<1x3x17x128xbf16, #tpu.memory_space<vmem>>, vector<1x3x17x128xbf16>
    %3 = vector.shape_cast %2 : vector<1x3x17x128xbf16> to vector<3x17x128xbf16>
    %c0_2 = arith.constant 0 : index
    %4 = arith.index_cast %0 : i32 to index
    %c0_3 = arith.constant 0 : index
    %c0_4 = arith.constant 0 : index
    %5 = vector.load %arg4[%c0_2, %4, %c0_3, %c0_4] : memref<1x3x17x128xbf16, #tpu.memory_space<vmem>>, vector<1x3x17x128xbf16>
    %6 = vector.shape_cast %5 : vector<1x3x17x128xbf16> to vector<3x17x128xbf16>
    %c0_5 = arith.constant 0 : index
    %7 = arith.index_cast %0 : i32 to index
    %c0_6 = arith.constant 0 : index
    %c0_7 = arith.constant 0 : index
    %8 = vector.load %arg5[%c0_5, %7, %c0_6, %c0_7] : memref<1x3x17x128xbf16, #tpu.memory_space<vmem>>, vector<1x3x17x128xbf16>
    %9 = vector.shape_cast %8 : vector<1x3x17x128xbf16> to vector<3x17x128xbf16>
    %c0_8 = arith.constant 0 : index
    %10 = arith.index_cast %0 : i32 to index
    %c0_9 = arith.constant 0 : index
    %c0_10 = arith.constant 0 : index
    %11 = vector.load %arg6[%c0_8, %10, %c0_9, %c0_10] : memref<1x3x17x128xbf16, #tpu.memory_space<vmem>>, vector<1x3x17x128xbf16>
    %12 = vector.shape_cast %11 : vector<1x3x17x128xbf16> to vector<3x17x128xbf16>
    %13 = vector.extract_strided_slice %3 {offsets = [0, 0, 0], sizes = [2, 16, 128], strides = [1, 1, 1]} : vector<3x17x128xbf16> to vector<2x16x128xbf16>
    %14 = vector.extract_strided_slice %6 {offsets = [0, 0, 0], sizes = [2, 16, 128], strides = [1, 1, 1]} : vector<3x17x128xbf16> to vector<2x16x128xbf16>
    %15 = vector.extract_strided_slice %3 {offsets = [0, 1, 0], sizes = [2, 16, 128], strides = [1, 1, 1]} : vector<3x17x128xbf16> to vector<2x16x128xbf16>
    %16 = vector.extract_strided_slice %9 {offsets = [0, 0, 0], sizes = [2, 16, 128], strides = [1, 1, 1]} : vector<3x17x128xbf16> to vector<2x16x128xbf16>
    %17 = vector.extract_strided_slice %12 {offsets = [0, 0, 0], sizes = [2, 16, 128], strides = [1, 1, 1]} : vector<3x17x128xbf16> to vector<2x16x128xbf16>
    %18 = vector.extract_strided_slice %9 {offsets = [0, 1, 0], sizes = [2, 16, 128], strides = [1, 1, 1]} : vector<3x17x128xbf16> to vector<2x16x128xbf16>
    %19 = vector.extract_strided_slice %3 {offsets = [1, 0, 0], sizes = [2, 16, 128], strides = [1, 1, 1]} : vector<3x17x128xbf16> to vector<2x16x128xbf16>
    %20 = vector.extract_strided_slice %6 {offsets = [1, 0, 0], sizes = [2, 16, 128], strides = [1, 1, 1]} : vector<3x17x128xbf16> to vector<2x16x128xbf16>
    %21 = vector.extract_strided_slice %3 {offsets = [1, 1, 0], sizes = [2, 16, 128], strides = [1, 1, 1]} : vector<3x17x128xbf16> to vector<2x16x128xbf16>
    %22 = tpu.concatenate %13, %14, %15, %16, %17, %18, %19, %20, %21 in 2 : vector<2x16x128xbf16>, vector<2x16x128xbf16>, vector<2x16x128xbf16>, vector<2x16x128xbf16>, vector<2x16x128xbf16>, vector<2x16x128xbf16>, vector<2x16x128xbf16>, vector<2x16x128xbf16>, vector<2x16x128xbf16> -> vector<2x16x1152xbf16>
    %23 = vector.shape_cast %22 : vector<2x16x1152xbf16> to vector<32x1152xbf16>
    %c0_11 = arith.constant 0 : index
    %c0_12 = arith.constant 0 : index
    %24 = vector.load %arg7[%c0_11, %c0_12] : memref<1152x128xbf16, #tpu.memory_space<vmem>>, vector<1152x128xbf16>
    %cst = arith.constant dense<0.000000e+00> : vector<32x128xf32>
    %25 = tpu.matmul %23, %24, %cst {dimension_numbers = #tpu.dot_dimension_numbers<[1], [0], [0], [1], [0, 0, 1, 1], [], []>} : vector<32x1152xbf16>, vector<1152x128xbf16>, vector<32x128xf32> -> vector<32x128xf32>
    %c0_13 = arith.constant 0 : index
    %c0_14 = arith.constant 0 : index
    %26 = vector.load %arg8[%c0_13, %c0_14] : memref<1x128xf32, #tpu.memory_space<vmem>>, vector<1x128xf32>
    %27 = vector.broadcast %26 : vector<1x128xf32> to vector<32x128xf32>
    %28 = arith.mulf %25, %27 : vector<32x128xf32>
    %c0_15 = arith.constant 0 : index
    %c0_16 = arith.constant 0 : index
    %29 = vector.load %arg9[%c0_15, %c0_16] : memref<1x128xf32, #tpu.memory_space<vmem>>, vector<1x128xf32>
    %30 = vector.broadcast %29 : vector<1x128xf32> to vector<32x128xf32>
    %31 = arith.addf %28, %30 : vector<32x128xf32>
    %cst_17 = arith.constant 2.000000e-01 : f32
    %32 = vector.broadcast %cst_17 : f32 to vector<32x128xf32>
    %33 = arith.mulf %32, %31 : vector<32x128xf32>
    %34 = arith.maximumf %31, %33 : vector<32x128xf32>
    %35 = vector.shape_cast %34 : vector<32x128xf32> to vector<2x16x128xf32>
    %36 = tpu.iota {dimensions = array<i32: 1>} : vector<2x16x128xi32>
    %c2_i32_18 = arith.constant 2 : i32
    %37 = vector.broadcast %c2_i32_18 : i32 to vector<2x16x128xi32>
    %38 = arith.cmpi slt, %36, %37 : vector<2x16x128xi32>
    %cst_19 = arith.constant 0.000000e+00 : f32
    %39 = vector.broadcast %cst_19 : f32 to vector<2x16x128xf32>
    %40 = arith.select %38, %35, %39 : vector<2x16x128xi1>, vector<2x16x128xf32>
    %41 = arith.truncf %40 : vector<2x16x128xf32> to vector<2x16x128xbf16>
    %c0_20 = arith.constant 0 : index
    %c0_21 = arith.constant 0 : index
    %c0_22 = arith.constant 0 : index
    %c0_23 = arith.constant 0 : index
    %42 = vector.load %arg10[%c0_20, %c0_21, %c0_22, %c0_23] : memref<1x2x16x128xbf16, #tpu.memory_space<vmem>>, vector<1x2x16x128xbf16>
    %43 = vector.shape_cast %42 : vector<1x2x16x128xbf16> to vector<2x16x128xbf16>
    %44 = vector.shape_cast %41 : vector<2x16x128xbf16> to vector<1x2x16x128xbf16>
    tpu.vector_store %arg10[%c0_20, %c0_21, %c0_22, %c0_23], %44 {strides = array<i32>} : memref<1x2x16x128xbf16, #tpu.memory_space<vmem>>, vector<1x2x16x128xbf16>,
    return
  }
  func.func @transform_0(%arg0: i32, %arg1: i32, %arg2: i32) -> (i32, i32, i32, i32) {
    %c0_i32 = arith.constant 0 : i32
    %c0_i32_0 = arith.constant 0 : i32
    %c0_i32_1 = arith.constant 0 : i32
    %c0_i32_2 = arith.constant 0 : i32
    return %arg1, %c0_i32, %c0_i32_0, %c0_i32_1 : i32, i32, i32, i32
  }
  func.func @transform_1(%arg0: i32, %arg1: i32, %arg2: i32) -> (i32, i32, i32, i32) {
    %c0_i32 = arith.constant 0 : i32
    %c0_i32_0 = arith.constant 0 : i32
    %c0_i32_1 = arith.constant 0 : i32
    %c0_i32_2 = arith.constant 0 : i32
    return %arg1, %c0_i32, %c0_i32_0, %c0_i32_1 : i32, i32, i32, i32
  }
  func.func @transform_2(%arg0: i32, %arg1: i32, %arg2: i32) -> (i32, i32, i32, i32) {
    %c0_i32 = arith.constant 0 : i32
    %c0_i32_0 = arith.constant 0 : i32
    %c0_i32_1 = arith.constant 0 : i32
    %c0_i32_2 = arith.constant 0 : i32
    return %arg1, %c0_i32, %c0_i32_0, %c0_i32_1 : i32, i32, i32, i32
  }
  func.func @transform_3(%arg0: i32, %arg1: i32, %arg2: i32) -> (i32, i32, i32, i32) {
    %c0_i32 = arith.constant 0 : i32
    %c0_i32_0 = arith.constant 0 : i32
    %c0_i32_1 = arith.constant 0 : i32
    %c0_i32_2 = arith.constant 0 : i32
    return %arg1, %c0_i32, %c0_i32_0, %c0_i32_1 : i32, i32, i32, i32
  }
  func.func @transform_4(%arg0: i32, %arg1: i32, %arg2: i32) -> (i32, i32) {
    %c0_i32 = arith.constant 0 : i32
    %c0_i32_0 = arith.constant 0 : i32
    return %c0_i32, %arg0 : i32, i32
  }
  func.func @transform_5(%arg0: i32, %arg1: i32, %arg2: i32) -> (i32, i32) {
    %c0_i32 = arith.constant 0 : i32
    %c0_i32_0 = arith.constant 0 : i32
    return %c0_i32, %arg0 : i32, i32
  }
  func.func @transform_6(%arg0: i32, %arg1: i32, %arg2: i32) -> (i32, i32) {
    %c0_i32 = arith.constant 0 : i32
    %c0_i32_0 = arith.constant 0 : i32
    return %c0_i32, %arg0 : i32, i32
  }
  func.func @transform_7(%arg0: i32, %arg1: i32, %arg2: i32) -> (i32, i32, i32, i32) {
    %c0_i32 = arith.constant 0 : i32
    %c0_i32_0 = arith.constant 0 : i32
    return %arg1, %arg2, %c0_i32, %arg0 : i32, i32, i32, i32
  }
}

module attributes {stable_mosaic.version = 11 : i64} {
  func.func @_conv3x3_s2_kernel(%arg0: i32, %arg1: i32, %arg2: i32, %arg3: memref<1x2x17x128xbf16, #tpu.memory_space<vmem>>, %arg4: memref<1x2x17x128xbf16, #tpu.memory_space<vmem>>, %arg5: memref<1x2x17x128xbf16, #tpu.memory_space<vmem>>, %arg6: memref<1x2x17x128xbf16, #tpu.memory_space<vmem>>, %arg7: memref<1152x128xbf16, #tpu.memory_space<vmem>>, %arg8: memref<1x128xf32, #tpu.memory_space<vmem>>, %arg9: memref<1x128xf32, #tpu.memory_space<vmem>>, %arg10: memref<1x1x16x128xbf16, #tpu.memory_space<vmem>>) attributes {dimension_semantics = [#tpu.dimension_semantics<parallel>, #tpu.dimension_semantics<parallel>, #tpu.dimension_semantics<parallel>], iteration_bounds = array<i64: 1, 2, 1>, scalar_prefetch = 0 : i64, scratch_operands = 0 : i64, tpu.core_type = #tpu.core_type<tc>, window_params = [{transform_indices = @transform_0, window_bounds = array<i64: 1, 2, 17, 128>}, {transform_indices = @transform_1, window_bounds = array<i64: 1, 2, 17, 128>}, {transform_indices = @transform_2, window_bounds = array<i64: 1, 2, 17, 128>}, {transform_indices = @transform_3, window_bounds = array<i64: 1, 2, 17, 128>}, {transform_indices = @transform_4, window_bounds = array<i64: 1152, 128>}, {transform_indices = @transform_5, window_bounds = array<i64: 1, 128>}, {transform_indices = @transform_6, window_bounds = array<i64: 1, 128>}, {transform_indices = @transform_7, window_bounds = array<i64: 1, 1, 16, 128>}]} {
    %c1_i32 = arith.constant 1 : i32
    %0 = arith.muli %arg2, %c1_i32 : i32
    %c0 = arith.constant 0 : index
    %1 = arith.index_cast %0 : i32 to index
    %c0_0 = arith.constant 0 : index
    %c0_1 = arith.constant 0 : index
    %2 = vector.load %arg3[%c0, %1, %c0_0, %c0_1] : memref<1x2x17x128xbf16, #tpu.memory_space<vmem>>, vector<1x2x17x128xbf16>
    %3 = vector.shape_cast %2 : vector<1x2x17x128xbf16> to vector<2x17x128xbf16>
    %c0_2 = arith.constant 0 : index
    %4 = arith.index_cast %0 : i32 to index
    %c0_3 = arith.constant 0 : index
    %c0_4 = arith.constant 0 : index
    %5 = vector.load %arg4[%c0_2, %4, %c0_3, %c0_4] : memref<1x2x17x128xbf16, #tpu.memory_space<vmem>>, vector<1x2x17x128xbf16>
    %6 = vector.shape_cast %5 : vector<1x2x17x128xbf16> to vector<2x17x128xbf16>
    %c0_5 = arith.constant 0 : index
    %7 = arith.index_cast %0 : i32 to index
    %c0_6 = arith.constant 0 : index
    %c0_7 = arith.constant 0 : index
    %8 = vector.load %arg5[%c0_5, %7, %c0_6, %c0_7] : memref<1x2x17x128xbf16, #tpu.memory_space<vmem>>, vector<1x2x17x128xbf16>
    %9 = vector.shape_cast %8 : vector<1x2x17x128xbf16> to vector<2x17x128xbf16>
    %c0_8 = arith.constant 0 : index
    %10 = arith.index_cast %0 : i32 to index
    %c0_9 = arith.constant 0 : index
    %c0_10 = arith.constant 0 : index
    %11 = vector.load %arg6[%c0_8, %10, %c0_9, %c0_10] : memref<1x2x17x128xbf16, #tpu.memory_space<vmem>>, vector<1x2x17x128xbf16>
    %12 = vector.shape_cast %11 : vector<1x2x17x128xbf16> to vector<2x17x128xbf16>
    %13 = vector.extract_strided_slice %3 {offsets = [0, 0, 0], sizes = [1, 16, 128], strides = [1, 1, 1]} : vector<2x17x128xbf16> to vector<1x16x128xbf16>
    %14 = vector.extract_strided_slice %6 {offsets = [0, 0, 0], sizes = [1, 16, 128], strides = [1, 1, 1]} : vector<2x17x128xbf16> to vector<1x16x128xbf16>
    %15 = vector.extract_strided_slice %3 {offsets = [0, 1, 0], sizes = [1, 16, 128], strides = [1, 1, 1]} : vector<2x17x128xbf16> to vector<1x16x128xbf16>
    %16 = vector.extract_strided_slice %9 {offsets = [0, 0, 0], sizes = [1, 16, 128], strides = [1, 1, 1]} : vector<2x17x128xbf16> to vector<1x16x128xbf16>
    %17 = vector.extract_strided_slice %12 {offsets = [0, 0, 0], sizes = [1, 16, 128], strides = [1, 1, 1]} : vector<2x17x128xbf16> to vector<1x16x128xbf16>
    %18 = vector.extract_strided_slice %9 {offsets = [0, 1, 0], sizes = [1, 16, 128], strides = [1, 1, 1]} : vector<2x17x128xbf16> to vector<1x16x128xbf16>
    %19 = vector.extract_strided_slice %3 {offsets = [1, 0, 0], sizes = [1, 16, 128], strides = [1, 1, 1]} : vector<2x17x128xbf16> to vector<1x16x128xbf16>
    %20 = vector.extract_strided_slice %6 {offsets = [1, 0, 0], sizes = [1, 16, 128], strides = [1, 1, 1]} : vector<2x17x128xbf16> to vector<1x16x128xbf16>
    %21 = vector.extract_strided_slice %3 {offsets = [1, 1, 0], sizes = [1, 16, 128], strides = [1, 1, 1]} : vector<2x17x128xbf16> to vector<1x16x128xbf16>
    %22 = tpu.concatenate %13, %14, %15, %16, %17, %18, %19, %20, %21 in 2 : vector<1x16x128xbf16>, vector<1x16x128xbf16>, vector<1x16x128xbf16>, vector<1x16x128xbf16>, vector<1x16x128xbf16>, vector<1x16x128xbf16>, vector<1x16x128xbf16>, vector<1x16x128xbf16>, vector<1x16x128xbf16> -> vector<1x16x1152xbf16>
    %23 = vector.shape_cast %22 : vector<1x16x1152xbf16> to vector<16x1152xbf16>
    %c0_11 = arith.constant 0 : index
    %c0_12 = arith.constant 0 : index
    %24 = vector.load %arg7[%c0_11, %c0_12] : memref<1152x128xbf16, #tpu.memory_space<vmem>>, vector<1152x128xbf16>
    %cst = arith.constant dense<0.000000e+00> : vector<16x128xf32>
    %25 = tpu.matmul %23, %24, %cst {dimension_numbers = #tpu.dot_dimension_numbers<[1], [0], [0], [1], [0, 0, 1, 1], [], []>} : vector<16x1152xbf16>, vector<1152x128xbf16>, vector<16x128xf32> -> vector<16x128xf32>
    %c0_13 = arith.constant 0 : index
    %c0_14 = arith.constant 0 : index
    %26 = vector.load %arg8[%c0_13, %c0_14] : memref<1x128xf32, #tpu.memory_space<vmem>>, vector<1x128xf32>
    %27 = vector.broadcast %26 : vector<1x128xf32> to vector<16x128xf32>
    %28 = arith.mulf %25, %27 : vector<16x128xf32>
    %c0_15 = arith.constant 0 : index
    %c0_16 = arith.constant 0 : index
    %29 = vector.load %arg9[%c0_15, %c0_16] : memref<1x128xf32, #tpu.memory_space<vmem>>, vector<1x128xf32>
    %30 = vector.broadcast %29 : vector<1x128xf32> to vector<16x128xf32>
    %31 = arith.addf %28, %30 : vector<16x128xf32>
    %cst_17 = arith.constant 2.000000e-01 : f32
    %32 = vector.broadcast %cst_17 : f32 to vector<16x128xf32>
    %33 = arith.mulf %32, %31 : vector<16x128xf32>
    %34 = arith.maximumf %31, %33 : vector<16x128xf32>
    %35 = vector.shape_cast %34 : vector<16x128xf32> to vector<1x16x128xf32>
    %36 = tpu.iota {dimensions = array<i32: 1>} : vector<1x16x128xi32>
    %c1_i32_18 = arith.constant 1 : i32
    %37 = vector.broadcast %c1_i32_18 : i32 to vector<1x16x128xi32>
    %38 = arith.cmpi slt, %36, %37 : vector<1x16x128xi32>
    %cst_19 = arith.constant 0.000000e+00 : f32
    %39 = vector.broadcast %cst_19 : f32 to vector<1x16x128xf32>
    %40 = arith.select %38, %35, %39 : vector<1x16x128xi1>, vector<1x16x128xf32>
    %41 = arith.truncf %40 : vector<1x16x128xf32> to vector<1x16x128xbf16>
    %c0_20 = arith.constant 0 : index
    %c0_21 = arith.constant 0 : index
    %c0_22 = arith.constant 0 : index
    %c0_23 = arith.constant 0 : index
    %42 = vector.load %arg10[%c0_20, %c0_21, %c0_22, %c0_23] : memref<1x1x16x128xbf16, #tpu.memory_space<vmem>>, vector<1x1x16x128xbf16>
    %43 = vector.shape_cast %42 : vector<1x1x16x128xbf16> to vector<1x16x128xbf16>
    %44 = vector.shape_cast %41 : vector<1x16x128xbf16> to vector<1x1x16x128xbf16>
    tpu.vector_store %arg10[%c0_20, %c0_21, %c0_22, %c0_23], %44 {strides = array<i32>} : memref<1x1x16x128xbf16, #tpu.memory_space<vmem>>, vector<1x1x16x128xbf16>,
    return
  }
  func.func @transform_0(%arg0: i32, %arg1: i32, %arg2: i32) -> (i32, i32, i32, i32) {
    %c0_i32 = arith.constant 0 : i32
    %c0_i32_0 = arith.constant 0 : i32
    %c0_i32_1 = arith.constant 0 : i32
    %c0_i32_2 = arith.constant 0 : i32
    return %arg1, %c0_i32, %c0_i32_0, %c0_i32_1 : i32, i32, i32, i32
  }
  func.func @transform_1(%arg0: i32, %arg1: i32, %arg2: i32) -> (i32, i32, i32, i32) {
    %c0_i32 = arith.constant 0 : i32
    %c0_i32_0 = arith.constant 0 : i32
    %c0_i32_1 = arith.constant 0 : i32
    %c0_i32_2 = arith.constant 0 : i32
    return %arg1, %c0_i32, %c0_i32_0, %c0_i32_1 : i32, i32, i32, i32
  }
  func.func @transform_2(%arg0: i32, %arg1: i32, %arg2: i32) -> (i32, i32, i32, i32) {
    %c0_i32 = arith.constant 0 : i32
    %c0_i32_0 = arith.constant 0 : i32
    %c0_i32_1 = arith.constant 0 : i32
    %c0_i32_2 = arith.constant 0 : i32
    return %arg1, %c0_i32, %c0_i32_0, %c0_i32_1 : i32, i32, i32, i32
  }
  func.func @transform_3(%arg0: i32, %arg1: i32, %arg2: i32) -> (i32, i32, i32, i32) {
    %c0_i32 = arith.constant 0 : i32
    %c0_i32_0 = arith.constant 0 : i32
    %c0_i32_1 = arith.constant 0 : i32
    %c0_i32_2 = arith.constant 0 : i32
    return %arg1, %c0_i32, %c0_i32_0, %c0_i32_1 : i32, i32, i32, i32
  }
  func.func @transform_4(%arg0: i32, %arg1: i32, %arg2: i32) -> (i32, i32) {
    %c0_i32 = arith.constant 0 : i32
    %c0_i32_0 = arith.constant 0 : i32
    return %c0_i32, %arg0 : i32, i32
  }
  func.func @transform_5(%arg0: i32, %arg1: i32, %arg2: i32) -> (i32, i32) {
    %c0_i32 = arith.constant 0 : i32
    %c0_i32_0 = arith.constant 0 : i32
    return %c0_i32, %arg0 : i32, i32
  }
  func.func @transform_6(%arg0: i32, %arg1: i32, %arg2: i32) -> (i32, i32) {
    %c0_i32 = arith.constant 0 : i32
    %c0_i32_0 = arith.constant 0 : i32
    return %c0_i32, %arg0 : i32, i32
  }
  func.func @transform_7(%arg0: i32, %arg1: i32, %arg2: i32) -> (i32, i32, i32, i32) {
    %c0_i32 = arith.constant 0 : i32
    %c0_i32_0 = arith.constant 0 : i32
    return %arg1, %arg2, %c0_i32, %arg0 : i32, i32, i32, i32
  }
}

module attributes {stable_mosaic.version = 11 : i64} {
  func.func @_conv3x3_s1_kernel(%arg0: i32, %arg1: i32, %arg2: i32, %arg3: memref<1x3x18x128xbf16, #tpu.memory_space<vmem>>, %arg4: memref<1152x128xbf16, #tpu.memory_space<vmem>>, %arg5: memref<1x128xf32, #tpu.memory_space<vmem>>, %arg6: memref<1x128xf32, #tpu.memory_space<vmem>>, %arg7: memref<1x1x16x128xbf16, #tpu.memory_space<vmem>>) attributes {dimension_semantics = [#tpu.dimension_semantics<parallel>, #tpu.dimension_semantics<parallel>, #tpu.dimension_semantics<parallel>], iteration_bounds = array<i64: 1, 2, 1>, scalar_prefetch = 0 : i64, scratch_operands = 0 : i64, tpu.core_type = #tpu.core_type<tc>, window_params = [{transform_indices = @transform_0, window_bounds = array<i64: 1, 3, 18, 128>}, {transform_indices = @transform_1, window_bounds = array<i64: 1152, 128>}, {transform_indices = @transform_2, window_bounds = array<i64: 1, 128>}, {transform_indices = @transform_3, window_bounds = array<i64: 1, 128>}, {transform_indices = @transform_4, window_bounds = array<i64: 1, 1, 16, 128>}]} {
    %c1_i32 = arith.constant 1 : i32
    %0 = arith.muli %arg2, %c1_i32 : i32
    %c0 = arith.constant 0 : index
    %1 = arith.index_cast %0 : i32 to index
    %c0_0 = arith.constant 0 : index
    %c0_1 = arith.constant 0 : index
    %2 = vector.load %arg3[%c0, %1, %c0_0, %c0_1] : memref<1x3x18x128xbf16, #tpu.memory_space<vmem>>, vector<1x3x18x128xbf16>
    %3 = vector.shape_cast %2 : vector<1x3x18x128xbf16> to vector<3x18x128xbf16>
    %4 = vector.extract_strided_slice %3 {offsets = [0, 0, 0], sizes = [1, 16, 128], strides = [1, 1, 1]} : vector<3x18x128xbf16> to vector<1x16x128xbf16>
    %5 = vector.extract_strided_slice %3 {offsets = [0, 1, 0], sizes = [1, 16, 128], strides = [1, 1, 1]} : vector<3x18x128xbf16> to vector<1x16x128xbf16>
    %6 = vector.extract_strided_slice %3 {offsets = [0, 2, 0], sizes = [1, 16, 128], strides = [1, 1, 1]} : vector<3x18x128xbf16> to vector<1x16x128xbf16>
    %7 = vector.extract_strided_slice %3 {offsets = [1, 0, 0], sizes = [1, 16, 128], strides = [1, 1, 1]} : vector<3x18x128xbf16> to vector<1x16x128xbf16>
    %8 = vector.extract_strided_slice %3 {offsets = [1, 1, 0], sizes = [1, 16, 128], strides = [1, 1, 1]} : vector<3x18x128xbf16> to vector<1x16x128xbf16>
    %9 = vector.extract_strided_slice %3 {offsets = [1, 2, 0], sizes = [1, 16, 128], strides = [1, 1, 1]} : vector<3x18x128xbf16> to vector<1x16x128xbf16>
    %10 = vector.extract_strided_slice %3 {offsets = [2, 0, 0], sizes = [1, 16, 128], strides = [1, 1, 1]} : vector<3x18x128xbf16> to vector<1x16x128xbf16>
    %11 = vector.extract_strided_slice %3 {offsets = [2, 1, 0], sizes = [1, 16, 128], strides = [1, 1, 1]} : vector<3x18x128xbf16> to vector<1x16x128xbf16>
    %12 = vector.extract_strided_slice %3 {offsets = [2, 2, 0], sizes = [1, 16, 128], strides = [1, 1, 1]} : vector<3x18x128xbf16> to vector<1x16x128xbf16>
    %13 = tpu.concatenate %4, %5, %6, %7, %8, %9, %10, %11, %12 in 2 : vector<1x16x128xbf16>, vector<1x16x128xbf16>, vector<1x16x128xbf16>, vector<1x16x128xbf16>, vector<1x16x128xbf16>, vector<1x16x128xbf16>, vector<1x16x128xbf16>, vector<1x16x128xbf16>, vector<1x16x128xbf16> -> vector<1x16x1152xbf16>
    %14 = vector.shape_cast %13 : vector<1x16x1152xbf16> to vector<16x1152xbf16>
    %c0_2 = arith.constant 0 : index
    %c0_3 = arith.constant 0 : index
    %15 = vector.load %arg4[%c0_2, %c0_3] : memref<1152x128xbf16, #tpu.memory_space<vmem>>, vector<1152x128xbf16>
    %cst = arith.constant dense<0.000000e+00> : vector<16x128xf32>
    %16 = tpu.matmul %14, %15, %cst {dimension_numbers = #tpu.dot_dimension_numbers<[1], [0], [0], [1], [0, 0, 1, 1], [], []>} : vector<16x1152xbf16>, vector<1152x128xbf16>, vector<16x128xf32> -> vector<16x128xf32>
    %c0_4 = arith.constant 0 : index
    %c0_5 = arith.constant 0 : index
    %17 = vector.load %arg5[%c0_4, %c0_5] : memref<1x128xf32, #tpu.memory_space<vmem>>, vector<1x128xf32>
    %18 = vector.broadcast %17 : vector<1x128xf32> to vector<16x128xf32>
    %19 = arith.mulf %16, %18 : vector<16x128xf32>
    %c0_6 = arith.constant 0 : index
    %c0_7 = arith.constant 0 : index
    %20 = vector.load %arg6[%c0_6, %c0_7] : memref<1x128xf32, #tpu.memory_space<vmem>>, vector<1x128xf32>
    %21 = vector.broadcast %20 : vector<1x128xf32> to vector<16x128xf32>
    %22 = arith.addf %19, %21 : vector<16x128xf32>
    %23 = vector.shape_cast %22 : vector<16x128xf32> to vector<1x16x128xf32>
    %24 = tpu.iota {dimensions = array<i32: 1>} : vector<1x16x128xi32>
    %c1_i32_8 = arith.constant 1 : i32
    %25 = vector.broadcast %c1_i32_8 : i32 to vector<1x16x128xi32>
    %26 = arith.cmpi slt, %24, %25 : vector<1x16x128xi32>
    %cst_9 = arith.constant 0.000000e+00 : f32
    %27 = vector.broadcast %cst_9 : f32 to vector<1x16x128xf32>
    %28 = arith.select %26, %23, %27 : vector<1x16x128xi1>, vector<1x16x128xf32>
    %29 = arith.truncf %28 : vector<1x16x128xf32> to vector<1x16x128xbf16>
    %c0_10 = arith.constant 0 : index
    %c0_11 = arith.constant 0 : index
    %c0_12 = arith.constant 0 : index
    %c0_13 = arith.constant 0 : index
    %30 = vector.load %arg7[%c0_10, %c0_11, %c0_12, %c0_13] : memref<1x1x16x128xbf16, #tpu.memory_space<vmem>>, vector<1x1x16x128xbf16>
    %31 = vector.shape_cast %30 : vector<1x1x16x128xbf16> to vector<1x16x128xbf16>
    %32 = vector.shape_cast %29 : vector<1x16x128xbf16> to vector<1x1x16x128xbf16>
    tpu.vector_store %arg7[%c0_10, %c0_11, %c0_12, %c0_13], %32 {strides = array<i32>} : memref<1x1x16x128xbf16, #tpu.memory_space<vmem>>, vector<1x1x16x128xbf16>,
    return
  }
  func.func @transform_0(%arg0: i32, %arg1: i32, %arg2: i32) -> (i32, i32, i32, i32) {
    %c0_i32 = arith.constant 0 : i32
    %c0_i32_0 = arith.constant 0 : i32
    %c0_i32_1 = arith.constant 0 : i32
    %c0_i32_2 = arith.constant 0 : i32
    return %arg1, %c0_i32, %c0_i32_0, %c0_i32_1 : i32, i32, i32, i32
  }
  func.func @transform_1(%arg0: i32, %arg1: i32, %arg2: i32) -> (i32, i32) {
    %c0_i32 = arith.constant 0 : i32
    %c0_i32_0 = arith.constant 0 : i32
    return %c0_i32, %arg0 : i32, i32
  }
  func.func @transform_2(%arg0: i32, %arg1: i32, %arg2: i32) -> (i32, i32) {
    %c0_i32 = arith.constant 0 : i32
    %c0_i32_0 = arith.constant 0 : i32
    return %c0_i32, %arg0 : i32, i32
  }
  func.func @transform_3(%arg0: i32, %arg1: i32, %arg2: i32) -> (i32, i32) {
    %c0_i32 = arith.constant 0 : i32
    %c0_i32_0 = arith.constant 0 : i32
    return %c0_i32, %arg0 : i32, i32
  }
  func.func @transform_4(%arg0: i32, %arg1: i32, %arg2: i32) -> (i32, i32, i32, i32) {
    %c0_i32 = arith.constant 0 : i32
    %c0_i32_0 = arith.constant 0 : i32
    return %arg1, %arg2, %c0_i32, %arg0 : i32, i32, i32, i32
  }
}

</mosaic_0001>

<bundles_post_ra>
// kernel: _lambda_.9
= control target key start
LH: loop header
LB: loop body
LE: loop exit
PB: predicated region body
PF: predicated region fallthrough
CT: control target
= control target key end

     0   :  { %s4435_s15 = smov 0   ;;  %s4437_s16 = smov 0   ;;  %s5924_s0 = inlined_call_operand.vmem [shape: bf16[2,18,18,16], index: 0, kind: input, shape index: {}]   ;;  %s5925_s1 = inlined_call_operand.vmem [shape: bf16[144,128], index: 1, kind: input, shape index: {}]   ;;  %s5926_s2 = inlined_call_operand.vmem [shape: f32[1,128], index: 2, kind: input, shape index: {}]   ;;  %s5927_s3 = inlined_call_operand.vmem [shape: f32[1,128], index: 3, kind: input, shape index: {}]   ;;  %s5928_s4 = inlined_call_operand.vmem [shape: bf16[2,16,16,128], index: 4, kind: output, shape index: {}]  }
   0x1   :  { %s4439_s17 = smov 0  }
   0x2 LB: > { %s29_s18 = sadd.s32 1, %s4404_s16  ;;  %p3480_p0 = scmp.ge.s32.totalorder %s4408_s17, 1  ;;  %s4408_s17 = sphi %s4439_s17, %s14_s17   ;;  %s4404_s16 = sphi %s4437_s16, %s6080_s16   ;;  %s4400_s15 = sphi %s4435_s15, %s6079_s15  }
   0x3   : > { %p31_p1 = scmp.ge.s32.totalorder %s29_s18, 2  ;;  %p210_p2 = scmp.lt.s32.totalorder %s4408_s17, 3 }
   0x5   : > { %s6082_s18 = smov (%p31_p1, %s29_s18), 0  ;;  %p211_p3 = pnand %p3480_p0, %p210_p2 }
   0x7   : > { %214 = sbr.rel (%p211_p3) target bundleno = 564 (0x234), region = 36 }
   0xc   : > { %v4359_v0 = vld [vmem:[%s5925_s1 + $0x8] sm:$0xff]   ;;  %p254_p4 = scmp.lt.s32.totalorder %s4400_s15, 1  ;;  %v4459_v1 = vld [vmem:[%s5925_s1] sm:$0xff]   ;;  %v4466_v2 = vld [vmem:[%s5925_s1 + $0x10] sm:$0xff]   ;;  %vm344_vm0 = vsmask.f32 3328 }
   0xd   : > { %4332 = vmatprep.subr.bf16.mxu1 %v4359_v0  ;;  %4026 = vmatprep.subr.bf16.mxu0 %v4359_v0  ;;  %vm345_vm1 = vsmask.f32 7440  ;;  %vm787_vm2 = vcmask 130048   ;;  %v5972_v29 = vmov 0  ;;  %vm1308_vm4 = vcmask 1042432  }
   0xe   : > { %s6084_s15 = smov (!%p254_p4, %s4400_s15), 1  ;;  %4333 = vmatpush3.bf16.msra.mxu1 %v4359_v0  ;;  %4027 = vmatpush3.bf16.msra.mxu0 %v4359_v0  ;;  %vm4513_vm3 = vmor %vm344_vm0, %vm345_vm1  ;;  %vm1309_vm5 = vcmask 1046532  }
   0xf   : > { %s4334_s25 = smul.u32 216, %s6084_s15  ;;  %4060 = vmatprep.subr.bf16.mxu1 %v4459_v1  ;;  %4094 = vmatprep.subr.bf16.mxu0 %v4466_v2  ;;  %v5973_v29 = vsel %vm4513_vm3, 4294967295, %v5972_v29  ;;  %vm4834_vm6 = vmor %vm1308_vm4, %vm1309_vm5  ;;  %s3745_s23 = sshll.u32 %s6084_s15, 7 }
  0x10   : > { %5974 = vst [vmem:[#allocation2_spill] sm:$0xff] %v5973_v29 }
  0x11   : > { %s4474_s28 = scalar_lea.vmem %s5924_s0, %s4334_s25  ;;  %s5797_s25 = scalar_lea.vmem %s5928_s4, %s3745_s23 }
  0x12   : > { %v4477_v3 = vld [vmem:[%s4474_s28] sm:$0xf]  ;;  %v4480_v4 = vld [vmem:[%s4474_s28 + $0x4] sm:$0xf]  ;;  %v4483_v5 = vld [vmem:[%s4474_s28 + $0x8] sm:$0x1] }
  0x13   : > { %v348_v6 = vshrl.u32 %v4477_v3, 16  ;;  %v351_v7 = vshll.u32 %v4477_v3, 16  ;;  %v357_v8 = vshll.u32 %v4480_v4, 16  ;;  %v361_v9 = vshrl.u32 %v4480_v4, 16  ;;  %v4490_v10 = vld [vmem:[%s4474_s28 + $0x60] sm:$0xf] }
  0x14   : > { %v367_v11 = vshll.u32 %v4483_v5, 16  ;;  %v4495_v13 = vld [vmem:[%s4474_s28 + $0x64] sm:$0xf]  ;;  %v4498_v14 = vld [vmem:[%s4474_s28 + $0x68] sm:$0x1]  ;;  %v540_v20 = vshrl.u32 %v4490_v10, 16 }
  0x15   : > { %v350_v15 = vrot.slane %v348_v6, 4  ;;  %v353_v16 = vrot.slane %v351_v7, 5  ;;  %v359_v17 = vrot.slane %v357_v8, 5  ;;  %v363_v18 = vrot.slane %v361_v9, 4  ;;  %v4506_v27 = vld [vmem:[%s4474_s28 + $0xc] sm:$0xf] }
  0x16   : > { %v369_v19 = vrot.slane %v367_v11, 5  ;;  %v543_v21 = vshll.u32 %v4490_v10, 16  ;;  %v549_v22 = vshll.u32 %v4495_v13, 16  ;;  %v553_v25 = vshrl.u32 %v4495_v13, 16  ;;  %v4509_v28 = vld [vmem:[%s4474_s28 + $0x10] sm:$0xf] }
  0x17   : > { %v354_v23 = vor.u32 %v353_v16, %v350_v15  ;;  %v364_v24 = vor.u32 %v363_v18, %v359_v17  ;;  %v559_v26 = vshll.u32 %v4498_v14, 16  ;;  %v542_v30 = vrot.slane %v540_v20, 4  ;;  %v4520_v39 = vld [vmem:[%s4474_s28 + $0x14] sm:$0x1]  ;;  %v4531_v51 = vld [vmem:[%s4474_s28 + $0x6c] sm:$0xf] }
  0x18   : > { %v545_v31 = vrot.slane %v543_v21, 5  ;;  %v551_v32 = vrot.slane %v549_v22, 5  ;;  %v555_v36 = vrot.slane %v553_v25, 4  ;;  %v372_v40 = vshrl.u32 %v4506_v27, 16  ;;  %5975 = vst [vmem:[#allocation3_spill] sm:$0xff] %v4531_v51 }
  0x19   : > { %v355_v34 = vrot.slane %v354_v23, 4  ;;  %v365_v35 = vrot.slane %v364_v24, 4  ;;  %v561_v37 = vrot.slane %v559_v26, 5  ;;  %v375_v41 = vshll.u32 %v4506_v27, 16  ;;  %v4535_v56 = vld [vmem:[%s4474_s28 + $0x70] sm:$0xf] }
  0x1a   : > { %v546_v38 = vor.u32 %v545_v31, %v542_v30  ;;  %v381_v42 = vshll.u32 %v4509_v28, 16  ;;  %v556_v45 = vor.u32 %v555_v36, %v551_v32  ;;  %v385_v46 = vshrl.u32 %v4509_v28, 16  ;;  %v4543_v61 = vld [vmem:[%s4474_s28 + $0x74] sm:$0x1]  ;;  %v4549_v7 = vld [vmem:[%s4474_s28 + $0x18] sm:$0xf] }
  0x1b   : > { %v360_v43 = vsel %vm4513_vm3, %v355_v34, %v359_v17  ;;  %v370_v44 = vsel %vm4513_vm3, %v365_v35, %v369_v19  ;;  %v374_v49 = vrot.slane %v372_v40, 4  ;;  %v377_v50 = vrot.slane %v375_v41, 5  ;;  %5976 = vst [vmem:[#allocation4_spill] sm:$0xff] %v4543_v61  ;;  %v4558_v20 = vld [vmem:[%s4474_s28 + $0x1c] sm:$0xf]  ;;  %v4580_v40 = vld [vmem:[%s5925_s1 + $0x20] sm:$0xff]  }
  0x1c   : > { %v3484_v47 = vcombine.low %v360_v43, %v370_v44  ;;  %v547_v48 = vrot.slane %v546_v38, 4  ;;  %v557_v52 = vrot.slane %v556_v45, 4  ;;  %v383_v53 = vrot.slane %v381_v42, 5  ;;  %v4565_v24 = vld [vmem:[%s4474_s28 + $0x20] sm:$0x1] }
  0x1d   : > { %v387_v54 = vrot.slane %v385_v46, 4  ;;  %v391_v55 = vshll.u32 %v4520_v39, 16  ;;  %v378_v58 = vor.u32 %v377_v50, %v374_v49  ;;  %v564_v6 = vshrl.u32 %v4531_v51, 16  ;;  %v4572_v34 = vld [vmem:[%s4474_s28 + $0x78] sm:$0xf] }
  0x1e   : > { %4028 = vmatprep.mubr.msk.bf16.mxu0 %vm787_vm2, %v3484_v47  ;;  %v552_v57 = vsel %vm4513_vm3, %v547_v48, %v551_v32  ;;  %v562_v62 = vsel %vm4513_vm3, %v557_v52, %v561_v37  ;;  %v567_v11 = vshll.u32 %v4531_v51, 16  ;;  %v573_v15 = vshll.u32 %v4535_v56, 16  ;;  %5978 = vst [vmem:[#allocation6_spill] sm:$0xff] %v4572_v34  ;;  %v4585_v45 = vld [vmem:[%s4474_s28 + $0x7c] sm:$0xf] }
  0x1f   : > { %v388_v63 = vor.u32 %v387_v54, %v383_v53  ;;  %v393_v0 = vrot.slane %v391_v55, 5  ;;  %v4551_v8 = vcombine.low %v552_v57, %v562_v62  ;;  %v379_v9 = vrot.slane %v378_v58, 4  ;;  %5980 = vst [vmem:[#allocation8_spill] sm:$0xff] %v4585_v45  ;;  %v4593_v55 = vld [vmem:[%s4474_s28 + $0x80] sm:$0x1] }
  0x20   : > { %v566_v17 = vrot.slane %v564_v6, 4  ;;  %v577_v18 = vshrl.u32 %v4535_v56, 16  ;;  %v583_v19 = vshll.u32 %v4543_v61, 16  ;;  %v569_v22 = vrot.slane %v567_v11, 5  ;;  %5981 = vst [vmem:[#allocation9_spill] sm:$0xff] %v4593_v55 }
  0x21   : > { %5977 = vst [vmem:[#allocation5_spill] sm:$0xff] %v4551_v8  ;;  %v389_v16 = vrot.slane %v388_v63, 4  ;;  %4044 = vmatprep.mubr.msk.bf16.mxu1 %vm787_vm2, %v4551_v8  ;;  %v384_v21 = vsel %vm4513_vm3, %v379_v9, %v383_v53  ;;  %v575_v23 = vrot.slane %v573_v15, 5  ;;  %v396_v25 = vshrl.u32 %v4549_v7, 16  ;;  %v4606_v15 = vld [vmem:[%s4474_s28 + $0x28] sm:$0xf] }
  0x22   : > { %v579_v30 = vrot.slane %v577_v18, 4  ;;  %v585_v31 = vrot.slane %v583_v19, 5  ;;  %v399_v32 = vshll.u32 %v4549_v7, 16  ;;  %v570_v36 = vor.u32 %v569_v22, %v566_v17 }
  0x23   : > { %v394_v26 = vsel %vm4513_vm3, %v389_v16, %v393_v0  ;;  %v398_v37 = vrot.slane %v396_v25, 4  ;;  %v405_v38 = vshll.u32 %v4558_v20, 16  ;;  %v409_v43 = vshrl.u32 %v4558_v20, 16  ;;  %v4599_v0 = vld [vmem:[%s4474_s28 + $0x24] sm:$0xf] }
  0x24   : > { %v4574_v35 = vcombine.low %v384_v21, %v394_v26  ;;  %v580_v41 = vor.u32 %v579_v30, %v575_v23  ;;  %v401_v42 = vrot.slane %v399_v32, 5  ;;  %v415_v44 = vshll.u32 %v4565_v24, 16  ;;  %v4614_v21 = vld [vmem:[%s5925_s1 + $0x18] sm:$0xff]   ;;  %v4619_v26 = vld [vmem:[%s4474_s28 + $0x2c] sm:$0x1] }
  0x25   : > { %v571_v46 = vrot.slane %v570_v36, 4  ;;  %v407_v47 = vrot.slane %v405_v38, 5  ;;  %v588_v48 = vshrl.u32 %v4572_v34, 16  ;;  %v591_v49 = vshll.u32 %v4572_v34, 16  ;;  %v4627_v38 = vld [vmem:[%s4474_s28 + $0x84] sm:$0xf] }
  0x26   : > { %5979 = vst [vmem:[#allocation7_spill] sm:$0xff] %v4574_v35  ;;  %4029 = vmatmul.mubr.msk.bf16.vlgmr.msra.gmra.mxu0 %vm787_vm2, %v4574_v35  ;;  %v581_v50 = vrot.slane %v580_v41, 4  ;;  %v402_v52 = vor.u32 %v401_v42, %v398_v37  ;;  %v411_v53 = vrot.slane %v409_v43, 4  ;;  %v417_v54 = vrot.slane %v415_v44, 5  ;;  %v4773_v35 = vld [vmem:[%s4474_s28 + $0xb0] sm:$0x1] }
  0x27   : > { %4095 = vmatpush3.bf16.msra.mxu0 %v4466_v2  ;;  %v576_v57 = vsel %vm4513_vm3, %v571_v46, %v575_v23  ;;  %v590_v58 = vrot.slane %v588_v48, 4  ;;  %v593_v62 = vrot.slane %v591_v49, 5  ;;  %v597_v63 = vshll.u32 %v4585_v45, 16  ;;  %v4634_v46 = vld [vmem:[%s4474_s28 + $0x88] sm:$0xf]  ;;  %5993 = vst [vmem:[#allocation21_spill] sm:$0xff] %v4773_v35 }
  0x28   : > { %4162 = vmatprep.subr.bf16.mxu0 %v4580_v40  ;;  %v586_v2 = vsel %vm4513_vm3, %v581_v50, %v585_v31  ;;  %v403_v6 = vrot.slane %v402_v52, 4  ;;  %v412_v9 = vor.u32 %v411_v53, %v407_v47  ;;  %v601_v11 = vshrl.u32 %v4585_v45, 16  ;;  %v4795_v45 = vld [vmem:[%s4474_s28 + $0x5c] sm:$0x1] }
  0x29   : > { %v4608_v16 = vcombine.low %v576_v57, %v586_v2  ;;  %v594_v17 = vor.u32 %v593_v62, %v590_v58  ;;  %v599_v18 = vrot.slane %v597_v63, 5  ;;  %v607_v19 = vshll.u32 %v4593_v55, 16 }
  0x2a   : > { %v408_v22 = vsel %vm4513_vm3, %v403_v6, %v407_v47  ;;  %v413_v23 = vrot.slane %v412_v9, 4  ;;  %v603_v25 = vrot.slane %v601_v11, 4  ;;  %v420_v30 = vshrl.u32 %v4599_v0, 16  ;;  %v4652_v6 = vld [vmem:[%s4474_s28 + $0x30] sm:$0xf] }
  0x2b   : > { %5982 = vst [vmem:[#allocation10_spill] sm:$0xff] %v4608_v16  ;;  %4045 = vmatmul.mubr.msk.bf16.vlgmr.msra.gmra.mxu1 %vm787_vm2, %v4608_v16  ;;  %v595_v31 = vrot.slane %v594_v17, 4  ;;  %v609_v32 = vrot.slane %v607_v19, 5  ;;  %v423_v36 = vshll.u32 %v4599_v0, 16  ;;  %v429_v37 = vshll.u32 %v4606_v15, 16 }
  0x2c   : > { %4061 = vmatpush3.bf16.msra.mxu1 %v4459_v1  ;;  %v418_v41 = vsel %vm4513_vm3, %v413_v23, %v417_v54  ;;  %v604_v42 = vor.u32 %v603_v25, %v599_v18  ;;  %v422_v43 = vrot.slane %v420_v30, 4  ;;  %v433_v44 = vshrl.u32 %v4606_v15, 16  ;;  %v4643_v54 = vld [vmem:[%s4474_s28 + $0x8c] sm:$0x1]  ;;  %v4657_v19 = vld [vmem:[%s4474_s28 + $0x34] sm:$0xf] }
  0x2d   : > { %v4636_v47 = vcombine.low %v408_v22, %v418_v41  ;;  %v600_v48 = vsel %vm4513_vm3, %v595_v31, %v599_v18  ;;  %v425_v49 = vrot.slane %v423_v36, 5  ;;  %v431_v50 = vrot.slane %v429_v37, 5  ;;  %4128 = vmatprep.subr.bf16.mxu1 %v4614_v21  ;;  %v4662_v31 = vld [vmem:[%s4474_s28 + $0x38] sm:$0x1] }
  0x2e   : > { %v605_v1 = vrot.slane %v604_v42, 4  ;;  %v435_v52 = vrot.slane %v433_v44, 4  ;;  %v439_v53 = vshll.u32 %v4619_v26, 16  ;;  %v612_v57 = vshrl.u32 %v4627_v38, 16 }
  0x2f   : > { %5983 = vst [vmem:[#allocation11_spill] sm:$0xff] %v4636_v47  ;;  %4032 = vmatprep.mubr.msk.bf16.mxu0 %vm787_vm2, %v4636_v47  ;;  %v426_v58 = vor.u32 %v425_v49, %v422_v43  ;;  %v615_v62 = vshll.u32 %v4627_v38, 16  ;;  %v621_v63 = vshll.u32 %v4634_v46, 16  ;;  %v625_v2 = vshrl.u32 %v4634_v46, 16 }
  0x30   : > { %v610_v9 = vsel %vm4513_vm3, %v605_v1, %v609_v32  ;;  %v436_v11 = vor.u32 %v435_v52, %v431_v50  ;;  %v441_v17 = vrot.slane %v439_v53, 5  ;;  %v614_v18 = vrot.slane %v612_v57, 4  ;;  %v4667_v32 = vld [vmem:[%s4474_s28 + $0x90] sm:$0xf]  ;;  %v4676_v1 = vld [vmem:[%s4474_s28 + $0x94] sm:$0xf] }
  0x31   : > { %v4659_v22 = vcombine.low %v600_v48, %v610_v9  ;;  %v427_v23 = vrot.slane %v426_v58, 4  ;;  %v617_v25 = vrot.slane %v615_v62, 5  ;;  %v623_v30 = vrot.slane %v621_v63, 5 }
  0x32   : > { %v437_v36 = vrot.slane %v436_v11, 4  ;;  %v627_v37 = vrot.slane %v625_v2, 4  ;;  %v631_v41 = vshll.u32 %v4643_v54, 16  ;;  %v444_v42 = vshrl.u32 %v4652_v6, 16 }
  0x33   : > { %5984 = vst [vmem:[#allocation12_spill] sm:$0xff] %v4659_v22  ;;  %4048 = vmatprep.mubr.msk.bf16.mxu1 %vm787_vm2, %v4659_v22  ;;  %v432_v43 = vsel %vm4513_vm3, %v427_v23, %v431_v50  ;;  %v618_v44 = vor.u32 %v617_v25, %v614_v18  ;;  %v447_v48 = vshll.u32 %v4652_v6, 16  ;;  %v453_v49 = vshll.u32 %v4657_v19, 16  ;;  %v4683_v50 = vld [vmem:[%s4474_s28 + $0x98] sm:$0x1] }
  0x34   : > { %v442_v52 = vsel %vm4513_vm3, %v437_v36, %v441_v17  ;;  %v628_v53 = vor.u32 %v627_v37, %v623_v30  ;;  %v633_v57 = vrot.slane %v631_v41, 5  ;;  %v446_v58 = vrot.slane %v444_v42, 4  ;;  %v4695_v42 = vld [vmem:[%s4474_s28 + $0x3c] sm:$0xf]  ;;  %v4724_v22 = vld [vmem:[%s4474_s28 + $0xa0] sm:$0xf] }
  0x35   : > { %v4680_v62 = vcombine.low %v432_v43, %v442_v52  ;;  %v619_v63 = vrot.slane %v618_v44, 4  ;;  %v449_v2 = vrot.slane %v447_v48, 5  ;;  %v455_v9 = vrot.slane %v453_v49, 5  ;;  %v4700_v52 = vld [vmem:[%s4474_s28 + $0x40] sm:$0xf] }
  0x36   : > { %v629_v11 = vrot.slane %v628_v53, 4  ;;  %v457_v18 = vshrl.u32 %v4657_v19, 16  ;;  %v463_v23 = vshll.u32 %v4662_v31, 16  ;;  %v636_v25 = vshrl.u32 %v4667_v32, 16 }
  0x37   : > { %5985 = vst [vmem:[#allocation13_spill] sm:$0xff] %v4680_v62  ;;  %4033 = vmatmul.mubr.msk.bf16.gmra.mxu0 %vm787_vm2, %v4680_v62  ;;  %v624_v17 = vsel %vm4513_vm3, %v619_v63, %v623_v30  ;;  %v450_v36 = vor.u32 %v449_v2, %v446_v58  ;;  %v639_v37 = vshll.u32 %v4667_v32, 16  ;;  %v645_v41 = vshll.u32 %v4676_v1, 16 }
  0x38   : > { %v634_v43 = vsel %vm4513_vm3, %v629_v11, %v633_v57  ;;  %v459_v44 = vrot.slane %v457_v18, 4  ;;  %v465_v48 = vrot.slane %v463_v23, 5  ;;  %v638_v49 = vrot.slane %v636_v25, 4  ;;  %v4712_v18 = vld [vmem:[%s4474_s28 + $0x44] sm:$0x1] }
  0x39   : > { %v4702_v53 = vcombine.low %v624_v17, %v634_v43  ;;  %v451_v30 = vrot.slane %v450_v36, 4  ;;  %v641_v58 = vrot.slane %v639_v37, 5  ;;  %v647_v63 = vrot.slane %v645_v41, 5  ;;  %v4717_v17 = vld [vmem:[%s4474_s28 + $0x9c] sm:$0xf] }
  0x3a   : > { %v460_v2 = vor.u32 %v459_v44, %v455_v9  ;;  %v649_v33 = vshrl.u32 %v4676_v1, 16  ;;  %v655_v60 = vshll.u32 %v4683_v50, 16  ;;  %v468_v12 = vshrl.u32 %v4695_v42, 16 }
  0x3b   : > { %5986 = vst [vmem:[#allocation14_spill] sm:$0xff] %v4702_v53  ;;  %4049 = vmatmul.mubr.msk.bf16.gmra.mxu1 %vm787_vm2, %v4702_v53  ;;  %v456_v57 = vsel %vm4513_vm3, %v451_v30, %v455_v9  ;;  %v642_v11 = vor.u32 %v641_v58, %v638_v49  ;;  %v471_v23 = vshll.u32 %v4695_v42, 16  ;;  %v477_v25 = vshll.u32 %v4700_v52, 16 }
  0x3c   : > { %v461_v36 = vrot.slane %v460_v2, 4  ;;  %v651_v37 = vrot.slane %v649_v33, 4  ;;  %v657_v41 = vrot.slane %v655_v60, 5  ;;  %v470_v43 = vrot.slane %v468_v12, 4 }
  0x3d   : > { %v643_v44 = vrot.slane %v642_v11, 4  ;;  %v473_v59 = vrot.slane %v471_v23, 5  ;;  %v479_v53 = vrot.slane %v477_v25, 5  ;;  %v481_v9 = vshrl.u32 %v4700_v52, 16  ;;  %v4732_v23 = vld [vmem:[%s4474_s28 + $0xa4] sm:$0x1] }
  0x3e   : > { %v466_v49 = vsel %vm4513_vm3, %v461_v36, %v465_v48  ;;  %v652_v30 = vor.u32 %v651_v37, %v647_v63  ;;  %v487_v58 = vshll.u32 %v4712_v18, 16  ;;  %v660_v2 = vshrl.u32 %v4717_v17, 16  ;;  %5988 = vst [vmem:[#allocation16_spill] sm:$0xff] %v4732_v23  ;;  %v4735_v25 = vld [vmem:[%s4474_s28 + $0x48] sm:$0xf] }
  0x3f   : > { %v4727_v33 = vcombine.low %v456_v57, %v466_v49  ;;  %v648_v12 = vsel %vm4513_vm3, %v643_v44, %v647_v63  ;;  %v474_v60 = vor.u32 %v473_v59, %v470_v43  ;;  %v483_v11 = vrot.slane %v481_v9, 4 }
  0x40   : > { %v653_v48 = vrot.slane %v652_v30, 4  ;;  %v489_v36 = vrot.slane %v487_v58, 5  ;;  %v662_v37 = vrot.slane %v660_v2, 4  ;;  %v663_v16 = vshll.u32 %v4717_v17, 16  ;;  %v4746_v30 = vld [vmem:[%s4474_s28 + $0x4c] sm:$0xf] }
  0x41   : > { %5987 = vst [vmem:[#allocation15_spill] sm:$0xff] %v4727_v33  ;;  %4036 = vmatprep.mubr.msk.bf16.mxu0 %vm787_vm2, %v4727_v33  ;;  %v475_v57 = vrot.slane %v474_v60, 4  ;;  %v484_v49 = vor.u32 %v483_v11, %v479_v53  ;;  %v669_v63 = vshll.u32 %v4724_v22, 16  ;;  %v673_v59 = vshrl.u32 %v4724_v22, 16  ;;  %v4754_v33 = vld [vmem:[%s4474_s28 + $0x50] sm:$0x1] }
  0x42   : > { %v658_v43 = vsel %vm4513_vm3, %v653_v48, %v657_v41  ;;  %v665_v44 = vrot.slane %v663_v16, 5  ;;  %v679_v9 = vshll.u32 %v4732_v23, 16  ;;  %v492_v58 = vshrl.u32 %v4735_v25, 16  ;;  %v4757_v48 = vld [vmem:[%s4474_s28 + $0xa8] sm:$0xf] }
  0x43   : > { %v4749_v2 = vcombine.low %v648_v12, %v658_v43  ;;  %v480_v60 = vsel %vm4513_vm3, %v475_v57, %v479_v53  ;;  %v485_v11 = vrot.slane %v484_v49, 4  ;;  %v671_v8 = vrot.slane %v669_v63, 5  ;;  %5990 = vst [vmem:[#allocation18_spill] sm:$0xff] %v4757_v48 }
  0x44   : > { %v666_v62 = vor.u32 %v665_v44, %v662_v37  ;;  %v675_v47 = vrot.slane %v673_v59, 4  ;;  %v681_v41 = vrot.slane %v679_v9, 5  ;;  %v494_v16 = vrot.slane %v492_v58, 4  ;;  %v4770_v44 = vld [vmem:[%s4474_s28 + $0xac] sm:$0xf] }
  0x45   : > { %5989 = vst [vmem:[#allocation17_spill] sm:$0xff] %v4749_v2  ;;  %4052 = vmatprep.mubr.msk.bf16.mxu1 %vm787_vm2, %v4749_v2  ;;  %v490_v12 = vsel %vm4513_vm3, %v485_v11, %v489_v36  ;;  %v495_v53 = vshll.u32 %v4735_v25, 16  ;;  %v501_v57 = vshll.u32 %v4746_v30, 16  ;;  %v505_v49 = vshrl.u32 %v4746_v30, 16  ;;  %5992 = vst [vmem:[#allocation20_spill] sm:$0xff] %v4770_v44 }
  0x46   : > { %v4766_v63 = vcombine.low %v480_v60, %v490_v12  ;;  %v667_v37 = vrot.slane %v666_v62, 4  ;;  %v676_v59 = vor.u32 %v675_v47, %v671_v8  ;;  %v511_v43 = vshll.u32 %v4754_v33, 16 }
  0x47   : > { %v497_v9 = vrot.slane %v495_v53, 5  ;;  %v503_v58 = vrot.slane %v501_v57, 5  ;;  %v507_v2 = vrot.slane %v505_v49, 4  ;;  %v684_v36 = vshrl.u32 %v4757_v48, 16  ;;  %v4783_v49 = vld [vmem:[%s4474_s28 + $0x54] sm:$0xf] }
  0x48   : > { %5991 = vst [vmem:[#allocation19_spill] sm:$0xff] %v4766_v63  ;;  %4037 = vmatmul.mubr.msk.bf16.gmra.mxu0 %vm787_vm2, %v4766_v63  ;;  %v672_v62 = vsel %vm4513_vm3, %v667_v37, %v671_v8  ;;  %v677_v47 = vrot.slane %v676_v59, 4  ;;  %v513_v60 = vrot.slane %v511_v43, 5  ;;  %v687_v11 = vshll.u32 %v4757_v48, 16  ;;  %v4790_v59 = vld [vmem:[%s4474_s28 + $0x58] sm:$0xf] }
  0x49   : > { %v498_v12 = vor.u32 %v497_v9, %v494_v16  ;;  %v508_v55 = vor.u32 %v507_v2, %v503_v58  ;;  %v686_v53 = vrot.slane %v684_v36, 4  ;;  %v693_v57 = vshll.u32 %v4770_v44, 16 }
  0x4a   : > { %v682_v63 = vsel %vm4513_vm3, %v677_v47, %v681_v41  ;;  %v689_v34 = vrot.slane %v687_v11, 5  ;;  %v697_v8 = vshrl.u32 %v4770_v44, 16  ;;  %v703_v37 = vshll.u32 %v4773_v35, 16 }
  0x4b   : > { %v4792_v2 = vcombine.low %v672_v62, %v682_v63  ;;  %v499_v16 = vrot.slane %v498_v12, 4  ;;  %v509_v43 = vrot.slane %v508_v55, 4  ;;  %v695_v9 = vrot.slane %v693_v57, 5 }
  0x4c   : > { %v690_v36 = vor.u32 %v689_v34, %v686_v53  ;;  %v699_v61 = vrot.slane %v697_v8, 4  ;;  %v705_v51 = vrot.slane %v703_v37, 5  ;;  %v516_v41 = vshrl.u32 %v4783_v49, 16  ;;  %v4807_v34 = vld [vmem:[%s4474_s28 + $0xb4] sm:$0xf] }
  0x4d   : > { %5994 = vst [vmem:[#allocation22_spill] sm:$0xff] %v4792_v2  ;;  %4053 = vmatmul.mubr.msk.bf16.gmra.mxu1 %vm787_vm2, %v4792_v2  ;;  %v504_v47 = vsel %vm4513_vm3, %v499_v16, %v503_v58  ;;  %v514_v63 = vsel %vm4513_vm3, %v509_v43, %v513_v60  ;;  %v519_v55 = vshll.u32 %v4783_v49, 16  ;;  %v525_v62 = vshll.u32 %v4790_v59, 16  ;;  %5995 = vst [vmem:[#allocation23_spill] sm:$0xff] %v4807_v34  ;;  %v4812_v8 = vld [vmem:[%s4474_s28 + $0xb8] sm:$0xf] }
  0x4e   : > { %v4809_v11 = vcombine.low %v504_v47, %v514_v63  ;;  %v691_v12 = vrot.slane %v690_v36, 4  ;;  %v700_v53 = vor.u32 %v699_v61, %v695_v9  ;;  %v518_v57 = vrot.slane %v516_v41, 4 }
  0x4f   : > { %v521_v37 = vrot.slane %v519_v55, 5  ;;  %v527_v2 = vrot.slane %v525_v62, 5  ;;  %v529_v58 = vshrl.u32 %v4790_v59, 16  ;;  %v535_v60 = vshll.u32 %v4795_v45, 16  ;;  %v4823_v55 = vld [vmem:[%s4474_s28 + $0xbc] sm:$0x1] }
  0x50   : > { %5996 = vst [vmem:[#allocation24_spill] sm:$0xff] %v4809_v11  ;;  %4040 = vmatprep.mubr.msk.bf16.mxu0 %vm787_vm2, %v4809_v11  ;;  %v696_v16 = vsel %vm4513_vm3, %v691_v12, %v695_v9  ;;  %v701_v43 = vrot.slane %v700_v53, 4  ;;  %v708_v36 = vshrl.u32 %v4807_v34, 16  ;;  %v711_v61 = vshll.u32 %v4807_v34, 16 }
  0x51   : > { %v522_v41 = vor.u32 %v521_v37, %v518_v57  ;;  %v531_v47 = vrot.slane %v529_v58, 4  ;;  %v537_v63 = vrot.slane %v535_v60, 5  ;;  %v717_v62 = vshll.u32 %v4812_v8, 16 }
  0x52   : > { %v706_v35 = vsel %vm4513_vm3, %v701_v43, %v705_v51  ;;  %v710_v48 = vrot.slane %v708_v36, 4  ;;  %v713_v11 = vrot.slane %v711_v61, 5  ;;  %v721_v44 = vshrl.u32 %v4812_v8, 16 }
  0x53   : > { %v4829_v9 = vcombine.low %v696_v16, %v706_v35  ;;  %v523_v12 = vrot.slane %v522_v41, 4  ;;  %v532_v53 = vor.u32 %v531_v47, %v527_v2  ;;  %v719_v23 = vrot.slane %v717_v62, 5 }
  0x54   : > { %v714_v34 = vor.u32 %v713_v11, %v710_v48  ;;  %v723_v57 = vrot.slane %v721_v44, 4  ;;  %v727_v37 = vshll.u32 %v4823_v55, 16  ;;  %v3550_v51 = vrot.slane %v4477_v3, 9 }
  0x55   : > { %4056 = vmatprep.mubr.msk.bf16.mxu1 %vm787_vm2, %v4829_v9  ;;  %v528_v35 = vsel %vm4513_vm3, %v523_v12, %v527_v2  ;;  %v533_v60 = vrot.slane %v532_v53, 4  ;;  %v1313_v48 = vrot.slane %v4480_v4, 5  ;;  %v4846_v44 = vcombine.low %v4506_v27, %v4509_v28 }
  0x56   : > { %v715_v11 = vrot.slane %v714_v34, 4  ;;  %v724_v16 = vor.u32 %v723_v57, %v719_v23  ;;  %v729_v43 = vrot.slane %v727_v37, 5  ;;  %v3551_v36 = vrot.slane %v4506_v27, 9 }
  0x57   : > { %v538_v61 = vsel %vm4513_vm3, %v533_v60, %v537_v63  ;;  %v1314_v41 = vsel %vm4834_vm6, %v3550_v51, %v1313_v48  ;;  %v1315_v47 = vrot.slane %v1313_v48, 4  ;;  %v5999_v2 = vrot.slane %v4509_v28, 5 }
  0x58   : > { %v4855_v12 = vcombine.low %v528_v35, %v538_v61  ;;  %v720_v53 = vsel %vm4513_vm3, %v715_v11, %v719_v23  ;;  %v725_v34 = vrot.slane %v724_v16, 4  ;;  %v6001_v63 = vrot.slane %v4483_v5, 5 }
  0x59   : > { %v1322_v62 = vrot.slane %v5999_v2, 4  ;;  %v6000_v57 = vmov %v5999_v2  ;;  %v6002_v51 = vrot.slane %v4520_v39, 5  ;;  %v4873_v60 = vcombine.low %v4549_v7, %v4558_v20 }
  0x5a   : > { %v1321_v27 = vsel %vm4834_vm6, %v3551_v36, %v6000_v57  ;;  %v1317_v37 = vsel %vm4834_vm6, %v1315_v47, %v6001_v63  ;;  %v3552_v23 = vrot.slane %v4549_v7, 9  ;;  %4041 = vmatmul.mubr.msk.bf16.gmra.mxu0 %vm787_vm2, %v4855_v12  ;;  %v730_v5 = vsel %vm4513_vm3, %v725_v34, %v729_v43  ;;  %v4909_v63 = vld [vmem:[%s5925_s1 + $0x30] sm:$0xff]  }
  0x5b   : > { %v1324_v35 = vsel %vm4834_vm6, %v1322_v62, %v6002_v51  ;;  %v3566_v28 = vcombine.low %v1314_v41, %v1317_v37  ;;  %v1327_v39 = vrot.slane %v4558_v20, 5  ;;  %v4883_v11 = vcombine.low %v720_v53, %v730_v5 }
  0x5c   : > { %v4880_v48 = vcombine.low %v1321_v27, %v1324_v35  ;;  %v1330_v16 = vrot.slane %v4565_v24, 5  ;;  %v1334_v61 = vrot.slane %v4606_v15, 5  ;;  %v3553_v43 = vrot.slane %v4599_v0, 9 }
  0x5d   : > { %6003 = vst [vmem:[#allocation25_spill] sm:$0xff] %v4883_v11  ;;  %4096 = vmatprep.mubr.msk.bf16.mxu0 %vm787_vm2, %v3566_v28  ;;  %v1328_v7 = vsel %vm4834_vm6, %v3552_v23, %v1327_v39  ;;  %v1329_v36 = vrot.slane %v1327_v39, 4  ;;  %4057 = vmatmul.mubr.msk.bf16.gmra.mxu1 %vm787_vm2, %v4883_v11  ;;  %v3554_v41 = vrot.slane %v4652_v6, 9  ;;  %v1341_v20 = vrot.slane %v4657_v19, 5 }
  0x5e   : > { %v6004_v24 = vcombine.low %v4477_v3, %v4480_v4  ;;  %v1336_v2 = vrot.slane %v1334_v61, 4  ;;  %v1337_v62 = vrot.slane %v4619_v26, 5  ;;  %v1344_v53 = vrot.slane %v4662_v31, 5 }
  0x5f   : > { %v1331_v47 = vsel %vm4834_vm6, %v1329_v36, %v1330_v16  ;;  %v1343_v57 = vrot.slane %v1341_v20, 4  ;;  %v1348_v27 = vrot.slane %v4700_v52, 5  ;;  %v1335_v3 = vsel %vm4834_vm6, %v3553_v43, %v1334_v61  ;;  %v4932_v16 = vld [vmem:[%s5925_s1 + $0x28] sm:$0xff]  }
  0x60   : > { %4062 = vmatprep.mubr.msk.bf16.mxu1 %vm787_vm2, %v6004_v24  ;;  %v4903_v34 = vcombine.low %v1328_v7, %v1331_v47  ;;  %v1342_v4 = vsel %vm4834_vm6, %v3554_v41, %v1341_v20  ;;  %v1355_v26 = vrot.slane %v4746_v30, 5  ;;  %v1338_v31 = vsel %vm4834_vm6, %v1336_v2, %v1337_v62 }
  0x61   : > { %v1345_v37 = vsel %vm4834_vm6, %v1343_v57, %v1344_v53  ;;  %v3555_v51 = vrot.slane %v4695_v42, 9  ;;  %v1351_v35 = vrot.slane %v4712_v18, 5  ;;  %v1350_v23 = vrot.slane %v1348_v27, 4 }
  0x62   : > { %4097 = vmatmul.mubr.msk.bf16.vlgmr.msra.gmra.mxu0 %vm787_vm2, %v4880_v48  ;;  %v3556_v5 = vrot.slane %v4735_v25, 9  ;;  %v1357_v28 = vrot.slane %v1355_v26, 4  ;;  %v1358_v39 = vrot.slane %v4754_v33, 5  ;;  %v4942_v18 = vcombine.low %v1342_v4, %v1345_v37 }
  0x63   : > { %4163 = vmatpush3.bf16.msra.mxu0 %v4580_v40  ;;  %4100 = vmatprep.mubr.msk.bf16.mxu0 %vm787_vm2, %v4903_v34  ;;  %v4940_v40 = vcombine.low %v1335_v3, %v1338_v31  ;;  %v1349_v33 = vsel %vm4834_vm6, %v3555_v51, %v1348_v27  ;;  %v1352_v7 = vsel %vm4834_vm6, %v1350_v23, %v1351_v35  ;;  %v1372_v43 = vrot.slane %v4498_v14, 5 }
  0x64   : > { %4230 = vmatprep.subr.bf16.mxu0 %v4909_v63  ;;  %v1356_v36 = vsel %vm4834_vm6, %v3556_v5, %v1355_v26  ;;  %v1359_v61 = vsel %vm4834_vm6, %v1357_v28, %v1358_v39  ;;  %v3557_v41 = vrot.slane %v4783_v49, 9  ;;  %v3558_v20 = vrot.slane %v4490_v10, 9  ;;  %v6005_v5 = vld [vmem:[#allocation16_spill] sm:$0xff] }
  0x65   : > { %4063 = vmatmul.mubr.msk.bf16.vlgmr.msra.gmra.mxu1 %vm787_vm2, %v4846_v44  ;;  %v1369_v24 = vrot.slane %v4495_v13, 5  ;;  %v4960_v47 = vcombine.low %v4599_v0, %v4606_v15  ;;  %v4964_v2 = vcombine.low %v4652_v6, %v4657_v19  ;;  %v4968_v62 = vcombine.low %v4695_v42, %v4700_v52  ;;  %v6006_v39 = vld [vmem:[#allocation20_spill] sm:$0xff] }
  0x66   : > { %4129 = vmatpush3.bf16.msra.mxu1 %v4614_v21  ;;  %4066 = vmatprep.mubr.msk.bf16.mxu1 %vm787_vm2, %v4873_v60  ;;  %v1362_v21 = vrot.slane %v4790_v59, 5  ;;  %v4972_v14 = vcombine.low %v4735_v25, %v4746_v30  ;;  %v4976_v53 = vcombine.low %v1349_v33, %v1352_v7  ;;  %v4978_v57 = vcombine.low %v1356_v36, %v1359_v61  ;;  %v6007_v33 = vld [vmem:[#allocation18_spill] sm:$0xff] }
  0x67   : > { %4196 = vmatprep.subr.bf16.mxu1 %v4932_v16  ;;  %v1365_v0 = vrot.slane %v4795_v45, 5  ;;  %v4983_v15 = vcombine.low %v4627_v38, %v4634_v46  ;;  %v3561_v19 = vrot.slane %v4627_v38, 9  ;;  %v1390_v42 = vrot.slane %v4634_v46, 5 }
  0x68   : > { %v1364_v6 = vrot.slane %v1362_v21, 4  ;;  %v1393_v52 = vrot.slane %v4643_v54, 5  ;;  %v1363_v25 = vsel %vm4834_vm6, %v3557_v41, %v1362_v21  ;;  %v1370_v45 = vsel %vm4834_vm6, %v3558_v20, %v1369_v24  ;;  %v6008_v21 = vld [vmem:[#allocation21_spill] sm:$0xff] }
  0x69   : > { %v1371_v30 = vrot.slane %v1369_v24, 4  ;;  %v4996_v27 = vcombine.low %v4667_v32, %v4676_v1  ;;  %v1391_v38 = vsel %vm4834_vm6, %v3561_v19, %v1390_v42  ;;  %v1392_v46 = vrot.slane %v1390_v42, 4 }
  0x6a   : > { %4101 = vmatmul.mubr.msk.bf16.gmra.mxu0 %vm787_vm2, %v4940_v40  ;;  %v3562_v54 = vrot.slane %v4667_v32, 9  ;;  %v1397_v3 = vrot.slane %v4676_v1, 5  ;;  %v1376_v4 = vrot.slane %v4535_v56, 5  ;;  %v1400_v26 = vrot.slane %v4683_v50, 5 }
  0x6b   : > { %4104 = vmatprep.mubr.msk.bf16.mxu0 %vm787_vm2, %v4942_v18  ;;  %v5010_v31 = vcombine.low %v4717_v17, %v4724_v22  ;;  %v3563_v37 = vrot.slane %v4717_v17, 9  ;;  %v1366_v51 = vsel %vm4834_vm6, %v1364_v6, %v1365_v0  ;;  %v1394_v32 = vsel %vm4834_vm6, %v1392_v46, %v1393_v52  ;;  %v6009_v0 = vld [vmem:[#allocation23_spill] sm:$0xff] }
  0x6c   : > { %v1398_v1 = vsel %vm4834_vm6, %v3562_v54, %v1397_v3  ;;  %v1399_v35 = vrot.slane %v1397_v3, 4  ;;  %v5019_v23 = vcombine.low %v1391_v38, %v1394_v32  ;;  %v1404_v50 = vrot.slane %v4724_v22, 5  ;;  %v6010_v54 = vld [vmem:[#allocation8_spill] sm:$0xff] }
  0x6d   : > { %4067 = vmatmul.mubr.msk.bf16.gmra.mxu1 %vm787_vm2, %v4960_v47  ;;  %v1407_v28 = vrot.slane %v6005_v5, 5  ;;  %v5025_v7 = vcombine.low %v6007_v33, %v6006_v39  ;;  %v3564_v36 = vrot.slane %v6007_v33, 9  ;;  %v1411_v61 = vrot.slane %v6006_v39, 5  ;;  %v6012_v39 = vld [vmem:[#allocation4_spill] sm:$0xff] }
  0x6e   : > { %4070 = vmatprep.mubr.msk.bf16.mxu1 %vm787_vm2, %v4964_v2  ;;  %v1401_v17 = vsel %vm4834_vm6, %v1399_v35, %v1400_v26  ;;  %v1414_v41 = vrot.slane %v6008_v21, 5  ;;  %v1405_v22 = vsel %vm4834_vm6, %v3563_v37, %v1404_v50  ;;  %v1406_v24 = vrot.slane %v1404_v50, 4 }
  0x6f   : > { %v5034_v20 = vcombine.low %v1398_v1, %v1401_v17  ;;  %v5040_v6 = vcombine.low %v6009_v0, %v4812_v8  ;;  %v1412_v19 = vsel %vm4834_vm6, %v3564_v36, %v1411_v61  ;;  %v1413_v42 = vrot.slane %v1411_v61, 4  ;;  %v6013_v36 = vld [vmem:[#allocation6_spill] sm:$0xff] }
  0x70   : > { %v3565_v52 = vrot.slane %v6009_v0, 9  ;;  %v1418_v38 = vrot.slane %v4812_v8, 5  ;;  %v1373_v46 = vsel %vm4834_vm6, %v1371_v30, %v1372_v43  ;;  %v1383_v3 = vrot.slane %v6010_v54, 5  ;;  %v6011_v30 = vld [vmem:[#allocation3_spill] sm:$0xff] }
  0x71   : > { %v1408_v26 = vsel %vm4834_vm6, %v1406_v24, %v1407_v28  ;;  %v1421_v37 = vrot.slane %v4823_v55, 5  ;;  %v1415_v1 = vsel %vm4834_vm6, %v1413_v42, %v1414_v41  ;;  %v5064_v43 = vcombine.low %v1363_v25, %v1366_v51  ;;  %v6014_v41 = vld [vmem:[#allocation9_spill] sm:$0xff] }
  0x72   : > { %4105 = vmatmul.mubr.msk.bf16.gmra.mxu0 %vm787_vm2, %v4976_v53  ;;  %v5056_v32 = vcombine.low %v1405_v22, %v1408_v26  ;;  %v1419_v8 = vsel %vm4834_vm6, %v3565_v52, %v1418_v38  ;;  %v1420_v35 = vrot.slane %v1418_v38, 4  ;;  %v3559_v50 = vrot.slane %v6011_v30, 9  ;;  %v5143_v52 = vld [vmem:[%s4474_s28 + $0xc0] sm:$0xf]  ;;  %v338_v38 = vld [vmem:[%s4474_s28 + $0xc8] sm:$0x1] }
  0x73   : > { %4108 = vmatprep.mubr.msk.bf16.mxu0 %vm787_vm2, %v4978_v57  ;;  %v5067_v55 = vcombine.low %v1412_v19, %v1415_v1  ;;  %v5069_v5 = vcombine.low %v1370_v45, %v1373_v46  ;;  %v1378_v28 = vrot.slane %v1376_v4, 4  ;;  %v1379_v33 = vrot.slane %v6012_v39, 5  ;;  %v6015_v1 = vld [vmem:[#allocation7_spill] sm:$0xff]  ;;  %v6020_v39 = vld [vmem:[#allocation24_spill] sm:$0xff] }
  0x74   : > { %v1422_v17 = vsel %vm4834_vm6, %v1420_v35, %v1421_v37  ;;  %v3560_v61 = vrot.slane %v6013_v36, 9  ;;  %v1385_v21 = vrot.slane %v1383_v3, 4  ;;  %v1386_v22 = vrot.slane %v6014_v41, 5  ;;  %v4384_v35 = vld [vmem:[%s5925_s1 + $0x40] sm:$0xff]  }
  0x75   : > { %4071 = vmatmul.mubr.msk.bf16.gmra.mxu1 %vm787_vm2, %v4968_v62  ;;  %v5076_v24 = vcombine.low %v1419_v8, %v1422_v17  ;;  %v5080_v25 = vcombine.low %v4783_v49, %v4790_v59  ;;  %v5086_v45 = vcombine.low %v4490_v10, %v4495_v13  ;;  %v1377_v51 = vsel %vm4834_vm6, %v3559_v50, %v1376_v4  ;;  %v6017_v50 = vld [vmem:[#allocation13_spill] sm:$0xff]  ;;  %v6023_v17 = vld [vmem:[#allocation12_spill] sm:$0xff] }
  0x76   : > { %4074 = vmatprep.mubr.msk.bf16.mxu1 %vm787_vm2, %v4972_v14  ;;  %v1380_v0 = vsel %vm4834_vm6, %v1378_v28, %v1379_v33  ;;  %v1384_v49 = vsel %vm4834_vm6, %v3560_v61, %v1383_v3  ;;  %v1387_v59 = vsel %vm4834_vm6, %v1385_v21, %v1386_v22  ;;  %v5108_v4 = vcombine.low %v6011_v30, %v4535_v56  ;;  %v5137_v56 = vld [vmem:[%s4474_s28 + $0xc4] sm:$0xf]  ;;  %v6016_v30 = vld [vmem:[#allocation11_spill] sm:$0xff]  ;;  %v4383_v28 = vld [vmem:[%s5925_s1 + $0x38] sm:$0xff]  }
  0x77   : > { %v5102_v10 = vcombine.low %v1377_v51, %v1380_v0  ;;  %v5104_v13 = vcombine.low %v1384_v49, %v1387_v59  ;;  %v5114_v19 = vcombine.low %v6013_v36, %v6010_v54  ;;  %v2163_v42 = vrot.slane %v5137_v56, 5  ;;  %v6022_v33 = vld [vmem:[#allocation10_spill] sm:$0xff] }
  0x78   : > { %v3635_v46 = vrot.slane %v5143_v52, 9  ;;  %v2166_v3 = vrot.slane %v338_v38, 5  ;;  %v6024_v36 = vld [vmem:[#allocation14_spill] sm:$0xff]  ;;  %v1930_v61 = vshrl.u32 %v5143_v52, 16  ;;  %v1933_v21 = vshll.u32 %v5143_v52, 16 }
  0x79   : > { %v2165_v54 = vrot.slane %v2163_v42, 4  ;;  %v1943_v41 = vshrl.u32 %v5137_v56, 16  ;;  %v1939_v22 = vshll.u32 %v5137_v56, 16 }
  0x7a   : > { %4109 = vmatmul.mubr.msk.bf16.gmra.mxu0 %vm787_vm2, %v5064_v43  ;;  %v2164_v26 = vsel %vm4834_vm6, %v3635_v46, %v2163_v42  ;;  %v1932_v51 = vrot.slane %v1930_v61, 4  ;;  %v1935_v0 = vrot.slane %v1933_v21, 5  ;;  %v6025_v42 = vld [vmem:[#allocation17_spill] sm:$0xff]  ;;  %v6026_v46 = vld [vmem:[#allocation22_spill] sm:$0xff] }
  0x7b   : > { %4112 = vmatprep.mubr.msk.bf16.mxu0 %vm787_vm2, %v5069_v5  ;;  %v2167_v37 = vsel %vm4834_vm6, %v2165_v54, %v2166_v3  ;;  %v1941_v49 = vrot.slane %v1939_v22, 5  ;;  %v1945_v59 = vrot.slane %v1943_v41, 4  ;;  %v3599_v22 = vcombine.low %v5143_v52, %v5137_v56 }
  0x7c   : > { %v5155_v8 = vcombine.low %v2164_v26, %v2167_v37  ;;  %v1936_v54 = vor.u32 %v1935_v0, %v1932_v51  ;;  %v1949_v26 = vshll.u32 %v338_v38, 16 }
  0x7d   : > { %4075 = vmatmul.mubr.msk.bf16.gmra.mxu1 %vm787_vm2, %v5080_v25  ;;  %v1946_v3 = vor.u32 %v1945_v59, %v1941_v49 }
  0x7e   : > { %4078 = vmatprep.mubr.msk.bf16.mxu1 %vm787_vm2, %v5086_v45  ;;  %v1937_v37 = vrot.slane %v1936_v54, 4  ;;  %v1951_v61 = vrot.slane %v1949_v26, 5  ;;  %v5341_v54 = vld [vmem:[%s4474_s28 + $0xd0] sm:$0xf] }
  0x80   : > { %v1942_v21 = vsel %vm4513_vm3, %v1937_v37, %v1941_v49 }
  0x82   : > { %4113 = vmatmul.mubr.msk.bf16.gmra.mxu0 %vm787_vm2, %v5102_v10 }
  0x83   : > { %4116 = vmatprep.mubr.msk.bf16.mxu0 %vm787_vm2, %v5104_v13 }
  0x85   : > { %4079 = vmatmul.mubr.msk.bf16.gmra.mxu1 %vm787_vm2, %v5108_v4 }
  0x86   : > { %4082 = vmatprep.mubr.msk.bf16.mxu1 %vm787_vm2, %v5114_v19 }
  0x8a   : > { %4117 = vmatmul.mubr.msk.bf16.gmra.mxu0 %vm787_vm2, %v5019_v23 }
  0x8b   : > { %4120 = vmatprep.mubr.msk.bf16.mxu0 %vm787_vm2, %v5034_v20 }
  0x8d   : > { %4083 = vmatmul.mubr.msk.bf16.gmra.mxu1 %vm787_vm2, %v4983_v15 }
  0x8e   : > { %4086 = vmatprep.mubr.msk.bf16.mxu1 %vm787_vm2, %v4996_v27 }
  0x92   : > { %4121 = vmatmul.mubr.msk.bf16.gmra.mxu0 %vm787_vm2, %v5056_v32 }
  0x93   : > { %4124 = vmatprep.mubr.msk.bf16.mxu0 %vm787_vm2, %v5067_v55 }
  0x95   : > { %4087 = vmatmul.mubr.msk.bf16.gmra.mxu1 %vm787_vm2, %v5010_v31 }
  0x96   : > { %4090 = vmatprep.mubr.msk.bf16.mxu1 %vm787_vm2, %v5025_v7 }
  0x9a   : > { %4125 = vmatmul.mubr.msk.bf16.gmra.mxu0 %vm787_vm2, %v5076_v24 }
  0x9b   : > { %4164 = vmatprep.mubr.msk.bf16.mxu0 %vm787_vm2, %v6015_v1  ;;  %v1947_v1 = vrot.slane %v1946_v3, 4 }
  0x9d   : > { %4091 = vmatmul.mubr.msk.bf16.gmra.mxu1 %vm787_vm2, %v5040_v6  ;;  %v1952_v38 = vsel %vm4513_vm3, %v1947_v1, %v1951_v61 }
  0x9e   : > { %4130 = vmatprep.mubr.msk.bf16.mxu1 %vm787_vm2, %v4846_v44  ;;  %v6018_v44 = vld [vmem:[#allocation15_spill] sm:$0xff]  ;;  %v5233_v41 = vcombine.low %v1942_v21, %v1952_v38 }
  0xa0   : > { %6027 = vst [vmem:[#allocation16_spill] sm:$0xff] %v5233_v41 }
  0xa2   : > { %4165 = vmatmul.mubr.msk.bf16.vlgmr.msra.gmra.mxu0 %vm787_vm2, %v6016_v30 }
  0xa3   : > { %4231 = vmatpush3.bf16.msra.mxu0 %v4909_v63  ;;  %4168 = vmatprep.mubr.msk.bf16.mxu0 %vm787_vm2, %v6017_v50  ;;  %v6019_v63 = vld [vmem:[#allocation19_spill] sm:$0xff] }
  0xa4   : > { %4298 = vmatprep.subr.bf16.mxu0 %v4384_v35 }
  0xa5   : > { %4131 = vmatmul.mubr.msk.bf16.vlgmr.msra.gmra.mxu1 %vm787_vm2, %v4873_v60 }
  0xa6   : > { %4197 = vmatpush3.bf16.msra.mxu1 %v4932_v16  ;;  %4134 = vmatprep.mubr.msk.bf16.mxu1 %vm787_vm2, %v4960_v47  ;;  %v6021_v16 = vld [vmem:[#allocation5_spill] sm:$0xff] }
  0xa7   : > { %4264 = vmatprep.subr.bf16.mxu1 %v4383_v28 }
  0xaa   : > { %4169 = vmatmul.mubr.msk.bf16.gmra.mxu0 %vm787_vm2, %v6018_v44 }
  0xab   : > { %4172 = vmatprep.mubr.msk.bf16.mxu0 %vm787_vm2, %v6019_v63 }
  0xad   : > { %4135 = vmatmul.mubr.msk.bf16.gmra.mxu1 %vm787_vm2, %v4964_v2 }
  0xae   : > { %4138 = vmatprep.mubr.msk.bf16.mxu1 %vm787_vm2, %v4968_v62 }
  0xb2   : > { %4173 = vmatmul.mubr.msk.bf16.gmra.mxu0 %vm787_vm2, %v6020_v39 }
  0xb3   : > { %4176 = vmatprep.mubr.msk.bf16.mxu0 %vm787_vm2, %v4855_v12 }
  0xb5   : > { %4139 = vmatmul.mubr.msk.bf16.gmra.mxu1 %vm787_vm2, %v4972_v14 }
  0xb6   : > { %4142 = vmatprep.mubr.msk.bf16.mxu1 %vm787_vm2, %v5080_v25 }
  0xba   : > { %4177 = vmatmul.mubr.msk.bf16.gmra.mxu0 %vm787_vm2, %v6021_v16 }
  0xbb   : > { %4180 = vmatprep.mubr.msk.bf16.mxu0 %vm787_vm2, %v6022_v33 }
  0xbd   : > { %4143 = vmatmul.mubr.msk.bf16.gmra.mxu1 %vm787_vm2, %v5086_v45 }
  0xbe   : > { %4146 = vmatprep.mubr.msk.bf16.mxu1 %vm787_vm2, %v5108_v4 }
  0xc2   : > { %4181 = vmatmul.mubr.msk.bf16.gmra.mxu0 %vm787_vm2, %v6023_v17 }
  0xc3   : > { %4184 = vmatprep.mubr.msk.bf16.mxu0 %vm787_vm2, %v6024_v36 }
  0xc5   : > { %4147 = vmatmul.mubr.msk.bf16.gmra.mxu1 %vm787_vm2, %v5114_v19 }
  0xc6   : > { %4150 = vmatprep.mubr.msk.bf16.mxu1 %vm787_vm2, %v4983_v15 }
  0xca   : > { %4185 = vmatmul.mubr.msk.bf16.gmra.mxu0 %vm787_vm2, %v6025_v42 }
  0xcb   : > { %4188 = vmatprep.mubr.msk.bf16.mxu0 %vm787_vm2, %v6026_v46 }
  0xcd   : > { %4151 = vmatmul.mubr.msk.bf16.gmra.mxu1 %vm787_vm2, %v4996_v27 }
  0xce   : > { %4154 = vmatprep.mubr.msk.bf16.mxu1 %vm787_vm2, %v5010_v31 }
  0xd2   : > { %4189 = vmatmul.mubr.msk.bf16.gmra.mxu0 %vm787_vm2, %v4829_v9 }
  0xd3   : > { %4192 = vmatprep.mubr.msk.bf16.mxu0 %vm787_vm2, %v4883_v11 }
  0xd5   : > { %4155 = vmatmul.mubr.msk.bf16.gmra.mxu1 %vm787_vm2, %v5025_v7 }
  0xd6   : > { %4158 = vmatprep.mubr.msk.bf16.mxu1 %vm787_vm2, %v5040_v6 }
  0xda   : > { %4193 = vmatmul.mubr.msk.bf16.gmra.mxu0 %vm787_vm2, %v5233_v41 }
  0xdb   : > { %4232 = vmatprep.mubr.msk.bf16.mxu0 %vm787_vm2, %v4873_v60 }
  0xdd   : > { %4159 = vmatmul.mubr.msk.bf16.gmra.mxu1 %vm787_vm2, %v3599_v22 }
  0xde   : > { %4198 = vmatprep.mubr.msk.bf16.mxu1 %vm787_vm2, %v4880_v48 }
  0xe2   : > { %4233 = vmatmul.mubr.msk.bf16.vlgmr.msra.gmra.mxu0 %vm787_vm2, %v4960_v47 }
  0xe3   : > { %4299 = vmatpush3.bf16.msra.mxu0 %v4384_v35  ;;  %4236 = vmatprep.mubr.msk.bf16.mxu0 %vm787_vm2, %v4964_v2 }
  0xe5   : > { %4199 = vmatmul.mubr.msk.bf16.vlgmr.msra.gmra.mxu1 %vm787_vm2, %v4903_v34 }
  0xe6   : > { %4265 = vmatpush3.bf16.msra.mxu1 %v4383_v28  ;;  %4202 = vmatprep.mubr.msk.bf16.mxu1 %vm787_vm2, %v4940_v40  ;;  %v5254_v60 = vpop.f32.mrf.mxu0 }
  0xe8   : > { %v5264_v47 = vpop.f32.mrf.mxu0 }
  0xea   : > { %4237 = vmatmul.mubr.msk.bf16.gmra.mxu0 %vm787_vm2, %v4968_v62  ;;  %v5270_v62 = vpop.f32.mrf.mxu0 }
  0xeb   : > { %4240 = vmatprep.mubr.msk.bf16.mxu0 %vm787_vm2, %v4972_v14  ;;  %v5260_v48 = vpop.f32.mrf.mxu1 }
  0xec   : > { %v5280_v56 = vpop.f32.mrf.mxu0 }
  0xed   : > { %4203 = vmatmul.mubr.msk.bf16.gmra.mxu1 %vm787_vm2, %v4942_v18  ;;  %v5266_v2 = vpop.f32.mrf.mxu1 }
  0xee   : > { %4206 = vmatprep.mubr.msk.bf16.mxu1 %vm787_vm2, %v4976_v53 }
  0xef   : > { %v5276_v14 = vpop.f32.mrf.mxu1 }
  0xf1   : > { %v5282_v52 = vpop.f32.mrf.mxu1 }
  0xf2   : > { %4241 = vmatmul.mubr.msk.bf16.gmra.mxu0 %vm787_vm2, %v5080_v25 }
  0xf3   : > { %4244 = vmatprep.mubr.msk.bf16.mxu0 %vm787_vm2, %v5086_v45 }
  0xf5   : > { %4207 = vmatmul.mubr.msk.bf16.gmra.mxu1 %vm787_vm2, %v4978_v57 }
  0xf6   : > { %4210 = vmatprep.mubr.msk.bf16.mxu1 %vm787_vm2, %v5064_v43 }
  0xf7   : > { %v5286_v25 = vpop.f32.mrf.mxu0 }
  0xf9   : > { %v5296_v35 = vpop.f32.mrf.mxu0 }
  0xfa   : > { %4245 = vmatmul.mubr.msk.bf16.gmra.mxu0 %vm787_vm2, %v5108_v4 }
  0xfb   : > { %4248 = vmatprep.mubr.msk.bf16.mxu0 %vm787_vm2, %v5114_v19  ;;  %v5292_v45 = vpop.f32.mrf.mxu1  ;;  %v5302_v4 = vpop.f32.mrf.mxu0 }
  0xfd   : > { %4211 = vmatmul.mubr.msk.bf16.gmra.mxu1 %vm787_vm2, %v5069_v5  ;;  %v5298_v28 = vpop.f32.mrf.mxu1  ;;  %v5312_v51 = vpop.f32.mrf.mxu0 }
  0xfe   : > { %4214 = vmatprep.mubr.msk.bf16.mxu1 %vm787_vm2, %v5102_v10 }
  0xff   : > { %v5308_v19 = vpop.f32.mrf.mxu1 }
 0x101   : > { %v5314_v0 = vpop.f32.mrf.mxu1 }
 0x102   : > { %4249 = vmatmul.mubr.msk.bf16.gmra.mxu0 %vm787_vm2, %v4983_v15 }
 0x103   : > { %4252 = vmatprep.mubr.msk.bf16.mxu0 %vm787_vm2, %v4996_v27 }
 0x105   : > { %4215 = vmatmul.mubr.msk.bf16.gmra.mxu1 %vm787_vm2, %v5104_v13 }
 0x106   : > { %4218 = vmatprep.mubr.msk.bf16.mxu1 %vm787_vm2, %v5019_v23 }
 0x108   : > { %v5318_v15 = vpop.f32.mrf.mxu0 }
 0x10a   : > { %4253 = vmatmul.mubr.msk.bf16.gmra.mxu0 %vm787_vm2, %v5010_v31  ;;  %v5328_v49 = vpop.f32.mrf.mxu0 }
 0x10b   : > { %4256 = vmatprep.mubr.msk.bf16.mxu0 %vm787_vm2, %v5025_v7  ;;  %v5338_v7 = vld [vmem:[%s4474_s28 + $0xcc] sm:$0xf] }
 0x10c   : > { %v5334_v31 = vpop.f32.mrf.mxu0 }
 0x10d   : > { %4219 = vmatmul.mubr.msk.bf16.gmra.mxu1 %vm787_vm2, %v5034_v20  ;;  %v5324_v27 = vpop.f32.mrf.mxu1 }
 0x10e   : > { %6028 = vst [vmem:[#allocation20_spill] sm:$0xff] %v5324_v27  ;;  %4222 = vmatprep.mubr.msk.bf16.mxu1 %vm787_vm2, %v5056_v32  ;;  %v5347_v26 = vpop.f32.mrf.mxu0 }
 0x10f   : > { %v5330_v59 = vpop.f32.mrf.mxu1 }
 0x110   : > { %6029 = vst [vmem:[#allocation18_spill] sm:$0xff] %v5330_v59 }
 0x111   : > { %v5345_v3 = vpop.f32.mrf.mxu1 }
 0x112   : > { %4257 = vmatmul.mubr.msk.bf16.gmra.mxu0 %vm787_vm2, %v5040_v6  ;;  %6030 = vst [vmem:[#allocation21_spill] sm:$0xff] %v5345_v3  ;;  %v3654_v6 = vcombine.low %v5338_v7, %v5341_v54 }
 0x113   : > { %4260 = vmatprep.mubr.msk.bf16.mxu0 %vm787_vm2, %v3599_v22  ;;  %v5353_v37 = vpop.f32.mrf.mxu1 }
 0x114   : > { %6031 = vst [vmem:[#allocation23_spill] sm:$0xff] %v5353_v37 }
 0x115   : > { %4223 = vmatmul.mubr.msk.bf16.gmra.mxu1 %vm787_vm2, %v5067_v55 }
 0x116   : > { %4226 = vmatprep.mubr.msk.bf16.mxu1 %vm787_vm2, %v5076_v24 }
 0x11a   : > { %v5355_v1 = vpop.f32.mrf.mxu0  ;;  %4261 = vmatmul.mubr.msk.bf16.gmra.mxu0 %vm787_vm2, %v3654_v6 }
 0x11b   : > { %4300 = vmatprep.mubr.msk.bf16.mxu0 %vm787_vm2, %v4903_v34 }
 0x11c   : > { %v5360_v61 = vpop.f32.mrf.mxu0 }
 0x11d   : > { %v5362_v21 = vpop.f32.mrf.mxu1  ;;  %4227 = vmatmul.mubr.msk.bf16.gmra.mxu1 %vm787_vm2, %v5155_v8 }
 0x11e   : > { %6032 = vst [vmem:[#allocation8_spill] sm:$0xff] %v5362_v21  ;;  %v5366_v38 = vpop.f32.mrf.mxu0  ;;  %4266 = vmatprep.mubr.msk.bf16.mxu1 %vm787_vm2, %v6016_v30 }
 0x11f   : > { %v5370_v22 = vpop.f32.mrf.mxu1 }
 0x120   : > { %6033 = vst [vmem:[#allocation3_spill] sm:$0xff] %v5370_v22  ;;  %v5372_v37 = vpop.f32.mrf.mxu0 }
 0x121   : > { %v5374_v6 = vpop.f32.mrf.mxu1 }
 0x122   : > { %6034 = vst [vmem:[#allocation4_spill] sm:$0xff] %v5374_v6  ;;  %v4098_v3 = vpop.f32.mrf.mxu0  ;;  %4301 = vmatmul.mubr.msk.bf16.vlgmr.msra.gmra.mxu0 %vm787_vm2, %v4940_v40 }
 0x123   : > { %v5378_v34 = vpop.f32.mrf.mxu1  ;;  %4304 = vmatprep.mubr.msk.bf16.mxu0 %vm787_vm2, %v4942_v18 }
 0x124   : > { %6035 = vst [vmem:[#allocation6_spill] sm:$0xff] %v5378_v34  ;;  %v1561_v21 = vpop.f32.mrf.mxu0 }
 0x125   : > { %v4064_v59 = vpop.f32.mrf.mxu1  ;;  %4267 = vmatmul.mubr.msk.bf16.vlgmr.msra.gmra.mxu1 %vm787_vm2, %v6017_v50 }
 0x126   : > { %v1174_v30 = vadd.f32 %v4064_v59, %v5254_v60  ;;  %v4099_v22 = vpop.f32.mrf.mxu0  ;;  %4270 = vmatprep.mubr.msk.bf16.mxu1 %vm787_vm2, %v6018_v44 }
 0x127   : > { %v1165_v6 = vpop.f32.mrf.mxu1 }
 0x128   : > { %v5387_v41 = vadd.f32 %v4098_v3, %v1174_v30  ;;  %v1166_v40 = vadd.f32 %v1165_v6, %v5264_v47  ;;  %v1564_v34 = vpop.f32.mrf.mxu0 }
 0x129   : > { %v4065_v27 = vpop.f32.mrf.mxu1 }
 0x12a   : > { %v5390_v29 = vadd.f32 %v1561_v21, %v1166_v40  ;;  %v1177_v18 = vadd.f32 %v4065_v27, %v5270_v62  ;;  %v4102_v11 = vpop.f32.mrf.mxu0  ;;  %4305 = vmatmul.mubr.msk.bf16.gmra.mxu0 %vm787_vm2, %v4976_v53 }
 0x12b   : > { %v1168_v50 = vpop.f32.mrf.mxu1  ;;  %4308 = vmatprep.mubr.msk.bf16.mxu0 %vm787_vm2, %v4978_v57 }
 0x12c   : > { %v5397_v44 = vadd.f32 %v4099_v22, %v1177_v18  ;;  %v1169_v60 = vadd.f32 %v1168_v50, %v5280_v56  ;;  %v1577_v59 = vpop.f32.mrf.mxu0 }
 0x12d   : > { %v4068_v47 = vpop.f32.mrf.mxu1  ;;  %4271 = vmatmul.mubr.msk.bf16.gmra.mxu1 %vm787_vm2, %v6019_v63 }
 0x12e   : > { %v5402_v3 = vadd.f32 %v1564_v34, %v1169_v60  ;;  %v1190_v62 = vadd.f32 %v4068_v47, %v5286_v25  ;;  %v4103_v27 = vpop.f32.mrf.mxu0  ;;  %4274 = vmatprep.mubr.msk.bf16.mxu1 %vm787_vm2, %v6020_v39 }
 0x12f   : > { %v1181_v53 = vpop.f32.mrf.mxu1 }
 0x130   : > { %v5407_v21 = vadd.f32 %v4102_v11, %v1190_v62  ;;  %v1182_v57 = vadd.f32 %v1181_v53, %v5296_v35  ;;  %v1580_v22 = vpop.f32.mrf.mxu0 }
 0x131   : > { %v4069_v56 = vpop.f32.mrf.mxu1 }
 0x132   : > { %v5410_v6 = vadd.f32 %v1577_v59, %v1182_v57  ;;  %v1193_v30 = vadd.f32 %v4069_v56, %v5302_v4  ;;  %v4106_v63 = vpop.f32.mrf.mxu0  ;;  %4309 = vmatmul.mubr.msk.bf16.gmra.mxu0 %vm787_vm2, %v5064_v43 }
 0x133   : > { %v1184_v25 = vpop.f32.mrf.mxu1  ;;  %4312 = vmatprep.mubr.msk.bf16.mxu0 %vm787_vm2, %v5069_v5 }
 0x134   : > { %v5417_v39 = vadd.f32 %v4103_v27, %v1193_v30  ;;  %v1185_v11 = vadd.f32 %v1184_v25, %v5312_v51  ;;  %v1593_v34 = vpop.f32.mrf.mxu0 }
 0x135   : > { %v4072_v35 = vpop.f32.mrf.mxu1  ;;  %4275 = vmatmul.mubr.msk.bf16.gmra.mxu1 %vm787_vm2, %v4855_v12 }
 0x136   : > { %v5422_v40 = vadd.f32 %v1580_v22, %v1185_v11  ;;  %v1206_v4 = vadd.f32 %v4072_v35, %v5318_v15  ;;  %v4107_v18 = vpop.f32.mrf.mxu0  ;;  %4278 = vmatprep.mubr.msk.bf16.mxu1 %vm787_vm2, %v6021_v16 }
 0x137   : > { %v1197_v43 = vpop.f32.mrf.mxu1 }
 0x138   : > { %v5427_v50 = vadd.f32 %v4106_v63, %v1206_v4  ;;  %v1198_v5 = vadd.f32 %v1197_v43, %v5328_v49  ;;  %v1596_v60 = vpop.f32.mrf.mxu0 }
 0x139   : > { %v4073_v51 = vpop.f32.mrf.mxu1 }
 0x13a   : > { %v5430_v59 = vadd.f32 %v1593_v34, %v1198_v5  ;;  %v1209_v47 = vadd.f32 %v4073_v51, %v5334_v31  ;;  %v4110_v12 = vpop.f32.mrf.mxu0  ;;  %4313 = vmatmul.mubr.msk.bf16.gmra.mxu0 %vm787_vm2, %v5102_v10  ;;  %v2588_v34 = vshll.u32 %v5338_v7, 16 }
 0x13b   : > { %v1200_v15 = vpop.f32.mrf.mxu1  ;;  %4316 = vmatprep.mubr.msk.bf16.mxu0 %vm787_vm2, %v5104_v13 }
 0x13c   : > { %v5437_v16 = vadd.f32 %v4107_v18, %v1209_v47  ;;  %v1201_v62 = vadd.f32 %v1200_v15, %v5347_v26  ;;  %v1609_v27 = vpop.f32.mrf.mxu0  ;;  %v2590_v51 = vrot.slane %v2588_v34, 5 }
 0x13d   : > { %v4076_v49 = vpop.f32.mrf.mxu1  ;;  %4279 = vmatmul.mubr.msk.bf16.gmra.mxu1 %vm787_vm2, %v6022_v33 }
 0x13e   : > { %v5442_v53 = vadd.f32 %v1596_v60, %v1201_v62  ;;  %v1222_v31 = vadd.f32 %v4076_v49, %v5355_v1  ;;  %v4111_v57 = vpop.f32.mrf.mxu0  ;;  %4282 = vmatprep.mubr.msk.bf16.mxu1 %vm787_vm2, %v6023_v17 }
 0x13f   : > { %v1213_v10 = vpop.f32.mrf.mxu1 }
 0x140   : > { %v5447_v22 = vadd.f32 %v4110_v12, %v1222_v31  ;;  %v1214_v13 = vadd.f32 %v1213_v10, %v5360_v61  ;;  %v1612_v56 = vpop.f32.mrf.mxu0  ;;  %v2585_v61 = vshrl.u32 %v5338_v7, 16 }
 0x141   : > { %v4077_v26 = vpop.f32.mrf.mxu1 }
 0x142   : > { %v5450_v30 = vadd.f32 %v1609_v27, %v1214_v13  ;;  %v1225_v63 = vadd.f32 %v4077_v26, %v5366_v38  ;;  %v4114_v33 = vpop.f32.mrf.mxu0  ;;  %4317 = vmatmul.mubr.msk.bf16.gmra.mxu0 %vm787_vm2, %v5019_v23  ;;  %v2594_v38 = vshll.u32 %v5341_v54, 16  ;;  %v2598_v23 = vshrl.u32 %v5341_v54, 16 }
 0x143   : > { %v1216_v1 = vpop.f32.mrf.mxu1  ;;  %4320 = vmatprep.mubr.msk.bf16.mxu0 %vm787_vm2, %v5034_v20 }
 0x144   : > { %v5457_v17 = vadd.f32 %v4111_v57, %v1225_v63  ;;  %v1217_v25 = vadd.f32 %v1216_v1, %v5372_v37  ;;  %v1625_v11 = vpop.f32.mrf.mxu0  ;;  %v2596_v12 = vrot.slane %v2594_v38, 5  ;;  %v2600_v15 = vrot.slane %v2598_v23, 4 }
 0x145   : > { %v4080_v35 = vpop.f32.mrf.mxu1  ;;  %4283 = vmatmul.mubr.msk.bf16.gmra.mxu1 %vm787_vm2, %v6024_v36  ;;  %v2587_v36 = vrot.slane %v2585_v61, 4  ;;  %v3690_v63 = vrot.slane %v5338_v7, 9 }
 0x146   : > { %v5466_v4 = vadd.f32 %v1612_v56, %v1217_v25  ;;  %v1238_v20 = vadd.f32 %v4080_v35, %v5260_v48  ;;  %v4115_v18 = vpop.f32.mrf.mxu0  ;;  %4286 = vmatprep.mubr.msk.bf16.mxu1 %vm787_vm2, %v6025_v42  ;;  %v2818_v42 = vrot.slane %v5341_v54, 5 }
 0x147   : > { %v1229_v37 = vpop.f32.mrf.mxu1 }
 0x148   : > { %v5471_v43 = vadd.f32 %v4114_v33, %v1238_v20  ;;  %v1230_v5 = vadd.f32 %v1229_v37, %v5266_v2  ;;  %v1628_v60 = vpop.f32.mrf.mxu0  ;;  %v341_v2 = vld [vmem:[%s4474_s28 + $0xd4] sm:$0x1] }
 0x149   : > { %v4081_v47 = vpop.f32.mrf.mxu1  ;;  %v2604_v26 = vshll.u32 %v341_v2, 16  ;;  %v2821_v1 = vrot.slane %v341_v2, 5 }
 0x14a   : > { %v5474_v62 = vadd.f32 %v1625_v11, %v1230_v5  ;;  %v1241_v48 = vadd.f32 %v4081_v47, %v5276_v14  ;;  %v4118_v27 = vpop.f32.mrf.mxu0  ;;  %4321 = vmatmul.mubr.msk.bf16.gmra.mxu0 %vm787_vm2, %v5056_v32  ;;  %v2591_v14 = vor.u32 %v2590_v51, %v2587_v36 }
 0x14b   : > { %v1232_v49 = vpop.f32.mrf.mxu1  ;;  %4324 = vmatprep.mubr.msk.bf16.mxu0 %vm787_vm2, %v5067_v55  ;;  %v2601_v55 = vor.u32 %v2600_v15, %v2596_v12  ;;  %v2606_v7 = vrot.slane %v2604_v26, 5 }
 0x14c   : > { %v5483_v31 = vadd.f32 %v4115_v18, %v1241_v48  ;;  %v1233_v57 = vadd.f32 %v1232_v49, %v5282_v52  ;;  %v1641_v10 = vpop.f32.mrf.mxu0  ;;  %v2820_v52 = vrot.slane %v2818_v42, 4  ;;  %v2592_v34 = vrot.slane %v2591_v14, 4  ;;  %v6039_v48 = vld [vmem:[#allocation16_spill] sm:$0xff]  ;;  %v6040_v49 = vld [vmem:[#allocation18_spill] sm:$0xff]  ;;  %v6041_v14 = vld [vmem:[#allocation21_spill] sm:$0xff] }
 0x14d   : > { %v4084_v13 = vpop.f32.mrf.mxu1  ;;  %4287 = vmatmul.mubr.msk.bf16.gmra.mxu1 %vm787_vm2, %v6026_v46 }
 0x14e   : > { %v5488_v56 = vadd.f32 %v1628_v60, %v1233_v57  ;;  %v1254_v32 = vadd.f32 %v4084_v13, %v5292_v45  ;;  %v4119_v54 = vpop.f32.mrf.mxu0  ;;  %4290 = vmatprep.mubr.msk.bf16.mxu1 %vm787_vm2, %v4829_v9  ;;  %v2602_v9 = vrot.slane %v2601_v55, 4  ;;  %v2822_v20 = vsel %vm4834_vm6, %v2820_v52, %v2821_v1  ;;  %v6036_v60 = vld [vmem:[#allocation25_spill] sm:$0xff] }
 0x14f   : > { %v1245_v33 = vpop.f32.mrf.mxu1  ;;  %v2597_v36 = vsel %vm4513_vm3, %v2592_v34, %v2596_v12 }
 0x150   : > { %v5494_v25 = vadd.f32 %v4118_v27, %v1254_v32  ;;  %v1246_v46 = vadd.f32 %v1245_v33, %v5298_v28  ;;  %v1644_v11 = vpop.f32.mrf.mxu0  ;;  %v2819_v28 = vsel %vm4834_vm6, %v3690_v63, %v2818_v42  ;;  %v2607_v58 = vsel %vm4513_vm3, %v2602_v9, %v2606_v7  ;;  %v6042_v63 = vld [vmem:[#allocation23_spill] sm:$0xff] }
 0x151   : > { %v4085_v61 = vpop.f32.mrf.mxu1  ;;  %v3672_v12 = vcombine.low %v2597_v36, %v2607_v58  ;;  %v6044_v9 = vld [vmem:[#allocation3_spill] sm:$0xff]  ;;  %v6046_v36 = vld [vmem:[#allocation6_spill] sm:$0xff] }
 0x152   : > { %v5497_v35 = vadd.f32 %v1641_v10, %v1246_v46  ;;  %v1257_v45 = vadd.f32 %v4085_v61, %v5308_v19  ;;  %v4122_v38 = vpop.f32.mrf.mxu0  ;;  %4325 = vmatmul.mubr.msk.bf16.gmra.mxu0 %vm787_vm2, %v5076_v24 }
 0x153   : > { %v1248_v23 = vpop.f32.mrf.mxu1  ;;  %4328 = vmatprep.mubr.msk.bf16.mxu0 %vm787_vm2, %v5155_v8  ;;  %v6038_v8 = vld [vmem:[#allocation20_spill] sm:$0xff] }
 0x154   : > { %v5508_v18 = vadd.f32 %v4119_v54, %v1257_v45  ;;  %v1249_v19 = vadd.f32 %v1248_v23, %v5314_v0  ;;  %v1657_v37 = vpop.f32.mrf.mxu0  ;;  %v3691_v0 = vcombine.low %v2819_v28, %v2822_v20 }
 0x155   : > { %v4088_v5 = vpop.f32.mrf.mxu1  ;;  %4291 = vmatmul.mubr.msk.bf16.gmra.mxu1 %vm787_vm2, %v6036_v60 }
 0x156   : > { %v5515_v51 = vadd.f32 %v1644_v11, %v1249_v19  ;;  %v1270_v47 = vadd.f32 %v4088_v5, %v6038_v8  ;;  %v4123_v15 = vpop.f32.mrf.mxu0  ;;  %4294 = vmatprep.mubr.msk.bf16.mxu1 %vm787_vm2, %v6039_v48  ;;  %v6043_v11 = vld [vmem:[#allocation8_spill] sm:$0xff] }
 0x157   : > { %v1261_v27 = vpop.f32.mrf.mxu1  ;;  %v6045_v19 = vld [vmem:[#allocation4_spill] sm:$0xff] }
 0x158   : > { %v5522_v42 = vadd.f32 %v4122_v38, %v1270_v47  ;;  %v1262_v2 = vadd.f32 %v1261_v27, %v6040_v49  ;;  %v1660_v57 = vpop.f32.mrf.mxu0 }
 0x159   : > { %v4089_v10 = vpop.f32.mrf.mxu1 }
 0x15a   : > { %v5525_v13 = vadd.f32 %v1657_v37, %v1262_v2  ;;  %v1273_v32 = vadd.f32 %v4089_v10, %v6041_v14  ;;  %v4126_v54 = vpop.f32.mrf.mxu0  ;;  %4329 = vmatmul.mubr.msk.bf16.gmra.mxu0 %vm787_vm2, %v3691_v0 }
 0x15b   : > { %v1264_v55 = vpop.f32.mrf.mxu1 }
 0x15c   : > { %v5529_v26 = vadd.f32 %v4123_v15, %v1273_v32  ;;  %v1265_v33 = vadd.f32 %v1264_v55, %v6042_v63  ;;  %v1673_v52 = vpop.f32.mrf.mxu0 }
 0x15d   : > { %v4092_v1 = vpop.f32.mrf.mxu1  ;;  %4295 = vmatmul.mubr.msk.bf16.gmra.mxu1 %vm787_vm2, %v3672_v12 }
 0x15e   : > { %v5533_v46 = vadd.f32 %v1660_v57, %v1265_v33  ;;  %v1286_v61 = vadd.f32 %v4092_v1, %v6043_v11  ;;  %v4127_v34 = vpop.f32.mrf.mxu0 }
 0x15f   : > { %v1277_v45 = vpop.f32.mrf.mxu1 }
 0x160   : > { %v5536_v38 = vadd.f32 %v4126_v54, %v1286_v61  ;;  %v1278_v7 = vadd.f32 %v1277_v45, %v6044_v9  ;;  %v1676_v23 = vpop.f32.mrf.mxu0 }
 0x161   : > { %v4093_v28 = vpop.f32.mrf.mxu1 }
 0x162   : > { %v5539_v20 = vadd.f32 %v1673_v52, %v1278_v7  ;;  %v1289_v37 = vadd.f32 %v4093_v28, %v6045_v19  ;;  %v4166_v5 = vpop.f32.mrf.mxu0 }
 0x163   : > { %v1280_v60 = vpop.f32.mrf.mxu1 }
 0x164   : > { %v5542_v24 = vadd.f32 %v4127_v34, %v1289_v37  ;;  %v1281_v8 = vadd.f32 %v1280_v60, %v6046_v36  ;;  %v2001_v47 = vpop.f32.mrf.mxu0 }
 0x165   : > { %v4132_v15 = vpop.f32.mrf.mxu1 }
 0x166   : > { %v5545_v48 = vadd.f32 %v1676_v23, %v1281_v8  ;;  %v1899_v58 = vadd.f32 %v4132_v15, %v5387_v41  ;;  %v4167_v0 = vpop.f32.mrf.mxu0 }
 0x167   : > { %v1770_v27 = vpop.f32.mrf.mxu1 }
 0x168   : > { %v5548_v49 = vadd.f32 %v4166_v5, %v1899_v58  ;;  %v1897_v2 = vadd.f32 %v1770_v27, %v5390_v29  ;;  %v2004_v57 = vpop.f32.mrf.mxu0 }
 0x169   : > { %v4133_v10 = vpop.f32.mrf.mxu1 }
 0x16a   : > { %v5551_v12 = vadd.f32 %v2001_v47, %v1897_v2  ;;  %v1900_v14 = vadd.f32 %v4133_v10, %v5397_v44  ;;  %v4170_v32 = vpop.f32.mrf.mxu0 }
 0x16b   : > { %v1773_v54 = vpop.f32.mrf.mxu1 }
 0x16c   : > { %v5554_v55 = vadd.f32 %v4167_v0, %v1900_v14  ;;  %v1898_v63 = vadd.f32 %v1773_v54, %v5402_v3  ;;  %v2017_v33 = vpop.f32.mrf.mxu0 }
 0x16d   : > { %v4136_v41 = vpop.f32.mrf.mxu1 }
 0x16e   : > { %v5557_v52 = vadd.f32 %v2004_v57, %v1898_v63  ;;  %v1903_v1 = vadd.f32 %v4136_v41, %v5407_v21  ;;  %v4171_v11 = vpop.f32.mrf.mxu0 }
 0x16f   : > { %v1786_v29 = vpop.f32.mrf.mxu1 }
 0x170   : > { %v5560_v61 = vadd.f32 %v4170_v32, %v1903_v1  ;;  %v1901_v34 = vadd.f32 %v1786_v29, %v5410_v6  ;;  %v2020_v45 = vpop.f32.mrf.mxu0 }
 0x171   : > { %v4137_v44 = vpop.f32.mrf.mxu1 }
 0x172   : > { %v5563_v9 = vadd.f32 %v2017_v33, %v1901_v34  ;;  %v1904_v7 = vadd.f32 %v4137_v44, %v5417_v39  ;;  %v4174_v23 = vpop.f32.mrf.mxu0 }
 0x173   : > { %v1789_v3 = vpop.f32.mrf.mxu1 }
 0x174   : > { %v5566_v28 = vadd.f32 %v4171_v11, %v1904_v7  ;;  %v1902_v19 = vadd.f32 %v1789_v3, %v5422_v40  ;;  %v2033_v37 = vpop.f32.mrf.mxu0 }
 0x175   : > { %v4140_v21 = vpop.f32.mrf.mxu1 }
 0x176   : > { %v5569_v5 = vadd.f32 %v2020_v45, %v1902_v19  ;;  %v1907_v60 = vadd.f32 %v4140_v21, %v5427_v50  ;;  %v4175_v36 = vpop.f32.mrf.mxu0 }
 0x177   : > { %v1802_v6 = vpop.f32.mrf.mxu1 }
 0x178   : > { %v5572_v8 = vadd.f32 %v4174_v23, %v1907_v60  ;;  %v1905_v47 = vadd.f32 %v1802_v6, %v5430_v59  ;;  %v2036_v15 = vpop.f32.mrf.mxu0 }
 0x179   : > { %v4141_v39 = vpop.f32.mrf.mxu1 }
 0x17a   : > { %v5575_v58 = vadd.f32 %v2033_v37, %v1905_v47  ;;  %v1908_v0 = vadd.f32 %v4141_v39, %v5437_v16  ;;  %v4178_v27 = vpop.f32.mrf.mxu0 }
 0x17b   : > { %v1805_v40 = vpop.f32.mrf.mxu1 }
 0x17c   : > { %v5578_v2 = vadd.f32 %v4175_v36, %v1908_v0  ;;  %v1906_v57 = vadd.f32 %v1805_v40, %v5442_v53  ;;  %v2049_v10 = vpop.f32.mrf.mxu0 }
 0x17d   : > { %v4144_v50 = vpop.f32.mrf.mxu1 }
 0x17e   : > { %v5581_v14 = vadd.f32 %v2036_v15, %v1906_v57  ;;  %v1911_v32 = vadd.f32 %v4144_v50, %v5447_v22  ;;  %v4179_v54 = vpop.f32.mrf.mxu0 }
 0x17f   : > { %v1818_v59 = vpop.f32.mrf.mxu1 }
 0x180   : > { %v5584_v63 = vadd.f32 %v4178_v27, %v1911_v32  ;;  %v1909_v33 = vadd.f32 %v1818_v59, %v5450_v30  ;;  %v2052_v41 = vpop.f32.mrf.mxu0 }
 0x181   : > { %v4145_v16 = vpop.f32.mrf.mxu1 }
 0x182   : > { %v5587_v1 = vadd.f32 %v2049_v10, %v1909_v33  ;;  %v1912_v11 = vadd.f32 %v4145_v16, %v5457_v17  ;;  %v4182_v29 = vpop.f32.mrf.mxu0 }
 0x183   : > { %v1821_v53 = vpop.f32.mrf.mxu1 }
 0x184   : > { %v5590_v34 = vadd.f32 %v4179_v54, %v1912_v11  ;;  %v1910_v45 = vadd.f32 %v1821_v53, %v5466_v4  ;;  %v2065_v44 = vpop.f32.mrf.mxu0 }
 0x185   : > { %v4148_v22 = vpop.f32.mrf.mxu1 }
 0x186   : > { %v5593_v7 = vadd.f32 %v2052_v41, %v1910_v45  ;;  %v1915_v23 = vadd.f32 %v4148_v22, %v5471_v43  ;;  %v4183_v3 = vpop.f32.mrf.mxu0 }
 0x187   : > { %v1834_v30 = vpop.f32.mrf.mxu1 }
 0x188   : > { %v5596_v19 = vadd.f32 %v4182_v29, %v1915_v23  ;;  %v1913_v37 = vadd.f32 %v1834_v30, %v5474_v62  ;;  %v2068_v21 = vpop.f32.mrf.mxu0 }
 0x189   : > { %v4149_v17 = vpop.f32.mrf.mxu1 }
 0x18a   : > { %v5599_v60 = vadd.f32 %v2065_v44, %v1913_v37  ;;  %v1916_v36 = vadd.f32 %v4149_v17, %v5483_v31  ;;  %v4186_v6 = vpop.f32.mrf.mxu0 }
 0x18b   : > { %v1837_v4 = vpop.f32.mrf.mxu1 }
 0x18c   : > { %v5602_v47 = vadd.f32 %v4183_v3, %v1916_v36  ;;  %v1914_v15 = vadd.f32 %v1837_v4, %v5488_v56  ;;  %v2081_v39 = vpop.f32.mrf.mxu0 }
 0x18d   : > { %v4152_v43 = vpop.f32.mrf.mxu1 }
 0x18e   : > { %v5605_v0 = vadd.f32 %v2068_v21, %v1914_v15  ;;  %v1919_v27 = vadd.f32 %v4152_v43, %v5494_v25  ;;  %v4187_v40 = vpop.f32.mrf.mxu0 }
 0x18f   : > { %v1850_v62 = vpop.f32.mrf.mxu1 }
 0x190   : > { %v5608_v57 = vadd.f32 %v4186_v6, %v1919_v27  ;;  %v1917_v10 = vadd.f32 %v1850_v62, %v5497_v35  ;;  %v2084_v50 = vpop.f32.mrf.mxu0 }
 0x191   : > { %v4153_v31 = vpop.f32.mrf.mxu1 }
 0x192   : > { %v5611_v32 = vadd.f32 %v2081_v39, %v1917_v10  ;;  %v1920_v54 = vadd.f32 %v4153_v31, %v5508_v18  ;;  %v4190_v59 = vpop.f32.mrf.mxu0 }
 0x193   : > { %v1853_v56 = vpop.f32.mrf.mxu1 }
 0x194   : > { %v5614_v33 = vadd.f32 %v4187_v40, %v1920_v54  ;;  %v1918_v41 = vadd.f32 %v1853_v56, %v5515_v51  ;;  %v2097_v16 = vpop.f32.mrf.mxu0 }
 0x195   : > { %v4156_v25 = vpop.f32.mrf.mxu1 }
 0x196   : > { %v5617_v11 = vadd.f32 %v2084_v50, %v1918_v41  ;;  %v1923_v29 = vadd.f32 %v4156_v25, %v5522_v42  ;;  %v4191_v53 = vpop.f32.mrf.mxu0 }
 0x197   : > { %v1866_v35 = vpop.f32.mrf.mxu1 }
 0x198   : > { %v5620_v45 = vadd.f32 %v4190_v59, %v1923_v29  ;;  %v1921_v44 = vadd.f32 %v1866_v35, %v5525_v13  ;;  %v2100_v22 = vpop.f32.mrf.mxu0 }
 0x199   : > { %v4157_v18 = vpop.f32.mrf.mxu1 }
 0x19a   : > { %v5623_v23 = vadd.f32 %v2097_v16, %v1921_v44  ;;  %v1924_v3 = vadd.f32 %v4157_v18, %v5529_v26  ;;  %v4194_v30 = vpop.f32.mrf.mxu0 }
 0x19b   : > { %v1869_v51 = vpop.f32.mrf.mxu1 }
 0x19c   : > { %v5626_v37 = vadd.f32 %v4191_v53, %v1924_v3  ;;  %v1922_v21 = vadd.f32 %v1869_v51, %v5533_v46  ;;  %v2113_v17 = vpop.f32.mrf.mxu0 }
 0x19d   : > { %v4160_v42 = vpop.f32.mrf.mxu1 }
 0x19e   : > { %6047 = vst [vmem:[#allocation9_spill] sm:$0xff] %v5626_v37  ;;  %v5629_v36 = vadd.f32 %v2100_v22, %v1922_v21  ;;  %v1927_v6 = vadd.f32 %v4160_v42, %v5536_v38  ;;  %v4195_v4 = vpop.f32.mrf.mxu0 }
 0x19f   : > { %v1882_v13 = vpop.f32.mrf.mxu1 }
 0x1a0   : > { %6048 = vst [vmem:[#allocation7_spill] sm:$0xff] %v5629_v36  ;;  %v5632_v15 = vadd.f32 %v4194_v30, %v1927_v6  ;;  %v1925_v39 = vadd.f32 %v1882_v13, %v5539_v20  ;;  %v2116_v43 = vpop.f32.mrf.mxu0 }
 0x1a1   : > { %v4161_v26 = vpop.f32.mrf.mxu1 }
 0x1a2   : > { %v5635_v27 = vadd.f32 %v2113_v17, %v1925_v39  ;;  %v1928_v40 = vadd.f32 %v4161_v26, %v5542_v24  ;;  %v4234_v62 = vpop.f32.mrf.mxu0 }
 0x1a3   : > { %v1885_v46 = vpop.f32.mrf.mxu1 }
 0x1a4   : > { %v5638_v10 = vadd.f32 %v4195_v4, %v1928_v40  ;;  %v1926_v50 = vadd.f32 %v1885_v46, %v5545_v48  ;;  %v2425_v31 = vpop.f32.mrf.mxu0 }
 0x1a5   : > { %v4200_v38 = vpop.f32.mrf.mxu1 }
 0x1a6   : > { %6049 = vst [vmem:[#allocation11_spill] sm:$0xff] %v5638_v10  ;;  %v5641_v54 = vadd.f32 %v2116_v43, %v1926_v50  ;;  %v2345_v59 = vadd.f32 %v4200_v38, %v5548_v49  ;;  %v5644_v56 = vpop.f32.mrf.mxu0 }
 0x1a7   : > { %v2216_v20 = vpop.f32.mrf.mxu1 }
 0x1a8   : > { %6050 = vst [vmem:[#allocation13_spill] sm:$0xff] %v5641_v54  ;;  %v5646_v41 = vadd.f32 %v4234_v62, %v2345_v59  ;;  %v2343_v16 = vadd.f32 %v2216_v20, %v5551_v12  ;;  %v5649_v24 = vpop.f32.mrf.mxu0 }
 0x1a9   : > { %v5651_v25 = vpop.f32.mrf.mxu1 }
 0x1aa   : > { %v5653_v29 = vadd.f32 %v2425_v31, %v2343_v16  ;;  %v4238_v48 = vpop.f32.mrf.mxu0 }
 0x1ab   : > { %v5655_v53 = vpop.f32.mrf.mxu1 }
 0x1ac   : > { %v2441_v35 = vpop.f32.mrf.mxu0 }
 0x1ad   : > { %v4204_v44 = vpop.f32.mrf.mxu1 }
 0x1ae   : > { %v2349_v49 = vadd.f32 %v4204_v44, %v5560_v61  ;;  %v5658_v22 = vpop.f32.mrf.mxu0 }
 0x1af   : > { %v2232_v18 = vpop.f32.mrf.mxu1 }
 0x1b0   : > { %v5660_v3 = vadd.f32 %v4238_v48, %v2349_v49  ;;  %v2347_v12 = vadd.f32 %v2232_v18, %v5563_v9  ;;  %v5663_v30 = vpop.f32.mrf.mxu0 }
 0x1b1   : > { %v5665_v51 = vpop.f32.mrf.mxu1 }
 0x1b2   : > { %v5667_v21 = vadd.f32 %v2441_v35, %v2347_v12  ;;  %v4242_v17 = vpop.f32.mrf.mxu0 }
 0x1b3   : > { %v5669_v42 = vpop.f32.mrf.mxu1 }
 0x1b4   : > { %v2457_v6 = vpop.f32.mrf.mxu0 }
 0x1b5   : > { %v4208_v4 = vpop.f32.mrf.mxu1 }
 0x1b6   : > { %v2353_v61 = vadd.f32 %v4208_v4, %v5572_v8  ;;  %v5672_v13 = vpop.f32.mrf.mxu0 }
 0x1b7   : > { %v2248_v39 = vpop.f32.mrf.mxu1 }
 0x1b8   : > { %v5674_v43 = vadd.f32 %v4242_v17, %v2353_v61  ;;  %v2351_v9 = vadd.f32 %v2248_v39, %v5575_v58  ;;  %v5677_v26 = vpop.f32.mrf.mxu0 }
 0x1b9   : > { %v5679_v40 = vpop.f32.mrf.mxu1 }
 0x1ba   : > { %v5681_v62 = vadd.f32 %v2457_v6, %v2351_v9  ;;  %v4246_v46 = vpop.f32.mrf.mxu0 }
 0x1bb   : > { %v5683_v50 = vpop.f32.mrf.mxu1 }
 0x1bc   : > { %v2473_v31 = vpop.f32.mrf.mxu0 }
 0x1bd   : > { %v4212_v38 = vpop.f32.mrf.mxu1 }
 0x1be   : > { %v2357_v8 = vadd.f32 %v4212_v38, %v5584_v63  ;;  %v5686_v59 = vpop.f32.mrf.mxu0 }
 0x1bf   : > { %v2264_v20 = vpop.f32.mrf.mxu1 }
 0x1c0   : > { %v5688_v16 = vadd.f32 %v4246_v46, %v2357_v8  ;;  %v2355_v58 = vadd.f32 %v2264_v20, %v5587_v1  ;;  %v5691_v48 = vpop.f32.mrf.mxu0 }
 0x1c1   : > { %v5693_v35 = vpop.f32.mrf.mxu1 }
 0x1c2   : > { %v5695_v44 = vadd.f32 %v2473_v31, %v2355_v58  ;;  %v4250_v49 = vpop.f32.mrf.mxu0 }
 0x1c3   : > { %v5697_v18 = vpop.f32.mrf.mxu1 }
 0x1c4   : > { %v2489_v12 = vpop.f32.mrf.mxu0 }
 0x1c5   : > { %v4216_v17 = vpop.f32.mrf.mxu1 }
 0x1c6   : > { %v2361_v63 = vadd.f32 %v4216_v17, %v5596_v19  ;;  %v5700_v6 = vpop.f32.mrf.mxu0 }
 0x1c7   : > { %v2280_v4 = vpop.f32.mrf.mxu1 }
 0x1c8   : > { %v5702_v61 = vadd.f32 %v4250_v49, %v2361_v63  ;;  %v2359_v1 = vadd.f32 %v2280_v4, %v5599_v60  ;;  %v5705_v39 = vpop.f32.mrf.mxu0 }
 0x1c9   : > { %v5707_v9 = vpop.f32.mrf.mxu1 }
 0x1ca   : > { %v5709_v46 = vadd.f32 %v2489_v12, %v2359_v1  ;;  %v4254_v31 = vpop.f32.mrf.mxu0 }
 0x1cb   : > { %v5711_v38 = vpop.f32.mrf.mxu1 }
 0x1cc   : > { %v2505_v8 = vpop.f32.mrf.mxu0 }
 0x1cd   : > { %v4220_v20 = vpop.f32.mrf.mxu1 }
 0x1ce   : > { %v2365_v19 = vadd.f32 %v4220_v20, %v5608_v57  ;;  %v5714_v58 = vpop.f32.mrf.mxu0 }
 0x1cf   : > { %6051 = vst [vmem:[#allocation15_spill] sm:$0xff] %v5714_v58  ;;  %v2296_v17 = vpop.f32.mrf.mxu1 }
 0x1d0   : > { %v5716_v49 = vadd.f32 %v4254_v31, %v2365_v19  ;;  %v2363_v60 = vadd.f32 %v2296_v17, %v5611_v32  ;;  %v5719_v63 = vpop.f32.mrf.mxu0 }
 0x1d1   : > { %6052 = vst [vmem:[#allocation19_spill] sm:$0xff] %v5719_v63  ;;  %v5721_v4 = vpop.f32.mrf.mxu1 }
 0x1d2   : > { %v5723_v12 = vadd.f32 %v2505_v8, %v2363_v60  ;;  %v4258_v1 = vpop.f32.mrf.mxu0 }
 0x1d3   : > { %v5725_v54 = vpop.f32.mrf.mxu1 }
 0x1d4   : > { %6053 = vst [vmem:[#allocation24_spill] sm:$0xff] %v5723_v12  ;;  %v2521_v10 = vpop.f32.mrf.mxu0 }
 0x1d5   : > { %v4224_v36 = vpop.f32.mrf.mxu1 }
 0x1d6   : > { %v2369_v57 = vadd.f32 %v4224_v36, %v5620_v45  ;;  %v5728_v20 = vpop.f32.mrf.mxu0 }
 0x1d7   : > { %6054 = vst [vmem:[#allocation5_spill] sm:$0xff] %v5728_v20  ;;  %v2312_v37 = vpop.f32.mrf.mxu1 }
 0x1d8   : > { %v5730_v31 = vadd.f32 %v4258_v1, %v2369_v57  ;;  %v2367_v32 = vadd.f32 %v2312_v37, %v5623_v23  ;;  %v5733_v19 = vpop.f32.mrf.mxu0 }
 0x1d9   : > { %6055 = vst [vmem:[#allocation10_spill] sm:$0xff] %v5733_v19  ;;  %v5735_v17 = vpop.f32.mrf.mxu1 }
 0x1da   : > { %v5737_v8 = vadd.f32 %v2521_v10, %v2367_v32  ;;  %v4262_v60 = vpop.f32.mrf.mxu0 }
 0x1db   : > { %v5739_v63 = vpop.f32.mrf.mxu1 }
 0x1dc   : > { %6056 = vst [vmem:[#allocation12_spill] sm:$0xff] %v5737_v8  ;;  %v2537_v12 = vpop.f32.mrf.mxu0  ;;  %v2346_v8 = vadd.f32 %v5651_v25, %v5554_v55  ;;  %v5770_v25 = vld [vmem:[%s5927_s3] ss:$0 sm:$0xff] }
 0x1dd   : > { %v4228_v58 = vpop.f32.mrf.mxu1 }
 0x1de   : > { %v2373_v45 = vadd.f32 %v4228_v58, %v5632_v15  ;;  %v5742_v36 = vpop.f32.mrf.mxu0 }
 0x1df   : > { %6057 = vst [vmem:[#allocation14_spill] sm:$0xff] %v5742_v36  ;;  %v2328_v20 = vpop.f32.mrf.mxu1 }
 0x1e0   : > { %v5744_v1 = vadd.f32 %v4262_v60, %v2373_v45  ;;  %v2371_v23 = vadd.f32 %v2328_v20, %v5635_v27  ;;  %v5747_v37 = vpop.f32.mrf.mxu0  ;;  %v2344_v60 = vadd.f32 %v5655_v53, %v5557_v52  ;;  %v5763_v20 = vld [vmem:[%s5926_s2] ss:$0 sm:$0xff] }
 0x1e1   : > { %6059 = vst [vmem:[#allocation22_spill] sm:$0xff] %v5747_v37  ;;  %v5749_v57 = vpop.f32.mrf.mxu1 }
 0x1e2   : > { %6058 = vst [vmem:[#allocation17_spill] sm:$0xff] %v5744_v1  ;;  %6060 = vst [vmem:[#allocation25_spill] sm:$0xff] %v5749_v57  ;;  %v5751_v10 = vadd.f32 %v2537_v12, %v2371_v23  ;;  %v4302_v32 = vpop.f32.mrf.mxu0  ;;  %v2555_v23 = vadd.f32 %v5644_v56, %v2346_v8  ;;  %v2350_v56 = vadd.f32 %v5665_v51, %v5566_v28 }
 0x1e3   : > { %v5753_v19 = vpop.f32.mrf.mxu1 }
 0x1e4   : > { %6061 = vst [vmem:[#allocation2_spill] sm:$0xff] %v5751_v10  ;;  %6062 = vst [vmem:[#allocation20_spill] sm:$0xff] %v5753_v19  ;;  %v2871_v15 = vpop.f32.mrf.mxu0 }
 0x1e5   : > { %v4268_v58 = vpop.f32.mrf.mxu1 }
 0x1e6   : > { %v2785_v45 = vadd.f32 %v4268_v58, %v5646_v41  ;;  %v4303_v27 = vpop.f32.mrf.mxu0  ;;  %v2553_v41 = vadd.f32 %v5649_v24, %v2344_v60  ;;  %v2348_v24 = vadd.f32 %v5669_v42, %v5569_v5  ;;  %v2354_v5 = vadd.f32 %v5679_v40, %v5578_v2 }
 0x1e7   : > { %v2656_v12 = vpop.f32.mrf.mxu1 }
 0x1e8   : > { %v3000_v37 = vadd.f32 %v4302_v32, %v2785_v45  ;;  %v2783_v10 = vadd.f32 %v2656_v12, %v5653_v29  ;;  %v2874_v55 = vpop.f32.mrf.mxu0 }
 0x1e9   : > { %v4269_v52 = vpop.f32.mrf.mxu1 }
 0x1ea   : > { %v3039_v53 = vmul.f32 %v5763_v20, %v3000_v37  ;;  %v2998_v58 = vadd.f32 %v2871_v15, %v2783_v10  ;;  %v2786_v1 = vadd.f32 %v4269_v52, %v2555_v23  ;;  %v4306_v19 = vpop.f32.mrf.mxu0  ;;  %v2559_v52 = vadd.f32 %v5658_v22, %v2350_v56 }
 0x1eb   : > { %v2659_v8 = vpop.f32.mrf.mxu1 }
 0x1ec   : > { %v3078_v29 = vadd.f32 %v5770_v25, %v3039_v53  ;;  %v3037_v32 = vmul.f32 %v5763_v20, %v2998_v58  ;;  %v3001_v45 = vadd.f32 %v4303_v27, %v2786_v1  ;;  %v2784_v12 = vadd.f32 %v2659_v8, %v2553_v41  ;;  %v2887_v36 = vpop.f32.mrf.mxu0 }
 0x1ed   : > { %v4272_v57 = vpop.f32.mrf.mxu1  ;;  %v2557_v8 = vadd.f32 %v5663_v30, %v2348_v24 }
 0x1ee   : > { %v3076_v37 = vadd.f32 %v5770_v25, %v3037_v32  ;;  %v3040_v10 = vmul.f32 %v5763_v20, %v3001_v45  ;;  %v2999_v15 = vadd.f32 %v2874_v55, %v2784_v12  ;;  %v4307_v60 = vpop.f32.mrf.mxu0  ;;  %v3110_v28 = vmul.f32 0.2, %v3078_v29 }
 0x1ef   : > { %v2789_v51 = vadd.f32 %v4272_v57, %v5660_v3  ;;  %v2672_v23 = vpop.f32.mrf.mxu1 }
 0x1f0   : > { %v3079_v1 = vadd.f32 %v5770_v25, %v3040_v10  ;;  %v3038_v27 = vmul.f32 %v5763_v20, %v2999_v15  ;;  %v2890_v41 = vpop.f32.mrf.mxu0  ;;  %v3108_v42 = vmul.f32 0.2, %v3076_v37  ;;  %v2787_v58 = vadd.f32 %v2672_v23, %v5667_v21 }
 0x1f1   : > { %v3004_v53 = vadd.f32 %v4306_v19, %v2789_v51  ;;  %v4273_v55 = vpop.f32.mrf.mxu1  ;;  %v3142_v32 = vmax.f32 %v3078_v29, %v3110_v28  ;;  %v2563_v21 = vadd.f32 %v5672_v13, %v2354_v5  ;;  %v2352_v13 = vadd.f32 %v5683_v50, %v5581_v14 }
 0x1f2   : > { %v3111_v3 = vmul.f32 0.2, %v3079_v1  ;;  %v3077_v57 = vadd.f32 %v5770_v25, %v3038_v27  ;;  %v2790_v22 = vadd.f32 %v4273_v55, %v2559_v52  ;;  %v4310_v56 = vpop.f32.mrf.mxu0  ;;  %v3002_v12 = vadd.f32 %v2887_v36, %v2787_v58 }
 0x1f3   : > { %v3043_v45 = vmul.f32 %v5763_v20, %v3004_v53  ;;  %v2675_v10 = vpop.f32.mrf.mxu1  ;;  %v3140_v23 = vmax.f32 %v3076_v37, %v3108_v42 }
 0x1f4   : > { %v3143_v15 = vmax.f32 %v3079_v1, %v3111_v3  ;;  %v3109_v2 = vmul.f32 0.2, %v3077_v57  ;;  %v3005_v40 = vadd.f32 %v4307_v60, %v2790_v22  ;;  %v2788_v19 = vadd.f32 %v2675_v10, %v2557_v8  ;;  %v2903_v51 = vpop.f32.mrf.mxu0 }
 0x1f5   : > { %v3082_v30 = vadd.f32 %v5770_v25, %v3043_v45  ;;  %v3041_v29 = vmul.f32 %v5763_v20, %v3002_v12  ;;  %v4276_v36 = vpop.f32.mrf.mxu1  ;;  %v2561_v12 = vadd.f32 %v5677_v26, %v2352_v13  ;;  %v2358_v10 = vadd.f32 %v5693_v35, %v5590_v34 }
 0x1f6   : > { %v3786_v24 = vpack.c.bf16 %v3143_v15, %v3142_v32  ;;  %v3141_v28 = vmax.f32 %v3077_v57, %v3109_v2  ;;  %v3044_v60 = vmul.f32 %v5763_v20, %v3005_v40  ;;  %v3003_v52 = vadd.f32 %v2890_v41, %v2788_v19  ;;  %v4311_v1 = vpop.f32.mrf.mxu0 }
 0x1f7   : > { %v3114_v37 = vmul.f32 0.2, %v3082_v30  ;;  %v3080_v27 = vadd.f32 %v5770_v25, %v3041_v29  ;;  %v2793_v5 = vadd.f32 %v4276_v36, %v5674_v43  ;;  %v2688_v42 = vpop.f32.mrf.mxu1 }
 0x1f8   : > { %3858 = vst [vmem:[%s5797_s25 + $0x8] sm:$0xff] %v3786_v24   ;;  %v3781_v53 = vpack.c.bf16 %v3141_v28, %v3140_v23  ;;  %v3083_v58 = vadd.f32 %v5770_v25, %v3044_v60  ;;  %v3042_v55 = vmul.f32 %v5763_v20, %v3003_v52  ;;  %v2791_v8 = vadd.f32 %v2688_v42, %v5681_v62  ;;  %v2906_v41 = vpop.f32.mrf.mxu0 }
 0x1f9   : > { %v3112_v3 = vmul.f32 0.2, %v3080_v27  ;;  %v3008_v57 = vadd.f32 %v4310_v56, %v2793_v5  ;;  %v4277_v22 = vpop.f32.mrf.mxu1  ;;  %v3146_v15 = vmax.f32 %v3082_v30, %v3114_v37 }
 0x1fa   : > { %3782 = vst [vmem:[%s5797_s25] sm:$0xff] %v3781_v53   ;;  %v3115_v14 = vmul.f32 0.2, %v3083_v58  ;;  %v3081_v50 = vadd.f32 %v5770_v25, %v3042_v55  ;;  %v3006_v32 = vadd.f32 %v2903_v51, %v2791_v8  ;;  %v2794_v45 = vadd.f32 %v4277_v22, %v2563_v21  ;;  %v4314_v43 = vpop.f32.mrf.mxu0 }
 0x1fb   : > { %v3047_v2 = vmul.f32 %v5763_v20, %v3008_v57  ;;  %v2691_v62 = vpop.f32.mrf.mxu1  ;;  %v2356_v51 = vadd.f32 %v5697_v18, %v5593_v7  ;;  %v3144_v24 = vmax.f32 %v3080_v27, %v3112_v3  ;;  %v2567_v7 = vadd.f32 %v5686_v59, %v2358_v10 }
 0x1fc   : > { %v3147_v40 = vmax.f32 %v3083_v58, %v3115_v14  ;;  %v3113_v19 = vmul.f32 0.2, %v3081_v50  ;;  %v3045_v56 = vmul.f32 %v5763_v20, %v3006_v32  ;;  %v3009_v23 = vadd.f32 %v4311_v1, %v2794_v45  ;;  %v2919_v29 = vpop.f32.mrf.mxu0 }
 0x1fd   : > { %v3086_v21 = vadd.f32 %v5770_v25, %v3047_v2  ;;  %v2792_v26 = vadd.f32 %v2691_v62, %v2561_v12  ;;  %v4280_v36 = vpop.f32.mrf.mxu1  ;;  %v2565_v8 = vadd.f32 %v5691_v48, %v2356_v51  ;;  %v2362_v48 = vadd.f32 %v5707_v9, %v5602_v47 }
 0x1fe   : > { %v3796_v34 = vpack.c.bf16 %v3147_v40, %v3146_v15  ;;  %v3145_v35 = vmax.f32 %v3081_v50, %v3113_v19  ;;  %v3048_v30 = vmul.f32 %v5763_v20, %v3009_v23  ;;  %v4315_v28 = vpop.f32.mrf.mxu0  ;;  %v3084_v52 = vadd.f32 %v5770_v25, %v3045_v56 }
 0x1ff   : > { %v3118_v60 = vmul.f32 0.2, %v3086_v21  ;;  %v3007_v1 = vadd.f32 %v2906_v41, %v2792_v26  ;;  %v2797_v13 = vadd.f32 %v4280_v36, %v5688_v16  ;;  %v2704_v37 = vpop.f32.mrf.mxu1  ;;  %v2360_v15 = vadd.f32 %v5711_v38, %v5605_v0 }
 0x200   : > { %3860 = vst [vmem:[%s5797_s25 + $0x18] sm:$0xff] %v3796_v34   ;;  %v3791_v18 = vpack.c.bf16 %v3145_v35, %v3144_v24  ;;  %v3087_v5 = vadd.f32 %v5770_v25, %v3048_v30  ;;  %v2795_v27 = vadd.f32 %v2704_v37, %v5695_v44  ;;  %v2922_v42 = vpop.f32.mrf.mxu0  ;;  %v3116_v59 = vmul.f32 0.2, %v3084_v52 }
 0x201   : > { %v3046_v53 = vmul.f32 %v5763_v20, %v3007_v1  ;;  %v3012_v58 = vadd.f32 %v4314_v43, %v2797_v13  ;;  %v4281_v55 = vpop.f32.mrf.mxu1  ;;  %v3150_v22 = vmax.f32 %v3086_v21, %v3118_v60  ;;  %v2571_v35 = vadd.f32 %v5700_v6, %v2362_v48 }
 0x202   : > { %3859 = vst [vmem:[%s5797_s25 + $0x10] sm:$0xff] %v3791_v18   ;;  %v3119_v41 = vmul.f32 0.2, %v3087_v5  ;;  %v3010_v3 = vadd.f32 %v2919_v29, %v2795_v27  ;;  %v2798_v16 = vadd.f32 %v4281_v55, %v2567_v7  ;;  %v4318_v57 = vpop.f32.mrf.mxu0  ;;  %v3148_v21 = vmax.f32 %v3084_v52, %v3116_v59 }
 0x203   : > { %v3085_v14 = vadd.f32 %v5770_v25, %v3046_v53  ;;  %v3051_v50 = vmul.f32 %v5763_v20, %v3012_v58  ;;  %v2707_v32 = vpop.f32.mrf.mxu1  ;;  %v2569_v1 = vadd.f32 %v5705_v39, %v2360_v15  ;;  %v2366_v18 = vadd.f32 %v5721_v4, %v5614_v33 }
 0x204   : > { %v3151_v44 = vmax.f32 %v3087_v5, %v3119_v41  ;;  %v3049_v45 = vmul.f32 %v5763_v20, %v3010_v3  ;;  %v3013_v12 = vadd.f32 %v4315_v28, %v2798_v16  ;;  %v2796_v43 = vadd.f32 %v2707_v32, %v2565_v8  ;;  %v2935_v10 = vpop.f32.mrf.mxu0 }
 0x205   : > { %v3117_v2 = vmul.f32 0.2, %v3085_v14  ;;  %v3090_v62 = vadd.f32 %v5770_v25, %v3051_v50  ;;  %v4284_v40 = vpop.f32.mrf.mxu1  ;;  %v2364_v8 = vadd.f32 %v5725_v54, %v5617_v11 }
 0x206   : > { %v3806_v19 = vpack.c.bf16 %v3151_v44, %v3150_v22  ;;  %v3088_v56 = vadd.f32 %v5770_v25, %v3049_v45  ;;  %v3052_v23 = vmul.f32 %v5763_v20, %v3013_v12  ;;  %v3011_v29 = vadd.f32 %v2922_v42, %v2796_v43  ;;  %v4319_v51 = vpop.f32.mrf.mxu0  ;;  %v6063_v45 = vld [vmem:[#allocation15_spill] sm:$0xff]  ;;  %v6064_v43 = vld [vmem:[#allocation24_spill] sm:$0xff] }
 0x207   : > { %v3149_v26 = vmax.f32 %v3085_v14, %v3117_v2  ;;  %v3122_v36 = vmul.f32 0.2, %v3090_v62  ;;  %v2801_v24 = vadd.f32 %v4284_v40, %v5702_v61  ;;  %v2720_v47 = vpop.f32.mrf.mxu1  ;;  %v2575_v12 = vadd.f32 %v6063_v45, %v2366_v18 }
 0x208   : > { %3862 = vst [vmem:[%s5797_s25 + $0x28] sm:$0xff] %v3806_v19   ;;  %v3091_v0 = vadd.f32 %v5770_v25, %v3052_v23  ;;  %v3050_v9 = vmul.f32 %v5763_v20, %v3011_v29  ;;  %v2799_v38 = vadd.f32 %v2720_v47, %v5709_v46  ;;  %v2938_v34 = vpop.f32.mrf.mxu0  ;;  %v3120_v28 = vmul.f32 0.2, %v3088_v56 }
 0x209   : > { %v3801_v30 = vpack.c.bf16 %v3149_v26, %v3148_v21  ;;  %v3016_v60 = vadd.f32 %v4318_v57, %v2801_v24  ;;  %v4285_v52 = vpop.f32.mrf.mxu1  ;;  %v3154_v5 = vmax.f32 %v3090_v62, %v3122_v36  ;;  %v6066_v26 = vld [vmem:[#allocation9_spill] sm:$0xff]  ;;  %v6067_v24 = vld [vmem:[#allocation7_spill] sm:$0xff] }
 0x20a   : > { %v3123_v13 = vmul.f32 0.2, %v3091_v0  ;;  %v3089_v61 = vadd.f32 %v5770_v25, %v3050_v9  ;;  %v3014_v37 = vadd.f32 %v2935_v10, %v2799_v38  ;;  %v4322_v7 = vpop.f32.mrf.mxu0  ;;  %v2802_v27 = vadd.f32 %v4285_v52, %v2571_v35 }
 0x20b   : > { %3861 = vst [vmem:[%s5797_s25 + $0x20] sm:$0xff] %v3801_v30   ;;  %v3055_v46 = vmul.f32 %v5763_v20, %v3016_v60  ;;  %v2723_v6 = vpop.f32.mrf.mxu1  ;;  %v3152_v41 = vmax.f32 %v3088_v56, %v3120_v28  ;;  %v6065_v56 = vld [vmem:[#allocation19_spill] sm:$0xff]  ;;  %v2370_v36 = vadd.f32 %v5735_v17, %v6066_v26  ;;  %v2368_v47 = vadd.f32 %v5739_v63, %v6067_v24 }
 0x20c   : > { %v3155_v42 = vmax.f32 %v3091_v0, %v3123_v13  ;;  %v3121_v53 = vmul.f32 0.2, %v3089_v61  ;;  %v3053_v58 = vmul.f32 %v5763_v20, %v3014_v37  ;;  %v2800_v55 = vadd.f32 %v2723_v6, %v2569_v1  ;;  %v2951_v39 = vpop.f32.mrf.mxu0 }
 0x20d   : > { %v3094_v3 = vadd.f32 %v5770_v25, %v3055_v46  ;;  %v3017_v33 = vadd.f32 %v4319_v51, %v2802_v27  ;;  %v4288_v4 = vpop.f32.mrf.mxu1  ;;  %v2573_v23 = vadd.f32 %v6065_v56, %v2364_v8 }
 0x20e   : > { %v3816_v16 = vpack.c.bf16 %v3155_v42, %v3154_v5  ;;  %v3153_v57 = vmax.f32 %v3089_v61, %v3121_v53  ;;  %v3092_v22 = vadd.f32 %v5770_v25, %v3053_v58  ;;  %v3015_v59 = vadd.f32 %v2938_v34, %v2800_v55  ;;  %v4323_v14 = vpop.f32.mrf.mxu0  ;;  %v6068_v53 = vld [vmem:[#allocation5_spill] sm:$0xff] }
 0x20f   : > { %v3056_v50 = vmul.f32 %v5763_v20, %v3017_v33  ;;  %v2805_v32 = vadd.f32 %v4288_v4, %v5716_v49  ;;  %v2736_v44 = vpop.f32.mrf.mxu1  ;;  %v3126_v15 = vmul.f32 0.2, %v3094_v3  ;;  %v2579_v58 = vadd.f32 %v6068_v53, %v2370_v36  ;;  %v6070_v33 = vld [vmem:[#allocation25_spill] sm:$0xff] }
 0x210   : > { %3864 = vst [vmem:[%s5797_s25 + $0x38] sm:$0xff] %v3816_v16   ;;  %v3811_v11 = vpack.c.bf16 %v3153_v57, %v3152_v41  ;;  %v3054_v54 = vmul.f32 %v5763_v20, %v3015_v59  ;;  %v2803_v10 = vadd.f32 %v2736_v44, %v6064_v43  ;;  %v2954_v48 = vpop.f32.mrf.mxu0  ;;  %v3124_v2 = vmul.f32 0.2, %v3092_v22 }
 0x211   : > { %v3095_v62 = vadd.f32 %v5770_v25, %v3056_v50  ;;  %v3020_v40 = vadd.f32 %v4322_v7, %v2805_v32  ;;  %v4289_v19 = vpop.f32.mrf.mxu1  ;;  %v3158_v52 = vmax.f32 %v3094_v3, %v3126_v15  ;;  %v6069_v3 = vld [vmem:[#allocation11_spill] sm:$0xff]  ;;  %v6072_v50 = vld [vmem:[#allocation10_spill] sm:$0xff] }
 0x212   : > { %3863 = vst [vmem:[%s5797_s25 + $0x30] sm:$0xff] %v3811_v11   ;;  %v3093_v49 = vadd.f32 %v5770_v25, %v3054_v54  ;;  %v3018_v29 = vadd.f32 %v2951_v39, %v2803_v10  ;;  %v2806_v51 = vadd.f32 %v4289_v19, %v2575_v12  ;;  %v4326_v21 = vpop.f32.mrf.mxu0  ;;  %v3156_v1 = vmax.f32 %v3092_v22, %v3124_v2  ;;  %v6071_v22 = vld [vmem:[#allocation12_spill] sm:$0xff] }
 0x213   : > { %v3127_v0 = vmul.f32 0.2, %v3095_v62  ;;  %v3059_v9 = vmul.f32 %v5763_v20, %v3020_v40  ;;  %v2739_v38 = vpop.f32.mrf.mxu1  ;;  %v2374_v4 = vadd.f32 %v6070_v33, %v6069_v3  ;;  %v6073_v40 = vld [vmem:[#allocation14_spill] sm:$0xff] }
 0x214   : > { %v3125_v34 = vmul.f32 0.2, %v3093_v49  ;;  %v3057_v35 = vmul.f32 %v5763_v20, %v3018_v29  ;;  %v3021_v30 = vadd.f32 %v4323_v14, %v2806_v51  ;;  %v2804_v28 = vadd.f32 %v2739_v38, %v2573_v23  ;;  %v2967_v60 = vpop.f32.mrf.mxu0 }
 0x215   : > { %v3159_v13 = vmax.f32 %v3095_v62, %v3127_v0  ;;  %v3098_v61 = vadd.f32 %v5770_v25, %v3059_v9  ;;  %v4292_v37 = vpop.f32.mrf.mxu1  ;;  %v2583_v19 = vadd.f32 %v6073_v40, %v2374_v4  ;;  %v6075_v0 = vld [vmem:[#allocation20_spill] sm:$0xff] }
 0x216   : > { %v3157_v17 = vmax.f32 %v3093_v49, %v3125_v34  ;;  %v3096_v63 = vadd.f32 %v5770_v25, %v3057_v35  ;;  %v3060_v7 = vmul.f32 %v5763_v20, %v3021_v30  ;;  %v3019_v18 = vadd.f32 %v2954_v48, %v2804_v28  ;;  %v4327_v5 = vpop.f32.mrf.mxu0  ;;  %v6076_v35 = vld [vmem:[#allocation17_spill] sm:$0xff] }
 0x217   : > { %v3826_v46 = vpack.c.bf16 %v3159_v13, %v3158_v52  ;;  %v3130_v27 = vmul.f32 0.2, %v3098_v61  ;;  %v2809_v6 = vadd.f32 %v4292_v37, %v5730_v31  ;;  %v2752_v42 = vpop.f32.mrf.mxu1  ;;  %v2577_v31 = vadd.f32 %v6072_v50, %v2368_v47  ;;  %v6074_v47 = vld [vmem:[#allocation13_spill] sm:$0xff]  ;;  %v6077_v13 = vld [vmem:[#allocation2_spill] sm:$0xff] }
 0x218   : > { %v3821_v55 = vpack.c.bf16 %v3157_v17, %v3156_v1  ;;  %v3099_v39 = vadd.f32 %v5770_v25, %v3060_v7  ;;  %v3058_v8 = vmul.f32 %v5763_v20, %v3019_v18  ;;  %v2970_v41 = vpop.f32.mrf.mxu0  ;;  %v3128_v16 = vmul.f32 0.2, %v3096_v63 }
 0x219   : > { %3866 = vst [vmem:[%s5797_s25 + $0x48] sm:$0xff] %v3826_v46   ;;  %v3024_v57 = vadd.f32 %v4326_v21, %v2809_v6  ;;  %v2807_v59 = vadd.f32 %v2752_v42, %v6071_v22  ;;  %v4293_v14 = vpop.f32.mrf.mxu1  ;;  %v3162_v11 = vmax.f32 %v3098_v61, %v3130_v27  ;;  %v2372_v9 = vadd.f32 %v6075_v0, %v6074_v47  ;;  %v6078_v6 = vld [vmem:[#allocation22_spill] sm:$0xff] }
 0x21a   : > { %3865 = vst [vmem:[%s5797_s25 + $0x40] sm:$0xff] %v3821_v55   ;;  %v3131_v32 = vmul.f32 0.2, %v3099_v39  ;;  %v3097_v44 = vadd.f32 %v5770_v25, %v3058_v8  ;;  %v2810_v45 = vadd.f32 %v4293_v14, %v2579_v58  ;;  %v4330_v12 = vpop.f32.mrf.mxu0  ;;  %v3160_v56 = vmax.f32 %v3096_v63, %v3128_v16 }
 0x21b   : > { %v3063_v54 = vmul.f32 %v5763_v20, %v3024_v57  ;;  %v3022_v43 = vadd.f32 %v2967_v60, %v2807_v59  ;;  %v2755_v10 = vpop.f32.mrf.mxu1  ;;  %v2581_v42 = vadd.f32 %v6078_v6, %v2372_v9 }
 0x21c   : > { %v3163_v48 = vmax.f32 %v3099_v39, %v3131_v32  ;;  %v3129_v15 = vmul.f32 0.2, %v3097_v44  ;;  %v3025_v2 = vadd.f32 %v4327_v5, %v2810_v45  ;;  %v2808_v62 = vadd.f32 %v2755_v10, %v2577_v31  ;;  %v2983_v24 = vpop.f32.mrf.mxu0 }
 0x21d   : > { %v3102_v23 = vadd.f32 %v5770_v25, %v3063_v54  ;;  %v3061_v49 = vmul.f32 %v5763_v20, %v3022_v43  ;;  %v4296_v29 = vpop.f32.mrf.mxu1 }
 0x21e   : > { %v3836_v51 = vpack.c.bf16 %v3163_v48, %v3162_v11  ;;  %v3161_v21 = vmax.f32 %v3097_v44, %v3129_v15  ;;  %v3064_v26 = vmul.f32 %v5763_v20, %v3025_v2  ;;  %v3023_v36 = vadd.f32 %v2970_v41, %v2808_v62  ;;  %v4331_v27 = vpop.f32.mrf.mxu0 }
 0x21f   : > { %v3134_v38 = vmul.f32 0.2, %v3102_v23  ;;  %v3100_v34 = vadd.f32 %v5770_v25, %v3061_v49  ;;  %v2813_v30 = vadd.f32 %v4296_v29, %v6076_v35  ;;  %v2768_v28 = vpop.f32.mrf.mxu1 }
 0x220   : > { %3868 = vst [vmem:[%s5797_s25 + $0x58] sm:$0xff] %v3836_v51   ;;  %v3831_v60 = vpack.c.bf16 %v3161_v21, %v3160_v56  ;;  %v3103_v52 = vadd.f32 %v5770_v25, %v3064_v26  ;;  %v3062_v1 = vmul.f32 %v5763_v20, %v3023_v36  ;;  %v2811_v61 = vadd.f32 %v2768_v28, %v6077_v13  ;;  %v2986_v14 = vpop.f32.mrf.mxu0 }
 0x221   : > { %v3132_v37 = vmul.f32 0.2, %v3100_v34  ;;  %v3028_v17 = vadd.f32 %v4330_v12, %v2813_v30  ;;  %v4297_v63 = vpop.f32.mrf.mxu1  ;;  %v3166_v53 = vmax.f32 %v3102_v23, %v3134_v38 }
 0x222   : > { %3867 = vst [vmem:[%s5797_s25 + $0x50] sm:$0xff] %v3831_v60   ;;  %v3135_v7 = vmul.f32 0.2, %v3103_v52  ;;  %v3101_v18 = vadd.f32 %v5770_v25, %v3062_v1  ;;  %v3026_v5 = vadd.f32 %v2983_v24, %v2811_v61  ;;  %v2814_v46 = vadd.f32 %v4297_v63, %v2583_v19 }
 0x223   : > { %v3067_v58 = vmul.f32 %v5763_v20, %v3028_v17  ;;  %v2771_v55 = vpop.f32.mrf.mxu1  ;;  %v3164_v16 = vmax.f32 %v3100_v34, %v3132_v37 }
 0x224   : > { %v3167_v39 = vmax.f32 %v3103_v52, %v3135_v7  ;;  %v3133_v8 = vmul.f32 0.2, %v3101_v18  ;;  %v3065_v41 = vmul.f32 %v5763_v20, %v3026_v5  ;;  %v3029_v3 = vadd.f32 %v4331_v27, %v2814_v46 }
 0x225   : > { %v3106_v33 = vadd.f32 %v5770_v25, %v3067_v58  ;;  %v2812_v4 = vadd.f32 %v2771_v55, %v2581_v42 }
 0x226   : > { %v3846_v57 = vpack.c.bf16 %v3167_v39, %v3166_v53  ;;  %v3165_v22 = vmax.f32 %v3101_v18, %v3133_v8  ;;  %v3068_v59 = vmul.f32 %v5763_v20, %v3029_v3  ;;  %v3104_v50 = vadd.f32 %v5770_v25, %v3065_v41 }
 0x227   : > { %v3027_v31 = vadd.f32 %v2986_v14, %v2812_v4  ;;  %v3138_v44 = vmul.f32 0.2, %v3106_v33 }
 0x228   : > { %3870 = vst [vmem:[%s5797_s25 + $0x68] sm:$0xff] %v3846_v57   ;;  %v3841_v32 = vpack.c.bf16 %v3165_v22, %v3164_v16  ;;  %v3107_v45 = vadd.f32 %v5770_v25, %v3068_v59  ;;  %v3136_v54 = vmul.f32 0.2, %v3104_v50 }
 0x229   : > { %v3066_v12 = vmul.f32 %v5763_v20, %v3027_v31  ;;  %v3170_v10 = vmax.f32 %v3106_v33, %v3138_v44 }
 0x22a   : > { %3869 = vst [vmem:[%s5797_s25 + $0x60] sm:$0xff] %v3841_v32   ;;  %v3139_v11 = vmul.f32 0.2, %v3107_v45  ;;  %v3168_v62 = vmax.f32 %v3104_v50, %v3136_v54 }
 0x22b   : > { %v3105_v43 = vadd.f32 %v5770_v25, %v3066_v12 }
 0x22c   : > { %v3171_v48 = vmax.f32 %v3107_v45, %v3139_v11 }
 0x22d   : > { %v3137_v15 = vmul.f32 0.2, %v3105_v43 }
 0x22e   : > { %v3856_v2 = vpack.c.bf16 %v3171_v48, %v3170_v10 }
 0x22f   : > { %v3169_v40 = vmax.f32 %v3105_v43, %v3137_v15 }
 0x230   : > { %3872 = vst [vmem:[%s5797_s25 + $0x78] sm:$0xff] %v3856_v2  }
 0x231   : > { %v3851_v19 = vpack.c.bf16 %v3169_v40, %v3168_v62 }
 0x233   : > { %3871 = vst [vmem:[%s5797_s25 + $0x70] sm:$0xff] %v3851_v19  }
 0x234 PF: > { %s14_s17 = sadd.s32 1, %s4408_s17   ;;  %s6079_s15 = smov %s4404_s16 }
 0x235   : > { %p11_p5 = scmp.ge.s32.totalorder %s14_s17, 4   ;;  %s6080_s16 = smov %s6082_s18 }
 0x237   :  { %13 = sbr.rel (!%p11_p5) target bundleno = 2 (0x2), region = 76 }

// kernel: _lambda_.11
= control target key start
LH: loop header
LB: loop body
LE: loop exit
PB: predicated region body
PF: predicated region fallthrough
CT: control target
= control target key end

     0   :  { %s2628_s15 = smov 0   ;;  %s2630_s16 = smov 0   ;;  %s3154_s0 = inlined_call_operand.vmem [shape: bf16[2,10,18,128], index: 0, kind: input, shape index: {}]   ;;  %s3155_s1 = inlined_call_operand.vmem [shape: bf16[1152,128], index: 1, kind: input, shape index: {}]   ;;  %s3156_s2 = inlined_call_operand.vmem [shape: f32[1,128], index: 2, kind: input, shape index: {}]   ;;  %s3157_s3 = inlined_call_operand.vmem [shape: f32[1,128], index: 3, kind: input, shape index: {}]   ;;  %s3158_s4 = inlined_call_operand.vmem [shape: bf16[2,8,16,128], index: 4, kind: output, shape index: {}]  }
   0x1   :  { %s2632_s17 = smov 0  }
   0x2 LB: > { %s29_s18 = sadd.s32 1, %s2596_s16  ;;  %p1968_p0 = scmp.ge.s32.totalorder %s2600_s17, 1  ;;  %s2600_s17 = sphi %s2632_s17, %s14_s17   ;;  %s2596_s16 = sphi %s2630_s16, %s3160_s16   ;;  %s2592_s15 = sphi %s2628_s15, %s3159_s15  }
   0x3   : > { %p31_p1 = scmp.ge.s32.totalorder %s29_s18, 2  ;;  %p210_p2 = scmp.lt.s32.totalorder %s2600_s17, 3 }
   0x5   : > { %s3162_s18 = smov (%p31_p1, %s29_s18), 0  ;;  %p211_p3 = pnand %p1968_p0, %p210_p2 }
   0x6   : > { %p254_p4 = scmp.lt.s32.totalorder (!%p211_p3), %s2592_s15, 1 }
   0x7   : > { %214 = sbr.rel (%p211_p3) target bundleno = 391 (0x187), region = 36 }
   0xc   : > { %v2486_v0 = vld [vmem:[%s3155_s1 + $0x78] sm:$0xff]   ;;  %v2490_v4 = vld [vmem:[%s3155_s1 + $0x70] sm:$0xff]   ;;  %v2494_v8 = vld [vmem:[%s3155_s1 + $0x68] sm:$0xff]   ;;  %s3164_s15 = smov (!%p254_p4, %s2592_s15), 1  ;;  %vm390_vm0 = vsmask.f32 7424 }
   0xd   : > { %v2487_v1 = vld [vmem:[%s3155_s1 + $0xf8] sm:$0xff]   ;;  %2140 = vmatprep.subr.bf16.mxu0 %v2486_v0  ;;  %v2491_v5 = vld [vmem:[%s3155_s1 + $0xf0] sm:$0xff]   ;;  %v2495_v9 = vld [vmem:[%s3155_s1 + $0xe8] sm:$0xff]   ;;  %s2460_s29 = smul.u32 120, %s3164_s15  ;;  %vm495_vm1 = vcmask 1046528   ;;  %s2084_s20 = sshll.u32 %s3164_s15, 6 }
   0xe   : > { %v2488_v2 = vld [vmem:[%s3155_s1 + $0x38] sm:$0xff]   ;;  %2204 = vmatprep.subr.bf16.mxu1 %v2487_v1  ;;  %v2492_v6 = vld [vmem:[%s3155_s1 + $0x30] sm:$0xff]   ;;  %v2496_v10 = vld [vmem:[%s3155_s1 + $0x28] sm:$0xff]   ;;  %s3126_s22 = scalar_lea.vmem %s3158_s4, %s2084_s20 }
   0xf   : > { %v2489_v3 = vld [vmem:[%s3155_s1 + $0xb8] sm:$0xff]   ;;  %2141 = vmatpush3.bf16.msra.mxu0 %v2488_v2  ;;  %v2493_v7 = vld [vmem:[%s3155_s1 + $0xb0] sm:$0xff]   ;;  %v2497_v11 = vld [vmem:[%s3155_s1 + $0xa8] sm:$0xff]   ;;  %s2749_s14 = scalar_lea.vmem %s3154_s0, %s2460_s29 }
  0x10   : > { %2205 = vmatpush3.bf16.msra.mxu1 %v2489_v3  ;;  %2142 = vmatprep.subr.bf16.mxu0 %v2490_v4  ;;  %v2498_v12 = vld [vmem:[%s3155_s1 + $0x60] sm:$0xff]   ;;  %v2502_v16 = vld [vmem:[%s3155_s1 + $0x58] sm:$0xff]   ;;  %v2506_v20 = vld [vmem:[%s3155_s1 + $0x50] sm:$0xff]  }
  0x11   : > { %2206 = vmatprep.subr.bf16.mxu1 %v2491_v5  ;;  %v2499_v13 = vld [vmem:[%s3155_s1 + $0xe0] sm:$0xff]   ;;  %v2503_v17 = vld [vmem:[%s3155_s1 + $0xd8] sm:$0xff]   ;;  %v2507_v21 = vld [vmem:[%s3155_s1 + $0xd0] sm:$0xff]  }
  0x12   : > { %v2500_v14 = vld [vmem:[%s3155_s1 + $0x20] sm:$0xff]   ;;  %v2504_v18 = vld [vmem:[%s3155_s1 + $0x18] sm:$0xff]   ;;  %v2508_v22 = vld [vmem:[%s3155_s1 + $0x10] sm:$0xff]  }
  0x13   : > { %2143 = vmatpush3.bf16.msra.mxu0 %v2492_v6  ;;  %v2501_v15 = vld [vmem:[%s3155_s1 + $0xa0] sm:$0xff]   ;;  %v2505_v19 = vld [vmem:[%s3155_s1 + $0x98] sm:$0xff]   ;;  %v2509_v23 = vld [vmem:[%s3155_s1 + $0x90] sm:$0xff]  }
  0x14   : > { %2207 = vmatpush3.bf16.msra.mxu1 %v2493_v7  ;;  %2144 = vmatprep.subr.bf16.mxu0 %v2494_v8  ;;  %v2510_v24 = vld [vmem:[%s3155_s1 + $0x48] sm:$0xff]   ;;  %v2514_v28 = vld [vmem:[%s3155_s1 + $0x40] sm:$0xff]   ;;  %v2521_v40 = vld [vmem:[%s3155_s1 + $0x178] sm:$0xff]  }
  0x15   : > { %2208 = vmatprep.subr.bf16.mxu1 %v2495_v9  ;;  %v2511_v25 = vld [vmem:[%s3155_s1 + $0xc8] sm:$0xff]   ;;  %v2515_v29 = vld [vmem:[%s3155_s1 + $0xc0] sm:$0xff]   ;;  %v2522_v43 = vld [vmem:[%s3155_s1 + $0x1f8] sm:$0xff]  }
  0x16   : > { %v2512_v26 = vld [vmem:[%s3155_s1 + $0x8] sm:$0xff]   ;;  %v2516_v30 = vld [vmem:[%s3155_s1] sm:$0xff]   ;;  %v2523_v45 = vld [vmem:[%s3155_s1 + $0x138] sm:$0xff]  }
  0x17   : > { %2145 = vmatpush3.bf16.msra.mxu0 %v2496_v10  ;;  %v2513_v27 = vld [vmem:[%s3155_s1 + $0x88] sm:$0xff]   ;;  %v2517_v31 = vld [vmem:[%s3155_s1 + $0x80] sm:$0xff]   ;;  %v2524_v47 = vld [vmem:[%s3155_s1 + $0x1b8] sm:$0xff]  }
  0x18   : > { %2209 = vmatpush3.bf16.msra.mxu1 %v2497_v11  ;;  %2146 = vmatprep.subr.bf16.mxu0 %v2498_v12  ;;  %v2518_v32 = vld [vmem:[%s2749_s14] sm:$0xff]   ;;  %v2519_v33 = vld [vmem:[%s2749_s14 + $0x8] ss:$0 sps:$4 sm:$0x11]   ;;  %v2520_v34 = vld [vmem:[%s2749_s14 + $0xc] sm:$0xff]  }
  0x19   : > { %2210 = vmatprep.subr.bf16.mxu1 %v2499_v13  ;;  %v392_v35 = vshrl.u32 %v2518_v32, 16  ;;  %v394_v36 = vshll.u32 %v2518_v32, 16  ;;  %v399_v37 = vshll.u32 %v2519_v33, 16  ;;  %v496_v38 = vrot.slane %v2518_v32, 1  ;;  %1285 = vmatprep.mubr.bf16.mxu1 %v2520_v34  ;;  %v2773_v52 = vld [vmem:[%s2749_s14 + $0x18] sm:$0xff]   ;;  %v2527_v57 = vld [vmem:[%s3155_s1 + $0x170] sm:$0xff]  }
  0x1a   : > { %v497_v39 = vrot.slane %v2519_v33, 1  ;;  %v404_v48 = vshrl.u32 %v2520_v34, 16  ;;  %v2525_v49 = vld [vmem:[%s2749_s14 + $0x14] ss:$0 sps:$4 sm:$0x11]   ;;  %v406_v50 = vshll.u32 %v2520_v34, 16 }
  0x1b   : > { %2147 = vmatpush3.bf16.msra.mxu0 %v2500_v14  ;;  %v396_v41 = vrot.slane %v394_v36, 1  ;;  %v401_v42 = vrot.slane %v399_v37, 1  ;;  %v499_v53 = vrot.slane %v2520_v34, 1  ;;  %v411_v55 = vshll.u32 %v2525_v49, 16  ;;  %v2528_v58 = vld [vmem:[%s3155_s1 + $0x1f0] sm:$0xff]   ;;  %v2798_v4 = vld [vmem:[%s2749_s14 + $0x24] sm:$0xff]  }
  0x1c   : > { %2211 = vmatpush3.bf16.msra.mxu1 %v2501_v15  ;;  %2148 = vmatprep.subr.bf16.mxu0 %v2502_v16  ;;  %v498_v44 = vsel %vm495_vm1, %v496_v38, %v497_v39  ;;  %v408_v54 = vrot.slane %v406_v50, 1  ;;  %v500_v56 = vrot.slane %v2525_v49, 1  ;;  %v416_v59 = vshrl.u32 %v2773_v52, 16  ;;  %v2529_v63 = vld [vmem:[%s3155_s1 + $0x130] sm:$0xff]   ;;  %v2533_v10 = vld [vmem:[%s3155_s1 + $0x168] sm:$0xff]  }
  0x1d   : > { %2212 = vmatprep.subr.bf16.mxu1 %v2503_v17  ;;  %v397_v46 = vor.u32 %v396_v41, %v392_v35  ;;  %v413_v61 = vrot.slane %v411_v55, 1  ;;  %v2530_v0 = vld [vmem:[%s3155_s1 + $0x1b0] sm:$0xff]   ;;  %v418_v1 = vshll.u32 %v2773_v52, 16  ;;  %v2531_v3 = vld [vmem:[%s2749_s14 + $0x20] ss:$0 sps:$4 sm:$0x11]  }
  0x1e   : > { %v409_v60 = vor.u32 %v408_v54, %v404_v48  ;;  %v2784_v62 = vsel %vm495_vm1, %v499_v53, %v500_v56  ;;  %v502_v6 = vrot.slane %v2773_v52, 1  ;;  %v423_v7 = vshll.u32 %v2531_v3, 16  ;;  %v2534_v13 = vld [vmem:[%s3155_s1 + $0x1e8] sm:$0xff]   ;;  %v2543_v33 = vld [vmem:[%s2749_s14 + $0x38] ss:$0 sps:$4 sm:$0x11]  }
  0x1f   : > { %2149 = vmatpush3.bf16.msra.mxu0 %v2504_v18  ;;  %v402_v51 = vsel %vm390_vm0, %v397_v46, %v401_v42  ;;  %v420_v5 = vrot.slane %v418_v1, 1  ;;  %v503_v8 = vrot.slane %v2531_v3, 1  ;;  %v428_v11 = vshrl.u32 %v2798_v4, 16  ;;  %v2535_v14 = vld [vmem:[%s3155_s1 + $0x128] sm:$0xff]   ;;  %v2852_v35 = vld [vmem:[%s2749_s14 + $0x3c] sm:$0xff]   ;;  %v2551_v55 = vld [vmem:[%s3155_s1 + $0x150] sm:$0xff]  }
  0x20   : > { %2213 = vmatpush3.bf16.msra.mxu1 %v2505_v19  ;;  %2150 = vmatprep.subr.bf16.mxu0 %v2506_v20  ;;  %v2794_v2 = vsel %vm390_vm0, %v409_v60, %v413_v61  ;;  %v425_v12 = vrot.slane %v423_v7, 1  ;;  %v430_v15 = vshll.u32 %v2798_v4, 16  ;;  %v2536_v18 = vld [vmem:[%s3155_s1 + $0x1a8] sm:$0xff]   ;;  %v447_v37 = vshll.u32 %v2543_v33, 16  ;;  %v2546_v42 = vld [vmem:[%s3155_s1 + $0x1d8] sm:$0xff]   ;;  %v2553_v61 = vld [vmem:[%s3155_s1 + $0x110] sm:$0xff]  }
  0x21   : > { %2214 = vmatprep.subr.bf16.mxu1 %v2507_v21  ;;  %1188 = vmatprep.mubr.bf16.mxu0 %v402_v51  ;;  %v421_v9 = vor.u32 %v420_v5, %v416_v59  ;;  %v2819_v17 = vsel %vm495_vm1, %v502_v6, %v503_v8  ;;  %v2537_v19 = vld [vmem:[%s2749_s14 + $0x2c] ss:$0 sps:$4 sm:$0x11]   ;;  %v2827_v21 = vld [vmem:[%s2749_s14 + $0x30] sm:$0xff]   ;;  %v509_v39 = vrot.slane %v2543_v33, 1  ;;  %v2548_v46 = vld [vmem:[%s3155_s1 + $0x198] sm:$0xff]  }
  0x22   : > { %v432_v20 = vrot.slane %v430_v15, 1  ;;  %v508_v38 = vrot.slane %v2827_v21, 1  ;;  %v452_v49 = vshrl.u32 %v2852_v35, 16  ;;  %v454_v50 = vshll.u32 %v2852_v35, 16  ;;  %v2880_v53 = vld [vmem:[%s2749_s14 + $0x48] sm:$0xff]   ;;  %v2906_v6 = vld [vmem:[%s2749_s14 + $0x54] sm:$0xff]  }
  0x23   : > { %2151 = vmatpush3.bf16.msra.mxu0 %v2508_v22  ;;  %v2816_v16 = vsel %vm390_vm0, %v421_v9, %v425_v12  ;;  %v435_v22 = vshll.u32 %v2537_v19, 16  ;;  %v2555_v3 = vld [vmem:[%s2749_s14 + $0x50] ss:$0 sps:$4 sm:$0x11]   ;;  %v464_v5 = vshrl.u32 %v2880_v53, 16  ;;  %v2559_v12 = vld [vmem:[%s3155_s1 + $0x108] sm:$0xff]  }
  0x24   : > { %2215 = vmatpush3.bf16.msra.mxu1 %v2509_v23  ;;  %2152 = vmatprep.subr.bf16.mxu0 %v2510_v24  ;;  %v505_v23 = vrot.slane %v2798_v4, 1  ;;  %v506_v24 = vrot.slane %v2537_v19, 1  ;;  %v456_v54 = vrot.slane %v454_v50, 1  ;;  %v2888_v56 = vsel %vm495_vm1, %v508_v38, %v509_v39  ;;  %v2560_v15 = vld [vmem:[%s3155_s1 + $0x188] sm:$0xff]   ;;  %v2566_v33 = vld [vmem:[%s3155_s1 + $0x180] sm:$0xff]  }
  0x25   : > { %2216 = vmatprep.subr.bf16.mxu1 %v2511_v25  ;;  %v2539_v25 = vld [vmem:[%s3155_s1 + $0x160] sm:$0xff]   ;;  %v471_v9 = vshll.u32 %v2555_v3, 16  ;;  %v2561_v19 = vld [vmem:[%s2749_s14 + $0x5c] ss:$0 sps:$4 sm:$0x11]  }
  0x26   : > { %v2856_v36 = vsel %vm495_vm1, %v505_v23, %v506_v24  ;;  %v457_v59 = vor.u32 %v456_v54, %v452_v49  ;;  %v515_v23 = vrot.slane %v2555_v3, 1  ;;  %v476_v24 = vshrl.u32 %v2906_v6, 16 }
  0x27   : > { %2153 = vmatpush3.bf16.msra.mxu0 %v2512_v26  ;;  %v433_v26 = vor.u32 %v432_v20, %v428_v11  ;;  %v2558_v11 = vld [vmem:[%s3155_s1 + $0x1c8] sm:$0xff]   ;;  %v478_v20 = vshll.u32 %v2906_v6, 16 }
  0x28   : > { %2217 = vmatpush3.bf16.msra.mxu1 %v2513_v27  ;;  %2154 = vmatprep.subr.bf16.mxu0 %v2514_v28  ;;  %v437_v27 = vrot.slane %v435_v22, 1  ;;  %v2540_v28 = vld [vmem:[%s3155_s1 + $0x1e0] sm:$0xff]   ;;  %v514_v22 = vrot.slane %v2880_v53, 1 }
  0x29   : > { %2218 = vmatprep.subr.bf16.mxu1 %v2515_v29  ;;  %v2541_v29 = vld [vmem:[%s3155_s1 + $0x120] sm:$0xff]  }
  0x2a   : > { %v2959_v38 = vsel %vm495_vm1, %v514_v22, %v515_v23 }
  0x2b   : > { %2155 = vmatpush3.bf16.msra.mxu0 %v2516_v30  ;;  %v440_v30 = vshrl.u32 %v2827_v21, 16 }
  0x2c   : > { %2219 = vmatpush3.bf16.msra.mxu1 %v2517_v31  ;;  %2268 = vmatprep.subr.bf16.mxu0 %v2521_v40  ;;  %v2843_v31 = vsel %vm390_vm0, %v433_v26, %v437_v27  ;;  %v2545_v40 = vld [vmem:[%s3155_s1 + $0x158] sm:$0xff]   ;;  %v2563_v26 = vld [vmem:[%s3155_s1 + $0x140] sm:$0xff]   ;;  %v480_v27 = vrot.slane %v478_v20, 1 }
  0x2d   : > { %2332 = vmatprep.subr.bf16.mxu1 %v2522_v43  ;;  %v449_v43 = vrot.slane %v447_v37, 1 }
  0x2e   : > { %1189 = vmatmul.mubr.bf16.vlgmr.msra.gmra.mxu0 %v2518_v32  ;;  %v2542_v32 = vld [vmem:[%s3155_s1 + $0x1a0] sm:$0xff]   ;;  %v481_v39 = vor.u32 %v480_v27, %v476_v24 }
  0x2f   : > { %1286 = vmatmul.mubr.bf16.vlgmr.msra.gmra.mxu1 %v498_v44  ;;  %2269 = vmatpush3.bf16.msra.mxu0 %v2523_v45  ;;  %v2547_v44 = vld [vmem:[%s3155_s1 + $0x118] sm:$0xff]  }
  0x30   : > { %2333 = vmatpush3.bf16.msra.mxu1 %v2524_v47  ;;  %1293 = vmatprep.mubr.bf16.mxu1 %v2773_v52  ;;  %v2549_v47 = vld [vmem:[%s2749_s14 + $0x44] ss:$0 sps:$4 sm:$0x11]  }
  0x31   : > { %2270 = vmatprep.subr.bf16.mxu0 %v2527_v57  ;;  %2334 = vmatprep.subr.bf16.mxu1 %v2528_v58  ;;  %v459_v51 = vshll.u32 %v2549_v47, 16  ;;  %v511_v57 = vrot.slane %v2852_v35, 1  ;;  %v2552_v58 = vld [vmem:[%s3155_s1 + $0x1d0] sm:$0xff]   ;;  %v512_v1 = vrot.slane %v2549_v47, 1 }
  0x32   : > { %1196 = vmatprep.mubr.bf16.mxu0 %v2794_v2 }
  0x33   : > { %2271 = vmatpush3.bf16.msra.mxu0 %v2529_v63  ;;  %v461_v60 = vrot.slane %v459_v51, 1  ;;  %v2554_v63 = vld [vmem:[%s3155_s1 + $0x190] sm:$0xff]  }
  0x34   : > { %2335 = vmatpush3.bf16.msra.mxu1 %v2530_v0  ;;  %2272 = vmatprep.subr.bf16.mxu0 %v2533_v10  ;;  %v466_v0 = vshll.u32 %v2880_v53, 16  ;;  %v2557_v10 = vld [vmem:[%s3155_s1 + $0x148] sm:$0xff]  }
  0x35   : > { %2336 = vmatprep.subr.bf16.mxu1 %v2534_v13  ;;  %v2909_v7 = vsel %vm390_vm0, %v457_v59, %v461_v60  ;;  %v2923_v13 = vsel %vm495_vm1, %v511_v57, %v512_v1  ;;  %v2576_v57 = vld [vmem:[%s2749_s14 + $0x74] ss:$0 sps:$4 sm:$0x11]  }
  0x36   : > { %1197 = vmatmul.mubr.bf16.gmra.mxu0 %v2520_v34  ;;  %v442_v34 = vshll.u32 %v2827_v21, 16  ;;  %v468_v8 = vrot.slane %v466_v0, 1  ;;  %v577_v3 = vrot.slane %v2576_v57, 1 }
  0x37   : > { %1294 = vmatmul.mubr.bf16.gmra.mxu1 %v2784_v62  ;;  %1204 = vmatprep.mubr.bf16.mxu0 %v2816_v16 }
  0x38   : > { %1301 = vmatprep.mubr.bf16.mxu1 %v2798_v4  ;;  %2273 = vmatpush3.bf16.msra.mxu0 %v2535_v14  ;;  %v444_v41 = vrot.slane %v442_v34, 1  ;;  %v473_v14 = vrot.slane %v471_v9, 1  ;;  %v2567_v34 = vld [vmem:[%s3155_s1 + $0x238] sm:$0xff]  }
  0x39   : > { %2337 = vmatpush3.bf16.msra.mxu1 %v2536_v18  ;;  %2274 = vmatprep.subr.bf16.mxu0 %v2539_v25  ;;  %v469_v18 = vor.u32 %v468_v8, %v464_v5  ;;  %v2934_v25 = vld [vmem:[%s2749_s14 + $0x60] sm:$0xff]  }
  0x3a   : > { %2338 = vmatprep.subr.bf16.mxu1 %v2540_v28  ;;  %v445_v45 = vor.u32 %v444_v41, %v440_v30  ;;  %v2564_v28 = vld [vmem:[%s3155_s1 + $0x1c0] sm:$0xff]   ;;  %v483_v30 = vshll.u32 %v2561_v19, 16  ;;  %v540_v37 = vshll.u32 %v2934_v25, 16  ;;  %v538_v41 = vshrl.u32 %v2934_v25, 16 }
  0x3b   : > { %v550_v47 = vrot.slane %v2934_v25, 1 }
  0x3c   : > { %2275 = vmatpush3.bf16.msra.mxu0 %v2541_v29  ;;  %v2875_v48 = vsel %vm390_vm0, %v445_v45, %v449_v43  ;;  %v2944_v29 = vsel %vm390_vm0, %v469_v18, %v473_v14  ;;  %v517_v43 = vrot.slane %v2906_v6, 1  ;;  %v2569_v14 = vld [vmem:[%s3155_s1 + $0x228] sm:$0xff]  }
  0x3d   : > { %2339 = vmatpush3.bf16.msra.mxu1 %v2542_v32  ;;  %2276 = vmatprep.subr.bf16.mxu0 %v2545_v40  ;;  %v2565_v32 = vld [vmem:[%s3155_s1 + $0x100] sm:$0xff]   ;;  %v485_v40 = vrot.slane %v483_v30, 1 }
  0x3e   : > { %1205 = vmatmul.mubr.bf16.gmra.mxu0 %v2773_v52  ;;  %2340 = vmatprep.subr.bf16.mxu1 %v2546_v42  ;;  %v542_v42 = vrot.slane %v540_v37, 1 }
  0x3f   : > { %1302 = vmatmul.mubr.bf16.gmra.mxu1 %v2819_v17  ;;  %1212 = vmatprep.mubr.bf16.mxu0 %v2843_v31  ;;  %v2966_v45 = vsel %vm390_vm0, %v481_v39, %v485_v40 }
  0x40   : > { %1309 = vmatprep.mubr.bf16.mxu1 %v2827_v21  ;;  %2277 = vmatpush3.bf16.msra.mxu0 %v2547_v44  ;;  %v518_v44 = vrot.slane %v2561_v19, 1  ;;  %v543_v49 = vor.u32 %v542_v42, %v538_v41 }
  0x41   : > { %2341 = vmatpush3.bf16.msra.mxu1 %v2548_v46  ;;  %2278 = vmatprep.subr.bf16.mxu0 %v2551_v55  ;;  %v2573_v46 = vld [vmem:[%s2749_s14 + $0x68] ss:$0 sps:$4 sm:$0x11]   ;;  %v2976_v55 = vld [vmem:[%s2749_s14 + $0x6c] sm:$0xff]  }
  0x42   : > { %2342 = vmatprep.subr.bf16.mxu1 %v2552_v58  ;;  %v545_v50 = vshll.u32 %v2573_v46, 16  ;;  %v551_v51 = vrot.slane %v2573_v46, 1  ;;  %v2973_v54 = vsel %vm495_vm1, %v517_v43, %v518_v44  ;;  %v564_v60 = vshrl.u32 %v2976_v55, 16 }
  0x43   : > { %v576_v0 = vrot.slane %v2976_v55, 1 }
  0x44   : > { %2279 = vmatpush3.bf16.msra.mxu0 %v2553_v61  ;;  %v547_v58 = vrot.slane %v545_v50, 1  ;;  %v2980_v59 = vsel %vm495_vm1, %v550_v47, %v551_v51  ;;  %v566_v61 = vshll.u32 %v2976_v55, 16 }
  0x45   : > { %2343 = vmatpush3.bf16.msra.mxu1 %v2554_v63  ;;  %2280 = vmatprep.subr.bf16.mxu0 %v2557_v10  ;;  %v571_v63 = vshll.u32 %v2576_v57, 16  ;;  %v2991_v9 = vsel %vm495_vm1, %v576_v0, %v577_v3 }
  0x46   : > { %1213 = vmatmul.mubr.bf16.gmra.mxu0 %v2798_v4  ;;  %2344 = vmatprep.subr.bf16.mxu1 %v2558_v11  ;;  %v2987_v1 = vsel %vm390_vm0, %v543_v49, %v547_v58  ;;  %v568_v5 = vrot.slane %v566_v61, 1 }
  0x47   : > { %1310 = vmatmul.mubr.bf16.gmra.mxu1 %v2856_v36  ;;  %1220 = vmatprep.mubr.bf16.mxu0 %v2875_v48  ;;  %v573_v8 = vrot.slane %v571_v63, 1 }
  0x48   : > { %1317 = vmatprep.mubr.bf16.mxu1 %v2852_v35  ;;  %2281 = vmatpush3.bf16.msra.mxu0 %v2559_v12  ;;  %v569_v10 = vor.u32 %v568_v5, %v564_v60  ;;  %v2568_v12 = vld [vmem:[%s3155_s1 + $0x230] sm:$0xff]  }
  0x49   : > { %2345 = vmatpush3.bf16.msra.mxu1 %v2560_v15  ;;  %2282 = vmatprep.subr.bf16.mxu0 %v2563_v26 }
  0x4a   : > { %2346 = vmatprep.subr.bf16.mxu1 %v2564_v28  ;;  %v574_v11 = vsel %vm390_vm0, %v569_v10, %v573_v8 }
  0x4c   : > { %2283 = vmatpush3.bf16.msra.mxu0 %v2565_v32 }
  0x4d   : > { %2347 = vmatpush3.bf16.msra.mxu1 %v2566_v33  ;;  %2412 = vmatprep.subr.bf16.mxu0 %v2567_v34 }
  0x4e   : > { %1221 = vmatmul.mubr.bf16.gmra.mxu0 %v2827_v21  ;;  %2444 = vmatprep.subr.bf16.mxu1 %v2567_v34 }
  0x4f   : > { %1318 = vmatmul.mubr.bf16.gmra.mxu1 %v2888_v56  ;;  %1228 = vmatprep.mubr.bf16.mxu0 %v2909_v7 }
  0x50   : > { %1325 = vmatprep.mubr.bf16.mxu1 %v2880_v53 }
  0x56   : > { %1229 = vmatmul.mubr.bf16.gmra.mxu0 %v2852_v35 }
  0x57   : > { %1326 = vmatmul.mubr.bf16.gmra.mxu1 %v2923_v13  ;;  %1236 = vmatprep.mubr.bf16.mxu0 %v2944_v29 }
  0x58   : > { %1333 = vmatprep.mubr.bf16.mxu1 %v2906_v6 }
  0x5e   : > { %1237 = vmatmul.mubr.bf16.gmra.mxu0 %v2880_v53 }
  0x5f   : > { %1334 = vmatmul.mubr.bf16.gmra.mxu1 %v2959_v38  ;;  %1244 = vmatprep.mubr.bf16.mxu0 %v2966_v45 }
  0x60   : > { %1341 = vmatprep.mubr.bf16.mxu1 %v2934_v25 }
  0x66   : > { %1245 = vmatmul.mubr.bf16.gmra.mxu0 %v2906_v6 }
  0x67   : > { %1342 = vmatmul.mubr.bf16.gmra.mxu1 %v2973_v54  ;;  %1382 = vmatprep.mubr.bf16.mxu0 %v2784_v62  ;;  %v2571_v62 = vld [vmem:[%s3155_s1 + $0x218] sm:$0xff]  }
  0x68   : > { %1479 = vmatprep.mubr.bf16.mxu1 %v2816_v16 }
  0x6e   : > { %1383 = vmatmul.mubr.bf16.vlgmr.msra.gmra.mxu0 %v2794_v2  ;;  %v2572_v2 = vld [vmem:[%s3155_s1 + $0x210] sm:$0xff]  }
  0x6f   : > { %1480 = vmatmul.mubr.bf16.vlgmr.msra.gmra.mxu1 %v2773_v52  ;;  %2413 = vmatpush3.bf16.msra.mxu0 %v2567_v34  ;;  %v2570_v52 = vld [vmem:[%s3155_s1 + $0x220] sm:$0xff]  }
  0x70   : > { %2452 = vmatpush3.bf16.msra.mxu1 %v2567_v34  ;;  %1487 = vmatprep.mubr.bf16.mxu1 %v2843_v31 }
  0x71   : > { %2445 = vmatprep.subr.bf16.mxu1 %v2568_v12  ;;  %1390 = vmatprep.mubr.bf16.mxu0 %v2819_v17 }
  0x72   : > { %2414 = vmatprep.subr.bf16.mxu0 %v2568_v12 }
  0x73   : > { %2415 = vmatpush3.bf16.msra.mxu0 %v2568_v12 }
  0x74   : > { %2453 = vmatpush3.bf16.msra.mxu1 %v2568_v12  ;;  %2416 = vmatprep.subr.bf16.mxu0 %v2569_v14 }
  0x75   : > { %2446 = vmatprep.subr.bf16.mxu1 %v2569_v14 }
  0x76   : > { %1391 = vmatmul.mubr.bf16.gmra.mxu0 %v2816_v16  ;;  %v2577_v16 = vld [vmem:[%s3155_s1 + $0x200] sm:$0xff]  }
  0x77   : > { %1488 = vmatmul.mubr.bf16.gmra.mxu1 %v2798_v4  ;;  %1398 = vmatprep.mubr.bf16.mxu0 %v2856_v36  ;;  %v2574_v4 = vld [vmem:[%s3155_s1 + $0x208] sm:$0xff]  }
  0x78   : > { %1495 = vmatprep.mubr.bf16.mxu1 %v2875_v48  ;;  %2454 = vmatpush3.bf16.msra.mxu1 %v2569_v14 }
  0x79   : > { %2447 = vmatprep.subr.bf16.mxu1 %v2570_v52  ;;  %2417 = vmatpush3.bf16.msra.mxu0 %v2569_v14 }
  0x7a   : > { %2418 = vmatprep.subr.bf16.mxu0 %v2570_v52 }
  0x7c   : > { %2455 = vmatpush3.bf16.msra.mxu1 %v2570_v52 }
  0x7d   : > { %2448 = vmatprep.subr.bf16.mxu1 %v2571_v62  ;;  %2419 = vmatpush3.bf16.msra.mxu0 %v2570_v52 }
  0x7e   : > { %2420 = vmatprep.subr.bf16.mxu0 %v2571_v62  ;;  %1399 = vmatmul.mubr.bf16.gmra.mxu0 %v2843_v31 }
  0x7f   : > { %1496 = vmatmul.mubr.bf16.gmra.mxu1 %v2827_v21  ;;  %1406 = vmatprep.mubr.bf16.mxu0 %v2888_v56 }
  0x80   : > { %1503 = vmatprep.mubr.bf16.mxu1 %v2909_v7  ;;  %2456 = vmatpush3.bf16.msra.mxu1 %v2571_v62 }
  0x81   : > { %2449 = vmatprep.subr.bf16.mxu1 %v2572_v2  ;;  %2421 = vmatpush3.bf16.msra.mxu0 %v2571_v62 }
  0x82   : > { %2422 = vmatprep.subr.bf16.mxu0 %v2572_v2 }
  0x84   : > { %2457 = vmatpush3.bf16.msra.mxu1 %v2572_v2 }
  0x85   : > { %2450 = vmatprep.subr.bf16.mxu1 %v2574_v4  ;;  %2423 = vmatpush3.bf16.msra.mxu0 %v2572_v2 }
  0x86   : > { %2424 = vmatprep.subr.bf16.mxu0 %v2574_v4  ;;  %1407 = vmatmul.mubr.bf16.gmra.mxu0 %v2875_v48 }
  0x87   : > { %1504 = vmatmul.mubr.bf16.gmra.mxu1 %v2852_v35  ;;  %1414 = vmatprep.mubr.bf16.mxu0 %v2923_v13 }
  0x88   : > { %1511 = vmatprep.mubr.bf16.mxu1 %v2944_v29  ;;  %2458 = vmatpush3.bf16.msra.mxu1 %v2574_v4 }
  0x89   : > { %2451 = vmatprep.subr.bf16.mxu1 %v2577_v16  ;;  %2425 = vmatpush3.bf16.msra.mxu0 %v2574_v4 }
  0x8a   : > { %2426 = vmatprep.subr.bf16.mxu0 %v2577_v16 }
  0x8c   : > { %2459 = vmatpush3.bf16.msra.mxu1 %v2577_v16 }
  0x8d   : > { %2427 = vmatpush3.bf16.msra.mxu0 %v2577_v16 }
  0x8e   : > { %1415 = vmatmul.mubr.bf16.gmra.mxu0 %v2909_v7 }
  0x8f   : > { %1512 = vmatmul.mubr.bf16.gmra.mxu1 %v2880_v53  ;;  %1422 = vmatprep.mubr.bf16.mxu0 %v2959_v38 }
  0x90   : > { %1519 = vmatprep.mubr.bf16.mxu1 %v2966_v45 }
  0x96   : > { %1423 = vmatmul.mubr.bf16.gmra.mxu0 %v2944_v29 }
  0x97   : > { %1520 = vmatmul.mubr.bf16.gmra.mxu1 %v2906_v6  ;;  %1430 = vmatprep.mubr.bf16.mxu0 %v2973_v54 }
  0x98   : > { %1527 = vmatprep.mubr.bf16.mxu1 %v2987_v1 }
  0x9e   : > { %1431 = vmatmul.mubr.bf16.gmra.mxu0 %v2966_v45 }
  0x9f   : > { %1528 = vmatmul.mubr.bf16.gmra.mxu1 %v2934_v25  ;;  %1438 = vmatprep.mubr.bf16.mxu0 %v2980_v59 }
  0xa0   : > { %1535 = vmatprep.mubr.bf16.mxu1 %v574_v11 }
  0xa6   : > { %1439 = vmatmul.mubr.bf16.gmra.mxu0 %v2987_v1 }
  0xa7   : > { %1536 = vmatmul.mubr.bf16.gmra.mxu1 %v2976_v55  ;;  %2428 = vmatprep.mubr.bf16.mxu0 %v2819_v17 }
  0xa8   : > { %2436 = vmatprep.mubr.bf16.mxu1 %v2959_v38 }
  0xae   : > { %2429 = vmatmul.mubr.bf16.vlgmr.msra.gmra.mxu0 %v2856_v36 }
  0xaf   : > { %2437 = vmatmul.mubr.bf16.vlgmr.msra.gmra.mxu1 %v2973_v54  ;;  %2432 = vmatprep.mubr.bf16.mxu0 %v2888_v56 }
  0xb0   : > { %2440 = vmatprep.mubr.bf16.mxu1 %v2980_v59 }
  0xb6   : > { %2433 = vmatmul.mubr.bf16.gmra.mxu0 %v2923_v13 }
  0xb7   : > { %2441 = vmatmul.mubr.bf16.gmra.mxu1 %v2991_v9 }
  0xee   : > { %v2156_v48 = vpop.f32.mrf.mxu0 }
  0xef   : > { %v2220_v21 = vpop.f32.mrf.mxu1 }
  0xf0   : > { %v2157_v6 = vpop.f32.mrf.mxu0 }
  0xf1   : > { %v2221_v31 = vpop.f32.mrf.mxu1  ;;  %v2158_v17 = vadd.f32 %v2157_v6, %v2156_v48 }
  0xf2   : > { %v2222_v35 = vadd.f32 %v2221_v31, %v2220_v21  ;;  %v2159_v15 = vpop.f32.mrf.mxu0 }
  0xf3   : > { %v2223_v53 = vpop.f32.mrf.mxu1 }
  0xf4   : > { %v3054_v19 = vadd.f32 %v2222_v35, %v2158_v17  ;;  %v2160_v20 = vpop.f32.mrf.mxu0 }
  0xf5   : > { %v2224_v7 = vpop.f32.mrf.mxu1 }
  0xf6   : > { %v2162_v56 = vpop.f32.mrf.mxu0 }
  0xf7   : > { %v2226_v18 = vpop.f32.mrf.mxu1 }
  0xf8   : > { %v2163_v24 = vpop.f32.mrf.mxu0 }
  0xf9   : > { %v2227_v36 = vpop.f32.mrf.mxu1  ;;  %v2164_v13 = vadd.f32 %v2163_v24, %v2162_v56 }
  0xfa   : > { %v2228_v22 = vadd.f32 %v2227_v36, %v2226_v18  ;;  %v2165_v26 = vpop.f32.mrf.mxu0 }
  0xfb   : > { %v2229_v23 = vpop.f32.mrf.mxu1 }
  0xfc   : > { %v3056_v28 = vadd.f32 %v2228_v22, %v2164_v13  ;;  %v2166_v29 = vpop.f32.mrf.mxu0 }
  0xfd   : > { %v2230_v25 = vpop.f32.mrf.mxu1 }
  0xfe   : > { %v2168_v33 = vpop.f32.mrf.mxu0 }
  0xff   : > { %v2232_v27 = vpop.f32.mrf.mxu1 }
 0x100   : > { %v2169_v37 = vpop.f32.mrf.mxu0 }
 0x101   : > { %v2233_v30 = vpop.f32.mrf.mxu1  ;;  %v2170_v39 = vadd.f32 %v2169_v37, %v2168_v33 }
 0x102   : > { %v2234_v32 = vadd.f32 %v2233_v30, %v2232_v27  ;;  %v2171_v40 = vpop.f32.mrf.mxu0 }
 0x103   : > { %v2235_v34 = vpop.f32.mrf.mxu1 }
 0x104   : > { %v3058_v42 = vadd.f32 %v2234_v32, %v2170_v39  ;;  %v2172_v43 = vpop.f32.mrf.mxu0 }
 0x105   : > { %v2236_v38 = vpop.f32.mrf.mxu1 }
 0x106   : > { %v2174_v46 = vpop.f32.mrf.mxu0 }
 0x107   : > { %v2238_v41 = vpop.f32.mrf.mxu1 }
 0x108   : > { %v2175_v49 = vpop.f32.mrf.mxu0 }
 0x109   : > { %v2239_v44 = vpop.f32.mrf.mxu1  ;;  %v2176_v51 = vadd.f32 %v2175_v49, %v2174_v46 }
 0x10a   : > { %v2240_v45 = vadd.f32 %v2239_v44, %v2238_v41  ;;  %v2177_v54 = vpop.f32.mrf.mxu0 }
 0x10b   : > { %v2241_v47 = vpop.f32.mrf.mxu1 }
 0x10c   : > { %v3060_v57 = vadd.f32 %v2240_v45, %v2176_v51  ;;  %v2178_v58 = vpop.f32.mrf.mxu0 }
 0x10d   : > { %v2242_v50 = vpop.f32.mrf.mxu1 }
 0x10e   : > { %v2180_v61 = vpop.f32.mrf.mxu0 }
 0x10f   : > { %v2244_v55 = vpop.f32.mrf.mxu1 }
 0x110   : > { %v2181_v0 = vpop.f32.mrf.mxu0 }
 0x111   : > { %v2245_v59 = vpop.f32.mrf.mxu1  ;;  %v2182_v3 = vadd.f32 %v2181_v0, %v2180_v61 }
 0x112   : > { %v2246_v60 = vadd.f32 %v2245_v59, %v2244_v55  ;;  %v2183_v5 = vpop.f32.mrf.mxu0 }
 0x113   : > { %v2247_v63 = vpop.f32.mrf.mxu1 }
 0x114   : > { %v3062_v9 = vadd.f32 %v2246_v60, %v2182_v3  ;;  %v2184_v10 = vpop.f32.mrf.mxu0 }
 0x115   : > { %v2248_v1 = vpop.f32.mrf.mxu1 }
 0x116   : > { %v2186_v14 = vpop.f32.mrf.mxu0 }
 0x117   : > { %v2250_v8 = vpop.f32.mrf.mxu1 }
 0x118   : > { %v2187_v62 = vpop.f32.mrf.mxu0 }
 0x119   : > { %v2251_v11 = vpop.f32.mrf.mxu1  ;;  %v2188_v4 = vadd.f32 %v2187_v62, %v2186_v14 }
 0x11a   : > { %v2252_v12 = vadd.f32 %v2251_v11, %v2250_v8  ;;  %v2189_v16 = vpop.f32.mrf.mxu0 }
 0x11b   : > { %v2253_v52 = vpop.f32.mrf.mxu1 }
 0x11c   : > { %v3064_v31 = vadd.f32 %v2252_v12, %v2188_v4  ;;  %v2190_v35 = vpop.f32.mrf.mxu0 }
 0x11d   : > { %v2254_v2 = vpop.f32.mrf.mxu1 }
 0x11e   : > { %v2192_v6 = vpop.f32.mrf.mxu0 }
 0x11f   : > { %v2256_v21 = vpop.f32.mrf.mxu1 }
 0x120   : > { %v2193_v17 = vpop.f32.mrf.mxu0 }
 0x121   : > { %v2257_v48 = vpop.f32.mrf.mxu1  ;;  %v2194_v18 = vadd.f32 %v2193_v17, %v2192_v6 }
 0x122   : > { %v2258_v53 = vadd.f32 %v2257_v48, %v2256_v21  ;;  %v2195_v20 = vpop.f32.mrf.mxu0 }
 0x123   : > { %v2259_v7 = vpop.f32.mrf.mxu1 }
 0x124   : > { %v3066_v22 = vadd.f32 %v2258_v53, %v2194_v18  ;;  %v2196_v56 = vpop.f32.mrf.mxu0 }
 0x125   : > { %v2260_v15 = vpop.f32.mrf.mxu1 }
 0x126   : > { %v2198_v25 = vpop.f32.mrf.mxu0 }
 0x127   : > { %v2262_v36 = vpop.f32.mrf.mxu1 }
 0x128   : > { %v2199_v26 = vpop.f32.mrf.mxu0 }
 0x129   : > { %v2263_v23 = vpop.f32.mrf.mxu1  ;;  %v2200_v29 = vadd.f32 %v2199_v26, %v2198_v25 }
 0x12a   : > { %v2264_v24 = vadd.f32 %v2263_v23, %v2262_v36  ;;  %v2201_v30 = vpop.f32.mrf.mxu0 }
 0x12b   : > { %v2265_v13 = vpop.f32.mrf.mxu1 }
 0x12c   : > { %v3068_v33 = vadd.f32 %v2264_v24, %v2200_v29  ;;  %v2202_v34 = vpop.f32.mrf.mxu0 }
 0x12d   : > { %v2266_v27 = vpop.f32.mrf.mxu1 }
 0x12e   : > { %v2284_v39 = vpop.f32.mrf.mxu0 }
 0x12f   : > { %v2348_v32 = vpop.f32.mrf.mxu1 }
 0x130   : > { %v2285_v41 = vpop.f32.mrf.mxu0 }
 0x131   : > { %v2349_v37 = vpop.f32.mrf.mxu1  ;;  %v2286_v44 = vadd.f32 %v2285_v41, %v2284_v39 }
 0x132   : > { %v2350_v38 = vadd.f32 %v2349_v37, %v2348_v32  ;;  %v2287_v45 = vpop.f32.mrf.mxu0 }
 0x133   : > { %v2351_v40 = vpop.f32.mrf.mxu1  ;;  %v1385_v47 = vadd.f32 %v2286_v44, %v3054_v19 }
 0x134   : > { %v2288_v49 = vpop.f32.mrf.mxu0 }
 0x135   : > { %v2352_v43 = vpop.f32.mrf.mxu1  ;;  %v3075_v51 = vadd.f32 %v2350_v38, %v1385_v47 }
 0x136   : > { %v2290_v54 = vpop.f32.mrf.mxu0 }
 0x137   : > { %v3070_v46 = vpop.f32.mrf.mxu1 }
 0x138   : > { %v2291_v58 = vpop.f32.mrf.mxu0 }
 0x139   : > { %v3073_v50 = vpop.f32.mrf.mxu1  ;;  %v2292_v44 = vadd.f32 %v2291_v58, %v2290_v54 }
 0x13a   : > { %v2293_v60 = vpop.f32.mrf.mxu0 }
 0x13b   : > { %v2357_v55 = vpop.f32.mrf.mxu1 }
 0x13c   : > { %v2294_v63 = vpop.f32.mrf.mxu0 }
 0x13d   : > { %v2358_v59 = vpop.f32.mrf.mxu1 }
 0x13e   : > { %v3081_v1 = vpop.f32.mrf.mxu0 }
 0x13f   : > { %v3077_v61 = vpop.f32.mrf.mxu1 }
 0x140   : > { %v3083_v5 = vpop.f32.mrf.mxu0 }
 0x141   : > { %v3079_v0 = vpop.f32.mrf.mxu1 }
 0x142   : > { %v2299_v8 = vpop.f32.mrf.mxu0 }
 0x143   : > { %v2363_v3 = vpop.f32.mrf.mxu1 }
 0x144   : > { %v2300_v11 = vpop.f32.mrf.mxu0  ;;  %v1393_v3 = vadd.f32 %v2292_v44, %v3056_v28  ;;  %v3102_v28 = vld [vmem:[%s3157_s3] ss:$0 sm:$0xff] }
 0x145   : > { %v2364_v19 = vpop.f32.mrf.mxu1 }
 0x146   : > { %v2302_v14 = vpop.f32.mrf.mxu0 }
 0x147   : > { %v3085_v10 = vpop.f32.mrf.mxu1 }
 0x148   : > { %v2303_v62 = vpop.f32.mrf.mxu0 }
 0x149   : > { %v3087_v12 = vpop.f32.mrf.mxu1 }
 0x14a   : > { %v2305_v4 = vpop.f32.mrf.mxu0 }
 0x14b   : > { %v2369_v52 = vpop.f32.mrf.mxu1  ;;  %v2304_v4 = vadd.f32 %v2303_v62, %v2302_v14 }
 0x14c   : > { %v2306_v21 = vpop.f32.mrf.mxu0 }
 0x14d   : > { %v2370_v2 = vpop.f32.mrf.mxu1 }
 0x14e   : > { %v2308_v48 = vpop.f32.mrf.mxu0  ;;  %v3095_v2 = vld [vmem:[%s3156_s2] ss:$0 sm:$0xff] }
 0x14f   : > { %v2372_v16 = vpop.f32.mrf.mxu1 }
 0x150   : > { %v2309_v6 = vpop.f32.mrf.mxu0 }
 0x151   : > { %v2373_v35 = vpop.f32.mrf.mxu1  ;;  %v2310_v40 = vadd.f32 %v2309_v6, %v2308_v48 }
 0x152   : > { %v2311_v17 = vpop.f32.mrf.mxu0  ;;  %v2374_v19 = vadd.f32 %v2373_v35, %v2372_v16 }
 0x153   : > { %v2375_v53 = vpop.f32.mrf.mxu1  ;;  %v1417_v55 = vadd.f32 %v2310_v40, %v3062_v9  ;;  %v2602_v40 = vmov 0.0  }
 0x154   : > { %v2312_v18 = vpop.f32.mrf.mxu0 }
 0x155   : > { %v2376_v7 = vpop.f32.mrf.mxu1  ;;  %v1514_v9 = vadd.f32 %v2374_v19, %v1417_v55  ;;  %v1409_v18 = vadd.f32 %v2304_v4, %v3060_v57 }
 0x156   : > { %v2314_v36 = vpop.f32.mrf.mxu0  ;;  %v2298_v7 = vadd.f32 %v3083_v5, %v3081_v1 }
 0x157   : > { %v2378_v15 = vpop.f32.mrf.mxu1 }
 0x158   : > { %v2315_v23 = vpop.f32.mrf.mxu0 }
 0x159   : > { %v2379_v20 = vpop.f32.mrf.mxu1  ;;  %v2316_v37 = vadd.f32 %v2315_v23, %v2314_v36 }
 0x15a   : > { %v2317_v25 = vpop.f32.mrf.mxu0  ;;  %v2380_v59 = vadd.f32 %v2379_v20, %v2378_v15 }
 0x15b   : > { %v2381_v56 = vpop.f32.mrf.mxu1  ;;  %v1425_v45 = vadd.f32 %v2316_v37, %v3064_v31  ;;  %v2356_v31 = vadd.f32 %v3073_v50, %v3070_v46  ;;  %v1401_v25 = vadd.f32 %v2298_v7, %v3058_v42 }
 0x15c   : > { %v2318_v26 = vpop.f32.mrf.mxu0 }
 0x15d   : > { %v2382_v24 = vpop.f32.mrf.mxu1  ;;  %v1522_v8 = vadd.f32 %v2380_v59, %v1425_v45  ;;  %v1490_v35 = vadd.f32 %v2356_v31, %v1393_v3  ;;  %v2368_v26 = vadd.f32 %v3087_v12, %v3085_v10 }
 0x15e   : > { %v2320_v29 = vpop.f32.mrf.mxu0 }
 0x15f   : > { %v2384_v13 = vpop.f32.mrf.mxu1  ;;  %v1506_v10 = vadd.f32 %v2368_v26, %v1409_v18 }
 0x160   : > { %v2321_v32 = vpop.f32.mrf.mxu0 }
 0x161   : > { %v2385_v27 = vpop.f32.mrf.mxu1  ;;  %v2322_v21 = vadd.f32 %v2321_v32, %v2320_v29 }
 0x162   : > { %v2323_v38 = vpop.f32.mrf.mxu0  ;;  %v2386_v29 = vadd.f32 %v2385_v27, %v2384_v13 }
 0x163   : > { %v2387_v30 = vpop.f32.mrf.mxu1  ;;  %v1433_v20 = vadd.f32 %v2322_v21, %v3066_v22 }
 0x164   : > { %v2324_v41 = vpop.f32.mrf.mxu0 }
 0x165   : > { %v2388_v34 = vpop.f32.mrf.mxu1  ;;  %v1530_v13 = vadd.f32 %v2386_v29, %v1433_v20 }
 0x166   : > { %v2326_v47 = vpop.f32.mrf.mxu0 }
 0x167   : > { %v2390_v39 = vpop.f32.mrf.mxu1 }
 0x168   : > { %v2327_v60 = vpop.f32.mrf.mxu0 }
 0x169   : > { %v2391_v43 = vpop.f32.mrf.mxu1  ;;  %v2328_v11 = vadd.f32 %v2327_v60, %v2326_v47 }
 0x16a   : > { %v2329_v52 = vpop.f32.mrf.mxu0  ;;  %v2392_v36 = vadd.f32 %v2391_v43, %v2390_v39 }
 0x16b   : > { %v2393_v49 = vpop.f32.mrf.mxu1  ;;  %v1441_v46 = vadd.f32 %v2328_v11, %v3068_v33 }
 0x16c   : > { %v2330_v48 = vpop.f32.mrf.mxu0 }
 0x16d   : > { %v2394_v63 = vpop.f32.mrf.mxu1  ;;  %v1538_v30 = vadd.f32 %v2392_v36, %v1441_v46 }
 0x16e   : > { %v2430_v50 = vpop.f32.mrf.mxu0 }
 0x16f   : > { %v2438_v54 = vpop.f32.mrf.mxu1  ;;  %v1587_v62 = vadd.f32 %v2430_v50, %v1490_v35 }
 0x170   : > { %v1619_v58 = vadd.f32 %v2438_v54, %v1522_v8  ;;  %v1578_v56 = vpop.f32.mrf.mxu0 }
 0x171   : > { %v1610_v16 = vpop.f32.mrf.mxu1  ;;  %v1650_v24 = vmul.f32 %v3095_v2, %v1587_v62  ;;  %v1579_v33 = vadd.f32 %v1578_v56, %v3075_v51  ;;  %v2362_v51 = vadd.f32 %v3079_v0, %v3077_v61 }
 0x172   : > { %v1658_v53 = vmul.f32 %v3095_v2, %v1619_v58  ;;  %v1611_v6 = vadd.f32 %v1610_v16, %v1514_v9  ;;  %v2431_v57 = vpop.f32.mrf.mxu0 }
 0x173   : > { %v2439_v14 = vpop.f32.mrf.mxu1  ;;  %v1673_v32 = vadd.f32 %v3102_v28, %v1650_v24  ;;  %v1648_v37 = vmul.f32 %v3095_v2, %v1579_v33  ;;  %v1498_v0 = vadd.f32 %v2362_v51, %v1401_v25 }
 0x174   : > { %v1681_v17 = vadd.f32 %v3102_v28, %v1658_v53  ;;  %v1656_v15 = vmul.f32 %v3095_v2, %v1611_v6  ;;  %v1581_v42 = vpop.f32.mrf.mxu0 }
 0x175   : > { %v1613_v23 = vpop.f32.mrf.mxu1  ;;  %v1689_v39 = vmul.f32 0.2, %v1673_v32  ;;  %v1671_v43 = vadd.f32 %v3102_v28, %v1648_v37 }
 0x176   : > { %v1697_v1 = vmul.f32 0.2, %v1681_v17  ;;  %v1679_v5 = vadd.f32 %v3102_v28, %v1656_v15  ;;  %v2434_v45 = vpop.f32.mrf.mxu0 }
 0x177   : > { %v2442_v22 = vpop.f32.mrf.mxu1  ;;  %v1705_v55 = vmax.f32 %v1673_v32, %v1689_v39  ;;  %v1687_v59 = vmul.f32 0.2, %v1671_v43  ;;  %v1603_v63 = vadd.f32 %v2434_v45, %v1506_v10 }
 0x178   : > { %v1713_v34 = vmax.f32 %v1681_v17, %v1697_v1  ;;  %v1695_v38 = vmul.f32 0.2, %v1679_v5  ;;  %v1635_v12 = vadd.f32 %v2442_v22, %v1538_v30  ;;  %v1594_v19 = vpop.f32.mrf.mxu0 }
 0x179   : > { %v1626_v27 = vpop.f32.mrf.mxu1  ;;  %v2107_v52 = vpack.c.bf16 %v2602_v40, %v1705_v55  ;;  %v1703_v54 = vmax.f32 %v1671_v43, %v1687_v59  ;;  %v1654_v31 = vmul.f32 %v3095_v2, %v1603_v63  ;;  %v1595_v58 = vadd.f32 %v1594_v19, %v1498_v0 }
 0x17a   : > { %v2123_v41 = vpack.c.bf16 %v2602_v40, %v1713_v34  ;;  %v1711_v44 = vmax.f32 %v1679_v5, %v1695_v38  ;;  %v1662_v61 = vmul.f32 %v3095_v2, %v1635_v12  ;;  %v1627_v47 = vadd.f32 %v1626_v27, %v1530_v13  ;;  %v2435_v21 = vpop.f32.mrf.mxu0 }
 0x17b   : > { %v2443_v49 = vpop.f32.mrf.mxu1  ;;  %2133 = vst [vmem:[%s3126_s22 + $0x8] sm:$0xff] %v2107_v52   ;;  %v2103_v48 = vpack.c.bf16 %v2602_v40, %v1703_v54  ;;  %v1677_v16 = vadd.f32 %v3102_v28, %v1654_v31  ;;  %v1652_v35 = vmul.f32 %v3095_v2, %v1595_v58 }
 0x17c   : > { %2137 = vst [vmem:[%s3126_s22 + $0x28] sm:$0xff] %v2123_v41   ;;  %v2119_v60 = vpack.c.bf16 %v2602_v40, %v1711_v44  ;;  %v1685_v3 = vadd.f32 %v3102_v28, %v1662_v61  ;;  %v1660_v8 = vmul.f32 %v3095_v2, %v1627_v47  ;;  %v1597_v7 = vpop.f32.mrf.mxu0 }
 0x17d   : > { %v1629_v11 = vpop.f32.mrf.mxu1  ;;  %2104 = vst [vmem:[%s3126_s22] sm:$0xff] %v2103_v48   ;;  %v1693_v46 = vmul.f32 0.2, %v1677_v16  ;;  %v1675_v50 = vadd.f32 %v3102_v28, %v1652_v35 }
 0x17e   : > { %2136 = vst [vmem:[%s3126_s22 + $0x20] sm:$0xff] %v2119_v60   ;;  %v1701_v9 = vmul.f32 0.2, %v1685_v3  ;;  %v1683_v4 = vadd.f32 %v3102_v28, %v1660_v8 }
 0x17f   : > { %v1709_v17 = vmax.f32 %v1677_v16, %v1693_v46  ;;  %v1691_v15 = vmul.f32 0.2, %v1675_v50 }
 0x180   : > { %v1717_v53 = vmax.f32 %v1685_v3, %v1701_v9  ;;  %v1699_v6 = vmul.f32 0.2, %v1683_v4 }
 0x181   : > { %v2115_v20 = vpack.c.bf16 %v2602_v40, %v1709_v17  ;;  %v1707_v36 = vmax.f32 %v1675_v50, %v1691_v15 }
 0x182   : > { %v2131_v14 = vpack.c.bf16 %v2602_v40, %v1717_v53  ;;  %v1715_v62 = vmax.f32 %v1683_v4, %v1699_v6 }
 0x183   : > { %2135 = vst [vmem:[%s3126_s22 + $0x18] sm:$0xff] %v2115_v20   ;;  %v2111_v2 = vpack.c.bf16 %v2602_v40, %v1707_v36 }
 0x184   : > { %2139 = vst [vmem:[%s3126_s22 + $0x38] sm:$0xff] %v2131_v14   ;;  %v2127_v18 = vpack.c.bf16 %v2602_v40, %v1715_v62 }
 0x185   : > { %2134 = vst [vmem:[%s3126_s22 + $0x10] sm:$0xff] %v2111_v2  }
 0x186   : > { %2138 = vst [vmem:[%s3126_s22 + $0x30] sm:$0xff] %v2127_v18  }
 0x187 PF: > { %s14_s17 = sadd.s32 1, %s2600_s17   ;;  %s3159_s15 = smov %s2596_s16 }
 0x188   : > { %p11_p5 = scmp.ge.s32.totalorder %s14_s17, 4   ;;  %s3160_s16 = smov %s3162_s18 }
 0x18a   :  { %13 = sbr.rel (!%p11_p5) target bundleno = 2 (0x2), region = 76 }

// kernel: _lambda_.10
= control target key start
LH: loop header
LB: loop body
LE: loop exit
PB: predicated region body
PF: predicated region fallthrough
CT: control target
= control target key end

     0   :  { %s3167_s24 = smov 0   ;;  %s3169_s25 = smov 0   ;;  %s3740_s0 = inlined_call_operand.vmem [shape: bf16[2,9,17,128], index: 0, kind: input, shape index: {}]   ;;  %s3741_s1 = inlined_call_operand.vmem [shape: bf16[2,9,17,128], index: 1, kind: input, shape index: {}]   ;;  %s3742_s2 = inlined_call_operand.vmem [shape: bf16[2,9,17,128], index: 2, kind: input, shape index: {}]   ;;  %s3743_s3 = inlined_call_operand.vmem [shape: bf16[2,9,17,128], index: 3, kind: input, shape index: {}]   ;;  %s3744_s4 = inlined_call_operand.vmem [shape: bf16[1152,128], index: 4, kind: input, shape index: {}]   ;;  %s3745_s5 = inlined_call_operand.vmem [shape: f32[1,128], index: 5, kind: input, shape index: {}]   ;;  %s3746_s6 = inlined_call_operand.vmem [shape: f32[1,128], index: 6, kind: input, shape index: {}]   ;;  %s3747_s7 = inlined_call_operand.vmem [shape: bf16[2,8,16,128], index: 7, kind: output, shape index: {}]  }
   0x1   :  { %s3171_s26 = smov 0  }
   0x2 LB: > { %s32_s27 = sadd.s32 1, %s3120_s25  ;;  %p2427_p0 = scmp.ge.s32.totalorder %s3124_s26, 1  ;;  %s3124_s26 = sphi %s3171_s26, %s17_s26   ;;  %s3120_s25 = sphi %s3169_s25, %s3749_s25   ;;  %s3116_s24 = sphi %s3167_s24, %s3748_s24  }
   0x3   : > { %p34_p1 = scmp.ge.s32.totalorder %s32_s27, 2  ;;  %p315_p2 = scmp.lt.s32.totalorder %s3124_s26, 3 }
   0x5   : > { %s3751_s27 = smov (%p34_p1, %s32_s27), 0  ;;  %p316_p3 = pnand %p2427_p0, %p315_p2 }
   0x6   : > { %p380_p4 = scmp.lt.s32.totalorder (!%p316_p3), %s3116_s24, 1 }
   0x7   : > { %319 = sbr.rel (%p316_p3) target bundleno = 392 (0x188), region = 48 }
   0xc   : > { %v2979_v0 = vld [vmem:[%s3744_s4 + $0x78] sm:$0xff]   ;;  %v2983_v4 = vld [vmem:[%s3744_s4 + $0x70] sm:$0xff]   ;;  %v2987_v8 = vld [vmem:[%s3744_s4 + $0x68] sm:$0xff]   ;;  %s3753_s24 = smov (!%p380_p4, %s3116_s24), 1  ;;  %vm640_vm0 = vsmask.f32 7424 }
   0xd   : > { %v2980_v1 = vld [vmem:[%s3744_s4 + $0xf8] sm:$0xff]   ;;  %2633 = vmatprep.subr.bf16.mxu0 %v2979_v0  ;;  %v2984_v5 = vld [vmem:[%s3744_s4 + $0xf0] sm:$0xff]   ;;  %v2988_v9 = vld [vmem:[%s3744_s4 + $0xe8] sm:$0xff]   ;;  %s3276_s23 = smul.u32 108, %s3753_s24  ;;  %s2577_s13 = sshll.u32 %s3753_s24, 6 }
   0xe   : > { %v2981_v2 = vld [vmem:[%s3744_s4 + $0x38] sm:$0xff]   ;;  %2697 = vmatprep.subr.bf16.mxu1 %v2980_v1  ;;  %v2985_v6 = vld [vmem:[%s3744_s4 + $0x30] sm:$0xff]   ;;  %v2989_v10 = vld [vmem:[%s3744_s4 + $0x28] sm:$0xff]   ;;  %s3712_s14 = scalar_lea.vmem %s3747_s7, %s2577_s13 }
   0xf   : > { %v2982_v3 = vld [vmem:[%s3744_s4 + $0xb8] sm:$0xff]   ;;  %2634 = vmatpush3.bf16.msra.mxu0 %v2981_v2  ;;  %v2986_v7 = vld [vmem:[%s3744_s4 + $0xb0] sm:$0xff]   ;;  %v2990_v11 = vld [vmem:[%s3744_s4 + $0xa8] sm:$0xff]   ;;  %s3288_s11 = scalar_lea.vmem %s3741_s1, %s3276_s23  ;;  %s3297_s16 = scalar_lea.vmem %s3742_s2, %s3276_s23 }
  0x10   : > { %2698 = vmatpush3.bf16.msra.mxu1 %v2982_v3  ;;  %2635 = vmatprep.subr.bf16.mxu0 %v2983_v4  ;;  %v2991_v12 = vld [vmem:[%s3744_s4 + $0x60] sm:$0xff]   ;;  %v2995_v16 = vld [vmem:[%s3744_s4 + $0x58] sm:$0xff]   ;;  %v2999_v20 = vld [vmem:[%s3744_s4 + $0x50] sm:$0xff]   ;;  %s3306_s21 = scalar_lea.vmem %s3740_s0, %s3276_s23  ;;  %s3551_s10 = scalar_lea.vmem %s3743_s3, %s3276_s23 }
  0x11   : > { %2699 = vmatprep.subr.bf16.mxu1 %v2984_v5  ;;  %v2992_v13 = vld [vmem:[%s3744_s4 + $0xe0] sm:$0xff]   ;;  %v2996_v17 = vld [vmem:[%s3744_s4 + $0xd8] sm:$0xff]   ;;  %v3000_v21 = vld [vmem:[%s3744_s4 + $0xd0] sm:$0xff]  }
  0x12   : > { %v2993_v14 = vld [vmem:[%s3744_s4 + $0x20] sm:$0xff]   ;;  %v2997_v18 = vld [vmem:[%s3744_s4 + $0x18] sm:$0xff]   ;;  %v3001_v22 = vld [vmem:[%s3744_s4 + $0x10] sm:$0xff]  }
  0x13   : > { %2636 = vmatpush3.bf16.msra.mxu0 %v2985_v6  ;;  %v2994_v15 = vld [vmem:[%s3744_s4 + $0xa0] sm:$0xff]   ;;  %v2998_v19 = vld [vmem:[%s3744_s4 + $0x98] sm:$0xff]   ;;  %v3002_v23 = vld [vmem:[%s3744_s4 + $0x90] sm:$0xff]  }
  0x14   : > { %2700 = vmatpush3.bf16.msra.mxu1 %v2986_v7  ;;  %2637 = vmatprep.subr.bf16.mxu0 %v2987_v8  ;;  %v3003_v24 = vld [vmem:[%s3744_s4 + $0x48] sm:$0xff]   ;;  %v3007_v28 = vld [vmem:[%s3744_s4 + $0x40] sm:$0xff]   ;;  %v3015_v39 = vld [vmem:[%s3744_s4 + $0x178] sm:$0xff]  }
  0x15   : > { %2701 = vmatprep.subr.bf16.mxu1 %v2988_v9  ;;  %v3004_v25 = vld [vmem:[%s3744_s4 + $0xc8] sm:$0xff]   ;;  %v3008_v29 = vld [vmem:[%s3744_s4 + $0xc0] sm:$0xff]   ;;  %v3016_v41 = vld [vmem:[%s3744_s4 + $0x1f8] sm:$0xff]  }
  0x16   : > { %v3005_v26 = vld [vmem:[%s3744_s4 + $0x8] sm:$0xff]   ;;  %v3009_v30 = vld [vmem:[%s3744_s4] sm:$0xff]   ;;  %v3017_v43 = vld [vmem:[%s3744_s4 + $0x138] sm:$0xff]  }
  0x17   : > { %2638 = vmatpush3.bf16.msra.mxu0 %v2989_v10  ;;  %v3006_v27 = vld [vmem:[%s3744_s4 + $0x88] sm:$0xff]   ;;  %v3010_v31 = vld [vmem:[%s3744_s4 + $0x80] sm:$0xff]   ;;  %v3018_v45 = vld [vmem:[%s3744_s4 + $0x1b8] sm:$0xff]  }
  0x18   : > { %2702 = vmatpush3.bf16.msra.mxu1 %v2990_v11  ;;  %2639 = vmatprep.subr.bf16.mxu0 %v2991_v12  ;;  %v3011_v32 = vld [vmem:[%s3288_s11] sm:$0xff]   ;;  %v3014_v35 = vld [vmem:[%s3306_s21 + $0x8] ss:$0 sps:$4 sm:$0x11]   ;;  %v3328_v46 = vld [vmem:[%s3288_s11 + $0xc] sm:$0xff]  }
  0x19   : > { %2703 = vmatprep.subr.bf16.mxu1 %v2992_v13  ;;  %v3310_v33 = vld [vmem:[%s3297_s16] sm:$0xff]   ;;  %1605 = vmatprep.mubr.bf16.mxu0 %v3011_v32  ;;  %v649_v38 = vshll.u32 %v3014_v35, 16  ;;  %v3332_v48 = vld [vmem:[%s3297_s16 + $0xc] sm:$0xff]   ;;  %v3022_v50 = vld [vmem:[%s3306_s21 + $0x14] ss:$0 sps:$4 sm:$0x11]  }
  0x1a   : > { %v3013_v34 = vld [vmem:[%s3306_s21] sm:$0xff]   ;;  %1702 = vmatprep.mubr.bf16.mxu1 %v3310_v33  ;;  %v3336_v49 = vld [vmem:[%s3306_s21 + $0xc] sm:$0xff]   ;;  %v661_v55 = vshll.u32 %v3022_v50, 16  ;;  %v3356_v60 = vld [vmem:[%s3288_s11 + $0x18] sm:$0xff]  }
  0x1b   : > { %2640 = vmatpush3.bf16.msra.mxu0 %v2993_v14  ;;  %v644_v36 = vshll.u32 %v3013_v34, 16  ;;  %v642_v37 = vshrl.u32 %v3013_v34, 16  ;;  %v651_v42 = vrot.slane %v649_v38, 1  ;;  %v654_v51 = vshrl.u32 %v3336_v49, 16  ;;  %v3023_v53 = vld [vmem:[%s3744_s4 + $0x170] sm:$0xff]   ;;  %v3360_v62 = vld [vmem:[%s3297_s16 + $0x18] sm:$0xff]  }
  0x1c   : > { %2704 = vmatpush3.bf16.msra.mxu1 %v2994_v15  ;;  %2641 = vmatprep.subr.bf16.mxu0 %v2995_v16  ;;  %v656_v52 = vshll.u32 %v3336_v49, 16  ;;  %v3024_v54 = vld [vmem:[%s3744_s4 + $0x1f0] sm:$0xff]   ;;  %v663_v59 = vrot.slane %v661_v55, 1  ;;  %v3366_v0 = vld [vmem:[%s3306_s21 + $0x18] sm:$0xff]   ;;  %v3031_v4 = vld [vmem:[%s3744_s4 + $0x168] sm:$0xff]  }
  0x1d   : > { %2705 = vmatprep.subr.bf16.mxu1 %v2996_v17  ;;  %v646_v40 = vrot.slane %v644_v36, 1  ;;  %v3025_v56 = vld [vmem:[%s3744_s4 + $0x130] sm:$0xff]   ;;  %v3030_v1 = vld [vmem:[%s3306_s21 + $0x20] ss:$0 sps:$4 sm:$0x11]   ;;  %v666_v2 = vshrl.u32 %v3366_v0, 16 }
  0x1e   : > { %v658_v57 = vrot.slane %v656_v52, 1  ;;  %v3026_v58 = vld [vmem:[%s3744_s4 + $0x1b0] sm:$0xff]   ;;  %v668_v3 = vshll.u32 %v3366_v0, 16  ;;  %v3032_v5 = vld [vmem:[%s3744_s4 + $0x1e8] sm:$0xff]   ;;  %v673_v6 = vshll.u32 %v3030_v1, 16  ;;  %v3047_v35 = vld [vmem:[%s3744_s4 + $0x158] sm:$0xff]  }
  0x1f   : > { %2642 = vmatpush3.bf16.msra.mxu0 %v2997_v18  ;;  %v647_v44 = vor.u32 %v646_v40, %v642_v37  ;;  %v3033_v7 = vld [vmem:[%s3744_s4 + $0x128] sm:$0xff]   ;;  %v3048_v36 = vld [vmem:[%s3744_s4 + $0x1d8] sm:$0xff]   ;;  %v3054_v50 = vld [vmem:[%s3306_s21 + $0x44] ss:$0 sps:$4 sm:$0x11]  }
  0x20   : > { %2706 = vmatpush3.bf16.msra.mxu1 %v2998_v19  ;;  %2643 = vmatprep.subr.bf16.mxu0 %v2999_v20  ;;  %v659_v61 = vor.u32 %v658_v57, %v654_v51  ;;  %v670_v8 = vrot.slane %v668_v3, 1  ;;  %v3034_v9 = vld [vmem:[%s3744_s4 + $0x1a8] sm:$0xff]   ;;  %v675_v10 = vrot.slane %v673_v6, 1  ;;  %v3039_v19 = vld [vmem:[%s3744_s4 + $0x160] sm:$0xff]   ;;  %v3049_v38 = vld [vmem:[%s3744_s4 + $0x118] sm:$0xff]   ;;  %v709_v55 = vshll.u32 %v3054_v50, 16 }
  0x21   : > { %2707 = vmatprep.subr.bf16.mxu1 %v3000_v21  ;;  %v652_v47 = vsel %vm640_vm0, %v647_v44, %v651_v42  ;;  %v3387_v11 = vld [vmem:[%s3288_s11 + $0x24] sm:$0xff]   ;;  %v3038_v16 = vld [vmem:[%s3306_s21 + $0x2c] ss:$0 sps:$4 sm:$0x11]   ;;  %v3050_v40 = vld [vmem:[%s3744_s4 + $0x198] sm:$0xff]   ;;  %v866_v6 = vshrl.u32 %v3310_v33, 16 }
  0x22   : > { %v3363_v63 = vsel %vm640_vm0, %v659_v61, %v663_v59  ;;  %v671_v12 = vor.u32 %v670_v8, %v666_v2  ;;  %v3391_v13 = vld [vmem:[%s3297_s16 + $0x24] sm:$0xff]   ;;  %v685_v21 = vshll.u32 %v3038_v16, 16  ;;  %v3449_v42 = vld [vmem:[%s3288_s11 + $0x3c] sm:$0xff]   ;;  %v711_v59 = vrot.slane %v709_v55, 1 }
  0x23   : > { %2644 = vmatpush3.bf16.msra.mxu0 %v3001_v22  ;;  %v3397_v15 = vld [vmem:[%s3306_s21 + $0x24] sm:$0xff]   ;;  %v3453_v44 = vld [vmem:[%s3297_s16 + $0x3c] sm:$0xff]   ;;  %v868_v2 = vshll.u32 %v3310_v33, 16  ;;  %v3062_v8 = vld [vmem:[%s3306_s21 + $0x50] ss:$0 sps:$4 sm:$0x11]  }
  0x24   : > { %2708 = vmatpush3.bf16.msra.mxu1 %v3002_v23  ;;  %2645 = vmatprep.subr.bf16.mxu0 %v3003_v24  ;;  %v3394_v14 = vsel %vm640_vm0, %v671_v12, %v675_v10  ;;  %v678_v17 = vshrl.u32 %v3397_v15, 16  ;;  %v680_v18 = vshll.u32 %v3397_v15, 16  ;;  %v3040_v20 = vld [vmem:[%s3744_s4 + $0x1e0] sm:$0xff]   ;;  %v3480_v61 = vld [vmem:[%s3288_s11 + $0x48] sm:$0xff]   ;;  %v721_v16 = vshll.u32 %v3062_v8, 16 }
  0x25   : > { %2709 = vmatprep.subr.bf16.mxu1 %v3004_v25  ;;  %v3041_v22 = vld [vmem:[%s3744_s4 + $0x120] sm:$0xff]   ;;  %v687_v25 = vrot.slane %v685_v21, 1  ;;  %v3485_v3 = vld [vmem:[%s3297_s16 + $0x48] sm:$0xff]   ;;  %v3514_v21 = vld [vmem:[%s3288_s11 + $0x54] sm:$0xff]  }
  0x26   : > { %v682_v23 = vrot.slane %v680_v18, 1  ;;  %v3042_v24 = vld [vmem:[%s3744_s4 + $0x1a0] sm:$0xff]   ;;  %v3063_v12 = vld [vmem:[%s3744_s4 + $0x148] sm:$0xff]  }
  0x27   : > { %2646 = vmatpush3.bf16.msra.mxu0 %v3005_v26  ;;  %v3418_v26 = vld [vmem:[%s3288_s11 + $0x30] sm:$0xff]   ;;  %v3064_v33 = vld [vmem:[%s3744_s4 + $0x1c8] sm:$0xff]  }
  0x28   : > { %2710 = vmatpush3.bf16.msra.mxu1 %v3006_v27  ;;  %2647 = vmatprep.subr.bf16.mxu0 %v3007_v28  ;;  %v683_v27 = vor.u32 %v682_v23, %v678_v17  ;;  %v3422_v28 = vld [vmem:[%s3297_s16 + $0x30] sm:$0xff]   ;;  %v3065_v17 = vld [vmem:[%s3744_s4 + $0x108] sm:$0xff]  }
  0x29   : > { %2711 = vmatprep.subr.bf16.mxu1 %v3008_v29  ;;  %v3518_v23 = vld [vmem:[%s3297_s16 + $0x54] sm:$0xff]  }
  0x2a   : > { %v3425_v29 = vsel %vm640_vm0, %v683_v27, %v687_v25  ;;  %v3524_v27 = vld [vmem:[%s3306_s21 + $0x54] sm:$0xff]  }
  0x2b   : > { %2648 = vmatpush3.bf16.msra.mxu0 %v3009_v30  ;;  %v3428_v30 = vld [vmem:[%s3306_s21 + $0x30] sm:$0xff]  }
  0x2c   : > { %2712 = vmatpush3.bf16.msra.mxu1 %v3010_v31  ;;  %2761 = vmatprep.subr.bf16.mxu0 %v3015_v39  ;;  %v3046_v31 = vld [vmem:[%s3306_s21 + $0x38] ss:$0 sps:$4 sm:$0x11]   ;;  %v690_v32 = vshrl.u32 %v3428_v30, 16 }
  0x2d   : > { %2825 = vmatprep.subr.bf16.mxu1 %v3016_v41  ;;  %v697_v37 = vshll.u32 %v3046_v31, 16  ;;  %v878_v31 = vshrl.u32 %v3332_v48, 16 }
  0x2e   : > { %1606 = vmatmul.mubr.bf16.vlgmr.msra.gmra.mxu0 %v3013_v34  ;;  %v692_v34 = vshll.u32 %v3428_v30, 16 }
  0x2f   : > { %2762 = vmatpush3.bf16.msra.mxu0 %v3017_v43  ;;  %1703 = vmatmul.mubr.bf16.vlgmr.msra.gmra.mxu1 %v652_v47  ;;  %v699_v41 = vrot.slane %v697_v37, 1  ;;  %v3459_v47 = vld [vmem:[%s3306_s21 + $0x3c] sm:$0xff]  }
  0x30   : > { %1613 = vmatprep.mubr.bf16.mxu0 %v3328_v46  ;;  %2826 = vmatpush3.bf16.msra.mxu1 %v3018_v45  ;;  %v694_v39 = vrot.slane %v692_v34, 1  ;;  %v702_v51 = vshrl.u32 %v3459_v47, 16  ;;  %v704_v52 = vshll.u32 %v3459_v47, 16  ;;  %v3071_v37 = vld [vmem:[%s3744_s4 + $0x140] sm:$0xff]  }
  0x31   : > { %1710 = vmatprep.mubr.bf16.mxu1 %v3332_v48  ;;  %2763 = vmatprep.subr.bf16.mxu0 %v3023_v53  ;;  %v3055_v53 = vld [vmem:[%s3744_s4 + $0x150] sm:$0xff]  }
  0x32   : > { %2827 = vmatprep.subr.bf16.mxu1 %v3024_v54  ;;  %v695_v43 = vor.u32 %v694_v39, %v690_v32  ;;  %v3056_v54 = vld [vmem:[%s3744_s4 + $0x1d0] sm:$0xff]   ;;  %v706_v57 = vrot.slane %v704_v52, 1  ;;  %v3070_v32 = vld [vmem:[%s3306_s21 + $0x5c] ss:$0 sps:$4 sm:$0x11]   ;;  %v3073_v39 = vld [vmem:[%s3744_s4 + $0x100] sm:$0xff]  }
  0x33   : > { %2764 = vmatpush3.bf16.msra.mxu0 %v3025_v56  ;;  %v3057_v56 = vld [vmem:[%s3744_s4 + $0x110] sm:$0xff]   ;;  %v3075_v52 = vld [vmem:[%s3297_s16 + $0x8] ss:$0 sps:$4 sm:$0x11]  }
  0x34   : > { %2828 = vmatpush3.bf16.msra.mxu1 %v3026_v58  ;;  %2765 = vmatprep.subr.bf16.mxu0 %v3031_v4  ;;  %v3456_v45 = vsel %vm640_vm0, %v695_v43, %v699_v41  ;;  %v3058_v58 = vld [vmem:[%s3744_s4 + $0x190] sm:$0xff]   ;;  %v707_v1 = vor.u32 %v706_v57, %v702_v51  ;;  %v3074_v41 = vld [vmem:[%s3744_s4 + $0x180] sm:$0xff]   ;;  %v892_v43 = vshll.u32 %v3360_v62, 16 }
  0x35   : > { %2829 = vmatprep.subr.bf16.mxu1 %v3032_v5  ;;  %v3491_v5 = vld [vmem:[%s3306_s21 + $0x48] sm:$0xff]   ;;  %v3078_v57 = vld [vmem:[%s3297_s16 + $0x14] ss:$0 sps:$4 sm:$0x11]  }
  0x36   : > { %1614 = vmatmul.mubr.bf16.gmra.mxu0 %v3336_v49  ;;  %v3488_v4 = vsel %vm640_vm0, %v707_v1, %v711_v59  ;;  %v716_v10 = vshll.u32 %v3491_v5, 16  ;;  %v3076_v1 = vld [vmem:[%s3551_s10] sm:$0xff]   ;;  %v894_v8 = vrot.slane %v892_v43, 1 }
  0x37   : > { %1621 = vmatprep.mubr.bf16.mxu0 %v3356_v60  ;;  %1711 = vmatmul.mubr.bf16.gmra.mxu1 %v3363_v63 }
  0x38   : > { %1718 = vmatprep.mubr.bf16.mxu1 %v3360_v62  ;;  %2766 = vmatpush3.bf16.msra.mxu0 %v3033_v7  ;;  %v880_v7 = vshll.u32 %v3332_v48, 16  ;;  %v718_v18 = vrot.slane %v716_v10, 1  ;;  %v3072_v48 = vld [vmem:[%s3744_s4 + $0x1c0] sm:$0xff]  }
  0x39   : > { %2830 = vmatpush3.bf16.msra.mxu1 %v3034_v9  ;;  %2767 = vmatprep.subr.bf16.mxu0 %v3039_v19  ;;  %v714_v9 = vshrl.u32 %v3491_v5, 16  ;;  %v3066_v19 = vld [vmem:[%s3744_s4 + $0x188] sm:$0xff]   ;;  %v3081_v10 = vld [vmem:[%s3297_s16 + $0x20] ss:$0 sps:$4 sm:$0x11]  }
  0x3a   : > { %2831 = vmatprep.subr.bf16.mxu1 %v3040_v20  ;;  %v723_v20 = vrot.slane %v721_v16, 1  ;;  %v882_v34 = vrot.slane %v880_v7, 1  ;;  %v885_v7 = vshll.u32 %v3078_v57, 16  ;;  %v3084_v16 = vld [vmem:[%s3297_s16 + $0x2c] ss:$0 sps:$4 sm:$0x11]  }
  0x3c   : > { %2768 = vmatpush3.bf16.msra.mxu0 %v3041_v22  ;;  %v719_v22 = vor.u32 %v718_v18, %v714_v9 }
  0x3d   : > { %2832 = vmatpush3.bf16.msra.mxu1 %v3042_v24  ;;  %2769 = vmatprep.subr.bf16.mxu0 %v3047_v35  ;;  %v870_v24 = vrot.slane %v868_v2, 1  ;;  %v726_v35 = vshrl.u32 %v3524_v27, 16  ;;  %v883_v2 = vor.u32 %v882_v34, %v878_v31  ;;  %v3086_v34 = vld [vmem:[%s3744_s4 + $0x220] sm:$0xff]  }
  0x3e   : > { %1622 = vmatmul.mubr.bf16.gmra.mxu0 %v3366_v0  ;;  %2833 = vmatprep.subr.bf16.mxu1 %v3048_v36  ;;  %v3521_v25 = vsel %vm640_vm0, %v719_v22, %v723_v20  ;;  %v728_v36 = vshll.u32 %v3524_v27, 16  ;;  %v3079_v20 = vld [vmem:[%s3551_s10 + $0xc] sm:$0xff]   ;;  %v902_v22 = vshrl.u32 %v3391_v13, 16 }
  0x3f   : > { %1629 = vmatprep.mubr.bf16.mxu0 %v3387_v11  ;;  %1719 = vmatmul.mubr.bf16.gmra.mxu1 %v3394_v14  ;;  %v871_v55 = vor.u32 %v870_v24, %v866_v6  ;;  %v3080_v6 = vld [vmem:[%s3744_s4 + $0x230] sm:$0xff]  }
  0x40   : > { %1726 = vmatprep.mubr.bf16.mxu1 %v3391_v13  ;;  %2770 = vmatpush3.bf16.msra.mxu0 %v3049_v38  ;;  %v733_v38 = vshll.u32 %v3070_v32, 16  ;;  %v909_v32 = vshll.u32 %v3084_v16, 16 }
  0x41   : > { %2834 = vmatpush3.bf16.msra.mxu1 %v3050_v40  ;;  %2771 = vmatprep.subr.bf16.mxu0 %v3055_v53  ;;  %v730_v40 = vrot.slane %v728_v36, 1  ;;  %v3077_v53 = vld [vmem:[%s3744_s4 + $0x238] sm:$0xff]  }
  0x42   : > { %2835 = vmatprep.subr.bf16.mxu1 %v3056_v54  ;;  %v735_v50 = vrot.slane %v733_v38, 1  ;;  %v3089_v36 = vld [vmem:[%s3744_s4 + $0x218] sm:$0xff]  }
  0x43   : > { %v731_v51 = vor.u32 %v730_v40, %v726_v35  ;;  %v911_v35 = vrot.slane %v909_v32, 1 }
  0x44   : > { %2772 = vmatpush3.bf16.msra.mxu0 %v3057_v56  ;;  %v873_v56 = vshll.u32 %v3075_v52, 16 }
  0x45   : > { %2836 = vmatpush3.bf16.msra.mxu1 %v3058_v58  ;;  %2773 = vmatprep.subr.bf16.mxu0 %v3063_v12  ;;  %v3557_v54 = vsel %vm640_vm0, %v731_v51, %v735_v50  ;;  %v890_v58 = vshrl.u32 %v3360_v62, 16  ;;  %v887_v12 = vrot.slane %v885_v7, 1  ;;  %v897_v62 = vshll.u32 %v3081_v10, 16  ;;  %v3095_v50 = vld [vmem:[%s3744_s4 + $0x208] sm:$0xff]   ;;  %v3091_v10 = vld [vmem:[%s3551_s10 + $0x3c] sm:$0xff]  }
  0x46   : > { %1630 = vmatmul.mubr.bf16.gmra.mxu0 %v3397_v15  ;;  %2837 = vmatprep.subr.bf16.mxu1 %v3064_v33  ;;  %v875_v59 = vrot.slane %v873_v56, 1  ;;  %v904_v33 = vshll.u32 %v3391_v13, 16  ;;  %v3087_v13 = vld [vmem:[%s3297_s16 + $0x38] ss:$0 sps:$4 sm:$0x11]   ;;  %v3085_v51 = vld [vmem:[%s3551_s10 + $0x24] sm:$0xff]  }
  0x47   : > { %1637 = vmatprep.mubr.bf16.mxu0 %v3418_v26  ;;  %1727 = vmatmul.mubr.bf16.gmra.mxu1 %v3425_v29  ;;  %v899_v18 = vrot.slane %v897_v62, 1  ;;  %v921_v40 = vshll.u32 %v3087_v13, 16 }
  0x48   : > { %1734 = vmatprep.mubr.bf16.mxu1 %v3422_v28  ;;  %2774 = vmatpush3.bf16.msra.mxu0 %v3065_v17  ;;  %v876_v9 = vsel %vm640_vm0, %v871_v55, %v875_v59  ;;  %v895_v17 = vor.u32 %v894_v8, %v890_v58  ;;  %v906_v31 = vrot.slane %v904_v33, 1  ;;  %v3093_v59 = vld [vmem:[%s3297_s16 + $0x50] ss:$0 sps:$4 sm:$0x11]  }
  0x49   : > { %2838 = vmatpush3.bf16.msra.mxu1 %v3066_v19  ;;  %2775 = vmatprep.subr.bf16.mxu0 %v3071_v37  ;;  %v3083_v19 = vld [vmem:[%s3744_s4 + $0x228] sm:$0xff]   ;;  %v3082_v37 = vld [vmem:[%s3551_s10 + $0x18] sm:$0xff]   ;;  %v923_v43 = vrot.slane %v921_v40, 1  ;;  %v945_v8 = vshll.u32 %v3093_v59, 16 }
  0x4a   : > { %2839 = vmatprep.subr.bf16.mxu1 %v3072_v48  ;;  %v900_v24 = vsel %vm640_vm0, %v895_v17, %v899_v18  ;;  %v914_v48 = vshrl.u32 %v3422_v28, 16  ;;  %v3097_v17 = vld [vmem:[%s3288_s11 + $0x60] sm:$0xff]  }
  0x4b   : > { %v3099_v18 = vld [vmem:[%s3306_s21 + $0x60] sm:$0xff]  }
  0x4c   : > { %2776 = vmatpush3.bf16.msra.mxu0 %v3073_v39 }
  0x4d   : > { %2840 = vmatpush3.bf16.msra.mxu1 %v3074_v41  ;;  %2905 = vmatprep.subr.bf16.mxu0 %v3077_v53 }
  0x4e   : > { %1638 = vmatmul.mubr.bf16.gmra.mxu0 %v3428_v30  ;;  %2937 = vmatprep.subr.bf16.mxu1 %v3077_v53 }
  0x4f   : > { %1645 = vmatprep.mubr.bf16.mxu0 %v3449_v42  ;;  %1735 = vmatmul.mubr.bf16.gmra.mxu1 %v3456_v45 }
  0x50   : > { %1742 = vmatprep.mubr.bf16.mxu1 %v3453_v44 }
  0x56   : > { %1646 = vmatmul.mubr.bf16.gmra.mxu0 %v3459_v47 }
  0x57   : > { %1653 = vmatprep.mubr.bf16.mxu0 %v3480_v61  ;;  %1743 = vmatmul.mubr.bf16.gmra.mxu1 %v3488_v4 }
  0x58   : > { %1750 = vmatprep.mubr.bf16.mxu1 %v3485_v3 }
  0x5e   : > { %1654 = vmatmul.mubr.bf16.gmra.mxu0 %v3491_v5 }
  0x5f   : > { %1661 = vmatprep.mubr.bf16.mxu0 %v3514_v21  ;;  %1751 = vmatmul.mubr.bf16.gmra.mxu1 %v3521_v25 }
  0x60   : > { %1758 = vmatprep.mubr.bf16.mxu1 %v3518_v23 }
  0x66   : > { %1662 = vmatmul.mubr.bf16.gmra.mxu0 %v3524_v27 }
  0x67   : > { %1759 = vmatmul.mubr.bf16.gmra.mxu1 %v3557_v54  ;;  %1799 = vmatprep.mubr.bf16.mxu0 %v876_v9 }
  0x68   : > { %1896 = vmatprep.mubr.bf16.mxu1 %v3328_v46  ;;  %v888_v46 = vsel %vm640_vm0, %v883_v2, %v887_v12  ;;  %v938_v2 = vshrl.u32 %v3485_v3, 16  ;;  %v950_v12 = vshrl.u32 %v3518_v23, 16 }
  0x6e   : > { %1800 = vmatmul.mubr.bf16.vlgmr.msra.gmra.mxu0 %v3076_v1 }
  0x6f   : > { %2906 = vmatpush3.bf16.msra.mxu0 %v3077_v53  ;;  %1807 = vmatprep.mubr.bf16.mxu0 %v888_v46 }
  0x70   : > { %2907 = vmatprep.subr.bf16.mxu0 %v3080_v6  ;;  %1897 = vmatmul.mubr.bf16.vlgmr.msra.gmra.mxu1 %v3336_v49  ;;  %v916_v49 = vshll.u32 %v3422_v28, 16  ;;  %v3090_v28 = vld [vmem:[%s3297_s16 + $0x44] ss:$0 sps:$4 sm:$0x11]  }
  0x71   : > { %2945 = vmatpush3.bf16.msra.mxu1 %v3077_v53  ;;  %1904 = vmatprep.mubr.bf16.mxu1 %v3356_v60  ;;  %v907_v60 = vor.u32 %v906_v31, %v902_v22  ;;  %v926_v53 = vshrl.u32 %v3453_v44, 16  ;;  %v933_v56 = vshll.u32 %v3090_v28, 16 }
  0x72   : > { %2938 = vmatprep.subr.bf16.mxu1 %v3080_v6  ;;  %v918_v39 = vrot.slane %v916_v49, 1 }
  0x73   : > { %2908 = vmatpush3.bf16.msra.mxu0 %v3080_v6  ;;  %v912_v38 = vsel %vm640_vm0, %v907_v60, %v911_v35  ;;  %v935_v58 = vrot.slane %v933_v56, 1 }
  0x74   : > { %2909 = vmatprep.subr.bf16.mxu0 %v3083_v19  ;;  %v919_v41 = vor.u32 %v918_v39, %v914_v48 }
  0x75   : > { %2946 = vmatpush3.bf16.msra.mxu1 %v3080_v6  ;;  %v947_v6 = vrot.slane %v945_v8, 1 }
  0x76   : > { %1808 = vmatmul.mubr.bf16.gmra.mxu0 %v3079_v20  ;;  %2939 = vmatprep.subr.bf16.mxu1 %v3083_v19  ;;  %v924_v52 = vsel %vm640_vm0, %v919_v41, %v923_v43 }
  0x77   : > { %1815 = vmatprep.mubr.bf16.mxu0 %v900_v24  ;;  %2910 = vmatpush3.bf16.msra.mxu0 %v3083_v19 }
  0x78   : > { %1905 = vmatmul.mubr.bf16.gmra.mxu1 %v3366_v0  ;;  %2911 = vmatprep.subr.bf16.mxu0 %v3086_v34  ;;  %v3092_v0 = vld [vmem:[%s3744_s4 + $0x210] sm:$0xff]  }
  0x79   : > { %1912 = vmatprep.mubr.bf16.mxu1 %v3387_v11  ;;  %2947 = vmatpush3.bf16.msra.mxu1 %v3083_v19  ;;  %v928_v11 = vshll.u32 %v3453_v44, 16  ;;  %v3088_v44 = vld [vmem:[%s3551_s10 + $0x30] sm:$0xff]   ;;  %v987_v19 = vshll.u32 %v3099_v18, 16 }
  0x7a   : > { %2940 = vmatprep.subr.bf16.mxu1 %v3086_v34 }
  0x7b   : > { %2912 = vmatpush3.bf16.msra.mxu0 %v3086_v34  ;;  %v930_v55 = vrot.slane %v928_v11, 1  ;;  %v989_v20 = vrot.slane %v987_v19, 1 }
  0x7c   : > { %2913 = vmatprep.subr.bf16.mxu0 %v3089_v36 }
  0x7d   : > { %2948 = vmatpush3.bf16.msra.mxu1 %v3086_v34  ;;  %v931_v57 = vor.u32 %v930_v55, %v926_v53 }
  0x7e   : > { %1816 = vmatmul.mubr.bf16.gmra.mxu0 %v3082_v37  ;;  %2941 = vmatprep.subr.bf16.mxu1 %v3089_v36 }
  0x7f   : > { %1823 = vmatprep.mubr.bf16.mxu0 %v912_v38  ;;  %2914 = vmatpush3.bf16.msra.mxu0 %v3089_v36  ;;  %v936_v1 = vsel %vm640_vm0, %v931_v57, %v935_v58 }
  0x80   : > { %1913 = vmatmul.mubr.bf16.gmra.mxu1 %v3397_v15  ;;  %2915 = vmatprep.subr.bf16.mxu0 %v3092_v0  ;;  %v3100_v15 = vld [vmem:[%s3744_s4 + $0x200] sm:$0xff]  }
  0x81   : > { %1920 = vmatprep.mubr.bf16.mxu1 %v3418_v26  ;;  %2949 = vmatpush3.bf16.msra.mxu1 %v3089_v36  ;;  %v940_v26 = vshll.u32 %v3485_v3, 16 }
  0x82   : > { %2942 = vmatprep.subr.bf16.mxu1 %v3092_v0 }
  0x83   : > { %2916 = vmatpush3.bf16.msra.mxu0 %v3092_v0  ;;  %v942_v7 = vrot.slane %v940_v26, 1 }
  0x84   : > { %2917 = vmatprep.subr.bf16.mxu0 %v3095_v50 }
  0x85   : > { %2950 = vmatpush3.bf16.msra.mxu1 %v3092_v0  ;;  %v943_v9 = vor.u32 %v942_v7, %v938_v2 }
  0x86   : > { %1824 = vmatmul.mubr.bf16.gmra.mxu0 %v3085_v51  ;;  %2943 = vmatprep.subr.bf16.mxu1 %v3095_v50 }
  0x87   : > { %1831 = vmatprep.mubr.bf16.mxu0 %v924_v52  ;;  %2918 = vmatpush3.bf16.msra.mxu0 %v3095_v50  ;;  %v948_v3 = vsel %vm640_vm0, %v943_v9, %v947_v6 }
  0x88   : > { %1921 = vmatmul.mubr.bf16.gmra.mxu1 %v3428_v30  ;;  %2919 = vmatprep.subr.bf16.mxu0 %v3100_v15  ;;  %v952_v30 = vshll.u32 %v3518_v23, 16  ;;  %v3098_v23 = vld [vmem:[%s3551_s10 + $0x54] sm:$0xff]  }
  0x89   : > { %1928 = vmatprep.mubr.bf16.mxu1 %v3449_v42  ;;  %2951 = vmatpush3.bf16.msra.mxu1 %v3095_v50  ;;  %v3096_v42 = vld [vmem:[%s3297_s16 + $0x5c] ss:$0 sps:$4 sm:$0x11]  }
  0x8a   : > { %2944 = vmatprep.subr.bf16.mxu1 %v3100_v15  ;;  %v954_v62 = vrot.slane %v952_v30, 1  ;;  %v957_v33 = vshll.u32 %v3096_v42, 16 }
  0x8b   : > { %2920 = vmatpush3.bf16.msra.mxu0 %v3100_v15 }
  0x8c   : > { %v955_v46 = vor.u32 %v954_v62, %v950_v12  ;;  %v959_v16 = vrot.slane %v957_v33, 1 }
  0x8d   : > { %2952 = vmatpush3.bf16.msra.mxu1 %v3100_v15 }
  0x8e   : > { %1832 = vmatmul.mubr.bf16.gmra.mxu0 %v3088_v44 }
  0x8f   : > { %1839 = vmatprep.mubr.bf16.mxu0 %v936_v1 }
  0x90   : > { %1929 = vmatmul.mubr.bf16.gmra.mxu1 %v3459_v47  ;;  %v3094_v47 = vld [vmem:[%s3551_s10 + $0x48] sm:$0xff]  }
  0x91   : > { %1936 = vmatprep.mubr.bf16.mxu1 %v3480_v61  ;;  %v960_v61 = vsel %vm640_vm0, %v955_v46, %v959_v16 }
  0x96   : > { %1840 = vmatmul.mubr.bf16.gmra.mxu0 %v3091_v10 }
  0x97   : > { %1847 = vmatprep.mubr.bf16.mxu0 %v948_v3 }
  0x98   : > { %1937 = vmatmul.mubr.bf16.gmra.mxu1 %v3491_v5  ;;  %v3101_v5 = vld [vmem:[%s3306_s21 + $0x68] ss:$0 sps:$4 sm:$0x11]  }
  0x99   : > { %1944 = vmatprep.mubr.bf16.mxu1 %v3514_v21  ;;  %v985_v21 = vshrl.u32 %v3099_v18, 16  ;;  %v992_v22 = vshll.u32 %v3101_v5, 16 }
  0x9b   : > { %v994_v24 = vrot.slane %v992_v22, 1 }
  0x9e   : > { %1848 = vmatmul.mubr.bf16.gmra.mxu0 %v3094_v47 }
  0x9f   : > { %1855 = vmatprep.mubr.bf16.mxu0 %v960_v61 }
  0xa0   : > { %1945 = vmatmul.mubr.bf16.gmra.mxu1 %v3524_v27  ;;  %v990_v27 = vor.u32 %v989_v20, %v985_v21 }
  0xa1   : > { %1952 = vmatprep.mubr.bf16.mxu1 %v3097_v17 }
  0xa6   : > { %1856 = vmatmul.mubr.bf16.gmra.mxu0 %v3098_v23 }
  0xa7   : > { %2921 = vmatprep.mubr.bf16.mxu0 %v3363_v63  ;;  %v995_v63 = vsel %vm640_vm0, %v990_v27, %v994_v24 }
  0xa8   : > { %1953 = vmatmul.mubr.bf16.gmra.mxu1 %v3099_v18 }
  0xa9   : > { %2929 = vmatprep.mubr.bf16.mxu1 %v3488_v4 }
  0xae   : > { %2922 = vmatmul.mubr.bf16.vlgmr.msra.gmra.mxu0 %v3394_v14 }
  0xaf   : > { %2925 = vmatprep.mubr.bf16.mxu0 %v3425_v29 }
  0xb0   : > { %2930 = vmatmul.mubr.bf16.vlgmr.msra.gmra.mxu1 %v3521_v25 }
  0xb1   : > { %2933 = vmatprep.mubr.bf16.mxu1 %v3557_v54 }
  0xb6   : > { %2926 = vmatmul.mubr.bf16.gmra.mxu0 %v3456_v45 }
  0xb8   : > { %2934 = vmatmul.mubr.bf16.gmra.mxu1 %v995_v63 }
  0xee   : > { %v2649_v4 = vpop.f32.mrf.mxu0 }
  0xef   : > { %v2713_v49 = vpop.f32.mrf.mxu1 }
  0xf0   : > { %v2650_v31 = vpop.f32.mrf.mxu0 }
  0xf1   : > { %v2651_v32 = vadd.f32 %v2650_v31, %v2649_v4  ;;  %v2714_v60 = vpop.f32.mrf.mxu1 }
  0xf2   : > { %v2652_v14 = vpop.f32.mrf.mxu0  ;;  %v2715_v29 = vadd.f32 %v2714_v60, %v2713_v49 }
  0xf3   : > { %v2716_v13 = vpop.f32.mrf.mxu1 }
  0xf4   : > { %v2653_v34 = vpop.f32.mrf.mxu0  ;;  %v3640_v36 = vadd.f32 %v2715_v29, %v2651_v32 }
  0xf5   : > { %v2717_v37 = vpop.f32.mrf.mxu1 }
  0xf6   : > { %v2655_v35 = vpop.f32.mrf.mxu0 }
  0xf7   : > { %v2719_v38 = vpop.f32.mrf.mxu1 }
  0xf8   : > { %v2656_v25 = vpop.f32.mrf.mxu0 }
  0xf9   : > { %v2657_v54 = vadd.f32 %v2656_v25, %v2655_v35  ;;  %v2720_v40 = vpop.f32.mrf.mxu1 }
  0xfa   : > { %v2658_v48 = vpop.f32.mrf.mxu0  ;;  %v2721_v0 = vadd.f32 %v2720_v40, %v2719_v38 }
  0xfb   : > { %v2722_v41 = vpop.f32.mrf.mxu1 }
  0xfc   : > { %v2659_v45 = vpop.f32.mrf.mxu0  ;;  %v3642_v28 = vadd.f32 %v2721_v0, %v2657_v54 }
  0xfd   : > { %v2723_v51 = vpop.f32.mrf.mxu1 }
  0xfe   : > { %v2661_v39 = vpop.f32.mrf.mxu0 }
  0xff   : > { %v2725_v53 = vpop.f32.mrf.mxu1 }
 0x100   : > { %v2662_v11 = vpop.f32.mrf.mxu0 }
 0x101   : > { %v2663_v43 = vadd.f32 %v2662_v11, %v2661_v39  ;;  %v2726_v56 = vpop.f32.mrf.mxu1 }
 0x102   : > { %v2664_v50 = vpop.f32.mrf.mxu0  ;;  %v2727_v15 = vadd.f32 %v2726_v56, %v2725_v53 }
 0x103   : > { %v2728_v57 = vpop.f32.mrf.mxu1 }
 0x104   : > { %v2665_v52 = vpop.f32.mrf.mxu0  ;;  %v3644_v59 = vadd.f32 %v2727_v15, %v2663_v43 }
 0x105   : > { %v2729_v1 = vpop.f32.mrf.mxu1 }
 0x106   : > { %v2667_v55 = vpop.f32.mrf.mxu0 }
 0x107   : > { %v2731_v7 = vpop.f32.mrf.mxu1 }
 0x108   : > { %v2668_v26 = vpop.f32.mrf.mxu0 }
 0x109   : > { %v2669_v58 = vadd.f32 %v2668_v26, %v2667_v55  ;;  %v2732_v30 = vpop.f32.mrf.mxu1 }
 0x10a   : > { %v2670_v44 = vpop.f32.mrf.mxu0  ;;  %v2733_v9 = vadd.f32 %v2732_v30, %v2731_v7 }
 0x10b   : > { %v2734_v42 = vpop.f32.mrf.mxu1 }
 0x10c   : > { %v2671_v2 = vpop.f32.mrf.mxu0  ;;  %v3646_v3 = vadd.f32 %v2733_v9, %v2669_v58 }
 0x10d   : > { %v2735_v62 = vpop.f32.mrf.mxu1 }
 0x10e   : > { %v2673_v8 = vpop.f32.mrf.mxu0 }
 0x10f   : > { %v2737_v46 = vpop.f32.mrf.mxu1 }
 0x110   : > { %v2674_v6 = vpop.f32.mrf.mxu0 }
 0x111   : > { %v2675_v10 = vadd.f32 %v2674_v6, %v2673_v8  ;;  %v2738_v47 = vpop.f32.mrf.mxu1 }
 0x112   : > { %v2676_v12 = vpop.f32.mrf.mxu0  ;;  %v2739_v61 = vadd.f32 %v2738_v47, %v2737_v46 }
 0x113   : > { %v2740_v23 = vpop.f32.mrf.mxu1 }
 0x114   : > { %v2677_v33 = vpop.f32.mrf.mxu0  ;;  %v3648_v19 = vadd.f32 %v2739_v61, %v2675_v10 }
 0x115   : > { %v2741_v21 = vpop.f32.mrf.mxu1 }
 0x116   : > { %v2679_v16 = vpop.f32.mrf.mxu0 }
 0x117   : > { %v2743_v22 = vpop.f32.mrf.mxu1 }
 0x118   : > { %v2680_v17 = vpop.f32.mrf.mxu0 }
 0x119   : > { %v2681_v18 = vadd.f32 %v2680_v17, %v2679_v16  ;;  %v2744_v24 = vpop.f32.mrf.mxu1 }
 0x11a   : > { %v2682_v5 = vpop.f32.mrf.mxu0  ;;  %v2745_v63 = vadd.f32 %v2744_v24, %v2743_v22 }
 0x11b   : > { %v2746_v31 = vpop.f32.mrf.mxu1 }
 0x11c   : > { %v2683_v20 = vpop.f32.mrf.mxu0  ;;  %v3650_v14 = vadd.f32 %v2745_v63, %v2681_v18 }
 0x11d   : > { %v2747_v49 = vpop.f32.mrf.mxu1 }
 0x11e   : > { %v2685_v27 = vpop.f32.mrf.mxu0 }
 0x11f   : > { %v2749_v35 = vpop.f32.mrf.mxu1 }
 0x120   : > { %v2686_v4 = vpop.f32.mrf.mxu0 }
 0x121   : > { %v2687_v32 = vadd.f32 %v2686_v4, %v2685_v27  ;;  %v2750_v13 = vpop.f32.mrf.mxu1 }
 0x122   : > { %v2688_v34 = vpop.f32.mrf.mxu0  ;;  %v2751_v25 = vadd.f32 %v2750_v13, %v2749_v35 }
 0x123   : > { %v2752_v37 = vpop.f32.mrf.mxu1 }
 0x124   : > { %v2689_v60 = vpop.f32.mrf.mxu0  ;;  %v3652_v45 = vadd.f32 %v2751_v25, %v2687_v32 }
 0x125   : > { %v2753_v39 = vpop.f32.mrf.mxu1 }
 0x126   : > { %v2691_v29 = vpop.f32.mrf.mxu0 }
 0x127   : > { %v2755_v0 = vpop.f32.mrf.mxu1 }
 0x128   : > { %v2692_v54 = vpop.f32.mrf.mxu0 }
 0x129   : > { %v2693_v48 = vadd.f32 %v2692_v54, %v2691_v29  ;;  %v2756_v11 = vpop.f32.mrf.mxu1 }
 0x12a   : > { %v2694_v38 = vpop.f32.mrf.mxu0  ;;  %v2757_v41 = vadd.f32 %v2756_v11, %v2755_v0 }
 0x12b   : > { %v2758_v43 = vpop.f32.mrf.mxu1 }
 0x12c   : > { %v2695_v40 = vpop.f32.mrf.mxu0  ;;  %v3654_v50 = vadd.f32 %v2757_v41, %v2693_v48 }
 0x12d   : > { %v2759_v52 = vpop.f32.mrf.mxu1 }
 0x12e   : > { %v2777_v51 = vpop.f32.mrf.mxu0 }
 0x130   : > { %v2778_v53 = vpop.f32.mrf.mxu0  ;;  %v3656_v55 = vpop.f32.mrf.mxu1 }
 0x132   : > { %v2780_v56 = vpop.f32.mrf.mxu0  ;;  %v3658_v15 = vpop.f32.mrf.mxu1 }
 0x134   : > { %v2781_v26 = vpop.f32.mrf.mxu0  ;;  %v2844_v57 = vpop.f32.mrf.mxu1 }
 0x135   : > { %v2779_v26 = vadd.f32 %v2778_v53, %v2777_v51 }
 0x136   : > { %v2783_v58 = vpop.f32.mrf.mxu0  ;;  %v2845_v44 = vpop.f32.mrf.mxu1 }
 0x138   : > { %v2784_v1 = vpop.f32.mrf.mxu0  ;;  %v2847_v2 = vpop.f32.mrf.mxu1 }
 0x139   : > { %v2785_v43 = vadd.f32 %v2784_v1, %v2783_v58  ;;  %v2843_v58 = vadd.f32 %v3658_v15, %v3656_v55  ;;  %v3689_v55 = vld [vmem:[%s3746_s6] ss:$0 sm:$0xff] }
 0x13a   : > { %v2786_v7 = vpop.f32.mrf.mxu0  ;;  %v2848_v8 = vpop.f32.mrf.mxu1 }
 0x13c   : > { %v2787_v30 = vpop.f32.mrf.mxu0  ;;  %v2850_v9 = vpop.f32.mrf.mxu1 }
 0x13d   : > { %v1810_v30 = vadd.f32 %v2785_v43, %v3642_v28 }
 0x13e   : > { %v3660_v6 = vpop.f32.mrf.mxu0  ;;  %v2851_v42 = vpop.f32.mrf.mxu1 }
 0x140   : > { %v2790_v10 = vpop.f32.mrf.mxu0  ;;  %v3662_v12 = vpop.f32.mrf.mxu1 }
 0x142   : > { %v2792_v62 = vpop.f32.mrf.mxu0  ;;  %v3664_v33 = vpop.f32.mrf.mxu1 }
 0x144   : > { %v2793_v46 = vpop.f32.mrf.mxu0  ;;  %v2856_v16 = vpop.f32.mrf.mxu1 }
 0x145   : > { %v1802_v46 = vadd.f32 %v2779_v26, %v3640_v36  ;;  %v2849_v16 = vadd.f32 %v2848_v8, %v2847_v2  ;;  %v2791_v36 = vadd.f32 %v2790_v10, %v3660_v6 }
 0x146   : > { %v2795_v47 = vpop.f32.mrf.mxu0  ;;  %v2857_v61 = vpop.f32.mrf.mxu1 }
 0x147   : > { %v1907_v53 = vadd.f32 %v2849_v16, %v1810_v30  ;;  %v1899_v8 = vadd.f32 %v2843_v58, %v1802_v46 }
 0x148   : > { %v2796_v17 = vpop.f32.mrf.mxu0  ;;  %v3666_v23 = vpop.f32.mrf.mxu1 }
 0x149   : > { %v2797_v1 = vadd.f32 %v2796_v17, %v2795_v47 }
 0x14a   : > { %v2798_v18 = vpop.f32.mrf.mxu0  ;;  %v3668_v5 = vpop.f32.mrf.mxu1 }
 0x14b   : > { %v1826_v47 = vadd.f32 %v2797_v1, %v3646_v3 }
 0x14c   : > { %v2799_v21 = vpop.f32.mrf.mxu0  ;;  %v2862_v20 = vpop.f32.mrf.mxu1 }
 0x14e   : > { %v2801_v22 = vpop.f32.mrf.mxu0  ;;  %v2863_v27 = vpop.f32.mrf.mxu1 }
 0x150   : > { %v2802_v24 = vpop.f32.mrf.mxu0  ;;  %v2865_v63 = vpop.f32.mrf.mxu1 }
 0x151   : > { %v2803_v42 = vadd.f32 %v2802_v24, %v2801_v22  ;;  %v3683_v22 = vld [vmem:[%s3745_s5] ss:$0 sm:$0xff] }
 0x152   : > { %v2804_v4 = vpop.f32.mrf.mxu0  ;;  %v2866_v31 = vpop.f32.mrf.mxu1 }
 0x153   : > { %v1834_v20 = vadd.f32 %v2803_v42, %v3648_v19  ;;  %v2867_v24 = vadd.f32 %v2866_v31, %v2865_v63  ;;  %v1818_v63 = vadd.f32 %v2791_v36, %v3644_v59  ;;  %v2861_v31 = vadd.f32 %v3668_v5, %v3666_v23 }
 0x154   : > { %v2805_v32 = vpop.f32.mrf.mxu0  ;;  %v2868_v34 = vpop.f32.mrf.mxu1 }
 0x155   : > { %v1923_v23 = vadd.f32 %v2861_v31, %v1826_v47 }
 0x156   : > { %v2807_v49 = vpop.f32.mrf.mxu0  ;;  %v2869_v60 = vpop.f32.mrf.mxu1 }
 0x158   : > { %v2808_v35 = vpop.f32.mrf.mxu0  ;;  %v2871_v29 = vpop.f32.mrf.mxu1 }
 0x159   : > { %v2809_v44 = vadd.f32 %v2808_v35, %v2807_v49  ;;  %v1931_v49 = vadd.f32 %v2867_v24, %v1834_v20 }
 0x15a   : > { %v2810_v13 = vpop.f32.mrf.mxu0  ;;  %v2872_v25 = vpop.f32.mrf.mxu1 }
 0x15b   : > { %v1842_v18 = vadd.f32 %v2809_v44, %v3650_v14  ;;  %v2873_v27 = vadd.f32 %v2872_v25, %v2871_v29 }
 0x15c   : > { %v2811_v54 = vpop.f32.mrf.mxu0  ;;  %v2874_v37 = vpop.f32.mrf.mxu1 }
 0x15d   : > { %v1939_v19 = vadd.f32 %v2873_v27, %v1842_v18 }
 0x15e   : > { %v2813_v48 = vpop.f32.mrf.mxu0  ;;  %v2875_v38 = vpop.f32.mrf.mxu1 }
 0x160   : > { %v2814_v39 = vpop.f32.mrf.mxu0  ;;  %v3670_v40 = vpop.f32.mrf.mxu1 }
 0x161   : > { %v2815_v6 = vadd.f32 %v2814_v39, %v2813_v48  ;;  %v2855_v48 = vadd.f32 %v3664_v33, %v3662_v12 }
 0x162   : > { %v2816_v0 = vpop.f32.mrf.mxu0  ;;  %v3672_v11 = vpop.f32.mrf.mxu1 }
 0x163   : > { %v1850_v5 = vadd.f32 %v2815_v6, %v3652_v45  ;;  %v1915_v44 = vadd.f32 %v2855_v48, %v1818_v63  ;;  %v2879_v12 = vadd.f32 %v3672_v11, %v3670_v40 }
 0x164   : > { %v2817_v41 = vpop.f32.mrf.mxu0  ;;  %v2880_v52 = vpop.f32.mrf.mxu1 }
 0x166   : > { %v2819_v56 = vpop.f32.mrf.mxu0  ;;  %v2881_v57 = vpop.f32.mrf.mxu1 }
 0x168   : > { %v2820_v7 = vpop.f32.mrf.mxu0  ;;  %v2883_v9 = vpop.f32.mrf.mxu1 }
 0x169   : > { %v2821_v4 = vadd.f32 %v2820_v7, %v2819_v56 }
 0x16a   : > { %v2822_v62 = vpop.f32.mrf.mxu0  ;;  %v2884_v61 = vpop.f32.mrf.mxu1 }
 0x16b   : > { %v1858_v3 = vadd.f32 %v2821_v4, %v3654_v50  ;;  %v2885_v0 = vadd.f32 %v2884_v61, %v2883_v9  ;;  %v3126_v9 = vmov 0.0  }
 0x16c   : > { %v2823_v21 = vpop.f32.mrf.mxu0  ;;  %v2886_v51 = vpop.f32.mrf.mxu1 }
 0x16d   : > { %v1955_v7 = vadd.f32 %v2885_v0, %v1858_v3  ;;  %v1947_v21 = vadd.f32 %v2879_v12, %v1850_v5 }
 0x16e   : > { %v2923_v28 = vpop.f32.mrf.mxu0  ;;  %v2887_v2 = vpop.f32.mrf.mxu1 }
 0x16f   : > { %v2004_v14 = vadd.f32 %v2923_v28, %v1907_v53 }
 0x170   : > { %v1995_v15 = vpop.f32.mrf.mxu0  ;;  %v2931_v32 = vpop.f32.mrf.mxu1 }
 0x171   : > { %v2067_v17 = vmul.f32 %v3683_v22, %v2004_v14  ;;  %v1996_v34 = vadd.f32 %v1995_v15, %v1899_v8  ;;  %v2036_v10 = vadd.f32 %v2931_v32, %v1939_v19 }
 0x172   : > { %v2924_v60 = vpop.f32.mrf.mxu0  ;;  %v2027_v13 = vpop.f32.mrf.mxu1 }
 0x173   : > { %v2090_v35 = vadd.f32 %v3689_v55, %v2067_v17  ;;  %v2065_v29 = vmul.f32 %v3683_v22, %v1996_v34  ;;  %v2075_v25 = vmul.f32 %v3683_v22, %v2036_v10  ;;  %v2028_v54 = vadd.f32 %v2027_v13, %v1931_v49 }
 0x174   : > { %v1998_v37 = vpop.f32.mrf.mxu0  ;;  %v2932_v39 = vpop.f32.mrf.mxu1 }
 0x175   : > { %v2106_v38 = vmul.f32 0.2, %v2090_v35  ;;  %v2088_v59 = vadd.f32 %v3689_v55, %v2065_v29  ;;  %v2098_v41 = vadd.f32 %v3689_v55, %v2075_v25  ;;  %v2073_v50 = vmul.f32 %v3683_v22, %v2028_v54 }
 0x176   : > { %v2927_v43 = vpop.f32.mrf.mxu0  ;;  %v2030_v26 = vpop.f32.mrf.mxu1 }
 0x177   : > { %v2122_v52 = vmax.f32 %v2090_v35, %v2106_v38  ;;  %v2104_v56 = vmul.f32 0.2, %v2088_v59  ;;  %v2020_v57 = vadd.f32 %v2927_v43, %v1923_v23  ;;  %v2114_v45 = vmul.f32 0.2, %v2098_v41 }
 0x178   : > { %v2096_v33 = vadd.f32 %v3689_v55, %v2073_v50  ;;  %v2011_v30 = vpop.f32.mrf.mxu0  ;;  %v2935_v16 = vpop.f32.mrf.mxu1 }
 0x179   : > { %v2600_v42 = vpack.c.bf16 %v3126_v9, %v2122_v52  ;;  %v2120_v62 = vmax.f32 %v2088_v59, %v2104_v56  ;;  %v2071_v46 = vmul.f32 %v3683_v22, %v2020_v57  ;;  %v2012_v61 = vadd.f32 %v2011_v30, %v1915_v44 }
 0x17a   : > { %v2130_v40 = vmax.f32 %v2098_v41, %v2114_v45  ;;  %v2112_v11 = vmul.f32 0.2, %v2096_v33  ;;  %v2052_v18 = vadd.f32 %v2935_v16, %v1955_v7  ;;  %v2928_v58 = vpop.f32.mrf.mxu0  ;;  %v2043_v20 = vpop.f32.mrf.mxu1 }
 0x17b   : > { %2626 = vst [vmem:[%s3712_s14 + $0x8] sm:$0xff] %v2600_v42   ;;  %v2596_v1 = vpack.c.bf16 %v3126_v9, %v2120_v62  ;;  %v2094_v51 = vadd.f32 %v3689_v55, %v2071_v46  ;;  %v2069_v53 = vmul.f32 %v3683_v22, %v2012_v61  ;;  %v2044_v2 = vadd.f32 %v2043_v20, %v1947_v21 }
 0x17c   : > { %v2616_v27 = vpack.c.bf16 %v3126_v9, %v2130_v40  ;;  %v2128_v28 = vmax.f32 %v2096_v33, %v2112_v11  ;;  %v2079_v36 = vmul.f32 %v3683_v22, %v2052_v18  ;;  %v2014_v14 = vpop.f32.mrf.mxu0  ;;  %v2936_v4 = vpop.f32.mrf.mxu1 }
 0x17d   : > { %2597 = vst [vmem:[%s3712_s14] sm:$0xff] %v2596_v1   ;;  %v2110_v8 = vmul.f32 0.2, %v2094_v51  ;;  %v2092_v24 = vadd.f32 %v3689_v55, %v2069_v53  ;;  %v2077_v47 = vmul.f32 %v3683_v22, %v2044_v2 }
 0x17e   : > { %2630 = vst [vmem:[%s3712_s14 + $0x28] sm:$0xff] %v2616_v27   ;;  %v2612_v19 = vpack.c.bf16 %v3126_v9, %v2128_v28  ;;  %v2102_v15 = vadd.f32 %v3689_v55, %v2079_v36  ;;  %v2046_v34 = vpop.f32.mrf.mxu1 }
 0x17f   : > { %v2126_v17 = vmax.f32 %v2094_v51, %v2110_v8  ;;  %v2108_v32 = vmul.f32 0.2, %v2092_v24  ;;  %v2100_v10 = vadd.f32 %v3689_v55, %v2077_v47 }
 0x180   : > { %2629 = vst [vmem:[%s3712_s14 + $0x20] sm:$0xff] %v2612_v19   ;;  %v2118_v6 = vmul.f32 0.2, %v2102_v15 }
 0x181   : > { %v2608_v49 = vpack.c.bf16 %v3126_v9, %v2126_v17  ;;  %v2124_v60 = vmax.f32 %v2092_v24, %v2108_v32  ;;  %v2116_v31 = vmul.f32 0.2, %v2100_v10 }
 0x182   : > { %v2134_v63 = vmax.f32 %v2102_v15, %v2118_v6 }
 0x183   : > { %2628 = vst [vmem:[%s3712_s14 + $0x18] sm:$0xff] %v2608_v49   ;;  %v2604_v35 = vpack.c.bf16 %v3126_v9, %v2124_v60  ;;  %v2132_v13 = vmax.f32 %v2100_v10, %v2116_v31 }
 0x184   : > { %v2624_v29 = vpack.c.bf16 %v3126_v9, %v2134_v63 }
 0x185   : > { %2627 = vst [vmem:[%s3712_s14 + $0x10] sm:$0xff] %v2604_v35   ;;  %v2620_v22 = vpack.c.bf16 %v3126_v9, %v2132_v13 }
 0x186   : > { %2632 = vst [vmem:[%s3712_s14 + $0x38] sm:$0xff] %v2624_v29  }
 0x187   : > { %2631 = vst [vmem:[%s3712_s14 + $0x30] sm:$0xff] %v2620_v22  }
 0x188 PF: > { %s17_s26 = sadd.s32 1, %s3124_s26   ;;  %s3748_s24 = smov %s3120_s25 }
 0x189   : > { %p14_p5 = scmp.ge.s32.totalorder %s17_s26, 4   ;;  %s3749_s25 = smov %s3751_s27 }
 0x18b   :  { %16 = sbr.rel (!%p14_p5) target bundleno = 2 (0x2), region = 100 }

// kernel: _lambda_.12
= control target key start
LH: loop header
LB: loop body
LE: loop exit
PB: predicated region body
PF: predicated region fallthrough
CT: control target
= control target key end

     0   :  { %s2471_s24 = smov 0   ;;  %s2473_s25 = smov 0   ;;  %s2858_s0 = inlined_call_operand.vmem [shape: bf16[2,5,17,128], index: 0, kind: input, shape index: {}]   ;;  %s2859_s1 = inlined_call_operand.vmem [shape: bf16[2,5,17,128], index: 1, kind: input, shape index: {}]   ;;  %s2860_s2 = inlined_call_operand.vmem [shape: bf16[2,5,17,128], index: 2, kind: input, shape index: {}]   ;;  %s2861_s3 = inlined_call_operand.vmem [shape: bf16[2,5,17,128], index: 3, kind: input, shape index: {}]   ;;  %s2862_s4 = inlined_call_operand.vmem [shape: bf16[1152,128], index: 4, kind: input, shape index: {}]   ;;  %s2863_s5 = inlined_call_operand.vmem [shape: f32[1,128], index: 5, kind: input, shape index: {}]   ;;  %s2864_s6 = inlined_call_operand.vmem [shape: f32[1,128], index: 6, kind: input, shape index: {}]   ;;  %s2865_s7 = inlined_call_operand.vmem [shape: bf16[2,4,16,128], index: 7, kind: output, shape index: {}]  }
   0x1   :  { %s2475_s26 = smov 0  }
   0x2 LB: > { %s32_s27 = sadd.s32 1, %s2424_s25  ;;  %p1923_p0 = scmp.ge.s32.totalorder %s2428_s26, 1  ;;  %s2428_s26 = sphi %s2475_s26, %s17_s26   ;;  %s2424_s25 = sphi %s2473_s25, %s2867_s25   ;;  %s2420_s24 = sphi %s2471_s24, %s2866_s24  }
   0x3   : > { %p34_p1 = scmp.ge.s32.totalorder %s32_s27, 2  ;;  %p315_p2 = scmp.lt.s32.totalorder %s2428_s26, 3 }
   0x5   : > { %s2869_s27 = smov (%p34_p1, %s32_s27), 0  ;;  %p316_p3 = pnand %p1923_p0, %p315_p2 }
   0x6   : > { %p380_p4 = scmp.lt.s32.totalorder (!%p316_p3), %s2420_s24, 1 }
   0x7   : > { %319 = sbr.rel (%p316_p3) target bundleno = 320 (0x140), region = 48 }
   0xc   : > { %v2307_v0 = vld [vmem:[%s2862_s4 + $0x78] sm:$0xff]   ;;  %v2311_v4 = vld [vmem:[%s2862_s4 + $0x70] sm:$0xff]   ;;  %v2315_v8 = vld [vmem:[%s2862_s4 + $0x68] sm:$0xff]   ;;  %s2871_s24 = smov (!%p380_p4, %s2420_s24), 1  ;;  %vm540_vm0 = vsmask.f32 7424 }
   0xd   : > { %v2308_v1 = vld [vmem:[%s2862_s4 + $0xf8] sm:$0xff]   ;;  %2069 = vmatprep.subr.bf16.mxu0 %v2307_v0  ;;  %v2312_v5 = vld [vmem:[%s2862_s4 + $0xf0] sm:$0xff]   ;;  %v2316_v9 = vld [vmem:[%s2862_s4 + $0xe8] sm:$0xff]   ;;  %s2580_s23 = smul.u32 60, %s2871_s24  ;;  %s2041_s13 = sshll.u32 %s2871_s24, 5 }
   0xe   : > { %v2309_v2 = vld [vmem:[%s2862_s4 + $0x38] sm:$0xff]   ;;  %2109 = vmatprep.subr.bf16.mxu1 %v2308_v1  ;;  %v2313_v6 = vld [vmem:[%s2862_s4 + $0x30] sm:$0xff]   ;;  %v2317_v10 = vld [vmem:[%s2862_s4 + $0x28] sm:$0xff]   ;;  %s422_s15 = scalar_lea.vmem %s2865_s7, %s2041_s13 }
   0xf   : > { %v2310_v3 = vld [vmem:[%s2862_s4 + $0xb8] sm:$0xff]   ;;  %2070 = vmatpush3.bf16.msra.mxu0 %v2309_v2  ;;  %v2314_v7 = vld [vmem:[%s2862_s4 + $0xb0] sm:$0xff]   ;;  %v2318_v11 = vld [vmem:[%s2862_s4 + $0xa8] sm:$0xff]   ;;  %s2592_s11 = scalar_lea.vmem %s2859_s1, %s2580_s23  ;;  %s2601_s16 = scalar_lea.vmem %s2860_s2, %s2580_s23 }
  0x10   : > { %2110 = vmatpush3.bf16.msra.mxu1 %v2310_v3  ;;  %2071 = vmatprep.subr.bf16.mxu0 %v2311_v4  ;;  %v2319_v12 = vld [vmem:[%s2862_s4 + $0x60] sm:$0xff]   ;;  %v2323_v16 = vld [vmem:[%s2862_s4 + $0x58] sm:$0xff]   ;;  %v2327_v20 = vld [vmem:[%s2862_s4 + $0x50] sm:$0xff]   ;;  %s2610_s21 = scalar_lea.vmem %s2858_s0, %s2580_s23  ;;  %s2781_s10 = scalar_lea.vmem %s2861_s3, %s2580_s23 }
  0x11   : > { %2111 = vmatprep.subr.bf16.mxu1 %v2312_v5  ;;  %v2320_v13 = vld [vmem:[%s2862_s4 + $0xe0] sm:$0xff]   ;;  %v2324_v17 = vld [vmem:[%s2862_s4 + $0xd8] sm:$0xff]   ;;  %v2328_v21 = vld [vmem:[%s2862_s4 + $0xd0] sm:$0xff]  }
  0x12   : > { %v2321_v14 = vld [vmem:[%s2862_s4 + $0x20] sm:$0xff]   ;;  %v2325_v18 = vld [vmem:[%s2862_s4 + $0x18] sm:$0xff]   ;;  %v2329_v22 = vld [vmem:[%s2862_s4 + $0x10] sm:$0xff]  }
  0x13   : > { %2072 = vmatpush3.bf16.msra.mxu0 %v2313_v6  ;;  %v2322_v15 = vld [vmem:[%s2862_s4 + $0xa0] sm:$0xff]   ;;  %v2326_v19 = vld [vmem:[%s2862_s4 + $0x98] sm:$0xff]   ;;  %v2330_v23 = vld [vmem:[%s2862_s4 + $0x90] sm:$0xff]  }
  0x14   : > { %2112 = vmatpush3.bf16.msra.mxu1 %v2314_v7  ;;  %2073 = vmatprep.subr.bf16.mxu0 %v2315_v8  ;;  %v2331_v24 = vld [vmem:[%s2862_s4 + $0x48] sm:$0xff]   ;;  %v2335_v28 = vld [vmem:[%s2862_s4 + $0x40] sm:$0xff]   ;;  %v2343_v39 = vld [vmem:[%s2862_s4 + $0x178] sm:$0xff]  }
  0x15   : > { %2113 = vmatprep.subr.bf16.mxu1 %v2316_v9  ;;  %v2332_v25 = vld [vmem:[%s2862_s4 + $0xc8] sm:$0xff]   ;;  %v2336_v29 = vld [vmem:[%s2862_s4 + $0xc0] sm:$0xff]   ;;  %v2344_v41 = vld [vmem:[%s2862_s4 + $0x1f8] sm:$0xff]  }
  0x16   : > { %v2333_v26 = vld [vmem:[%s2862_s4 + $0x8] sm:$0xff]   ;;  %v2337_v30 = vld [vmem:[%s2862_s4] sm:$0xff]   ;;  %v2345_v43 = vld [vmem:[%s2862_s4 + $0x138] sm:$0xff]  }
  0x17   : > { %2074 = vmatpush3.bf16.msra.mxu0 %v2317_v10  ;;  %v2334_v27 = vld [vmem:[%s2862_s4 + $0x88] sm:$0xff]   ;;  %v2338_v31 = vld [vmem:[%s2862_s4 + $0x80] sm:$0xff]   ;;  %v2346_v45 = vld [vmem:[%s2862_s4 + $0x1b8] sm:$0xff]  }
  0x18   : > { %2114 = vmatpush3.bf16.msra.mxu1 %v2318_v11  ;;  %2075 = vmatprep.subr.bf16.mxu0 %v2319_v12  ;;  %v2339_v32 = vld [vmem:[%s2592_s11] sm:$0xff]   ;;  %v2342_v35 = vld [vmem:[%s2610_s21 + $0x8] ss:$0 sps:$4 sm:$0x11]   ;;  %v2347_v46 = vld [vmem:[%s2862_s4 + $0x170] sm:$0xff]  }
  0x19   : > { %2115 = vmatprep.subr.bf16.mxu1 %v2320_v13  ;;  %v2614_v33 = vld [vmem:[%s2601_s16] sm:$0xff]   ;;  %1341 = vmatprep.mubr.bf16.mxu0 %v2339_v32  ;;  %v549_v38 = vshll.u32 %v2342_v35, 16  ;;  %v2348_v48 = vld [vmem:[%s2862_s4 + $0x1f0] sm:$0xff]   ;;  %v2355_v57 = vld [vmem:[%s2862_s4 + $0x168] sm:$0xff]  }
  0x1a   : > { %v2341_v34 = vld [vmem:[%s2610_s21] sm:$0xff]   ;;  %1406 = vmatprep.mubr.bf16.mxu1 %v2614_v33  ;;  %v2349_v49 = vld [vmem:[%s2862_s4 + $0x130] sm:$0xff]   ;;  %v2356_v58 = vld [vmem:[%s2862_s4 + $0x1e8] sm:$0xff]  }
  0x1b   : > { %2076 = vmatpush3.bf16.msra.mxu0 %v2321_v14  ;;  %v544_v36 = vshll.u32 %v2341_v34, 16  ;;  %v542_v37 = vshrl.u32 %v2341_v34, 16  ;;  %v551_v42 = vrot.slane %v549_v38, 1  ;;  %v2350_v50 = vld [vmem:[%s2862_s4 + $0x1b0] sm:$0xff]   ;;  %v2357_v60 = vld [vmem:[%s2862_s4 + $0x128] sm:$0xff]   ;;  %v2359_v0 = vld [vmem:[%s2862_s4 + $0x160] sm:$0xff]  }
  0x1c   : > { %2116 = vmatpush3.bf16.msra.mxu1 %v2322_v15  ;;  %2077 = vmatprep.subr.bf16.mxu0 %v2323_v16  ;;  %v2645_v51 = vld [vmem:[%s2592_s11 + $0xc] sm:$0xff]   ;;  %v2354_v54 = vld [vmem:[%s2610_s21 + $0x14] ss:$0 sps:$4 sm:$0x11]   ;;  %v2360_v2 = vld [vmem:[%s2862_s4 + $0x1e0] sm:$0xff]  }
  0x1d   : > { %2117 = vmatprep.subr.bf16.mxu1 %v2324_v17  ;;  %v546_v40 = vrot.slane %v544_v36, 1  ;;  %v2648_v52 = vld [vmem:[%s2601_s16 + $0xc] sm:$0xff]   ;;  %v561_v59 = vshll.u32 %v2354_v54, 16  ;;  %v2361_v4 = vld [vmem:[%s2862_s4 + $0x120] sm:$0xff]   ;;  %v2688_v6 = vld [vmem:[%s2592_s11 + $0x18] sm:$0xff]  }
  0x1e   : > { %v2652_v53 = vld [vmem:[%s2610_s21 + $0xc] sm:$0xff]   ;;  %v2362_v5 = vld [vmem:[%s2862_s4 + $0x1a0] sm:$0xff]   ;;  %v2691_v7 = vld [vmem:[%s2601_s16 + $0x18] sm:$0xff]  }
  0x1f   : > { %2078 = vmatpush3.bf16.msra.mxu0 %v2325_v18  ;;  %v547_v44 = vor.u32 %v546_v40, %v542_v37  ;;  %v554_v55 = vshrl.u32 %v2652_v53, 16  ;;  %v556_v56 = vshll.u32 %v2652_v53, 16  ;;  %v2358_v62 = vld [vmem:[%s2862_s4 + $0x1a8] sm:$0xff]   ;;  %v563_v63 = vrot.slane %v561_v59, 1  ;;  %v2695_v8 = vld [vmem:[%s2610_s21 + $0x18] sm:$0xff]  }
  0x20   : > { %2118 = vmatpush3.bf16.msra.mxu1 %v2326_v19  ;;  %2079 = vmatprep.subr.bf16.mxu0 %v2327_v20  ;;  %v2366_v9 = vld [vmem:[%s2610_s21 + $0x20] ss:$0 sps:$4 sm:$0x11]   ;;  %v566_v10 = vshrl.u32 %v2695_v8, 16  ;;  %v568_v11 = vshll.u32 %v2695_v8, 16  ;;  %v2367_v12 = vld [vmem:[%s2862_s4 + $0x158] sm:$0xff]  }
  0x21   : > { %2119 = vmatprep.subr.bf16.mxu1 %v2328_v21  ;;  %v552_v47 = vsel %vm540_vm0, %v547_v44, %v551_v42  ;;  %v558_v61 = vrot.slane %v556_v56, 1  ;;  %v2368_v13 = vld [vmem:[%s2862_s4 + $0x1d8] sm:$0xff]   ;;  %v573_v14 = vshll.u32 %v2366_v9, 16  ;;  %v2371_v19 = vld [vmem:[%s2862_s4 + $0x150] sm:$0xff]   ;;  %v2379_v35 = vld [vmem:[%s2862_s4 + $0x148] sm:$0xff]  }
  0x22   : > { %v2369_v15 = vld [vmem:[%s2862_s4 + $0x118] sm:$0xff]   ;;  %v570_v16 = vrot.slane %v568_v11, 1  ;;  %v2372_v21 = vld [vmem:[%s2862_s4 + $0x1d0] sm:$0xff]   ;;  %v2380_v36 = vld [vmem:[%s2862_s4 + $0x1c8] sm:$0xff]  }
  0x23   : > { %2080 = vmatpush3.bf16.msra.mxu0 %v2329_v22  ;;  %v559_v1 = vor.u32 %v558_v61, %v554_v55  ;;  %v2370_v17 = vld [vmem:[%s2862_s4 + $0x198] sm:$0xff]   ;;  %v575_v18 = vrot.slane %v573_v14, 1  ;;  %v2381_v37 = vld [vmem:[%s2862_s4 + $0x108] sm:$0xff]   ;;  %v2390_v61 = vld [vmem:[%s2862_s4 + $0x230] sm:$0xff]  }
  0x24   : > { %2120 = vmatpush3.bf16.msra.mxu1 %v2330_v23  ;;  %2081 = vmatprep.subr.bf16.mxu0 %v2331_v24  ;;  %v571_v20 = vor.u32 %v570_v16, %v566_v10  ;;  %v2373_v23 = vld [vmem:[%s2862_s4 + $0x110] sm:$0xff]   ;;  %v2387_v54 = vld [vmem:[%s2601_s16 + $0x8] ss:$0 sps:$4 sm:$0x11]   ;;  %v2389_v56 = vld [vmem:[%s2862_s4 + $0x238] sm:$0xff]  }
  0x25   : > { %2121 = vmatprep.subr.bf16.mxu1 %v2332_v25  ;;  %v2678_v3 = vsel %vm540_vm0, %v559_v1, %v563_v63  ;;  %v2374_v24 = vld [vmem:[%s2862_s4 + $0x190] sm:$0xff]   ;;  %v2731_v25 = vld [vmem:[%s2592_s11 + $0x24] sm:$0xff]   ;;  %v661_v55 = vshll.u32 %v2387_v54, 16 }
  0x26   : > { %v2721_v22 = vsel %vm540_vm0, %v571_v20, %v575_v18  ;;  %v2392_v14 = vld [vmem:[%s2781_s10 + $0xc] sm:$0xff]  }
  0x27   : > { %2082 = vmatpush3.bf16.msra.mxu0 %v2333_v26  ;;  %v656_v26 = vshll.u32 %v2614_v33, 16  ;;  %v663_v59 = vrot.slane %v661_v55, 1  ;;  %v2402_v18 = vld [vmem:[%s2610_s21 + $0x30] sm:$0xff]  }
  0x28   : > { %2122 = vmatpush3.bf16.msra.mxu1 %v2334_v27  ;;  %2083 = vmatprep.subr.bf16.mxu0 %v2335_v28  ;;  %v2735_v27 = vld [vmem:[%s2601_s16 + $0x24] sm:$0xff]   ;;  %v721_v20 = vshrl.u32 %v2402_v18, 16 }
  0x29   : > { %2123 = vmatprep.subr.bf16.mxu1 %v2336_v29  ;;  %v2739_v28 = vld [vmem:[%s2610_s21 + $0x24] sm:$0xff]   ;;  %v654_v29 = vshrl.u32 %v2614_v33, 16  ;;  %v658_v44 = vrot.slane %v656_v26, 1  ;;  %v2405_v26 = vld [vmem:[%s2610_s21 + $0x38] ss:$0 sps:$4 sm:$0x11]  }
  0x2a   : > { %v578_v32 = vshrl.u32 %v2739_v28, 16 }
  0x2b   : > { %2084 = vmatpush3.bf16.msra.mxu0 %v2337_v30  ;;  %v668_v30 = vshll.u32 %v2648_v52, 16 }
  0x2c   : > { %2124 = vmatpush3.bf16.msra.mxu1 %v2338_v31  ;;  %2149 = vmatprep.subr.bf16.mxu0 %v2343_v39  ;;  %v2378_v31 = vld [vmem:[%s2610_s21 + $0x2c] ss:$0 sps:$4 sm:$0x11]  }
  0x2d   : > { %2189 = vmatprep.subr.bf16.mxu1 %v2344_v41  ;;  %v585_v33 = vshll.u32 %v2378_v31, 16  ;;  %v2382_v39 = vld [vmem:[%s2862_s4 + $0x188] sm:$0xff]   ;;  %v2383_v41 = vld [vmem:[%s2862_s4 + $0x140] sm:$0xff]   ;;  %v2398_v31 = vld [vmem:[%s2862_s4 + $0x210] sm:$0xff]  }
  0x2e   : > { %1342 = vmatmul.mubr.bf16.vlgmr.msra.gmra.mxu0 %v2341_v34  ;;  %v580_v34 = vshll.u32 %v2739_v28, 16 }
  0x2f   : > { %2150 = vmatpush3.bf16.msra.mxu0 %v2345_v43  ;;  %1407 = vmatmul.mubr.bf16.vlgmr.msra.gmra.mxu1 %v552_v47  ;;  %v587_v40 = vrot.slane %v585_v33, 1  ;;  %v2384_v43 = vld [vmem:[%s2862_s4 + $0x1c0] sm:$0xff]   ;;  %v666_v47 = vshrl.u32 %v2648_v52, 16 }
  0x30   : > { %2151 = vmatprep.subr.bf16.mxu0 %v2347_v46  ;;  %2190 = vmatpush3.bf16.msra.mxu1 %v2346_v45  ;;  %v582_v38 = vrot.slane %v580_v34, 1  ;;  %v2385_v46 = vld [vmem:[%s2862_s4 + $0x100] sm:$0xff]   ;;  %v2400_v34 = vld [vmem:[%s2592_s11 + $0x30] sm:$0xff]  }
  0x31   : > { %2191 = vmatprep.subr.bf16.mxu1 %v2348_v48  ;;  %1349 = vmatprep.mubr.bf16.mxu0 %v2645_v51  ;;  %v2386_v48 = vld [vmem:[%s2862_s4 + $0x180] sm:$0xff]  }
  0x32   : > { %1414 = vmatprep.mubr.bf16.mxu1 %v2648_v52  ;;  %v583_v42 = vor.u32 %v582_v38, %v578_v32  ;;  %v659_v52 = vor.u32 %v658_v44, %v654_v29  ;;  %v2396_v29 = vld [vmem:[%s2781_s10 + $0x18] sm:$0xff]  }
  0x33   : > { %2152 = vmatpush3.bf16.msra.mxu0 %v2349_v49  ;;  %v670_v49 = vrot.slane %v668_v30, 1 }
  0x34   : > { %2192 = vmatpush3.bf16.msra.mxu1 %v2350_v50  ;;  %2153 = vmatprep.subr.bf16.mxu0 %v2355_v57  ;;  %v2767_v45 = vsel %vm540_vm0, %v583_v42, %v587_v40  ;;  %v680_v50 = vshll.u32 %v2691_v7, 16  ;;  %v692_v57 = vshll.u32 %v2735_v27, 16  ;;  %v664_v63 = vsel %vm540_vm0, %v659_v52, %v663_v59 }
  0x35   : > { %2193 = vmatprep.subr.bf16.mxu1 %v2356_v58  ;;  %v2391_v58 = vld [vmem:[%s2601_s16 + $0x14] ss:$0 sps:$4 sm:$0x11]  }
  0x36   : > { %1350 = vmatmul.mubr.bf16.gmra.mxu0 %v2652_v53  ;;  %v682_v1 = vrot.slane %v680_v50, 1  ;;  %v694_v9 = vrot.slane %v692_v57, 1 }
  0x37   : > { %2154 = vmatpush3.bf16.msra.mxu0 %v2357_v60  ;;  %1415 = vmatmul.mubr.bf16.gmra.mxu1 %v2678_v3  ;;  %v2388_v60 = vld [vmem:[%s2781_s10] sm:$0xff]  }
  0x38   : > { %2194 = vmatpush3.bf16.msra.mxu1 %v2358_v62  ;;  %2155 = vmatprep.subr.bf16.mxu0 %v2359_v0  ;;  %v673_v62 = vshll.u32 %v2391_v58, 16  ;;  %v678_v0 = vshrl.u32 %v2691_v7, 16 }
  0x39   : > { %2195 = vmatprep.subr.bf16.mxu1 %v2360_v2  ;;  %1357 = vmatprep.mubr.bf16.mxu0 %v2688_v6 }
  0x3a   : > { %1422 = vmatprep.mubr.bf16.mxu1 %v2691_v7  ;;  %v675_v2 = vrot.slane %v673_v62, 1  ;;  %v2393_v7 = vld [vmem:[%s2862_s4 + $0x228] sm:$0xff]  }
  0x3b   : > { %2156 = vmatpush3.bf16.msra.mxu0 %v2361_v4  ;;  %v2395_v4 = vld [vmem:[%s2601_s16 + $0x20] ss:$0 sps:$4 sm:$0x11]  }
  0x3c   : > { %2196 = vmatpush3.bf16.msra.mxu1 %v2362_v5  ;;  %2157 = vmatprep.subr.bf16.mxu0 %v2367_v12  ;;  %v690_v5 = vshrl.u32 %v2735_v27, 16  ;;  %v685_v11 = vshll.u32 %v2395_v4, 16 }
  0x3d   : > { %2197 = vmatprep.subr.bf16.mxu1 %v2368_v13  ;;  %v2399_v13 = vld [vmem:[%s2601_s16 + $0x2c] ss:$0 sps:$4 sm:$0x11]  }
  0x3e   : > { %1358 = vmatmul.mubr.bf16.gmra.mxu0 %v2695_v8  ;;  %v687_v12 = vrot.slane %v685_v11, 1  ;;  %v695_v16 = vor.u32 %v694_v9, %v690_v5 }
  0x3f   : > { %2158 = vmatpush3.bf16.msra.mxu0 %v2369_v15  ;;  %1423 = vmatmul.mubr.bf16.gmra.mxu1 %v2721_v22  ;;  %v2394_v15 = vld [vmem:[%s2862_s4 + $0x220] sm:$0xff]  }
  0x40   : > { %2198 = vmatpush3.bf16.msra.mxu1 %v2370_v17  ;;  %2159 = vmatprep.subr.bf16.mxu0 %v2371_v19  ;;  %v697_v17 = vshll.u32 %v2399_v13, 16 }
  0x41   : > { %2199 = vmatprep.subr.bf16.mxu1 %v2372_v21  ;;  %1365 = vmatprep.mubr.bf16.mxu0 %v2731_v25  ;;  %v723_v21 = vshll.u32 %v2402_v18, 16 }
  0x42   : > { %1430 = vmatprep.mubr.bf16.mxu1 %v2735_v27  ;;  %v699_v19 = vrot.slane %v697_v17, 1  ;;  %v728_v27 = vshll.u32 %v2405_v26, 16 }
  0x43   : > { %2160 = vmatpush3.bf16.msra.mxu0 %v2373_v23  ;;  %v2397_v23 = vld [vmem:[%s2862_s4 + $0x218] sm:$0xff]  }
  0x44   : > { %2200 = vmatpush3.bf16.msra.mxu1 %v2374_v24  ;;  %2161 = vmatprep.subr.bf16.mxu0 %v2379_v35  ;;  %v700_v24 = vsel %vm540_vm0, %v695_v16, %v699_v19  ;;  %v730_v32 = vrot.slane %v728_v27, 1 }
  0x45   : > { %2201 = vmatprep.subr.bf16.mxu1 %v2380_v36  ;;  %v2401_v36 = vld [vmem:[%s2781_s10 + $0x24] sm:$0xff]  }
  0x46   : > { %1366 = vmatmul.mubr.bf16.gmra.mxu0 %v2739_v28 }
  0x47   : > { %2162 = vmatpush3.bf16.msra.mxu0 %v2381_v37  ;;  %1431 = vmatmul.mubr.bf16.gmra.mxu1 %v2767_v45 }
  0x48   : > { %2202 = vmatpush3.bf16.msra.mxu1 %v2382_v39  ;;  %2163 = vmatprep.subr.bf16.mxu0 %v2383_v41 }
  0x49   : > { %2203 = vmatprep.subr.bf16.mxu1 %v2384_v43  ;;  %1536 = vmatprep.mubr.bf16.mxu1 %v2645_v51  ;;  %v671_v51 = vor.u32 %v670_v49, %v666_v47 }
  0x4a   : > { %1471 = vmatprep.mubr.bf16.mxu0 %v664_v63 }
  0x4b   : > { %2164 = vmatpush3.bf16.msra.mxu0 %v2385_v46  ;;  %v676_v10 = vsel %vm540_vm0, %v671_v51, %v675_v2 }
  0x4c   : > { %2204 = vmatpush3.bf16.msra.mxu1 %v2386_v48  ;;  %2241 = vmatprep.subr.bf16.mxu0 %v2389_v56 }
  0x4d   : > { %2265 = vmatprep.subr.bf16.mxu1 %v2389_v56 }
  0x4e   : > { %1472 = vmatmul.mubr.bf16.vlgmr.msra.gmra.mxu0 %v2388_v60 }
  0x4f   : > { %1537 = vmatmul.mubr.bf16.vlgmr.msra.gmra.mxu1 %v2652_v53  ;;  %2242 = vmatpush3.bf16.msra.mxu0 %v2389_v56  ;;  %v683_v53 = vor.u32 %v682_v1, %v678_v0 }
  0x50   : > { %2273 = vmatpush3.bf16.msra.mxu1 %v2389_v56  ;;  %2243 = vmatprep.subr.bf16.mxu0 %v2390_v61 }
  0x51   : > { %2266 = vmatprep.subr.bf16.mxu1 %v2390_v61  ;;  %1479 = vmatprep.mubr.bf16.mxu0 %v676_v10 }
  0x52   : > { %1544 = vmatprep.mubr.bf16.mxu1 %v2688_v6  ;;  %v688_v6 = vsel %vm540_vm0, %v683_v53, %v687_v12 }
  0x53   : > { %2244 = vmatpush3.bf16.msra.mxu0 %v2390_v61 }
  0x54   : > { %2274 = vmatpush3.bf16.msra.mxu1 %v2390_v61  ;;  %2245 = vmatprep.subr.bf16.mxu0 %v2393_v7 }
  0x55   : > { %2267 = vmatprep.subr.bf16.mxu1 %v2393_v7 }
  0x56   : > { %1480 = vmatmul.mubr.bf16.gmra.mxu0 %v2392_v14 }
  0x57   : > { %1545 = vmatmul.mubr.bf16.gmra.mxu1 %v2695_v8  ;;  %2246 = vmatpush3.bf16.msra.mxu0 %v2393_v7  ;;  %v725_v8 = vrot.slane %v723_v21, 1 }
  0x58   : > { %2275 = vmatpush3.bf16.msra.mxu1 %v2393_v7  ;;  %2247 = vmatprep.subr.bf16.mxu0 %v2394_v15 }
  0x59   : > { %2268 = vmatprep.subr.bf16.mxu1 %v2394_v15  ;;  %1487 = vmatprep.mubr.bf16.mxu0 %v688_v6  ;;  %v726_v30 = vor.u32 %v725_v8, %v721_v20 }
  0x5a   : > { %1552 = vmatprep.mubr.bf16.mxu1 %v2731_v25  ;;  %v2403_v25 = vld [vmem:[%s2862_s4 + $0x208] sm:$0xff]  }
  0x5b   : > { %2248 = vmatpush3.bf16.msra.mxu0 %v2394_v15  ;;  %v731_v35 = vsel %vm540_vm0, %v726_v30, %v730_v32 }
  0x5c   : > { %2276 = vmatpush3.bf16.msra.mxu1 %v2394_v15  ;;  %2249 = vmatprep.subr.bf16.mxu0 %v2397_v23 }
  0x5d   : > { %2269 = vmatprep.subr.bf16.mxu1 %v2397_v23 }
  0x5e   : > { %1488 = vmatmul.mubr.bf16.gmra.mxu0 %v2396_v29 }
  0x5f   : > { %1553 = vmatmul.mubr.bf16.gmra.mxu1 %v2739_v28  ;;  %2250 = vmatpush3.bf16.msra.mxu0 %v2397_v23  ;;  %v2404_v28 = vld [vmem:[%s2862_s4 + $0x200] sm:$0xff]  }
  0x60   : > { %2277 = vmatpush3.bf16.msra.mxu1 %v2397_v23  ;;  %2251 = vmatprep.subr.bf16.mxu0 %v2398_v31 }
  0x61   : > { %2270 = vmatprep.subr.bf16.mxu1 %v2398_v31  ;;  %1495 = vmatprep.mubr.bf16.mxu0 %v700_v24 }
  0x62   : > { %1560 = vmatprep.mubr.bf16.mxu1 %v2400_v34 }
  0x63   : > { %2252 = vmatpush3.bf16.msra.mxu0 %v2398_v31 }
  0x64   : > { %2278 = vmatpush3.bf16.msra.mxu1 %v2398_v31  ;;  %2253 = vmatprep.subr.bf16.mxu0 %v2403_v25 }
  0x65   : > { %2271 = vmatprep.subr.bf16.mxu1 %v2403_v25 }
  0x66   : > { %1496 = vmatmul.mubr.bf16.gmra.mxu0 %v2401_v36 }
  0x67   : > { %1561 = vmatmul.mubr.bf16.gmra.mxu1 %v2402_v18  ;;  %2254 = vmatpush3.bf16.msra.mxu0 %v2403_v25 }
  0x68   : > { %2279 = vmatpush3.bf16.msra.mxu1 %v2403_v25  ;;  %2255 = vmatprep.subr.bf16.mxu0 %v2404_v28 }
  0x69   : > { %2272 = vmatprep.subr.bf16.mxu1 %v2404_v28  ;;  %2257 = vmatprep.mubr.bf16.mxu0 %v2678_v3 }
  0x6a   : > { %2261 = vmatprep.mubr.bf16.mxu1 %v2767_v45 }
  0x6b   : > { %2256 = vmatpush3.bf16.msra.mxu0 %v2404_v28 }
  0x6c   : > { %2280 = vmatpush3.bf16.msra.mxu1 %v2404_v28 }
  0x6e   : > { %2258 = vmatmul.mubr.bf16.vlgmr.msra.gmra.mxu0 %v2721_v22 }
  0x6f   : > { %2262 = vmatmul.mubr.bf16.vlgmr.msra.gmra.mxu1 %v731_v35 }
  0xee   : > { %v2085_v33 = vpop.f32.mrf.mxu0 }
  0xef   : > { %v2125_v41 = vpop.f32.mrf.mxu1 }
  0xf0   : > { %v2086_v37 = vpop.f32.mrf.mxu0 }
  0xf1   : > { %v2087_v38 = vadd.f32 %v2086_v37, %v2085_v33  ;;  %v2126_v42 = vpop.f32.mrf.mxu1 }
  0xf2   : > { %v2088_v39 = vpop.f32.mrf.mxu0  ;;  %v2127_v43 = vadd.f32 %v2126_v42, %v2125_v41 }
  0xf3   : > { %v2128_v44 = vpop.f32.mrf.mxu1 }
  0xf4   : > { %v2089_v40 = vpop.f32.mrf.mxu0  ;;  %v2836_v46 = vadd.f32 %v2127_v43, %v2087_v38 }
  0xf5   : > { %v2129_v47 = vpop.f32.mrf.mxu1 }
  0xf6   : > { %v2091_v3 = vpop.f32.mrf.mxu0 }
  0xf7   : > { %v2131_v50 = vpop.f32.mrf.mxu1 }
  0xf8   : > { %v2092_v48 = vpop.f32.mrf.mxu0 }
  0xf9   : > { %v2132_v54 = vpop.f32.mrf.mxu1  ;;  %v2093_v31 = vadd.f32 %v2092_v48, %v2091_v3 }
  0xfa   : > { %v2094_v45 = vpop.f32.mrf.mxu0  ;;  %v2133_v32 = vadd.f32 %v2132_v54, %v2131_v50 }
  0xfb   : > { %v2134_v52 = vpop.f32.mrf.mxu1 }
  0xfc   : > { %v2095_v49 = vpop.f32.mrf.mxu0  ;;  %v1417_v41 = vadd.f32 %v2133_v32, %v2093_v31 }
  0xfd   : > { %v2135_v55 = vpop.f32.mrf.mxu1 }
  0xfe   : > { %v2097_v22 = vpop.f32.mrf.mxu0 }
  0xff   : > { %v2137_v59 = vpop.f32.mrf.mxu1 }
 0x100   : > { %v2098_v56 = vpop.f32.mrf.mxu0 }
 0x101   : > { %v2138_v60 = vpop.f32.mrf.mxu1  ;;  %v2099_v35 = vadd.f32 %v2098_v56, %v2097_v22 }
 0x102   : > { %v2100_v57 = vpop.f32.mrf.mxu0  ;;  %v2139_v25 = vadd.f32 %v2138_v60, %v2137_v59 }
 0x103   : > { %v2140_v61 = vpop.f32.mrf.mxu1 }
 0x104   : > { %v2101_v58 = vpop.f32.mrf.mxu0  ;;  %v1425_v44 = vadd.f32 %v2139_v25, %v2099_v35 }
 0x105   : > { %v2141_v62 = vpop.f32.mrf.mxu1 }
 0x106   : > { %v2103_v51 = vpop.f32.mrf.mxu0 }
 0x107   : > { %v2143_v2 = vpop.f32.mrf.mxu1 }
 0x108   : > { %v2104_v63 = vpop.f32.mrf.mxu0 }
 0x109   : > { %v2144_v4 = vpop.f32.mrf.mxu1  ;;  %v2105_v28 = vadd.f32 %v2104_v63, %v2103_v51 }
 0x10a   : > { %v2106_v0 = vpop.f32.mrf.mxu0  ;;  %v2145_v33 = vadd.f32 %v2144_v4, %v2143_v2 }
 0x10b   : > { %v2146_v5 = vpop.f32.mrf.mxu1  ;;  %v2029_v0 = vld [vmem:[%s2863_s5] ss:$0 sm:$0xff] }
 0x10c   : > { %v2107_v1 = vpop.f32.mrf.mxu0  ;;  %v1433_v45 = vadd.f32 %v2145_v33, %v2105_v28 }
 0x10d   : > { %v2147_v9 = vpop.f32.mrf.mxu1  ;;  %v1680_v1 = vlaneseq }
 0x10e   : > { %v2165_v7 = vpop.f32.mrf.mxu0 }
 0x10f   : > { %v2205_v10 = vpop.f32.mrf.mxu1 }
 0x110   : > { %v2166_v53 = vpop.f32.mrf.mxu0 }
 0x111   : > { %v2206_v11 = vpop.f32.mrf.mxu1  ;;  %v2167_v42 = vadd.f32 %v2166_v53, %v2165_v7  ;;  %v2030_v7 = vld [vmem:[%s2864_s6] ss:$0 sm:$0xff] }
 0x112   : > { %v2168_v13 = vpop.f32.mrf.mxu0  ;;  %v2207_v60 = vadd.f32 %v2206_v11, %v2205_v10 }
 0x113   : > { %v2208_v12 = vpop.f32.mrf.mxu1  ;;  %v1474_v54 = vadd.f32 %v2167_v42, %v2836_v46 }
 0x114   : > { %v2169_v15 = vpop.f32.mrf.mxu0 }
 0x115   : > { %v2209_v14 = vpop.f32.mrf.mxu1  ;;  %v1539_v46 = vadd.f32 %v2207_v60, %v1474_v54  ;;  %v1681_v15 = vshrl.u32 %v1680_v1, 7 }
 0x116   : > { %v2171_v17 = vpop.f32.mrf.mxu0 }
 0x117   : > { %v2211_v16 = vpop.f32.mrf.mxu1  ;;  %vm1683_vm1 = vcmp.lt.s32.totalorder %v1681_v15, 4 }
 0x118   : > { %v2172_v6 = vpop.f32.mrf.mxu0 }
 0x119   : > { %v2212_v18 = vpop.f32.mrf.mxu1  ;;  %v2173_v37 = vadd.f32 %v2172_v6, %v2171_v17 }
 0x11a   : > { %v2174_v20 = vpop.f32.mrf.mxu0  ;;  %v2213_v22 = vadd.f32 %v2212_v18, %v2211_v16 }
 0x11b   : > { %v2214_v19 = vpop.f32.mrf.mxu1  ;;  %v1482_v49 = vadd.f32 %v2173_v37, %v1417_v41 }
 0x11c   : > { %v2175_v23 = vpop.f32.mrf.mxu0 }
 0x11d   : > { %v2215_v21 = vpop.f32.mrf.mxu1  ;;  %v1547_v61 = vadd.f32 %v2213_v22, %v1482_v49 }
 0x11e   : > { %v2177_v26 = vpop.f32.mrf.mxu0 }
 0x11f   : > { %v2217_v24 = vpop.f32.mrf.mxu1 }
 0x120   : > { %v2178_v27 = vpop.f32.mrf.mxu0 }
 0x121   : > { %v2218_v8 = vpop.f32.mrf.mxu1  ;;  %v2179_v39 = vadd.f32 %v2178_v27, %v2177_v26 }
 0x122   : > { %v2180_v30 = vpop.f32.mrf.mxu0  ;;  %v2219_v58 = vadd.f32 %v2218_v8, %v2217_v24 }
 0x123   : > { %v2220_v29 = vpop.f32.mrf.mxu1  ;;  %v1490_v48 = vadd.f32 %v2179_v39, %v1425_v44 }
 0x124   : > { %v2181_v36 = vpop.f32.mrf.mxu0 }
 0x125   : > { %v2221_v34 = vpop.f32.mrf.mxu1  ;;  %v1555_v2 = vadd.f32 %v2219_v58, %v1490_v48  ;;  %v2430_v36 = vmov 0.0  }
 0x126   : > { %v2183_v40 = vpop.f32.mrf.mxu0 }
 0x127   : > { %v2223_v38 = vpop.f32.mrf.mxu1 }
 0x128   : > { %v2184_v47 = vpop.f32.mrf.mxu0 }
 0x129   : > { %v2224_v43 = vpop.f32.mrf.mxu1  ;;  %v2185_v52 = vadd.f32 %v2184_v47, %v2183_v40 }
 0x12a   : > { %v2186_v50 = vpop.f32.mrf.mxu0  ;;  %v2225_v56 = vadd.f32 %v2224_v43, %v2223_v38 }
 0x12b   : > { %v2226_v3 = vpop.f32.mrf.mxu1  ;;  %v1498_v55 = vadd.f32 %v2185_v52, %v1433_v45 }
 0x12c   : > { %v2187_v59 = vpop.f32.mrf.mxu0 }
 0x12d   : > { %v2227_v57 = vpop.f32.mrf.mxu1  ;;  %v1563_v51 = vadd.f32 %v2225_v56, %v1498_v55 }
 0x12e   : > { %v2259_v63 = vpop.f32.mrf.mxu0 }
 0x12f   : > { %v2263_v62 = vpop.f32.mrf.mxu1  ;;  %v1612_v4 = vadd.f32 %v2259_v63, %v1547_v61 }
 0x130   : > { %v1628_v5 = vadd.f32 %v2263_v62, %v1563_v51  ;;  %v1603_v53 = vpop.f32.mrf.mxu0 }
 0x131   : > { %v1619_v9 = vpop.f32.mrf.mxu1  ;;  %v1643_v11 = vmul.f32 %v2029_v0, %v1612_v4  ;;  %v1604_v13 = vadd.f32 %v1603_v53, %v1539_v46 }
 0x132   : > { %v1620_v10 = vadd.f32 %v1619_v9, %v1555_v2  ;;  %v1647_v12 = vmul.f32 %v2029_v0, %v1628_v5  ;;  %v2260_v17 = vpop.f32.mrf.mxu0 }
 0x133   : > { %v2264_v14 = vpop.f32.mrf.mxu1  ;;  %v1658_v18 = vadd.f32 %v2030_v7, %v1643_v11  ;;  %v1641_v19 = vmul.f32 %v2029_v0, %v1604_v13 }
 0x134   : > { %v1645_v16 = vmul.f32 %v2029_v0, %v1620_v10  ;;  %v1662_v6 = vadd.f32 %v2030_v7, %v1647_v12  ;;  %v1606_v23 = vpop.f32.mrf.mxu0 }
 0x135   : > { %v1622_v20 = vpop.f32.mrf.mxu1  ;;  %v1666_v24 = vmul.f32 0.2, %v1658_v18  ;;  %v1656_v8 = vadd.f32 %v2030_v7, %v1641_v19 }
 0x136   : > { %v1660_v21 = vadd.f32 %v2030_v7, %v1645_v16  ;;  %v1670_v26 = vmul.f32 0.2, %v1662_v6 }
 0x137   : > { %v1674_v29 = vmax.f32 %v1658_v18, %v1666_v24  ;;  %v1664_v31 = vmul.f32 0.2, %v1656_v8 }
 0x138   : > { %v1668_v27 = vmul.f32 0.2, %v1660_v21  ;;  %v1678_v30 = vmax.f32 %v1662_v6, %v1670_v26 }
 0x139   : > { %v1687_v34 = vsel %vm1683_vm1, %v1674_v29, 0.0  ;;  %v1672_v25 = vmax.f32 %v1656_v8, %v1664_v31 }
 0x13a   : > { %v1676_v32 = vmax.f32 %v1660_v21, %v1668_v27  ;;  %v1691_v35 = vsel %vm1683_vm1, %v1678_v30, 0.0  ;;  %v2056_v28 = vpack.c.bf16 %v2430_v36, %v1687_v34 }
 0x13b   : > { %v2064_v33 = vpack.c.bf16 %v2430_v36, %v1691_v35  ;;  %v1685_v38 = vsel %vm1683_vm1, %v1672_v25, 0.0 }
 0x13c   : > { %v1689_v37 = vsel %vm1683_vm1, %v1676_v32, 0.0  ;;  %2066 = vst [vmem:[%s422_s15 + $0x8] sm:$0xff] %v2056_v28   ;;  %v2052_v40 = vpack.c.bf16 %v2430_v36, %v1685_v38 }
 0x13d   : > { %v2060_v39 = vpack.c.bf16 %v2430_v36, %v1689_v37  ;;  %2068 = vst [vmem:[%s422_s15 + $0x18] sm:$0xff] %v2064_v33  }
 0x13e   : > { %2053 = vst [vmem:[%s422_s15] sm:$0xff] %v2052_v40  }
 0x13f   : > { %2067 = vst [vmem:[%s422_s15 + $0x10] sm:$0xff] %v2060_v39  }
 0x140 PF: > { %s17_s26 = sadd.s32 1, %s2428_s26   ;;  %s2866_s24 = smov %s2424_s25 }
 0x141   : > { %p14_p5 = scmp.ge.s32.totalorder %s17_s26, 4   ;;  %s2867_s25 = smov %s2869_s27 }
 0x143   :  { %16 = sbr.rel (!%p14_p5) target bundleno = 2 (0x2), region = 100 }

// kernel: _lambda_.13
= control target key start
LH: loop header
LB: loop body
LE: loop exit
PB: predicated region body
PF: predicated region fallthrough
CT: control target
= control target key end

     0   :  { %s2112_s15 = smov 0   ;;  %s2114_s16 = smov 0   ;;  %s2461_s0 = inlined_call_operand.vmem [shape: bf16[2,6,18,128], index: 0, kind: input, shape index: {}]   ;;  %s2462_s1 = inlined_call_operand.vmem [shape: bf16[1152,128], index: 1, kind: input, shape index: {}]   ;;  %s2463_s2 = inlined_call_operand.vmem [shape: f32[1,128], index: 2, kind: input, shape index: {}]   ;;  %s2464_s3 = inlined_call_operand.vmem [shape: f32[1,128], index: 3, kind: input, shape index: {}]   ;;  %s2465_s4 = inlined_call_operand.vmem [shape: bf16[2,4,16,128], index: 4, kind: output, shape index: {}]  }
   0x1   :  { %s2116_s17 = smov 0  }
   0x2 LB: > { %s29_s18 = sadd.s32 1, %s2080_s16  ;;  %p1612_p0 = scmp.ge.s32.totalorder %s2084_s17, 1  ;;  %s2084_s17 = sphi %s2116_s17, %s14_s17   ;;  %s2080_s16 = sphi %s2114_s16, %s2467_s16   ;;  %s2076_s15 = sphi %s2112_s15, %s2466_s15  }
   0x3   : > { %p31_p1 = scmp.ge.s32.totalorder %s29_s18, 2  ;;  %p210_p2 = scmp.lt.s32.totalorder %s2084_s17, 3 }
   0x5   : > { %s2469_s18 = smov (%p31_p1, %s29_s18), 0  ;;  %p211_p3 = pnand %p1612_p0, %p210_p2 }
   0x6   : > { %p254_p4 = scmp.lt.s32.totalorder (!%p211_p3), %s2076_s15, 1 }
   0x7   : > { %214 = sbr.rel (%p211_p3) target bundleno = 320 (0x140), region = 36 }
   0xc   : > { %v1978_v0 = vld [vmem:[%s2462_s1 + $0x78] sm:$0xff]   ;;  %v1982_v4 = vld [vmem:[%s2462_s1 + $0x70] sm:$0xff]   ;;  %v1986_v8 = vld [vmem:[%s2462_s1 + $0x68] sm:$0xff]   ;;  %s2471_s15 = smov (!%p254_p4, %s2076_s15), 1  ;;  %vm342_vm0 = vsmask.f32 7424 }
   0xd   : > { %v1979_v1 = vld [vmem:[%s2462_s1 + $0xf8] sm:$0xff]   ;;  %1740 = vmatprep.subr.bf16.mxu0 %v1978_v0  ;;  %v1983_v5 = vld [vmem:[%s2462_s1 + $0xf0] sm:$0xff]   ;;  %v1987_v9 = vld [vmem:[%s2462_s1 + $0xe8] sm:$0xff]   ;;  %s1952_s29 = smul.u32 72, %s2471_s15  ;;  %vm395_vm1 = vcmask 1046528   ;;  %s1712_s20 = sshll.u32 %s2471_s15, 5 }
   0xe   : > { %v1980_v2 = vld [vmem:[%s2462_s1 + $0x38] sm:$0xff]   ;;  %1780 = vmatprep.subr.bf16.mxu1 %v1979_v1  ;;  %v1984_v6 = vld [vmem:[%s2462_s1 + $0x30] sm:$0xff]   ;;  %v1988_v10 = vld [vmem:[%s2462_s1 + $0x28] sm:$0xff]   ;;  %s281_s23 = scalar_lea.vmem %s2465_s4, %s1712_s20 }
   0xf   : > { %v1981_v3 = vld [vmem:[%s2462_s1 + $0xb8] sm:$0xff]   ;;  %1741 = vmatpush3.bf16.msra.mxu0 %v1980_v2  ;;  %v1985_v7 = vld [vmem:[%s2462_s1 + $0xb0] sm:$0xff]   ;;  %v1989_v11 = vld [vmem:[%s2462_s1 + $0xa8] sm:$0xff]   ;;  %s2233_s14 = scalar_lea.vmem %s2461_s0, %s1952_s29 }
  0x10   : > { %1781 = vmatpush3.bf16.msra.mxu1 %v1981_v3  ;;  %1742 = vmatprep.subr.bf16.mxu0 %v1982_v4  ;;  %v1990_v12 = vld [vmem:[%s2462_s1 + $0x60] sm:$0xff]   ;;  %v1994_v16 = vld [vmem:[%s2462_s1 + $0x58] sm:$0xff]   ;;  %v1998_v20 = vld [vmem:[%s2462_s1 + $0x50] sm:$0xff]  }
  0x11   : > { %1782 = vmatprep.subr.bf16.mxu1 %v1983_v5  ;;  %v1991_v13 = vld [vmem:[%s2462_s1 + $0xe0] sm:$0xff]   ;;  %v1995_v17 = vld [vmem:[%s2462_s1 + $0xd8] sm:$0xff]   ;;  %v1999_v21 = vld [vmem:[%s2462_s1 + $0xd0] sm:$0xff]  }
  0x12   : > { %v1992_v14 = vld [vmem:[%s2462_s1 + $0x20] sm:$0xff]   ;;  %v1996_v18 = vld [vmem:[%s2462_s1 + $0x18] sm:$0xff]   ;;  %v2000_v22 = vld [vmem:[%s2462_s1 + $0x10] sm:$0xff]  }
  0x13   : > { %1743 = vmatpush3.bf16.msra.mxu0 %v1984_v6  ;;  %v1993_v15 = vld [vmem:[%s2462_s1 + $0xa0] sm:$0xff]   ;;  %v1997_v19 = vld [vmem:[%s2462_s1 + $0x98] sm:$0xff]   ;;  %v2001_v23 = vld [vmem:[%s2462_s1 + $0x90] sm:$0xff]  }
  0x14   : > { %1783 = vmatpush3.bf16.msra.mxu1 %v1985_v7  ;;  %1744 = vmatprep.subr.bf16.mxu0 %v1986_v8  ;;  %v2002_v24 = vld [vmem:[%s2462_s1 + $0x48] sm:$0xff]   ;;  %v2006_v28 = vld [vmem:[%s2462_s1 + $0x40] sm:$0xff]   ;;  %v2013_v40 = vld [vmem:[%s2462_s1 + $0x178] sm:$0xff]  }
  0x15   : > { %1784 = vmatprep.subr.bf16.mxu1 %v1987_v9  ;;  %v2003_v25 = vld [vmem:[%s2462_s1 + $0xc8] sm:$0xff]   ;;  %v2007_v29 = vld [vmem:[%s2462_s1 + $0xc0] sm:$0xff]   ;;  %v2014_v43 = vld [vmem:[%s2462_s1 + $0x1f8] sm:$0xff]  }
  0x16   : > { %v2004_v26 = vld [vmem:[%s2462_s1 + $0x8] sm:$0xff]   ;;  %v2008_v30 = vld [vmem:[%s2462_s1] sm:$0xff]   ;;  %v2015_v45 = vld [vmem:[%s2462_s1 + $0x138] sm:$0xff]  }
  0x17   : > { %1745 = vmatpush3.bf16.msra.mxu0 %v1988_v10  ;;  %v2005_v27 = vld [vmem:[%s2462_s1 + $0x88] sm:$0xff]   ;;  %v2009_v31 = vld [vmem:[%s2462_s1 + $0x80] sm:$0xff]   ;;  %v2016_v47 = vld [vmem:[%s2462_s1 + $0x1b8] sm:$0xff]  }
  0x18   : > { %1785 = vmatpush3.bf16.msra.mxu1 %v1989_v11  ;;  %1746 = vmatprep.subr.bf16.mxu0 %v1990_v12  ;;  %v2010_v32 = vld [vmem:[%s2233_s14] sm:$0xff]   ;;  %v2011_v33 = vld [vmem:[%s2233_s14 + $0x8] ss:$0 sps:$4 sm:$0x11]   ;;  %v2012_v34 = vld [vmem:[%s2233_s14 + $0xc] sm:$0xff]  }
  0x19   : > { %1786 = vmatprep.subr.bf16.mxu1 %v1991_v13  ;;  %v344_v35 = vshrl.u32 %v2010_v32, 16  ;;  %v346_v36 = vshll.u32 %v2010_v32, 16  ;;  %v351_v37 = vshll.u32 %v2011_v33, 16  ;;  %v396_v38 = vrot.slane %v2010_v32, 1  ;;  %1137 = vmatprep.mubr.bf16.mxu1 %v2012_v34  ;;  %v2017_v48 = vld [vmem:[%s2462_s1 + $0x170] sm:$0xff]   ;;  %v2269_v58 = vld [vmem:[%s2233_s14 + $0x18] sm:$0xff]  }
  0x1a   : > { %v397_v39 = vrot.slane %v2011_v33, 1  ;;  %v358_v49 = vshll.u32 %v2012_v34, 16  ;;  %v2018_v51 = vld [vmem:[%s2462_s1 + $0x1f0] sm:$0xff]   ;;  %v356_v52 = vshrl.u32 %v2012_v34, 16  ;;  %v399_v56 = vrot.slane %v2012_v34, 1  ;;  %v2023_v62 = vld [vmem:[%s2462_s1 + $0x168] sm:$0xff]  }
  0x1b   : > { %1747 = vmatpush3.bf16.msra.mxu0 %v1992_v14  ;;  %v348_v41 = vrot.slane %v346_v36, 1  ;;  %v353_v42 = vrot.slane %v351_v37, 1  ;;  %v2019_v53 = vld [vmem:[%s2462_s1 + $0x130] sm:$0xff]   ;;  %v2024_v63 = vld [vmem:[%s2462_s1 + $0x1e8] sm:$0xff]   ;;  %v368_v4 = vshrl.u32 %v2269_v58, 16  ;;  %v2027_v6 = vld [vmem:[%s2462_s1 + $0x160] sm:$0xff]  }
  0x1c   : > { %1787 = vmatpush3.bf16.msra.mxu1 %v1993_v15  ;;  %1748 = vmatprep.subr.bf16.mxu0 %v1994_v16  ;;  %v398_v44 = vsel %vm395_vm1, %v396_v38, %v397_v39  ;;  %v360_v54 = vrot.slane %v358_v49, 1  ;;  %v2020_v55 = vld [vmem:[%s2462_s1 + $0x1b0] sm:$0xff]   ;;  %v2025_v2 = vld [vmem:[%s2462_s1 + $0x128] sm:$0xff]   ;;  %v370_v7 = vshll.u32 %v2269_v58, 16  ;;  %v2028_v8 = vld [vmem:[%s2462_s1 + $0x1e0] sm:$0xff]   ;;  %v402_v9 = vrot.slane %v2269_v58, 1 }
  0x1d   : > { %1788 = vmatprep.subr.bf16.mxu1 %v1995_v17  ;;  %v349_v46 = vor.u32 %v348_v41, %v344_v35  ;;  %v2021_v57 = vld [vmem:[%s2233_s14 + $0x14] ss:$0 sps:$4 sm:$0x11]   ;;  %v2026_v3 = vld [vmem:[%s2462_s1 + $0x1a8] sm:$0xff]   ;;  %v2029_v10 = vld [vmem:[%s2462_s1 + $0x120] sm:$0xff]  }
  0x1e   : > { %v361_v59 = vor.u32 %v360_v54, %v356_v52  ;;  %v363_v60 = vshll.u32 %v2021_v57, 16  ;;  %v400_v61 = vrot.slane %v2021_v57, 1  ;;  %v372_v11 = vrot.slane %v370_v7, 1  ;;  %v2030_v12 = vld [vmem:[%s2462_s1 + $0x1a0] sm:$0xff]   ;;  %v2043_v38 = vld [vmem:[%s2462_s1 + $0x148] sm:$0xff]   ;;  %v2051_v49 = vld [vmem:[%s2462_s1 + $0x238] sm:$0xff]  }
  0x1f   : > { %1749 = vmatpush3.bf16.msra.mxu0 %v1996_v18  ;;  %v354_v50 = vsel %vm342_vm0, %v349_v46, %v353_v42  ;;  %v2031_v13 = vld [vmem:[%s2233_s14 + $0x20] ss:$0 sps:$4 sm:$0x11]   ;;  %v2309_v14 = vld [vmem:[%s2233_s14 + $0x24] sm:$0xff]   ;;  %v2033_v18 = vld [vmem:[%s2462_s1 + $0x158] sm:$0xff]  }
  0x20   : > { %1789 = vmatpush3.bf16.msra.mxu1 %v1997_v19  ;;  %1750 = vmatprep.subr.bf16.mxu0 %v1998_v20  ;;  %v365_v0 = vrot.slane %v363_v60, 1  ;;  %v2279_v1 = vsel %vm395_vm1, %v399_v56, %v400_v61  ;;  %v373_v15 = vor.u32 %v372_v11, %v368_v4  ;;  %v375_v16 = vshll.u32 %v2031_v13, 16  ;;  %v2041_v33 = vld [vmem:[%s2233_s14 + $0x2c] ss:$0 sps:$4 sm:$0x11]   ;;  %v2048_v46 = vld [vmem:[%s2462_s1 + $0x1c0] sm:$0xff]  }
  0x21   : > { %1790 = vmatprep.subr.bf16.mxu1 %v1999_v21  ;;  %1072 = vmatprep.mubr.bf16.mxu0 %v354_v50  ;;  %v403_v17 = vrot.slane %v2031_v13, 1  ;;  %v2034_v21 = vld [vmem:[%s2462_s1 + $0x1d8] sm:$0xff]   ;;  %v387_v36 = vshll.u32 %v2041_v33, 16  ;;  %v406_v37 = vrot.slane %v2041_v33, 1  ;;  %v2044_v41 = vld [vmem:[%s2462_s1 + $0x1c8] sm:$0xff]  }
  0x22   : > { %v2290_v5 = vsel %vm342_vm0, %v361_v59, %v365_v0  ;;  %v377_v19 = vrot.slane %v375_v16, 1  ;;  %v2045_v42 = vld [vmem:[%s2462_s1 + $0x108] sm:$0xff]   ;;  %v2055_v52 = vld [vmem:[%s2233_s14 + $0x38] ss:$0 sps:$4 sm:$0x11]   ;;  %v2403_v57 = vld [vmem:[%s2233_s14 + $0x3c] sm:$0xff]  }
  0x23   : > { %1751 = vmatpush3.bf16.msra.mxu0 %v2000_v22  ;;  %v2316_v20 = vsel %vm395_vm1, %v402_v9, %v403_v17  ;;  %v2035_v22 = vld [vmem:[%s2462_s1 + $0x118] sm:$0xff]   ;;  %v389_v39 = vrot.slane %v387_v36, 1  ;;  %v429_v56 = vshll.u32 %v2055_v52, 16  ;;  %v2059_v59 = vld [vmem:[%s2233_s14 + $0x44] ss:$0 sps:$4 sm:$0x11]  }
  0x24   : > { %1791 = vmatpush3.bf16.msra.mxu1 %v2001_v23  ;;  %1752 = vmatprep.subr.bf16.mxu0 %v2002_v24  ;;  %v382_v23 = vshll.u32 %v2309_v14, 16  ;;  %v2327_v24 = vsel %vm342_vm0, %v373_v15, %v377_v19  ;;  %v450_v61 = vshll.u32 %v2403_v57, 16  ;;  %v448_v0 = vshrl.u32 %v2403_v57, 16  ;;  %v2060_v11 = vld [vmem:[%s2462_s1 + $0x208] sm:$0xff]  }
  0x25   : > { %1792 = vmatprep.subr.bf16.mxu1 %v2003_v25  ;;  %v2036_v25 = vld [vmem:[%s2462_s1 + $0x198] sm:$0xff]   ;;  %v431_v60 = vrot.slane %v429_v56, 1  ;;  %v460_v13 = vrot.slane %v2403_v57, 1 }
  0x27   : > { %1753 = vmatpush3.bf16.msra.mxu0 %v2004_v26  ;;  %v2037_v26 = vld [vmem:[%s2462_s1 + $0x150] sm:$0xff]  }
  0x28   : > { %1793 = vmatpush3.bf16.msra.mxu1 %v2005_v27  ;;  %1754 = vmatprep.subr.bf16.mxu0 %v2006_v28  ;;  %v380_v27 = vshrl.u32 %v2309_v14, 16  ;;  %v2038_v28 = vld [vmem:[%s2462_s1 + $0x1d0] sm:$0xff]  }
  0x29   : > { %1794 = vmatprep.subr.bf16.mxu1 %v2007_v29  ;;  %v384_v29 = vrot.slane %v382_v23, 1 }
  0x2b   : > { %1755 = vmatpush3.bf16.msra.mxu0 %v2008_v30  ;;  %v2039_v30 = vld [vmem:[%s2462_s1 + $0x110] sm:$0xff]   ;;  %v385_v35 = vor.u32 %v384_v29, %v380_v27 }
  0x2c   : > { %1795 = vmatpush3.bf16.msra.mxu1 %v2009_v31  ;;  %1820 = vmatprep.subr.bf16.mxu0 %v2013_v40  ;;  %v405_v31 = vrot.slane %v2309_v14, 1 }
  0x2d   : > { %1860 = vmatprep.subr.bf16.mxu1 %v2014_v43  ;;  %v2367_v43 = vsel %vm342_vm0, %v385_v35, %v389_v39 }
  0x2e   : > { %1073 = vmatmul.mubr.bf16.vlgmr.msra.gmra.mxu0 %v2010_v32  ;;  %v2040_v32 = vld [vmem:[%s2462_s1 + $0x190] sm:$0xff]   ;;  %v2357_v40 = vsel %vm395_vm1, %v405_v31, %v406_v37 }
  0x2f   : > { %1138 = vmatmul.mubr.bf16.vlgmr.msra.gmra.mxu1 %v398_v44  ;;  %1821 = vmatpush3.bf16.msra.mxu0 %v2015_v45  ;;  %v2046_v44 = vld [vmem:[%s2462_s1 + $0x188] sm:$0xff]   ;;  %v2047_v45 = vld [vmem:[%s2462_s1 + $0x140] sm:$0xff]  }
  0x30   : > { %1861 = vmatpush3.bf16.msra.mxu1 %v2016_v47  ;;  %1822 = vmatprep.subr.bf16.mxu0 %v2017_v48  ;;  %v2049_v47 = vld [vmem:[%s2462_s1 + $0x100] sm:$0xff]  }
  0x31   : > { %1862 = vmatprep.subr.bf16.mxu1 %v2018_v51  ;;  %1145 = vmatprep.mubr.bf16.mxu1 %v2269_v58  ;;  %v2050_v48 = vld [vmem:[%s2462_s1 + $0x180] sm:$0xff]   ;;  %v2052_v51 = vld [vmem:[%s2462_s1 + $0x230] sm:$0xff]  }
  0x32   : > { %1080 = vmatprep.mubr.bf16.mxu0 %v2290_v5 }
  0x33   : > { %1823 = vmatpush3.bf16.msra.mxu0 %v2019_v53 }
  0x34   : > { %1863 = vmatpush3.bf16.msra.mxu1 %v2020_v55  ;;  %1824 = vmatprep.subr.bf16.mxu0 %v2023_v62  ;;  %v2053_v55 = vld [vmem:[%s2462_s1 + $0x228] sm:$0xff]   ;;  %v2054_v62 = vld [vmem:[%s2462_s1 + $0x220] sm:$0xff]  }
  0x35   : > { %1864 = vmatprep.subr.bf16.mxu1 %v2024_v63 }
  0x36   : > { %1081 = vmatmul.mubr.bf16.gmra.mxu0 %v2012_v34  ;;  %v2350_v34 = vld [vmem:[%s2233_s14 + $0x30] sm:$0xff]  }
  0x37   : > { %1146 = vmatmul.mubr.bf16.gmra.mxu1 %v2279_v1  ;;  %1825 = vmatpush3.bf16.msra.mxu0 %v2025_v2  ;;  %v424_v50 = vshll.u32 %v2350_v34, 16  ;;  %v422_v53 = vshrl.u32 %v2350_v34, 16  ;;  %v455_v2 = vshll.u32 %v2059_v59, 16  ;;  %v434_v4 = vrot.slane %v2350_v34, 1 }
  0x38   : > { %1865 = vmatpush3.bf16.msra.mxu1 %v2026_v3  ;;  %1826 = vmatprep.subr.bf16.mxu0 %v2027_v6  ;;  %v2056_v3 = vld [vmem:[%s2462_s1 + $0x218] sm:$0xff]  }
  0x39   : > { %1866 = vmatprep.subr.bf16.mxu1 %v2028_v8  ;;  %1153 = vmatprep.mubr.bf16.mxu1 %v2309_v14  ;;  %v426_v54 = vrot.slane %v424_v50, 1  ;;  %v457_v7 = vrot.slane %v455_v2, 1  ;;  %v2057_v8 = vld [vmem:[%s2462_s1 + $0x210] sm:$0xff]  }
  0x3a   : > { %1088 = vmatprep.mubr.bf16.mxu0 %v2327_v24 }
  0x3b   : > { %1827 = vmatpush3.bf16.msra.mxu0 %v2029_v10 }
  0x3c   : > { %1867 = vmatpush3.bf16.msra.mxu1 %v2030_v12  ;;  %1828 = vmatprep.subr.bf16.mxu0 %v2033_v18  ;;  %v2061_v12 = vld [vmem:[%s2462_s1 + $0x200] sm:$0xff]  }
  0x3d   : > { %1868 = vmatprep.subr.bf16.mxu1 %v2034_v21 }
  0x3e   : > { %1089 = vmatmul.mubr.bf16.gmra.mxu0 %v2269_v58 }
  0x3f   : > { %1154 = vmatmul.mubr.bf16.gmra.mxu1 %v2316_v20  ;;  %1829 = vmatpush3.bf16.msra.mxu0 %v2035_v22 }
  0x40   : > { %1869 = vmatpush3.bf16.msra.mxu1 %v2036_v25  ;;  %1830 = vmatprep.subr.bf16.mxu0 %v2037_v26 }
  0x41   : > { %1870 = vmatprep.subr.bf16.mxu1 %v2038_v28  ;;  %1161 = vmatprep.mubr.bf16.mxu1 %v2350_v34 }
  0x42   : > { %1096 = vmatprep.mubr.bf16.mxu0 %v2367_v43 }
  0x43   : > { %1831 = vmatpush3.bf16.msra.mxu0 %v2039_v30 }
  0x44   : > { %1871 = vmatpush3.bf16.msra.mxu1 %v2040_v32  ;;  %1832 = vmatprep.subr.bf16.mxu0 %v2043_v38 }
  0x45   : > { %1872 = vmatprep.subr.bf16.mxu1 %v2044_v41 }
  0x46   : > { %1097 = vmatmul.mubr.bf16.gmra.mxu0 %v2309_v14 }
  0x47   : > { %1162 = vmatmul.mubr.bf16.gmra.mxu1 %v2357_v40  ;;  %1833 = vmatpush3.bf16.msra.mxu0 %v2045_v42 }
  0x48   : > { %1267 = vmatprep.mubr.bf16.mxu1 %v2327_v24  ;;  %1873 = vmatpush3.bf16.msra.mxu1 %v2046_v44 }
  0x49   : > { %1834 = vmatprep.subr.bf16.mxu0 %v2047_v45  ;;  %1202 = vmatprep.mubr.bf16.mxu0 %v2279_v1  ;;  %v452_v1 = vrot.slane %v450_v61, 1 }
  0x4a   : > { %1874 = vmatprep.subr.bf16.mxu1 %v2048_v46 }
  0x4b   : > { %1835 = vmatpush3.bf16.msra.mxu0 %v2049_v47  ;;  %v453_v6 = vor.u32 %v452_v1, %v448_v0 }
  0x4c   : > { %1875 = vmatpush3.bf16.msra.mxu1 %v2050_v48  ;;  %1912 = vmatprep.subr.bf16.mxu0 %v2051_v49 }
  0x4d   : > { %1936 = vmatprep.subr.bf16.mxu1 %v2051_v49  ;;  %v458_v10 = vsel %vm342_vm0, %v453_v6, %v457_v7 }
  0x4e   : > { %1203 = vmatmul.mubr.bf16.vlgmr.msra.gmra.mxu0 %v2290_v5  ;;  %v435_v5 = vrot.slane %v2055_v52, 1 }
  0x4f   : > { %1268 = vmatmul.mubr.bf16.vlgmr.msra.gmra.mxu1 %v2269_v58  ;;  %1913 = vmatpush3.bf16.msra.mxu0 %v2051_v49  ;;  %v427_v58 = vor.u32 %v426_v54, %v422_v53 }
  0x50   : > { %1944 = vmatpush3.bf16.msra.mxu1 %v2051_v49  ;;  %1914 = vmatprep.subr.bf16.mxu0 %v2052_v51  ;;  %v436_v9 = vsel %vm395_vm1, %v434_v4, %v435_v5 }
  0x51   : > { %1937 = vmatprep.subr.bf16.mxu1 %v2052_v51  ;;  %1210 = vmatprep.mubr.bf16.mxu0 %v2316_v20  ;;  %v432_v63 = vsel %vm342_vm0, %v427_v58, %v431_v60 }
  0x52   : > { %1275 = vmatprep.mubr.bf16.mxu1 %v2367_v43 }
  0x53   : > { %1915 = vmatpush3.bf16.msra.mxu0 %v2052_v51 }
  0x54   : > { %1945 = vmatpush3.bf16.msra.mxu1 %v2052_v51  ;;  %1916 = vmatprep.subr.bf16.mxu0 %v2053_v55 }
  0x55   : > { %1938 = vmatprep.subr.bf16.mxu1 %v2053_v55 }
  0x56   : > { %1211 = vmatmul.mubr.bf16.gmra.mxu0 %v2327_v24 }
  0x57   : > { %1276 = vmatmul.mubr.bf16.gmra.mxu1 %v2309_v14  ;;  %1917 = vmatpush3.bf16.msra.mxu0 %v2053_v55  ;;  %v461_v14 = vrot.slane %v2059_v59, 1 }
  0x58   : > { %1946 = vmatpush3.bf16.msra.mxu1 %v2053_v55  ;;  %1918 = vmatprep.subr.bf16.mxu0 %v2054_v62 }
  0x59   : > { %1939 = vmatprep.subr.bf16.mxu1 %v2054_v62  ;;  %1218 = vmatprep.mubr.bf16.mxu0 %v2357_v40  ;;  %v462_v15 = vsel %vm395_vm1, %v460_v13, %v461_v14 }
  0x5a   : > { %1283 = vmatprep.mubr.bf16.mxu1 %v432_v63 }
  0x5b   : > { %1919 = vmatpush3.bf16.msra.mxu0 %v2054_v62 }
  0x5c   : > { %1947 = vmatpush3.bf16.msra.mxu1 %v2054_v62  ;;  %1920 = vmatprep.subr.bf16.mxu0 %v2056_v3 }
  0x5d   : > { %1940 = vmatprep.subr.bf16.mxu1 %v2056_v3 }
  0x5e   : > { %1219 = vmatmul.mubr.bf16.gmra.mxu0 %v2367_v43 }
  0x5f   : > { %1284 = vmatmul.mubr.bf16.gmra.mxu1 %v2350_v34  ;;  %1921 = vmatpush3.bf16.msra.mxu0 %v2056_v3 }
  0x60   : > { %1948 = vmatpush3.bf16.msra.mxu1 %v2056_v3  ;;  %1922 = vmatprep.subr.bf16.mxu0 %v2057_v8 }
  0x61   : > { %1941 = vmatprep.subr.bf16.mxu1 %v2057_v8  ;;  %1226 = vmatprep.mubr.bf16.mxu0 %v436_v9 }
  0x62   : > { %1291 = vmatprep.mubr.bf16.mxu1 %v458_v10 }
  0x63   : > { %1923 = vmatpush3.bf16.msra.mxu0 %v2057_v8 }
  0x64   : > { %1949 = vmatpush3.bf16.msra.mxu1 %v2057_v8  ;;  %1924 = vmatprep.subr.bf16.mxu0 %v2060_v11 }
  0x65   : > { %1942 = vmatprep.subr.bf16.mxu1 %v2060_v11 }
  0x66   : > { %1227 = vmatmul.mubr.bf16.gmra.mxu0 %v432_v63 }
  0x67   : > { %1292 = vmatmul.mubr.bf16.gmra.mxu1 %v2403_v57  ;;  %1925 = vmatpush3.bf16.msra.mxu0 %v2060_v11 }
  0x68   : > { %1950 = vmatpush3.bf16.msra.mxu1 %v2060_v11  ;;  %1926 = vmatprep.subr.bf16.mxu0 %v2061_v12 }
  0x69   : > { %1943 = vmatprep.subr.bf16.mxu1 %v2061_v12  ;;  %1928 = vmatprep.mubr.bf16.mxu0 %v2316_v20 }
  0x6a   : > { %1932 = vmatprep.mubr.bf16.mxu1 %v436_v9 }
  0x6b   : > { %1927 = vmatpush3.bf16.msra.mxu0 %v2061_v12 }
  0x6c   : > { %1951 = vmatpush3.bf16.msra.mxu1 %v2061_v12 }
  0x6e   : > { %1929 = vmatmul.mubr.bf16.vlgmr.msra.gmra.mxu0 %v2357_v40 }
  0x6f   : > { %1933 = vmatmul.mubr.bf16.vlgmr.msra.gmra.mxu1 %v462_v15 }
  0xee   : > { %v1756_v19 = vpop.f32.mrf.mxu0 }
  0xef   : > { %v1796_v16 = vpop.f32.mrf.mxu1 }
  0xf0   : > { %v1757_v22 = vpop.f32.mrf.mxu0 }
  0xf1   : > { %v1797_v17 = vpop.f32.mrf.mxu1  ;;  %v1758_v13 = vadd.f32 %v1757_v22, %v1756_v19 }
  0xf2   : > { %v2439_v18 = vadd.f32 %v1797_v17, %v1796_v16  ;;  %v1759_v24 = vpop.f32.mrf.mxu0 }
  0xf3   : > { %v1799_v21 = vpop.f32.mrf.mxu1 }
  0xf4   : > { %v1760_v25 = vpop.f32.mrf.mxu0 }
  0xf5   : > { %v1800_v23 = vpop.f32.mrf.mxu1 }
  0xf6   : > { %v1762_v27 = vpop.f32.mrf.mxu0 }
  0xf7   : > { %v1802_v26 = vpop.f32.mrf.mxu1 }
  0xf8   : > { %v1763_v29 = vpop.f32.mrf.mxu0 }
  0xf9   : > { %v1803_v20 = vpop.f32.mrf.mxu1  ;;  %v1764_v7 = vadd.f32 %v1763_v29, %v1762_v27 }
  0xfa   : > { %v1765_v31 = vpop.f32.mrf.mxu0  ;;  %v1804_v8 = vadd.f32 %v1803_v20, %v1802_v26 }
  0xfb   : > { %v1805_v28 = vpop.f32.mrf.mxu1 }
  0xfc   : > { %v1766_v32 = vpop.f32.mrf.mxu0  ;;  %v1148_v24 = vadd.f32 %v1804_v8, %v1764_v7 }
  0xfd   : > { %v1806_v30 = vpop.f32.mrf.mxu1  ;;  %v1140_v32 = vadd.f32 %v2439_v18, %v1758_v13  ;;  %v1700_v18 = vld [vmem:[%s2463_s2] ss:$0 sm:$0xff] }
  0xfe   : > { %v1768_v35 = vpop.f32.mrf.mxu0 }
  0xff   : > { %v1808_v33 = vpop.f32.mrf.mxu1 }
 0x100   : > { %v1769_v37 = vpop.f32.mrf.mxu0 }
 0x101   : > { %v1809_v34 = vpop.f32.mrf.mxu1  ;;  %v1770_v10 = vadd.f32 %v1769_v37, %v1768_v35 }
 0x102   : > { %v1771_v39 = vpop.f32.mrf.mxu0  ;;  %v1810_v11 = vadd.f32 %v1809_v34, %v1808_v33 }
 0x103   : > { %v1811_v36 = vpop.f32.mrf.mxu1 }
 0x104   : > { %v1772_v40 = vpop.f32.mrf.mxu0  ;;  %v1156_v30 = vadd.f32 %v1810_v11, %v1770_v10 }
 0x105   : > { %v1812_v38 = vpop.f32.mrf.mxu1 }
 0x106   : > { %v1774_v43 = vpop.f32.mrf.mxu0 }
 0x107   : > { %v1814_v41 = vpop.f32.mrf.mxu1 }
 0x108   : > { %v1775_v45 = vpop.f32.mrf.mxu0 }
 0x109   : > { %v1815_v42 = vpop.f32.mrf.mxu1  ;;  %v1776_v14 = vadd.f32 %v1775_v45, %v1774_v43  ;;  %v1411_v45 = vlaneseq }
 0x10a   : > { %v1777_v47 = vpop.f32.mrf.mxu0  ;;  %v1816_v15 = vadd.f32 %v1815_v42, %v1814_v41 }
 0x10b   : > { %v1817_v44 = vpop.f32.mrf.mxu1 }
 0x10c   : > { %v1778_v48 = vpop.f32.mrf.mxu0  ;;  %v1164_v27 = vadd.f32 %v1816_v15, %v1776_v14  ;;  %v2086_v14 = vmov 0.0  }
 0x10d   : > { %v1818_v46 = vpop.f32.mrf.mxu1 }
 0x10e   : > { %v1836_v50 = vpop.f32.mrf.mxu0 }
 0x10f   : > { %v1876_v49 = vpop.f32.mrf.mxu1 }
 0x110   : > { %v1837_v52 = vpop.f32.mrf.mxu0 }
 0x111   : > { %v1877_v51 = vpop.f32.mrf.mxu1  ;;  %v1838_v25 = vadd.f32 %v1837_v52, %v1836_v50 }
 0x112   : > { %v1839_v54 = vpop.f32.mrf.mxu0  ;;  %v1878_v40 = vadd.f32 %v1877_v51, %v1876_v49 }
 0x113   : > { %v1879_v53 = vpop.f32.mrf.mxu1  ;;  %v1205_v19 = vadd.f32 %v1838_v25, %v1140_v32 }
 0x114   : > { %v1840_v56 = vpop.f32.mrf.mxu0  ;;  %v1701_v53 = vld [vmem:[%s2464_s3] ss:$0 sm:$0xff] }
 0x115   : > { %v1880_v55 = vpop.f32.mrf.mxu1  ;;  %v1270_v50 = vadd.f32 %v1878_v40, %v1205_v19 }
 0x116   : > { %v1842_v59 = vpop.f32.mrf.mxu0 }
 0x117   : > { %v1882_v57 = vpop.f32.mrf.mxu1 }
 0x118   : > { %v1843_v60 = vpop.f32.mrf.mxu0 }
 0x119   : > { %v1883_v58 = vpop.f32.mrf.mxu1  ;;  %v1844_v16 = vadd.f32 %v1843_v60, %v1842_v59  ;;  %v1412_v59 = vshrl.u32 %v1411_v45, 7 }
 0x11a   : > { %v1845_v62 = vpop.f32.mrf.mxu0  ;;  %v1884_v22 = vadd.f32 %v1883_v58, %v1882_v57 }
 0x11b   : > { %v1885_v61 = vpop.f32.mrf.mxu1  ;;  %v1213_v26 = vadd.f32 %v1844_v16, %v1148_v24  ;;  %vm1414_vm2 = vcmp.lt.s32.totalorder %v1412_v59, 4 }
 0x11c   : > { %v1846_v0 = vpop.f32.mrf.mxu0 }
 0x11d   : > { %v1886_v63 = vpop.f32.mrf.mxu1  ;;  %v1278_v41 = vadd.f32 %v1884_v22, %v1213_v26 }
 0x11e   : > { %v1848_v2 = vpop.f32.mrf.mxu0 }
 0x11f   : > { %v1888_v1 = vpop.f32.mrf.mxu1 }
 0x120   : > { %v1849_v4 = vpop.f32.mrf.mxu0 }
 0x121   : > { %v1889_v3 = vpop.f32.mrf.mxu1  ;;  %v1850_v21 = vadd.f32 %v1849_v4, %v1848_v2 }
 0x122   : > { %v1851_v6 = vpop.f32.mrf.mxu0  ;;  %v1890_v38 = vadd.f32 %v1889_v3, %v1888_v1 }
 0x123   : > { %v1891_v5 = vpop.f32.mrf.mxu1  ;;  %v1221_v33 = vadd.f32 %v1850_v21, %v1156_v30 }
 0x124   : > { %v1852_v12 = vpop.f32.mrf.mxu0 }
 0x125   : > { %v1892_v9 = vpop.f32.mrf.mxu1  ;;  %v1286_v46 = vadd.f32 %v1890_v38, %v1221_v33 }
 0x126   : > { %v1854_v23 = vpop.f32.mrf.mxu0 }
 0x127   : > { %v1894_v17 = vpop.f32.mrf.mxu1 }
 0x128   : > { %v1855_v31 = vpop.f32.mrf.mxu0 }
 0x129   : > { %v1895_v28 = vpop.f32.mrf.mxu1  ;;  %v1856_v20 = vadd.f32 %v1855_v31, %v1854_v23 }
 0x12a   : > { %v1857_v34 = vpop.f32.mrf.mxu0  ;;  %v1896_v36 = vadd.f32 %v1895_v28, %v1894_v17 }
 0x12b   : > { %v1897_v29 = vpop.f32.mrf.mxu1  ;;  %v1229_v35 = vadd.f32 %v1856_v20, %v1164_v27 }
 0x12c   : > { %v1858_v39 = vpop.f32.mrf.mxu0 }
 0x12d   : > { %v1898_v37 = vpop.f32.mrf.mxu1  ;;  %v1294_v42 = vadd.f32 %v1896_v36, %v1229_v35 }
 0x12e   : > { %v1930_v44 = vpop.f32.mrf.mxu0 }
 0x12f   : > { %v1934_v43 = vpop.f32.mrf.mxu1  ;;  %v1343_v47 = vadd.f32 %v1930_v44, %v1278_v41 }
 0x130   : > { %v1359_v48 = vadd.f32 %v1934_v43, %v1294_v42  ;;  %v1334_v54 = vpop.f32.mrf.mxu0 }
 0x131   : > { %v1350_v52 = vpop.f32.mrf.mxu1  ;;  %v1374_v51 = vmul.f32 %v1700_v18, %v1343_v47  ;;  %v1335_v56 = vadd.f32 %v1334_v54, %v1270_v50 }
 0x132   : > { %v1351_v49 = vadd.f32 %v1350_v52, %v1286_v46  ;;  %v1378_v55 = vmul.f32 %v1700_v18, %v1359_v48  ;;  %v1931_v60 = vpop.f32.mrf.mxu0 }
 0x133   : > { %v1935_v57 = vpop.f32.mrf.mxu1  ;;  %v1389_v61 = vadd.f32 %v1701_v53, %v1374_v51  ;;  %v1372_v63 = vmul.f32 %v1700_v18, %v1335_v56 }
 0x134   : > { %v1376_v58 = vmul.f32 %v1700_v18, %v1351_v49  ;;  %v1393_v62 = vadd.f32 %v1701_v53, %v1378_v55  ;;  %v1337_v2 = vpop.f32.mrf.mxu0 }
 0x135   : > { %v1353_v0 = vpop.f32.mrf.mxu1  ;;  %v1397_v3 = vmul.f32 0.2, %v1389_v61  ;;  %v1387_v5 = vadd.f32 %v1701_v53, %v1372_v63 }
 0x136   : > { %v1391_v1 = vadd.f32 %v1701_v53, %v1376_v58  ;;  %v1401_v4 = vmul.f32 0.2, %v1393_v62 }
 0x137   : > { %v1405_v7 = vmax.f32 %v1389_v61, %v1397_v3  ;;  %v1395_v9 = vmul.f32 0.2, %v1387_v5 }
 0x138   : > { %v1399_v6 = vmul.f32 0.2, %v1391_v1  ;;  %v1409_v8 = vmax.f32 %v1393_v62, %v1401_v4 }
 0x139   : > { %v1418_v11 = vsel %vm1414_vm2, %v1405_v7, 0.0  ;;  %v1403_v13 = vmax.f32 %v1387_v5, %v1395_v9 }
 0x13a   : > { %v1407_v10 = vmax.f32 %v1391_v1, %v1399_v6  ;;  %v1422_v12 = vsel %vm1414_vm2, %v1409_v8, 0.0  ;;  %v1727_v15 = vpack.c.bf16 %v2086_v14, %v1418_v11 }
 0x13b   : > { %v1735_v16 = vpack.c.bf16 %v2086_v14, %v1422_v12  ;;  %v1416_v21 = vsel %vm1414_vm2, %v1403_v13, 0.0 }
 0x13c   : > { %v1420_v17 = vsel %vm1414_vm2, %v1407_v10, 0.0  ;;  %1737 = vst [vmem:[%s281_s23 + $0x8] sm:$0xff] %v1727_v15   ;;  %v1723_v24 = vpack.c.bf16 %v2086_v14, %v1416_v21 }
 0x13d   : > { %v1731_v23 = vpack.c.bf16 %v2086_v14, %v1420_v17  ;;  %1739 = vst [vmem:[%s281_s23 + $0x18] sm:$0xff] %v1735_v16  }
 0x13e   : > { %1724 = vst [vmem:[%s281_s23] sm:$0xff] %v1723_v24  }
 0x13f   : > { %1738 = vst [vmem:[%s281_s23 + $0x10] sm:$0xff] %v1731_v23  }
 0x140 PF: > { %s14_s17 = sadd.s32 1, %s2084_s17   ;;  %s2466_s15 = smov %s2080_s16 }
 0x141   : > { %p11_p5 = scmp.ge.s32.totalorder %s14_s17, 4   ;;  %s2467_s16 = smov %s2469_s18 }
 0x143   :  { %13 = sbr.rel (!%p11_p5) target bundleno = 2 (0x2), region = 76 }

// kernel: _lambda_.15
= control target key start
LH: loop header
LB: loop body
LE: loop exit
PB: predicated region body
PF: predicated region fallthrough
CT: control target
= control target key end

     0   :  { %s1838_s15 = smov 0   ;;  %s1840_s16 = smov 0   ;;  %s2126_s0 = inlined_call_operand.vmem [shape: bf16[2,4,18,128], index: 0, kind: input, shape index: {}]   ;;  %s2127_s1 = inlined_call_operand.vmem [shape: bf16[1152,128], index: 1, kind: input, shape index: {}]   ;;  %s2128_s2 = inlined_call_operand.vmem [shape: f32[1,128], index: 2, kind: input, shape index: {}]   ;;  %s2129_s3 = inlined_call_operand.vmem [shape: f32[1,128], index: 3, kind: input, shape index: {}]   ;;  %s2130_s4 = inlined_call_operand.vmem [shape: bf16[2,2,16,128], index: 4, kind: output, shape index: {}]  }
   0x1   :  { %s1842_s17 = smov 0  }
   0x2 LB: > { %s29_s18 = sadd.s32 1, %s1806_s16  ;;  %p1434_p0 = scmp.ge.s32.totalorder %s1810_s17, 1  ;;  %s1810_s17 = sphi %s1842_s17, %s14_s17   ;;  %s1806_s16 = sphi %s1840_s16, %s2132_s16   ;;  %s1802_s15 = sphi %s1838_s15, %s2131_s15  }
   0x3   : > { %p31_p1 = scmp.ge.s32.totalorder %s29_s18, 2  ;;  %p210_p2 = scmp.lt.s32.totalorder %s1810_s17, 3 }
   0x5   : > { %s2134_s18 = smov (%p31_p1, %s29_s18), 0  ;;  %p211_p3 = pnand %p1434_p0, %p210_p2 }
   0x6   : > { %p254_p4 = scmp.lt.s32.totalorder (!%p211_p3), %s1802_s15, 1 }
   0x7   : > { %214 = sbr.rel (%p211_p3) target bundleno = 319 (0x13f), region = 36 }
   0xc   : > { %v1708_v0 = vld [vmem:[%s2127_s1 + $0x78] sm:$0xff]   ;;  %v1712_v4 = vld [vmem:[%s2127_s1 + $0x70] sm:$0xff]   ;;  %v1716_v8 = vld [vmem:[%s2127_s1 + $0x68] sm:$0xff]   ;;  %s2136_s15 = smov (!%p254_p4, %s1802_s15), 1  ;;  %vm318_vm0 = vsmask.f32 7424 }
   0xd   : > { %v1709_v1 = vld [vmem:[%s2127_s1 + $0xf8] sm:$0xff]   ;;  %1540 = vmatprep.subr.bf16.mxu0 %v1708_v0  ;;  %v1713_v5 = vld [vmem:[%s2127_s1 + $0xf0] sm:$0xff]   ;;  %v1717_v9 = vld [vmem:[%s2127_s1 + $0xe8] sm:$0xff]   ;;  %s1682_s29 = smul.u32 48, %s2136_s15  ;;  %vm345_vm1 = vcmask 1046528   ;;  %s1526_s20 = sshll.u32 %s2136_s15, 4 }
   0xe   : > { %v1710_v2 = vld [vmem:[%s2127_s1 + $0x38] sm:$0xff]   ;;  %1568 = vmatprep.subr.bf16.mxu1 %v1709_v1  ;;  %v1714_v6 = vld [vmem:[%s2127_s1 + $0x30] sm:$0xff]   ;;  %v1718_v10 = vld [vmem:[%s2127_s1 + $0x28] sm:$0xff]   ;;  %s281_s23 = scalar_lea.vmem %s2130_s4, %s1526_s20 }
   0xf   : > { %v1711_v3 = vld [vmem:[%s2127_s1 + $0xb8] sm:$0xff]   ;;  %1541 = vmatpush3.bf16.msra.mxu0 %v1710_v2  ;;  %v1715_v7 = vld [vmem:[%s2127_s1 + $0xb0] sm:$0xff]   ;;  %v1719_v11 = vld [vmem:[%s2127_s1 + $0xa8] sm:$0xff]   ;;  %s1959_s14 = scalar_lea.vmem %s2126_s0, %s1682_s29 }
  0x10   : > { %1569 = vmatpush3.bf16.msra.mxu1 %v1711_v3  ;;  %1542 = vmatprep.subr.bf16.mxu0 %v1712_v4  ;;  %v1720_v12 = vld [vmem:[%s2127_s1 + $0x60] sm:$0xff]   ;;  %v1724_v16 = vld [vmem:[%s2127_s1 + $0x58] sm:$0xff]   ;;  %v1728_v20 = vld [vmem:[%s2127_s1 + $0x50] sm:$0xff]  }
  0x11   : > { %1570 = vmatprep.subr.bf16.mxu1 %v1713_v5  ;;  %v1721_v13 = vld [vmem:[%s2127_s1 + $0xe0] sm:$0xff]   ;;  %v1725_v17 = vld [vmem:[%s2127_s1 + $0xd8] sm:$0xff]   ;;  %v1729_v21 = vld [vmem:[%s2127_s1 + $0xd0] sm:$0xff]  }
  0x12   : > { %v1722_v14 = vld [vmem:[%s2127_s1 + $0x20] sm:$0xff]   ;;  %v1726_v18 = vld [vmem:[%s2127_s1 + $0x18] sm:$0xff]   ;;  %v1730_v22 = vld [vmem:[%s2127_s1 + $0x10] sm:$0xff]  }
  0x13   : > { %1543 = vmatpush3.bf16.msra.mxu0 %v1714_v6  ;;  %v1723_v15 = vld [vmem:[%s2127_s1 + $0xa0] sm:$0xff]   ;;  %v1727_v19 = vld [vmem:[%s2127_s1 + $0x98] sm:$0xff]   ;;  %v1731_v23 = vld [vmem:[%s2127_s1 + $0x90] sm:$0xff]  }
  0x14   : > { %1571 = vmatpush3.bf16.msra.mxu1 %v1715_v7  ;;  %1544 = vmatprep.subr.bf16.mxu0 %v1716_v8  ;;  %v1732_v24 = vld [vmem:[%s2127_s1 + $0x48] sm:$0xff]   ;;  %v1736_v28 = vld [vmem:[%s2127_s1 + $0x40] sm:$0xff]   ;;  %v1743_v40 = vld [vmem:[%s2127_s1 + $0x178] sm:$0xff]  }
  0x15   : > { %1572 = vmatprep.subr.bf16.mxu1 %v1717_v9  ;;  %v1733_v25 = vld [vmem:[%s2127_s1 + $0xc8] sm:$0xff]   ;;  %v1737_v29 = vld [vmem:[%s2127_s1 + $0xc0] sm:$0xff]   ;;  %v1745_v43 = vld [vmem:[%s2127_s1 + $0x1f8] sm:$0xff]  }
  0x16   : > { %v1734_v26 = vld [vmem:[%s2127_s1 + $0x8] sm:$0xff]   ;;  %v1738_v30 = vld [vmem:[%s2127_s1] sm:$0xff]   ;;  %v1746_v46 = vld [vmem:[%s2127_s1 + $0x1b8] sm:$0xff]  }
  0x17   : > { %1545 = vmatpush3.bf16.msra.mxu0 %v1718_v10  ;;  %v1735_v27 = vld [vmem:[%s2127_s1 + $0x88] sm:$0xff]   ;;  %v1739_v31 = vld [vmem:[%s2127_s1 + $0x80] sm:$0xff]   ;;  %v1744_v47 = vld [vmem:[%s2127_s1 + $0x138] sm:$0xff]  }
  0x18   : > { %1573 = vmatpush3.bf16.msra.mxu1 %v1719_v11  ;;  %1546 = vmatprep.subr.bf16.mxu0 %v1720_v12  ;;  %v1740_v32 = vld [vmem:[%s1959_s14] sm:$0xff]   ;;  %v1741_v33 = vld [vmem:[%s1959_s14 + $0x8] ss:$0 sps:$4 sm:$0x11]   ;;  %v1967_v34 = vld [vmem:[%s1959_s14 + $0xc] sm:$0xff]  }
  0x19   : > { %1574 = vmatprep.subr.bf16.mxu1 %v1721_v13  ;;  %v320_v35 = vshrl.u32 %v1740_v32, 16  ;;  %v322_v36 = vshll.u32 %v1740_v32, 16  ;;  %v327_v37 = vshll.u32 %v1741_v33, 16  ;;  %v346_v38 = vrot.slane %v1740_v32, 1  ;;  %1063 = vmatprep.mubr.bf16.mxu1 %v1967_v34  ;;  %v1747_v49 = vld [vmem:[%s2127_s1 + $0x170] sm:$0xff]   ;;  %v1751_v53 = vld [vmem:[%s2127_s1 + $0x168] sm:$0xff]  }
  0x1a   : > { %v347_v39 = vrot.slane %v1741_v33, 1  ;;  %v1749_v50 = vld [vmem:[%s2127_s1 + $0x1f0] sm:$0xff]   ;;  %v1753_v54 = vld [vmem:[%s2127_s1 + $0x1e8] sm:$0xff]   ;;  %v334_v57 = vshll.u32 %v1967_v34, 16  ;;  %v1755_v58 = vld [vmem:[%s2127_s1 + $0x160] sm:$0xff]   ;;  %v332_v61 = vshrl.u32 %v1967_v34, 16 }
  0x1b   : > { %1547 = vmatpush3.bf16.msra.mxu0 %v1722_v14  ;;  %v324_v41 = vrot.slane %v322_v36, 1  ;;  %v329_v42 = vrot.slane %v327_v37, 1  ;;  %v1750_v51 = vld [vmem:[%s2127_s1 + $0x1b0] sm:$0xff]   ;;  %v1754_v55 = vld [vmem:[%s2127_s1 + $0x1a8] sm:$0xff]   ;;  %v1757_v59 = vld [vmem:[%s2127_s1 + $0x1e0] sm:$0xff]   ;;  %v349_v1 = vrot.slane %v1967_v34, 1 }
  0x1c   : > { %1575 = vmatpush3.bf16.msra.mxu1 %v1723_v15  ;;  %1548 = vmatprep.subr.bf16.mxu0 %v1724_v16  ;;  %v348_v44 = vsel %vm345_vm1, %v346_v38, %v347_v39  ;;  %v1748_v52 = vld [vmem:[%s2127_s1 + $0x130] sm:$0xff]   ;;  %v1752_v56 = vld [vmem:[%s2127_s1 + $0x128] sm:$0xff]   ;;  %v1758_v60 = vld [vmem:[%s2127_s1 + $0x1a0] sm:$0xff]   ;;  %v336_v63 = vrot.slane %v334_v57, 1 }
  0x1d   : > { %1576 = vmatprep.subr.bf16.mxu1 %v1725_v17  ;;  %v325_v45 = vor.u32 %v324_v41, %v320_v35  ;;  %v1756_v62 = vld [vmem:[%s2127_s1 + $0x120] sm:$0xff]   ;;  %v1759_v0 = vld [vmem:[%s2127_s1 + $0x158] sm:$0xff]   ;;  %v1761_v3 = vld [vmem:[%s1959_s14 + $0x14] ss:$0 sps:$4 sm:$0x11]  }
  0x1e   : > { %v1760_v2 = vld [vmem:[%s2127_s1 + $0x118] sm:$0xff]   ;;  %v337_v5 = vor.u32 %v336_v63, %v332_v61  ;;  %v339_v6 = vshll.u32 %v1761_v3, 16  ;;  %v1764_v8 = vld [vmem:[%s2127_s1 + $0x150] sm:$0xff]   ;;  %v350_v9 = vrot.slane %v1761_v3, 1  ;;  %v1769_v17 = vld [vmem:[%s2127_s1 + $0x148] sm:$0xff]  }
  0x1f   : > { %1549 = vmatpush3.bf16.msra.mxu0 %v1726_v18  ;;  %v330_v48 = vsel %vm318_vm0, %v325_v45, %v329_v42  ;;  %v1762_v4 = vld [vmem:[%s2127_s1 + $0x1d8] sm:$0xff]   ;;  %v1765_v11 = vld [vmem:[%s2127_s1 + $0x110] sm:$0xff]   ;;  %v1770_v18 = vld [vmem:[%s2127_s1 + $0x108] sm:$0xff]  }
  0x20   : > { %1577 = vmatpush3.bf16.msra.mxu1 %v1727_v19  ;;  %1550 = vmatprep.subr.bf16.mxu0 %v1728_v20  ;;  %v1763_v7 = vld [vmem:[%s2127_s1 + $0x198] sm:$0xff]   ;;  %v341_v10 = vrot.slane %v339_v6, 1  ;;  %v1767_v14 = vld [vmem:[%s2127_s1 + $0x1d0] sm:$0xff]   ;;  %v351_v15 = vsel %vm345_vm1, %v349_v1, %v350_v9  ;;  %v1771_v19 = vld [vmem:[%s2127_s1 + $0x1c8] sm:$0xff]  }
  0x21   : > { %1578 = vmatprep.subr.bf16.mxu1 %v1729_v21  ;;  %1014 = vmatprep.mubr.bf16.mxu0 %v330_v48  ;;  %v1766_v12 = vld [vmem:[%s1959_s14 + $0x18] sm:$0xff]   ;;  %v1768_v16 = vld [vmem:[%s2127_s1 + $0x190] sm:$0xff]   ;;  %v1772_v21 = vld [vmem:[%s2127_s1 + $0x188] sm:$0xff]  }
  0x22   : > { %v342_v13 = vsel %vm318_vm0, %v337_v5, %v341_v10  ;;  %v366_v20 = vshll.u32 %v1766_v12, 16  ;;  %v1781_v37 = vld [vmem:[%s1959_s14 + $0x24] sm:$0xff]   ;;  %v1782_v38 = vld [vmem:[%s1959_s14 + $0x2c] ss:$0 sps:$4 sm:$0x11]  }
  0x23   : > { %1551 = vmatpush3.bf16.msra.mxu0 %v1730_v22  ;;  %v1773_v22 = vld [vmem:[%s2127_s1 + $0x140] sm:$0xff]   ;;  %v392_v41 = vshll.u32 %v1781_v37, 16  ;;  %v1780_v42 = vld [vmem:[%s2127_s1 + $0x228] sm:$0xff]  }
  0x24   : > { %1579 = vmatpush3.bf16.msra.mxu1 %v1731_v23  ;;  %1552 = vmatprep.subr.bf16.mxu0 %v1732_v24  ;;  %v1774_v23 = vld [vmem:[%s2127_s1 + $0x100] sm:$0xff]   ;;  %v364_v24 = vshrl.u32 %v1766_v12, 16 }
  0x25   : > { %1580 = vmatprep.subr.bf16.mxu1 %v1733_v25  ;;  %v1775_v25 = vld [vmem:[%s2127_s1 + $0x1c0] sm:$0xff]  }
  0x27   : > { %1553 = vmatpush3.bf16.msra.mxu0 %v1734_v26  ;;  %v368_v26 = vrot.slane %v366_v20, 1 }
  0x28   : > { %1581 = vmatpush3.bf16.msra.mxu1 %v1735_v27  ;;  %1554 = vmatprep.subr.bf16.mxu0 %v1736_v28  ;;  %v1776_v27 = vld [vmem:[%s2127_s1 + $0x180] sm:$0xff]   ;;  %v376_v28 = vrot.slane %v1766_v12, 1 }
  0x29   : > { %1582 = vmatprep.subr.bf16.mxu1 %v1737_v29  ;;  %v1777_v29 = vld [vmem:[%s2127_s1 + $0x238] sm:$0xff]  }
  0x2b   : > { %1555 = vmatpush3.bf16.msra.mxu0 %v1738_v30  ;;  %v1778_v30 = vld [vmem:[%s1959_s14 + $0x20] ss:$0 sps:$4 sm:$0x11]  }
  0x2c   : > { %1583 = vmatpush3.bf16.msra.mxu1 %v1739_v31  ;;  %1596 = vmatprep.subr.bf16.mxu0 %v1743_v40  ;;  %v369_v31 = vor.u32 %v368_v26, %v364_v24  ;;  %v377_v33 = vrot.slane %v1778_v30, 1  ;;  %v390_v40 = vshrl.u32 %v1781_v37, 16 }
  0x2d   : > { %1624 = vmatprep.subr.bf16.mxu1 %v1745_v43  ;;  %v397_v43 = vshll.u32 %v1782_v38, 16 }
  0x2e   : > { %1015 = vmatmul.mubr.bf16.vlgmr.msra.gmra.mxu0 %v1740_v32  ;;  %v371_v32 = vshll.u32 %v1778_v30, 16  ;;  %v378_v36 = vsel %vm345_vm1, %v376_v28, %v377_v33 }
  0x2f   : > { %1064 = vmatmul.mubr.bf16.vlgmr.msra.gmra.mxu1 %v348_v44  ;;  %1597 = vmatpush3.bf16.msra.mxu0 %v1744_v47  ;;  %v394_v44 = vrot.slane %v392_v41, 1  ;;  %v399_v45 = vrot.slane %v397_v43, 1  ;;  %v1783_v47 = vld [vmem:[%s2127_s1 + $0x220] sm:$0xff]  }
  0x30   : > { %1625 = vmatpush3.bf16.msra.mxu1 %v1746_v46  ;;  %1598 = vmatprep.subr.bf16.mxu0 %v1747_v49  ;;  %v373_v35 = vrot.slane %v371_v32, 1  ;;  %v1784_v49 = vld [vmem:[%s2127_s1 + $0x218] sm:$0xff]  }
  0x31   : > { %1626 = vmatprep.subr.bf16.mxu1 %v1749_v50  ;;  %1022 = vmatprep.mubr.bf16.mxu0 %v342_v13  ;;  %v395_v46 = vor.u32 %v394_v44, %v390_v40  ;;  %v1785_v50 = vld [vmem:[%s2127_s1 + $0x210] sm:$0xff]  }
  0x32   : > { %1071 = vmatprep.mubr.bf16.mxu1 %v1766_v12  ;;  %v374_v39 = vsel %vm318_vm0, %v369_v31, %v373_v35 }
  0x33   : > { %1599 = vmatpush3.bf16.msra.mxu0 %v1748_v52  ;;  %v400_v48 = vsel %vm318_vm0, %v395_v46, %v399_v45  ;;  %v1787_v52 = vld [vmem:[%s2127_s1 + $0x200] sm:$0xff]  }
  0x34   : > { %1627 = vmatpush3.bf16.msra.mxu1 %v1750_v51  ;;  %1600 = vmatprep.subr.bf16.mxu0 %v1751_v53  ;;  %v1786_v51 = vld [vmem:[%s2127_s1 + $0x208] sm:$0xff]   ;;  %v402_v53 = vrot.slane %v1781_v37, 1 }
  0x35   : > { %1628 = vmatprep.subr.bf16.mxu1 %v1753_v54  ;;  %v403_v54 = vrot.slane %v1782_v38, 1  ;;  %v1518_v38 = vld [vmem:[%s2128_s2] ss:$0 sm:$0xff] }
  0x36   : > { %1023 = vmatmul.mubr.bf16.gmra.mxu0 %v1967_v34  ;;  %v1779_v34 = vld [vmem:[%s2127_s1 + $0x230] sm:$0xff]  }
  0x37   : > { %1601 = vmatpush3.bf16.msra.mxu0 %v1752_v56  ;;  %1072 = vmatmul.mubr.bf16.gmra.mxu1 %v351_v15 }
  0x38   : > { %1629 = vmatpush3.bf16.msra.mxu1 %v1754_v55  ;;  %1602 = vmatprep.subr.bf16.mxu0 %v1755_v58  ;;  %v404_v55 = vsel %vm345_vm1, %v402_v53, %v403_v54 }
  0x39   : > { %1630 = vmatprep.subr.bf16.mxu1 %v1757_v59  ;;  %1112 = vmatprep.mubr.bf16.mxu0 %v351_v15 }
  0x3a   : > { %1161 = vmatprep.mubr.bf16.mxu1 %v374_v39 }
  0x3b   : > { %1603 = vmatpush3.bf16.msra.mxu0 %v1756_v62 }
  0x3c   : > { %1631 = vmatpush3.bf16.msra.mxu1 %v1758_v60  ;;  %1604 = vmatprep.subr.bf16.mxu0 %v1759_v0 }
  0x3d   : > { %1632 = vmatprep.subr.bf16.mxu1 %v1762_v4 }
  0x3f   : > { %1605 = vmatpush3.bf16.msra.mxu0 %v1760_v2 }
  0x40   : > { %1633 = vmatpush3.bf16.msra.mxu1 %v1763_v7  ;;  %1606 = vmatprep.subr.bf16.mxu0 %v1764_v8 }
  0x41   : > { %1634 = vmatprep.subr.bf16.mxu1 %v1767_v14 }
  0x43   : > { %1607 = vmatpush3.bf16.msra.mxu0 %v1765_v11 }
  0x44   : > { %1635 = vmatpush3.bf16.msra.mxu1 %v1768_v16  ;;  %1608 = vmatprep.subr.bf16.mxu0 %v1769_v17 }
  0x45   : > { %1636 = vmatprep.subr.bf16.mxu1 %v1771_v19 }
  0x47   : > { %1609 = vmatpush3.bf16.msra.mxu0 %v1770_v18 }
  0x48   : > { %1637 = vmatpush3.bf16.msra.mxu1 %v1772_v21  ;;  %1610 = vmatprep.subr.bf16.mxu0 %v1773_v22 }
  0x49   : > { %1638 = vmatprep.subr.bf16.mxu1 %v1775_v25 }
  0x4b   : > { %1611 = vmatpush3.bf16.msra.mxu0 %v1774_v23 }
  0x4c   : > { %1639 = vmatpush3.bf16.msra.mxu1 %v1776_v27  ;;  %1662 = vmatprep.subr.bf16.mxu0 %v1777_v29 }
  0x4e   : > { %1113 = vmatmul.mubr.bf16.vlgmr.msra.gmra.mxu0 %v342_v13 }
  0x4f   : > { %1663 = vmatpush3.bf16.msra.mxu0 %v1777_v29  ;;  %1120 = vmatprep.mubr.bf16.mxu0 %v378_v36 }
  0x50   : > { %1664 = vmatprep.subr.bf16.mxu0 %v1779_v34  ;;  %1162 = vmatmul.mubr.bf16.vlgmr.msra.gmra.mxu1 %v1766_v12 }
  0x51   : > { %1169 = vmatprep.mubr.bf16.mxu1 %v400_v48 }
  0x53   : > { %1665 = vmatpush3.bf16.msra.mxu0 %v1779_v34 }
  0x54   : > { %1666 = vmatprep.subr.bf16.mxu0 %v1780_v42 }
  0x56   : > { %1121 = vmatmul.mubr.bf16.gmra.mxu0 %v374_v39  ;;  %v1257_v39 = vlaneseq }
  0x57   : > { %1667 = vmatpush3.bf16.msra.mxu0 %v1780_v42  ;;  %1678 = vmatprep.mubr.bf16.mxu0 %v378_v36  ;;  %v1519_v42 = vld [vmem:[%s2129_s3] ss:$0 sm:$0xff] }
  0x58   : > { %1668 = vmatprep.subr.bf16.mxu0 %v1783_v47  ;;  %1170 = vmatmul.mubr.bf16.gmra.mxu1 %v1781_v37  ;;  %v1258_v46 = vshrl.u32 %v1257_v39, 7 }
  0x5a   : > { %vm1260_vm2 = vcmp.lt.s32.totalorder %v1258_v46, 2 }
  0x5b   : > { %1669 = vmatpush3.bf16.msra.mxu0 %v1783_v47 }
  0x5c   : > { %1670 = vmatprep.subr.bf16.mxu0 %v1784_v49 }
  0x5f   : > { %1671 = vmatpush3.bf16.msra.mxu0 %v1784_v49 }
  0x60   : > { %1672 = vmatprep.subr.bf16.mxu0 %v1785_v50 }
  0x63   : > { %1673 = vmatpush3.bf16.msra.mxu0 %v1785_v50 }
  0x64   : > { %1674 = vmatprep.subr.bf16.mxu0 %v1786_v51 }
  0x67   : > { %1675 = vmatpush3.bf16.msra.mxu0 %v1786_v51 }
  0x68   : > { %1676 = vmatprep.subr.bf16.mxu0 %v1787_v52 }
  0x6b   : > { %1677 = vmatpush3.bf16.msra.mxu0 %v1787_v52 }
  0x6e   : > { %1679 = vmatmul.mubr.bf16.vlgmr.msra.gmra.mxu0 %v404_v55 }
  0xee   : > { %v1556_v58 = vpop.f32.mrf.mxu0 }
  0xef   : > { %v1584_v56 = vpop.f32.mrf.mxu1 }
  0xf0   : > { %v1557_v60 = vpop.f32.mrf.mxu0 }
  0xf1   : > { %v1585_v57 = vpop.f32.mrf.mxu1  ;;  %v1558_v26 = vadd.f32 %v1557_v60, %v1556_v58 }
  0xf2   : > { %v1559_v62 = vpop.f32.mrf.mxu0  ;;  %v1586_v27 = vadd.f32 %v1585_v57, %v1584_v56  ;;  %v1812_v57 = vmov 0.0  }
  0xf3   : > { %v1587_v59 = vpop.f32.mrf.mxu1 }
  0xf4   : > { %v1560_v63 = vpop.f32.mrf.mxu0  ;;  %v1066_v31 = vadd.f32 %v1586_v27, %v1558_v26 }
  0xf5   : > { %v1588_v61 = vpop.f32.mrf.mxu1 }
  0xf6   : > { %v1562_v0 = vpop.f32.mrf.mxu0 }
  0xf7   : > { %v1590_v1 = vpop.f32.mrf.mxu1 }
  0xf8   : > { %v1563_v2 = vpop.f32.mrf.mxu0 }
  0xf9   : > { %v1591_v3 = vpop.f32.mrf.mxu1  ;;  %v1564_v24 = vadd.f32 %v1563_v2, %v1562_v0 }
  0xfa   : > { %v1565_v4 = vpop.f32.mrf.mxu0  ;;  %v1592_v25 = vadd.f32 %v1591_v3, %v1590_v1 }
  0xfb   : > { %v1593_v5 = vpop.f32.mrf.mxu1 }
  0xfc   : > { %v1566_v6 = vpop.f32.mrf.mxu0  ;;  %v1074_v29 = vadd.f32 %v1592_v25, %v1564_v24 }
  0xfd   : > { %v1594_v7 = vpop.f32.mrf.mxu1 }
 0x10e   : > { %v1612_v8 = vpop.f32.mrf.mxu0 }
 0x110   : > { %v1613_v9 = vpop.f32.mrf.mxu0  ;;  %v1640_v10 = vpop.f32.mrf.mxu1 }
 0x111   : > { %v1614_v30 = vadd.f32 %v1613_v9, %v1612_v8 }
 0x112   : > { %v1615_v11 = vpop.f32.mrf.mxu0  ;;  %v1641_v12 = vpop.f32.mrf.mxu1 }
 0x113   : > { %v1115_v34 = vadd.f32 %v1614_v30, %v1066_v31  ;;  %v1642_v35 = vadd.f32 %v1641_v12, %v1640_v10 }
 0x114   : > { %v1616_v13 = vpop.f32.mrf.mxu0  ;;  %v1643_v14 = vpop.f32.mrf.mxu1 }
 0x115   : > { %v1164_v41 = vadd.f32 %v1642_v35, %v1115_v34 }
 0x116   : > { %v1618_v15 = vpop.f32.mrf.mxu0  ;;  %v1644_v16 = vpop.f32.mrf.mxu1 }
 0x118   : > { %v1619_v17 = vpop.f32.mrf.mxu0  ;;  %v1646_v18 = vpop.f32.mrf.mxu1 }
 0x119   : > { %v1620_v28 = vadd.f32 %v1619_v17, %v1618_v15 }
 0x11a   : > { %v1621_v19 = vpop.f32.mrf.mxu0  ;;  %v1647_v20 = vpop.f32.mrf.mxu1 }
 0x11b   : > { %v1123_v32 = vadd.f32 %v1620_v28, %v1074_v29  ;;  %v1648_v33 = vadd.f32 %v1647_v20, %v1646_v18 }
 0x11c   : > { %v1622_v21 = vpop.f32.mrf.mxu0  ;;  %v1649_v22 = vpop.f32.mrf.mxu1 }
 0x11d   : > { %v1172_v36 = vadd.f32 %v1648_v33, %v1123_v32 }
 0x11e   : > { %v1650_v23 = vpop.f32.mrf.mxu1 }
 0x12e   : > { %v1680_v37 = vpop.f32.mrf.mxu0 }
 0x12f   : > { %v1221_v40 = vadd.f32 %v1680_v37, %v1172_v36 }
 0x130   : > { %v1212_v43 = vpop.f32.mrf.mxu0 }
 0x131   : > { %v1236_v44 = vmul.f32 %v1518_v38, %v1221_v40  ;;  %v1213_v45 = vadd.f32 %v1212_v43, %v1164_v41 }
 0x132   : > { %v1681_v47 = vpop.f32.mrf.mxu0 }
 0x133   : > { %v1247_v48 = vadd.f32 %v1519_v42, %v1236_v44  ;;  %v1234_v49 = vmul.f32 %v1518_v38, %v1213_v45 }
 0x134   : > { %v1215_v50 = vpop.f32.mrf.mxu0 }
 0x135   : > { %v1251_v51 = vmul.f32 0.2, %v1247_v48  ;;  %v1245_v52 = vadd.f32 %v1519_v42, %v1234_v49 }
 0x137   : > { %v1255_v53 = vmax.f32 %v1247_v48, %v1251_v51  ;;  %v1249_v54 = vmul.f32 0.2, %v1245_v52 }
 0x139   : > { %v1264_v55 = vsel %vm1260_vm2, %v1255_v53, 0.0  ;;  %v1253_v56 = vmax.f32 %v1245_v52, %v1249_v54 }
 0x13a   : > { %v1537_v58 = vpack.c.bf16 %v1812_v57, %v1264_v55 }
 0x13b   : > { %v1262_v59 = vsel %vm1260_vm2, %v1253_v56, 0.0 }
 0x13c   : > { %1539 = vst [vmem:[%s281_s23 + $0x8] sm:$0xff] %v1537_v58   ;;  %v1533_v60 = vpack.c.bf16 %v1812_v57, %v1262_v59 }
 0x13e   : > { %1534 = vst [vmem:[%s281_s23] sm:$0xff] %v1533_v60  }
 0x13f PF: > { %s14_s17 = sadd.s32 1, %s1810_s17   ;;  %s2131_s15 = smov %s1806_s16 }
 0x140   : > { %p11_p5 = scmp.ge.s32.totalorder %s14_s17, 4   ;;  %s2132_s16 = smov %s2134_s18 }
 0x142   :  { %13 = sbr.rel (!%p11_p5) target bundleno = 2 (0x2), region = 76 }

// kernel: _lambda_.14
= control target key start
LH: loop header
LB: loop body
LE: loop exit
PB: predicated region body
PF: predicated region fallthrough
CT: control target
= control target key end

     0   :  { %s2107_s24 = smov 0   ;;  %s2109_s25 = smov 0   ;;  %s2414_s0 = inlined_call_operand.vmem [shape: bf16[2,3,17,128], index: 0, kind: input, shape index: {}]   ;;  %s2415_s1 = inlined_call_operand.vmem [shape: bf16[2,3,17,128], index: 1, kind: input, shape index: {}]   ;;  %s2416_s2 = inlined_call_operand.vmem [shape: bf16[2,3,17,128], index: 2, kind: input, shape index: {}]   ;;  %s2417_s3 = inlined_call_operand.vmem [shape: bf16[2,3,17,128], index: 3, kind: input, shape index: {}]   ;;  %s2418_s4 = inlined_call_operand.vmem [shape: bf16[1152,128], index: 4, kind: input, shape index: {}]   ;;  %s2419_s5 = inlined_call_operand.vmem [shape: f32[1,128], index: 5, kind: input, shape index: {}]   ;;  %s2420_s6 = inlined_call_operand.vmem [shape: f32[1,128], index: 6, kind: input, shape index: {}]   ;;  %s2421_s7 = inlined_call_operand.vmem [shape: bf16[2,2,16,128], index: 7, kind: output, shape index: {}]  }
   0x1   :  { %s2111_s26 = smov 0  }
   0x2 LB: > { %s32_s27 = sadd.s32 1, %s2060_s25  ;;  %p1671_p0 = scmp.ge.s32.totalorder %s2064_s26, 1  ;;  %s2064_s26 = sphi %s2111_s26, %s17_s26   ;;  %s2060_s25 = sphi %s2109_s25, %s2423_s25   ;;  %s2056_s24 = sphi %s2107_s24, %s2422_s24  }
   0x3   : > { %p34_p1 = scmp.ge.s32.totalorder %s32_s27, 2  ;;  %p315_p2 = scmp.lt.s32.totalorder %s2064_s26, 3 }
   0x5   : > { %s2425_s27 = smov (%p34_p1, %s32_s27), 0  ;;  %p316_p3 = pnand %p1671_p0, %p315_p2 }
   0x6   : > { %p380_p4 = scmp.lt.s32.totalorder (!%p316_p3), %s2056_s24, 1 }
   0x7   : > { %319 = sbr.rel (%p316_p3) target bundleno = 319 (0x13f), region = 48 }
   0xc   : > { %v1955_v0 = vld [vmem:[%s2418_s4 + $0x78] sm:$0xff]   ;;  %v1959_v4 = vld [vmem:[%s2418_s4 + $0x70] sm:$0xff]   ;;  %v1963_v8 = vld [vmem:[%s2418_s4 + $0x68] sm:$0xff]   ;;  %s2427_s24 = smov (!%p380_p4, %s2056_s24), 1  ;;  %vm490_vm0 = vsmask.f32 7424 }
   0xd   : > { %v1956_v1 = vld [vmem:[%s2418_s4 + $0xf8] sm:$0xff]   ;;  %1787 = vmatprep.subr.bf16.mxu0 %v1955_v0  ;;  %v1960_v5 = vld [vmem:[%s2418_s4 + $0xf0] sm:$0xff]   ;;  %v1964_v9 = vld [vmem:[%s2418_s4 + $0xe8] sm:$0xff]   ;;  %s2216_s23 = smul.u32 36, %s2427_s24  ;;  %s1773_s13 = sshll.u32 %s2427_s24, 4 }
   0xe   : > { %v1957_v2 = vld [vmem:[%s2418_s4 + $0x38] sm:$0xff]   ;;  %1815 = vmatprep.subr.bf16.mxu1 %v1956_v1  ;;  %v1961_v6 = vld [vmem:[%s2418_s4 + $0x30] sm:$0xff]   ;;  %v1965_v10 = vld [vmem:[%s2418_s4 + $0x28] sm:$0xff]   ;;  %s422_s15 = scalar_lea.vmem %s2421_s7, %s1773_s13 }
   0xf   : > { %v1958_v3 = vld [vmem:[%s2418_s4 + $0xb8] sm:$0xff]   ;;  %1788 = vmatpush3.bf16.msra.mxu0 %v1957_v2  ;;  %v1962_v7 = vld [vmem:[%s2418_s4 + $0xb0] sm:$0xff]   ;;  %v1966_v11 = vld [vmem:[%s2418_s4 + $0xa8] sm:$0xff]   ;;  %s2228_s11 = scalar_lea.vmem %s2415_s1, %s2216_s23  ;;  %s2237_s16 = scalar_lea.vmem %s2416_s2, %s2216_s23 }
  0x10   : > { %1816 = vmatpush3.bf16.msra.mxu1 %v1958_v3  ;;  %1789 = vmatprep.subr.bf16.mxu0 %v1959_v4  ;;  %v1967_v12 = vld [vmem:[%s2418_s4 + $0x60] sm:$0xff]   ;;  %v1971_v16 = vld [vmem:[%s2418_s4 + $0x58] sm:$0xff]   ;;  %v1975_v20 = vld [vmem:[%s2418_s4 + $0x50] sm:$0xff]   ;;  %s2246_s21 = scalar_lea.vmem %s2414_s0, %s2216_s23  ;;  %s399_s10 = scalar_lea.vmem %s2417_s3, %s2216_s23 }
  0x11   : > { %1817 = vmatprep.subr.bf16.mxu1 %v1960_v5  ;;  %v1968_v13 = vld [vmem:[%s2418_s4 + $0xe0] sm:$0xff]   ;;  %v1972_v17 = vld [vmem:[%s2418_s4 + $0xd8] sm:$0xff]   ;;  %v1976_v21 = vld [vmem:[%s2418_s4 + $0xd0] sm:$0xff]  }
  0x12   : > { %v1969_v14 = vld [vmem:[%s2418_s4 + $0x20] sm:$0xff]   ;;  %v1973_v18 = vld [vmem:[%s2418_s4 + $0x18] sm:$0xff]   ;;  %v1977_v22 = vld [vmem:[%s2418_s4 + $0x10] sm:$0xff]  }
  0x13   : > { %1790 = vmatpush3.bf16.msra.mxu0 %v1961_v6  ;;  %v1970_v15 = vld [vmem:[%s2418_s4 + $0xa0] sm:$0xff]   ;;  %v1974_v19 = vld [vmem:[%s2418_s4 + $0x98] sm:$0xff]   ;;  %v1978_v23 = vld [vmem:[%s2418_s4 + $0x90] sm:$0xff]  }
  0x14   : > { %1818 = vmatpush3.bf16.msra.mxu1 %v1962_v7  ;;  %1791 = vmatprep.subr.bf16.mxu0 %v1963_v8  ;;  %v1979_v24 = vld [vmem:[%s2418_s4 + $0x48] sm:$0xff]   ;;  %v1983_v28 = vld [vmem:[%s2418_s4 + $0x40] sm:$0xff]   ;;  %v1991_v39 = vld [vmem:[%s2418_s4 + $0x178] sm:$0xff]  }
  0x15   : > { %1819 = vmatprep.subr.bf16.mxu1 %v1964_v9  ;;  %v1980_v25 = vld [vmem:[%s2418_s4 + $0xc8] sm:$0xff]   ;;  %v1984_v29 = vld [vmem:[%s2418_s4 + $0xc0] sm:$0xff]   ;;  %v1992_v41 = vld [vmem:[%s2418_s4 + $0x138] sm:$0xff]  }
  0x16   : > { %v1981_v26 = vld [vmem:[%s2418_s4 + $0x8] sm:$0xff]   ;;  %v1985_v30 = vld [vmem:[%s2418_s4] sm:$0xff]   ;;  %v1993_v43 = vld [vmem:[%s2418_s4 + $0x1f8] sm:$0xff]  }
  0x17   : > { %1792 = vmatpush3.bf16.msra.mxu0 %v1965_v10  ;;  %v1982_v27 = vld [vmem:[%s2418_s4 + $0x88] sm:$0xff]   ;;  %v1986_v31 = vld [vmem:[%s2418_s4 + $0x80] sm:$0xff]   ;;  %v1994_v45 = vld [vmem:[%s2418_s4 + $0x1b8] sm:$0xff]  }
  0x18   : > { %1820 = vmatpush3.bf16.msra.mxu1 %v1966_v11  ;;  %1793 = vmatprep.subr.bf16.mxu0 %v1967_v12  ;;  %v1987_v32 = vld [vmem:[%s2228_s11] sm:$0xff]   ;;  %v1990_v35 = vld [vmem:[%s2246_s21 + $0x8] ss:$0 sps:$4 sm:$0x11]   ;;  %v1995_v46 = vld [vmem:[%s2418_s4 + $0x170] sm:$0xff]  }
  0x19   : > { %1821 = vmatprep.subr.bf16.mxu1 %v1968_v13  ;;  %v2250_v33 = vld [vmem:[%s2237_s16] sm:$0xff]   ;;  %1209 = vmatprep.mubr.bf16.mxu0 %v1987_v32  ;;  %v499_v38 = vshll.u32 %v1990_v35, 16  ;;  %v1996_v48 = vld [vmem:[%s2418_s4 + $0x130] sm:$0xff]   ;;  %v1999_v51 = vld [vmem:[%s2418_s4 + $0x168] sm:$0xff]  }
  0x1a   : > { %v1989_v34 = vld [vmem:[%s2246_s21] sm:$0xff]   ;;  %1258 = vmatprep.mubr.bf16.mxu1 %v2250_v33  ;;  %v1997_v49 = vld [vmem:[%s2418_s4 + $0x1f0] sm:$0xff]   ;;  %v2000_v52 = vld [vmem:[%s2418_s4 + $0x128] sm:$0xff]   ;;  %v550_v13 = vshll.u32 %v2250_v33, 16 }
  0x1b   : > { %1794 = vmatpush3.bf16.msra.mxu0 %v1969_v14  ;;  %v494_v36 = vshll.u32 %v1989_v34, 16  ;;  %v492_v37 = vshrl.u32 %v1989_v34, 16  ;;  %v501_v42 = vrot.slane %v499_v38, 1  ;;  %v1998_v50 = vld [vmem:[%s2418_s4 + $0x1b0] sm:$0xff]   ;;  %v2001_v53 = vld [vmem:[%s2418_s4 + $0x1e8] sm:$0xff]   ;;  %v2003_v55 = vld [vmem:[%s2418_s4 + $0x160] sm:$0xff]  }
  0x1c   : > { %1822 = vmatpush3.bf16.msra.mxu1 %v1970_v15  ;;  %1795 = vmatprep.subr.bf16.mxu0 %v1971_v16  ;;  %v2002_v54 = vld [vmem:[%s2418_s4 + $0x1a8] sm:$0xff]   ;;  %v2004_v56 = vld [vmem:[%s2418_s4 + $0x120] sm:$0xff]   ;;  %v2007_v59 = vld [vmem:[%s2418_s4 + $0x158] sm:$0xff]  }
  0x1d   : > { %1823 = vmatprep.subr.bf16.mxu1 %v1972_v17  ;;  %v496_v40 = vrot.slane %v494_v36, 1  ;;  %v2005_v57 = vld [vmem:[%s2418_s4 + $0x1e0] sm:$0xff]   ;;  %v2008_v60 = vld [vmem:[%s2418_s4 + $0x118] sm:$0xff]   ;;  %v2009_v61 = vld [vmem:[%s2228_s11 + $0xc] sm:$0xff]  }
  0x1e   : > { %v2006_v58 = vld [vmem:[%s2418_s4 + $0x1a0] sm:$0xff]   ;;  %v2010_v62 = vld [vmem:[%s2418_s4 + $0x1d8] sm:$0xff]   ;;  %v2011_v63 = vld [vmem:[%s2246_s21 + $0xc] sm:$0xff]  }
  0x1f   : > { %1796 = vmatpush3.bf16.msra.mxu0 %v1973_v18  ;;  %v497_v44 = vor.u32 %v496_v40, %v492_v37  ;;  %v2012_v0 = vld [vmem:[%s2418_s4 + $0x198] sm:$0xff]   ;;  %v2013_v1 = vld [vmem:[%s2418_s4 + $0x150] sm:$0xff]   ;;  %v506_v3 = vshll.u32 %v2011_v63, 16  ;;  %v504_v5 = vshrl.u32 %v2011_v63, 16  ;;  %v2019_v12 = vld [vmem:[%s2418_s4 + $0x148] sm:$0xff]  }
  0x20   : > { %1824 = vmatpush3.bf16.msra.mxu1 %v1974_v19  ;;  %1797 = vmatprep.subr.bf16.mxu0 %v1975_v20  ;;  %v2014_v2 = vld [vmem:[%s2418_s4 + $0x110] sm:$0xff]   ;;  %v2020_v14 = vld [vmem:[%s2418_s4 + $0x108] sm:$0xff]   ;;  %v2023_v19 = vld [vmem:[%s2418_s4 + $0x140] sm:$0xff]   ;;  %v548_v20 = vshrl.u32 %v2250_v33, 16 }
  0x21   : > { %1825 = vmatprep.subr.bf16.mxu1 %v1976_v21  ;;  %v502_v47 = vsel %vm490_vm0, %v497_v44, %v501_v42  ;;  %v2015_v4 = vld [vmem:[%s2237_s16 + $0xc] sm:$0xff]   ;;  %v508_v7 = vrot.slane %v506_v3, 1  ;;  %v2017_v8 = vld [vmem:[%s2246_s21 + $0x14] ss:$0 sps:$4 sm:$0x11]   ;;  %v2024_v21 = vld [vmem:[%s2418_s4 + $0x100] sm:$0xff]  }
  0x22   : > { %v2016_v6 = vld [vmem:[%s2418_s4 + $0x1d0] sm:$0xff]   ;;  %v511_v11 = vshll.u32 %v2017_v8, 16  ;;  %v2021_v16 = vld [vmem:[%s2418_s4 + $0x1c8] sm:$0xff]   ;;  %v2028_v33 = vld [vmem:[%s399_s10] sm:$0xff]  }
  0x23   : > { %1798 = vmatpush3.bf16.msra.mxu0 %v1977_v22  ;;  %v2018_v9 = vld [vmem:[%s2418_s4 + $0x190] sm:$0xff]   ;;  %v509_v10 = vor.u32 %v508_v7, %v504_v5  ;;  %v2022_v17 = vld [vmem:[%s2418_s4 + $0x188] sm:$0xff]   ;;  %v552_v22 = vrot.slane %v550_v13, 1  ;;  %v2035_v40 = vld [vmem:[%s2246_s21 + $0x18] sm:$0xff]  }
  0x24   : > { %1826 = vmatpush3.bf16.msra.mxu1 %v1978_v23  ;;  %1799 = vmatprep.subr.bf16.mxu0 %v1979_v24  ;;  %v513_v15 = vrot.slane %v511_v11, 1  ;;  %v562_v23 = vshll.u32 %v2015_v4, 16  ;;  %v2025_v24 = vld [vmem:[%s2418_s4 + $0x1c0] sm:$0xff]   ;;  %v2030_v36 = vld [vmem:[%s2418_s4 + $0x230] sm:$0xff]   ;;  %v2033_v42 = vld [vmem:[%s2418_s4 + $0x228] sm:$0xff]  }
  0x25   : > { %1827 = vmatprep.subr.bf16.mxu1 %v1980_v25  ;;  %v2026_v25 = vld [vmem:[%s2237_s16 + $0x8] ss:$0 sps:$4 sm:$0x11]  }
  0x26   : > { %v514_v18 = vsel %vm490_vm0, %v509_v10, %v513_v15 }
  0x27   : > { %1800 = vmatpush3.bf16.msra.mxu0 %v1981_v26  ;;  %v2027_v26 = vld [vmem:[%s2418_s4 + $0x180] sm:$0xff]  }
  0x28   : > { %1828 = vmatpush3.bf16.msra.mxu1 %v1982_v27  ;;  %1801 = vmatprep.subr.bf16.mxu0 %v1983_v28  ;;  %v553_v27 = vor.u32 %v552_v22, %v548_v20  ;;  %v555_v28 = vshll.u32 %v2026_v25, 16 }
  0x29   : > { %1829 = vmatprep.subr.bf16.mxu1 %v1984_v29  ;;  %v560_v29 = vshrl.u32 %v2015_v4, 16 }
  0x2a   : > { %v557_v32 = vrot.slane %v555_v28, 1 }
  0x2b   : > { %1802 = vmatpush3.bf16.msra.mxu0 %v1985_v30  ;;  %v2029_v30 = vld [vmem:[%s2418_s4 + $0x238] sm:$0xff]  }
  0x2c   : > { %1830 = vmatpush3.bf16.msra.mxu1 %v1986_v31  ;;  %1843 = vmatprep.subr.bf16.mxu0 %v1991_v39  ;;  %v564_v31 = vrot.slane %v562_v23, 1  ;;  %v558_v35 = vsel %vm490_vm0, %v553_v27, %v557_v32  ;;  %v2034_v39 = vld [vmem:[%s2228_s11 + $0x18] sm:$0xff]  }
  0x2d   : > { %1871 = vmatprep.subr.bf16.mxu1 %v1993_v43  ;;  %v591_v43 = vshll.u32 %v2035_v40, 16 }
  0x2e   : > { %1210 = vmatmul.mubr.bf16.vlgmr.msra.gmra.mxu0 %v1989_v34  ;;  %v2031_v34 = vld [vmem:[%s2237_s16 + $0x14] ss:$0 sps:$4 sm:$0x11]   ;;  %v565_v37 = vor.u32 %v564_v31, %v560_v29 }
  0x2f   : > { %1844 = vmatpush3.bf16.msra.mxu0 %v1992_v41  ;;  %1259 = vmatmul.mubr.bf16.vlgmr.msra.gmra.mxu1 %v502_v47  ;;  %v567_v38 = vshll.u32 %v2031_v34, 16  ;;  %v593_v47 = vrot.slane %v591_v43, 1 }
  0x30   : > { %1845 = vmatprep.subr.bf16.mxu0 %v1995_v46  ;;  %1872 = vmatpush3.bf16.msra.mxu1 %v1994_v45  ;;  %v2032_v45 = vld [vmem:[%s399_s10 + $0xc] sm:$0xff]   ;;  %v589_v46 = vshrl.u32 %v2035_v40, 16 }
  0x31   : > { %1873 = vmatprep.subr.bf16.mxu1 %v1997_v49  ;;  %1217 = vmatprep.mubr.bf16.mxu0 %v2009_v61  ;;  %v569_v41 = vrot.slane %v567_v38, 1  ;;  %v2041_v49 = vld [vmem:[%s2246_s21 + $0x20] ss:$0 sps:$4 sm:$0x11]  }
  0x32   : > { %1266 = vmatprep.mubr.bf16.mxu1 %v2015_v4 }
  0x33   : > { %1846 = vmatpush3.bf16.msra.mxu0 %v1996_v48  ;;  %v570_v44 = vsel %vm490_vm0, %v565_v37, %v569_v41  ;;  %v2036_v48 = vld [vmem:[%s2418_s4 + $0x220] sm:$0xff]   ;;  %v1452_v41 = vlaneseq }
  0x34   : > { %1847 = vmatprep.subr.bf16.mxu0 %v1999_v51  ;;  %1874 = vmatpush3.bf16.msra.mxu1 %v1998_v50  ;;  %v594_v50 = vor.u32 %v593_v47, %v589_v46  ;;  %v596_v51 = vshll.u32 %v2041_v49, 16 }
  0x35   : > { %1875 = vmatprep.subr.bf16.mxu1 %v2001_v53 }
  0x36   : > { %1218 = vmatmul.mubr.bf16.gmra.mxu0 %v2011_v63  ;;  %v598_v53 = vrot.slane %v596_v51, 1 }
  0x37   : > { %1848 = vmatpush3.bf16.msra.mxu0 %v2000_v52  ;;  %1267 = vmatmul.mubr.bf16.gmra.mxu1 %v514_v18  ;;  %v2037_v52 = vld [vmem:[%s2418_s4 + $0x218] sm:$0xff]  }
  0x38   : > { %1849 = vmatprep.subr.bf16.mxu0 %v2003_v55  ;;  %1876 = vmatpush3.bf16.msra.mxu1 %v2002_v54  ;;  %v599_v54 = vsel %vm490_vm0, %v594_v50, %v598_v53  ;;  %v2038_v55 = vld [vmem:[%s2418_s4 + $0x210] sm:$0xff]  }
  0x39   : > { %1877 = vmatprep.subr.bf16.mxu1 %v2005_v57  ;;  %1356 = vmatprep.mubr.bf16.mxu1 %v2009_v61  ;;  %v2040_v57 = vld [vmem:[%s2418_s4 + $0x200] sm:$0xff]  }
  0x3a   : > { %1307 = vmatprep.mubr.bf16.mxu0 %v558_v35 }
  0x3b   : > { %1850 = vmatpush3.bf16.msra.mxu0 %v2004_v56  ;;  %v2039_v56 = vld [vmem:[%s2418_s4 + $0x208] sm:$0xff]  }
  0x3c   : > { %1851 = vmatprep.subr.bf16.mxu0 %v2007_v59  ;;  %1878 = vmatpush3.bf16.msra.mxu1 %v2006_v58 }
  0x3d   : > { %1879 = vmatprep.subr.bf16.mxu1 %v2010_v62 }
  0x3f   : > { %1852 = vmatpush3.bf16.msra.mxu0 %v2008_v60 }
  0x40   : > { %1880 = vmatpush3.bf16.msra.mxu1 %v2012_v0  ;;  %1853 = vmatprep.subr.bf16.mxu0 %v2013_v1 }
  0x41   : > { %1881 = vmatprep.subr.bf16.mxu1 %v2016_v6 }
  0x43   : > { %1854 = vmatpush3.bf16.msra.mxu0 %v2014_v2 }
  0x44   : > { %1882 = vmatpush3.bf16.msra.mxu1 %v2018_v9  ;;  %1855 = vmatprep.subr.bf16.mxu0 %v2019_v12 }
  0x45   : > { %1883 = vmatprep.subr.bf16.mxu1 %v2021_v16 }
  0x47   : > { %1856 = vmatpush3.bf16.msra.mxu0 %v2020_v14 }
  0x48   : > { %1884 = vmatpush3.bf16.msra.mxu1 %v2022_v17  ;;  %1857 = vmatprep.subr.bf16.mxu0 %v2023_v19 }
  0x49   : > { %1885 = vmatprep.subr.bf16.mxu1 %v2025_v24 }
  0x4b   : > { %1858 = vmatpush3.bf16.msra.mxu0 %v2024_v21 }
  0x4c   : > { %1886 = vmatpush3.bf16.msra.mxu1 %v2027_v26  ;;  %1909 = vmatprep.subr.bf16.mxu0 %v2029_v30 }
  0x4e   : > { %1308 = vmatmul.mubr.bf16.vlgmr.msra.gmra.mxu0 %v2028_v33 }
  0x4f   : > { %1357 = vmatmul.mubr.bf16.vlgmr.msra.gmra.mxu1 %v2011_v63  ;;  %1910 = vmatpush3.bf16.msra.mxu0 %v2029_v30 }
  0x50   : > { %1364 = vmatprep.mubr.bf16.mxu1 %v2034_v39  ;;  %1911 = vmatprep.subr.bf16.mxu0 %v2030_v36 }
  0x51   : > { %1315 = vmatprep.mubr.bf16.mxu0 %v570_v44  ;;  %v1766_v44 = vld [vmem:[%s2420_s6] ss:$0 sm:$0xff] }
  0x53   : > { %1912 = vmatpush3.bf16.msra.mxu0 %v2030_v36 }
  0x54   : > { %1913 = vmatprep.subr.bf16.mxu0 %v2033_v42 }
  0x56   : > { %1316 = vmatmul.mubr.bf16.gmra.mxu0 %v2032_v45 }
  0x57   : > { %1365 = vmatmul.mubr.bf16.gmra.mxu1 %v2035_v40  ;;  %1914 = vmatpush3.bf16.msra.mxu0 %v2033_v42  ;;  %v1765_v40 = vld [vmem:[%s2419_s5] ss:$0 sm:$0xff] }
  0x58   : > { %1925 = vmatprep.mubr.bf16.mxu0 %v514_v18  ;;  %1915 = vmatprep.subr.bf16.mxu0 %v2036_v48 }
  0x5b   : > { %1916 = vmatpush3.bf16.msra.mxu0 %v2036_v48  ;;  %v1453_v48 = vshrl.u32 %v1452_v41, 7 }
  0x5c   : > { %1917 = vmatprep.subr.bf16.mxu0 %v2037_v52 }
  0x5d   : > { %vm1455_vm1 = vcmp.lt.s32.totalorder %v1453_v48, 2 }
  0x5f   : > { %1918 = vmatpush3.bf16.msra.mxu0 %v2037_v52 }
  0x60   : > { %1919 = vmatprep.subr.bf16.mxu0 %v2038_v55 }
  0x63   : > { %1920 = vmatpush3.bf16.msra.mxu0 %v2038_v55 }
  0x64   : > { %1921 = vmatprep.subr.bf16.mxu0 %v2039_v56 }
  0x67   : > { %1922 = vmatpush3.bf16.msra.mxu0 %v2039_v56 }
  0x68   : > { %1923 = vmatprep.subr.bf16.mxu0 %v2040_v57 }
  0x6b   : > { %1924 = vmatpush3.bf16.msra.mxu0 %v2040_v57 }
  0x6e   : > { %1926 = vmatmul.mubr.bf16.vlgmr.msra.gmra.mxu0 %v599_v54 }
  0xee   : > { %v1803_v58 = vpop.f32.mrf.mxu0 }
  0xef   : > { %v1831_v63 = vpop.f32.mrf.mxu1 }
  0xf0   : > { %v1804_v59 = vpop.f32.mrf.mxu0 }
  0xf1   : > { %v1805_v60 = vadd.f32 %v1804_v59, %v1803_v58  ;;  %v1832_v0 = vpop.f32.mrf.mxu1  ;;  %v2066_v59 = vmov 0.0  }
  0xf2   : > { %v1806_v61 = vpop.f32.mrf.mxu0  ;;  %v1833_v29 = vadd.f32 %v1832_v0, %v1831_v63 }
  0xf3   : > { %v1834_v1 = vpop.f32.mrf.mxu1 }
  0xf4   : > { %v1807_v62 = vpop.f32.mrf.mxu0  ;;  %v1261_v33 = vadd.f32 %v1833_v29, %v1805_v60 }
  0xf5   : > { %v1835_v2 = vpop.f32.mrf.mxu1 }
  0xf6   : > { %v1809_v3 = vpop.f32.mrf.mxu0 }
  0xf7   : > { %v1837_v7 = vpop.f32.mrf.mxu1 }
  0xf8   : > { %v1810_v4 = vpop.f32.mrf.mxu0 }
  0xf9   : > { %v1838_v8 = vpop.f32.mrf.mxu1  ;;  %v1811_v27 = vadd.f32 %v1810_v4, %v1809_v3 }
  0xfa   : > { %v1812_v5 = vpop.f32.mrf.mxu0  ;;  %v1839_v28 = vadd.f32 %v1838_v8, %v1837_v7 }
  0xfb   : > { %v1840_v9 = vpop.f32.mrf.mxu1 }
  0xfc   : > { %v1813_v6 = vpop.f32.mrf.mxu0  ;;  %v1269_v31 = vadd.f32 %v1839_v28, %v1811_v27 }
  0xfd   : > { %v1841_v10 = vpop.f32.mrf.mxu1 }
 0x10e   : > { %v1859_v12 = vpop.f32.mrf.mxu0 }
 0x10f   : > { %v1887_v11 = vpop.f32.mrf.mxu1 }
 0x110   : > { %v1860_v14 = vpop.f32.mrf.mxu0 }
 0x111   : > { %v1888_v13 = vpop.f32.mrf.mxu1  ;;  %v1861_v32 = vadd.f32 %v1860_v14, %v1859_v12 }
 0x112   : > { %v1862_v16 = vpop.f32.mrf.mxu0  ;;  %v1889_v37 = vadd.f32 %v1888_v13, %v1887_v11 }
 0x113   : > { %v1890_v15 = vpop.f32.mrf.mxu1  ;;  %v1310_v36 = vadd.f32 %v1861_v32, %v1261_v33 }
 0x114   : > { %v1863_v18 = vpop.f32.mrf.mxu0 }
 0x115   : > { %v1891_v17 = vpop.f32.mrf.mxu1  ;;  %v1359_v43 = vadd.f32 %v1889_v37, %v1310_v36 }
 0x116   : > { %v1865_v20 = vpop.f32.mrf.mxu0 }
 0x117   : > { %v1893_v19 = vpop.f32.mrf.mxu1 }
 0x118   : > { %v1866_v22 = vpop.f32.mrf.mxu0 }
 0x119   : > { %v1894_v21 = vpop.f32.mrf.mxu1  ;;  %v1867_v30 = vadd.f32 %v1866_v22, %v1865_v20 }
 0x11a   : > { %v1868_v24 = vpop.f32.mrf.mxu0  ;;  %v1895_v35 = vadd.f32 %v1894_v21, %v1893_v19 }
 0x11b   : > { %v1896_v23 = vpop.f32.mrf.mxu1  ;;  %v1318_v34 = vadd.f32 %v1867_v30, %v1269_v31 }
 0x11c   : > { %v1869_v26 = vpop.f32.mrf.mxu0 }
 0x11d   : > { %v1897_v25 = vpop.f32.mrf.mxu1  ;;  %v1367_v38 = vadd.f32 %v1895_v35, %v1318_v34 }
 0x12e   : > { %v1927_v39 = vpop.f32.mrf.mxu0 }
 0x12f   : > { %v1416_v42 = vadd.f32 %v1927_v39, %v1367_v38 }
 0x130   : > { %v1407_v45 = vpop.f32.mrf.mxu0 }
 0x131   : > { %v1431_v46 = vmul.f32 %v1765_v40, %v1416_v42  ;;  %v1408_v47 = vadd.f32 %v1407_v45, %v1359_v43 }
 0x132   : > { %v1928_v49 = vpop.f32.mrf.mxu0 }
 0x133   : > { %v1442_v50 = vadd.f32 %v1766_v44, %v1431_v46  ;;  %v1429_v51 = vmul.f32 %v1765_v40, %v1408_v47 }
 0x134   : > { %v1410_v52 = vpop.f32.mrf.mxu0 }
 0x135   : > { %v1446_v53 = vmul.f32 0.2, %v1442_v50  ;;  %v1440_v54 = vadd.f32 %v1766_v44, %v1429_v51 }
 0x137   : > { %v1450_v55 = vmax.f32 %v1442_v50, %v1446_v53  ;;  %v1444_v56 = vmul.f32 0.2, %v1440_v54 }
 0x139   : > { %v1459_v57 = vsel %vm1455_vm1, %v1450_v55, 0.0  ;;  %v1448_v58 = vmax.f32 %v1440_v54, %v1444_v56 }
 0x13a   : > { %v1784_v60 = vpack.c.bf16 %v2066_v59, %v1459_v57 }
 0x13b   : > { %v1457_v61 = vsel %vm1455_vm1, %v1448_v58, 0.0 }
 0x13c   : > { %1786 = vst [vmem:[%s422_s15 + $0x8] sm:$0xff] %v1784_v60   ;;  %v1780_v62 = vpack.c.bf16 %v2066_v59, %v1457_v61 }
 0x13e   : > { %1781 = vst [vmem:[%s422_s15] sm:$0xff] %v1780_v62  }
 0x13f PF: > { %s17_s26 = sadd.s32 1, %s2064_s26   ;;  %s2422_s24 = smov %s2060_s25 }
 0x140   : > { %p14_p5 = scmp.ge.s32.totalorder %s17_s26, 4   ;;  %s2423_s25 = smov %s2425_s27 }
 0x142   :  { %16 = sbr.rel (!%p14_p5) target bundleno = 2 (0x2), region = 100 }

// kernel: _lambda_.16
= control target key start
LH: loop header
LB: loop body
LE: loop exit
PB: predicated region body
PF: predicated region fallthrough
CT: control target
= control target key end

     0   :  { %s1930_s24 = smov 0   ;;  %s1932_s25 = smov 0   ;;  %s2240_s0 = inlined_call_operand.vmem [shape: bf16[2,2,17,128], index: 0, kind: input, shape index: {}]   ;;  %s2241_s1 = inlined_call_operand.vmem [shape: bf16[2,2,17,128], index: 1, kind: input, shape index: {}]   ;;  %s2242_s2 = inlined_call_operand.vmem [shape: bf16[2,2,17,128], index: 2, kind: input, shape index: {}]   ;;  %s2243_s3 = inlined_call_operand.vmem [shape: bf16[2,2,17,128], index: 3, kind: input, shape index: {}]   ;;  %s2244_s4 = inlined_call_operand.vmem [shape: bf16[1152,128], index: 4, kind: input, shape index: {}]   ;;  %s2245_s5 = inlined_call_operand.vmem [shape: f32[1,128], index: 5, kind: input, shape index: {}]   ;;  %s2246_s6 = inlined_call_operand.vmem [shape: f32[1,128], index: 6, kind: input, shape index: {}]   ;;  %s2247_s7 = inlined_call_operand.vmem [shape: bf16[2,1,16,128], index: 7, kind: output, shape index: {}]  }
   0x1   :  { %s1934_s26 = smov 0  }
   0x2 LB: > { %s32_s27 = sadd.s32 1, %s1882_s25  ;;  %p1538_p0 = scmp.ge.s32.totalorder %s1886_s26, 1  ;;  %s1886_s26 = sphi %s1934_s26, %s17_s26   ;;  %s1882_s25 = sphi %s1932_s25, %s2249_s25   ;;  %s1878_s24 = sphi %s1930_s24, %s2248_s24  }
   0x3   : > { %p34_p1 = scmp.ge.s32.totalorder %s32_s27, 2  ;;  %p315_p2 = scmp.lt.s32.totalorder %s1886_s26, 3 }
   0x5   : > { %s2251_s27 = smov (%p34_p1, %s32_s27), 0  ;;  %p316_p3 = pnand %p1538_p0, %p315_p2 }
   0x6   : > { %p379_p4 = scmp.lt.s32.totalorder (!%p316_p3), %s1878_s24, 1 }
   0x7   : > { %319 = sbr.rel (%p316_p3) target bundleno = 317 (0x13d), region = 48 }
   0xc   : > { %v1783_v0 = vld [vmem:[%s2244_s4 + $0x78] sm:$0xff]   ;;  %v1787_v4 = vld [vmem:[%s2244_s4 + $0x70] sm:$0xff]   ;;  %v1791_v8 = vld [vmem:[%s2244_s4 + $0x68] sm:$0xff]   ;;  %s2253_s24 = smov (!%p379_p4, %s1878_s24), 1  ;;  %vm461_vm0 = vsmask.f32 7424 }
   0xd   : > { %v1784_v1 = vld [vmem:[%s2244_s4 + $0xf8] sm:$0xff]   ;;  %1639 = vmatprep.subr.bf16.mxu0 %v1783_v0  ;;  %v1788_v5 = vld [vmem:[%s2244_s4 + $0xf0] sm:$0xff]   ;;  %v1792_v9 = vld [vmem:[%s2244_s4 + $0xe8] sm:$0xff]   ;;  %s2039_s23 = smul.u32 24, %s2253_s24  ;;  %vm1889_vm1 = vmmov 0  }
   0xe   : > { %v1785_v2 = vld [vmem:[%s2244_s4 + $0x38] sm:$0xff]   ;;  %1661 = vmatprep.subr.bf16.mxu1 %v1784_v1  ;;  %v1789_v6 = vld [vmem:[%s2244_s4 + $0x30] sm:$0xff]   ;;  %v1793_v10 = vld [vmem:[%s2244_s4 + $0x28] sm:$0xff]  }
   0xf   : > { %v1786_v3 = vld [vmem:[%s2244_s4 + $0xb8] sm:$0xff]   ;;  %1640 = vmatpush3.bf16.msra.mxu0 %v1785_v2  ;;  %v1790_v7 = vld [vmem:[%s2244_s4 + $0xb0] sm:$0xff]   ;;  %v1794_v11 = vld [vmem:[%s2244_s4 + $0xa8] sm:$0xff]   ;;  %s2051_s11 = scalar_lea.vmem %s2241_s1, %s2039_s23  ;;  %s2060_s16 = scalar_lea.vmem %s2242_s2, %s2039_s23 }
  0x10   : > { %1662 = vmatpush3.bf16.msra.mxu1 %v1786_v3  ;;  %1641 = vmatprep.subr.bf16.mxu0 %v1787_v4  ;;  %v1795_v12 = vld [vmem:[%s2244_s4 + $0x60] sm:$0xff]   ;;  %v1799_v16 = vld [vmem:[%s2244_s4 + $0x58] sm:$0xff]   ;;  %v1803_v20 = vld [vmem:[%s2244_s4 + $0x50] sm:$0xff]   ;;  %s2069_s21 = scalar_lea.vmem %s2240_s0, %s2039_s23  ;;  %s398_s8 = scalar_lea.vmem %s2243_s3, %s2039_s23 }
  0x11   : > { %1663 = vmatprep.subr.bf16.mxu1 %v1788_v5  ;;  %v1796_v13 = vld [vmem:[%s2244_s4 + $0xe0] sm:$0xff]   ;;  %v1800_v17 = vld [vmem:[%s2244_s4 + $0xd8] sm:$0xff]   ;;  %v1804_v21 = vld [vmem:[%s2244_s4 + $0xd0] sm:$0xff]   ;;  %s1632_s23 = sshll.u32 %s2253_s24, 3 }
  0x12   : > { %v1797_v14 = vld [vmem:[%s2244_s4 + $0x20] sm:$0xff]   ;;  %v1801_v18 = vld [vmem:[%s2244_s4 + $0x18] sm:$0xff]   ;;  %v1805_v22 = vld [vmem:[%s2244_s4 + $0x10] sm:$0xff]  }
  0x13   : > { %1642 = vmatpush3.bf16.msra.mxu0 %v1789_v6  ;;  %v1798_v15 = vld [vmem:[%s2244_s4 + $0xa0] sm:$0xff]   ;;  %v1802_v19 = vld [vmem:[%s2244_s4 + $0x98] sm:$0xff]   ;;  %v1806_v23 = vld [vmem:[%s2244_s4 + $0x90] sm:$0xff]  }
  0x14   : > { %1664 = vmatpush3.bf16.msra.mxu1 %v1790_v7  ;;  %1643 = vmatprep.subr.bf16.mxu0 %v1791_v8  ;;  %v1807_v24 = vld [vmem:[%s2244_s4 + $0x48] sm:$0xff]   ;;  %v1811_v28 = vld [vmem:[%s2244_s4 + $0x40] sm:$0xff]   ;;  %v1819_v39 = vld [vmem:[%s2244_s4 + $0x178] sm:$0xff]  }
  0x15   : > { %1665 = vmatprep.subr.bf16.mxu1 %v1792_v9  ;;  %v1808_v25 = vld [vmem:[%s2244_s4 + $0xc8] sm:$0xff]   ;;  %v1812_v29 = vld [vmem:[%s2244_s4 + $0xc0] sm:$0xff]   ;;  %v1820_v41 = vld [vmem:[%s2244_s4 + $0x138] sm:$0xff]  }
  0x16   : > { %v1809_v26 = vld [vmem:[%s2244_s4 + $0x8] sm:$0xff]   ;;  %v1813_v30 = vld [vmem:[%s2244_s4] sm:$0xff]   ;;  %v1821_v43 = vld [vmem:[%s2244_s4 + $0x1f8] sm:$0xff]  }
  0x17   : > { %1644 = vmatpush3.bf16.msra.mxu0 %v1793_v10  ;;  %v1810_v27 = vld [vmem:[%s2244_s4 + $0x88] sm:$0xff]   ;;  %v1814_v31 = vld [vmem:[%s2244_s4 + $0x80] sm:$0xff]   ;;  %v1822_v45 = vld [vmem:[%s2244_s4 + $0x1b8] sm:$0xff]  }
  0x18   : > { %1666 = vmatpush3.bf16.msra.mxu1 %v1794_v11  ;;  %1645 = vmatprep.subr.bf16.mxu0 %v1795_v12  ;;  %v1815_v32 = vld [vmem:[%s2051_s11] sm:$0xff]   ;;  %v1818_v35 = vld [vmem:[%s2069_s21 + $0x8] ss:$0 sps:$4 sm:$0x11]   ;;  %v1823_v46 = vld [vmem:[%s2244_s4 + $0x170] sm:$0xff]  }
  0x19   : > { %1667 = vmatprep.subr.bf16.mxu1 %v1796_v13  ;;  %v2073_v33 = vld [vmem:[%s2060_s16] sm:$0xff]   ;;  %1139 = vmatprep.mubr.bf16.mxu0 %v1815_v32  ;;  %v470_v38 = vshll.u32 %v1818_v35, 16  ;;  %v1824_v48 = vld [vmem:[%s2244_s4 + $0x130] sm:$0xff]   ;;  %v1827_v51 = vld [vmem:[%s2244_s4 + $0x168] sm:$0xff]  }
  0x1a   : > { %v1817_v34 = vld [vmem:[%s2069_s21] sm:$0xff]   ;;  %1180 = vmatprep.mubr.bf16.mxu1 %v2073_v33  ;;  %v1825_v49 = vld [vmem:[%s2244_s4 + $0x1f0] sm:$0xff]   ;;  %v1828_v52 = vld [vmem:[%s2244_s4 + $0x128] sm:$0xff]   ;;  %v493_v4 = vshll.u32 %v2073_v33, 16  ;;  %v491_v9 = vshrl.u32 %v2073_v33, 16 }
  0x1b   : > { %1646 = vmatpush3.bf16.msra.mxu0 %v1797_v14  ;;  %v465_v36 = vshll.u32 %v1817_v34, 16  ;;  %v463_v37 = vshrl.u32 %v1817_v34, 16  ;;  %v472_v42 = vrot.slane %v470_v38, 1  ;;  %v1826_v50 = vld [vmem:[%s2244_s4 + $0x1b0] sm:$0xff]   ;;  %v1829_v53 = vld [vmem:[%s2244_s4 + $0x1e8] sm:$0xff]   ;;  %v1831_v55 = vld [vmem:[%s2244_s4 + $0x160] sm:$0xff]  }
  0x1c   : > { %1668 = vmatpush3.bf16.msra.mxu1 %v1798_v15  ;;  %1647 = vmatprep.subr.bf16.mxu0 %v1799_v16  ;;  %v1830_v54 = vld [vmem:[%s2244_s4 + $0x1a8] sm:$0xff]   ;;  %v1832_v56 = vld [vmem:[%s2244_s4 + $0x120] sm:$0xff]   ;;  %v1835_v59 = vld [vmem:[%s2244_s4 + $0x158] sm:$0xff]   ;;  %v495_v11 = vrot.slane %v493_v4, 1  ;;  %v1888_v15 = vmov 0.0  }
  0x1d   : > { %1669 = vmatprep.subr.bf16.mxu1 %v1800_v17  ;;  %v467_v40 = vrot.slane %v465_v36, 1  ;;  %v1833_v57 = vld [vmem:[%s2244_s4 + $0x1e0] sm:$0xff]   ;;  %v1836_v60 = vld [vmem:[%s2244_s4 + $0x118] sm:$0xff]   ;;  %v1839_v63 = vld [vmem:[%s2244_s4 + $0x150] sm:$0xff]  }
  0x1e   : > { %v1834_v58 = vld [vmem:[%s2244_s4 + $0x1a0] sm:$0xff]   ;;  %v1837_v61 = vld [vmem:[%s2244_s4 + $0x1d8] sm:$0xff]   ;;  %v1840_v0 = vld [vmem:[%s2244_s4 + $0x110] sm:$0xff]   ;;  %v496_v16 = vor.u32 %v495_v11, %v491_v9 }
  0x1f   : > { %1648 = vmatpush3.bf16.msra.mxu0 %v1801_v18  ;;  %v468_v44 = vor.u32 %v467_v40, %v463_v37  ;;  %v1838_v62 = vld [vmem:[%s2244_s4 + $0x198] sm:$0xff]   ;;  %v1841_v1 = vld [vmem:[%s2244_s4 + $0x1d0] sm:$0xff]   ;;  %v1843_v3 = vld [vmem:[%s2244_s4 + $0x148] sm:$0xff]  }
  0x20   : > { %1670 = vmatpush3.bf16.msra.mxu1 %v1802_v19  ;;  %1649 = vmatprep.subr.bf16.mxu0 %v1803_v20  ;;  %v1842_v2 = vld [vmem:[%s2244_s4 + $0x190] sm:$0xff]   ;;  %v1844_v5 = vld [vmem:[%s2244_s4 + $0x108] sm:$0xff]   ;;  %v1847_v8 = vld [vmem:[%s2244_s4 + $0x140] sm:$0xff]  }
  0x21   : > { %1671 = vmatprep.subr.bf16.mxu1 %v1804_v21  ;;  %v473_v47 = vsel %vm461_vm0, %v468_v44, %v472_v42  ;;  %v1845_v6 = vld [vmem:[%s2244_s4 + $0x1c8] sm:$0xff]   ;;  %v1848_v10 = vld [vmem:[%s2244_s4 + $0x100] sm:$0xff]   ;;  %v1854_v21 = vld [vmem:[%s2244_s4 + $0x238] sm:$0xff]  }
  0x22   : > { %v1846_v7 = vld [vmem:[%s2244_s4 + $0x188] sm:$0xff]   ;;  %v1849_v12 = vld [vmem:[%s2244_s4 + $0x1c0] sm:$0xff]   ;;  %v1859_v35 = vld [vmem:[%s2244_s4 + $0x218] sm:$0xff]  }
  0x23   : > { %1650 = vmatpush3.bf16.msra.mxu0 %v1805_v22  ;;  %v1850_v13 = vld [vmem:[%s2060_s16 + $0x8] ss:$0 sps:$4 sm:$0x11]   ;;  %v1851_v14 = vld [vmem:[%s2244_s4 + $0x180] sm:$0xff]   ;;  %v1853_v19 = vld [vmem:[%s2051_s11 + $0xc] sm:$0xff]   ;;  %s420_s11 = scalar_lea.vmem %s2247_s7, %s1632_s23 }
  0x24   : > { %1672 = vmatpush3.bf16.msra.mxu1 %v1806_v23  ;;  %1651 = vmatprep.subr.bf16.mxu0 %v1807_v24  ;;  %v498_v17 = vshll.u32 %v1850_v13, 16  ;;  %v1852_v18 = vld [vmem:[%s398_s8] sm:$0xff]   ;;  %v1855_v22 = vld [vmem:[%s2069_s21 + $0xc] sm:$0xff]  }
  0x25   : > { %1673 = vmatprep.subr.bf16.mxu1 %v1808_v25  ;;  %v521_v24 = vshll.u32 %v1855_v22, 16  ;;  %v1856_v25 = vld [vmem:[%s2244_s4 + $0x230] sm:$0xff]   ;;  %v1858_v33 = vld [vmem:[%s2244_s4 + $0x220] sm:$0xff]   ;;  %v1861_v37 = vld [vmem:[%s2244_s4 + $0x208] sm:$0xff]  }
  0x26   : > { %v500_v20 = vrot.slane %v498_v17, 1  ;;  %v1860_v36 = vld [vmem:[%s2244_s4 + $0x210] sm:$0xff]   ;;  %v1862_v38 = vld [vmem:[%s2244_s4 + $0x200] sm:$0xff]  }
  0x27   : > { %1652 = vmatpush3.bf16.msra.mxu0 %v1809_v26  ;;  %v519_v26 = vshrl.u32 %v1855_v22, 16 }
  0x28   : > { %1674 = vmatpush3.bf16.msra.mxu1 %v1810_v27  ;;  %1653 = vmatprep.subr.bf16.mxu0 %v1811_v28  ;;  %v501_v23 = vsel %vm461_vm0, %v496_v16, %v500_v20  ;;  %v523_v27 = vrot.slane %v521_v24, 1  ;;  %v1863_v28 = vld [vmem:[%s2069_s21 + $0x14] ss:$0 sps:$4 sm:$0x11]  }
  0x29   : > { %1675 = vmatprep.subr.bf16.mxu1 %v1812_v29  ;;  %v1857_v29 = vld [vmem:[%s2244_s4 + $0x228] sm:$0xff]  }
  0x2b   : > { %1654 = vmatpush3.bf16.msra.mxu0 %v1813_v30  ;;  %v524_v30 = vor.u32 %v523_v27, %v519_v26 }
  0x2c   : > { %1676 = vmatpush3.bf16.msra.mxu1 %v1814_v31  ;;  %1683 = vmatprep.subr.bf16.mxu0 %v1819_v39  ;;  %v526_v31 = vshll.u32 %v1863_v28, 16 }
  0x2d   : > { %1705 = vmatprep.subr.bf16.mxu1 %v1821_v43 }
  0x2e   : > { %1140 = vmatmul.mubr.bf16.vlgmr.msra.gmra.mxu0 %v1817_v34  ;;  %v528_v32 = vrot.slane %v526_v31, 1 }
  0x2f   : > { %1684 = vmatpush3.bf16.msra.mxu0 %v1820_v41  ;;  %1181 = vmatmul.mubr.bf16.vlgmr.msra.gmra.mxu1 %v473_v47 }
  0x30   : > { %1685 = vmatprep.subr.bf16.mxu0 %v1823_v46  ;;  %1706 = vmatpush3.bf16.msra.mxu1 %v1822_v45  ;;  %v529_v34 = vsel %vm461_vm0, %v524_v30, %v528_v32 }
  0x31   : > { %1707 = vmatprep.subr.bf16.mxu1 %v1825_v49  ;;  %1262 = vmatprep.mubr.bf16.mxu1 %v1853_v19 }
  0x32   : > { %1221 = vmatprep.mubr.bf16.mxu0 %v501_v23 }
  0x33   : > { %1686 = vmatpush3.bf16.msra.mxu0 %v1824_v48 }
  0x34   : > { %1687 = vmatprep.subr.bf16.mxu0 %v1827_v51  ;;  %1708 = vmatpush3.bf16.msra.mxu1 %v1826_v50 }
  0x35   : > { %1709 = vmatprep.subr.bf16.mxu1 %v1829_v53 }
  0x37   : > { %1688 = vmatpush3.bf16.msra.mxu0 %v1828_v52 }
  0x38   : > { %1689 = vmatprep.subr.bf16.mxu0 %v1831_v55  ;;  %1710 = vmatpush3.bf16.msra.mxu1 %v1830_v54 }
  0x39   : > { %1711 = vmatprep.subr.bf16.mxu1 %v1833_v57 }
  0x3b   : > { %1690 = vmatpush3.bf16.msra.mxu0 %v1832_v56 }
  0x3c   : > { %1691 = vmatprep.subr.bf16.mxu0 %v1835_v59  ;;  %1712 = vmatpush3.bf16.msra.mxu1 %v1834_v58 }
  0x3d   : > { %1713 = vmatprep.subr.bf16.mxu1 %v1837_v61 }
  0x3f   : > { %1692 = vmatpush3.bf16.msra.mxu0 %v1836_v60 }
  0x40   : > { %1693 = vmatprep.subr.bf16.mxu0 %v1839_v63  ;;  %1714 = vmatpush3.bf16.msra.mxu1 %v1838_v62  ;;  %v1626_v63 = vld [vmem:[%s2245_s5] ss:$0 sm:$0xff] }
  0x41   : > { %1715 = vmatprep.subr.bf16.mxu1 %v1841_v1 }
  0x43   : > { %1694 = vmatpush3.bf16.msra.mxu0 %v1840_v0  ;;  %v1334_v0 = vlaneseq }
  0x44   : > { %1695 = vmatprep.subr.bf16.mxu0 %v1843_v3  ;;  %1716 = vmatpush3.bf16.msra.mxu1 %v1842_v2  ;;  %v1627_v2 = vld [vmem:[%s2246_s6] ss:$0 sm:$0xff] }
  0x45   : > { %1717 = vmatprep.subr.bf16.mxu1 %v1845_v6 }
  0x47   : > { %1696 = vmatpush3.bf16.msra.mxu0 %v1844_v5  ;;  %v1335_v5 = vshrl.u32 %v1334_v0, 7 }
  0x48   : > { %1697 = vmatprep.subr.bf16.mxu0 %v1847_v8  ;;  %1718 = vmatpush3.bf16.msra.mxu1 %v1846_v7 }
  0x49   : > { %1719 = vmatprep.subr.bf16.mxu1 %v1849_v12  ;;  %vm1337_vm2 = vcmp.lt.s32.totalorder %v1335_v5, 1 }
  0x4b   : > { %1698 = vmatpush3.bf16.msra.mxu0 %v1848_v10 }
  0x4c   : > { %1736 = vmatprep.subr.bf16.mxu0 %v1888_v15  ;;  %1720 = vmatpush3.bf16.msra.mxu1 %v1851_v14 }
  0x4e   : > { %1222 = vmatmul.mubr.bf16.vlgmr.msra.gmra.mxu0 %v1852_v18 }
  0x4f   : > { %1263 = vmatmul.mubr.bf16.vlgmr.msra.gmra.mxu1 %v1855_v22  ;;  %1737 = vmatpush3.bf16.msra.mxu0 %v1854_v21 }
  0x50   : > { %1752 = vmatprep.mubr.msk.bf16.mxu0 %vm1889_vm1, %v1888_v15  ;;  %1738 = vmatprep.subr.bf16.mxu0 %v1888_v15 }
  0x53   : > { %1739 = vmatpush3.bf16.msra.mxu0 %v1856_v25 }
  0x54   : > { %1740 = vmatprep.subr.bf16.mxu0 %v1888_v15 }
  0x57   : > { %1741 = vmatpush3.bf16.msra.mxu0 %v1857_v29 }
  0x58   : > { %1742 = vmatprep.subr.bf16.mxu0 %v1888_v15 }
  0x5b   : > { %1743 = vmatpush3.bf16.msra.mxu0 %v1858_v33 }
  0x5c   : > { %1744 = vmatprep.subr.bf16.mxu0 %v1888_v15 }
  0x5f   : > { %1745 = vmatpush3.bf16.msra.mxu0 %v1859_v35 }
  0x60   : > { %1746 = vmatprep.subr.bf16.mxu0 %v1888_v15 }
  0x63   : > { %1747 = vmatpush3.bf16.msra.mxu0 %v1860_v36 }
  0x64   : > { %1748 = vmatprep.subr.bf16.mxu0 %v1888_v15 }
  0x67   : > { %1749 = vmatpush3.bf16.msra.mxu0 %v1861_v37 }
  0x68   : > { %1750 = vmatprep.subr.bf16.mxu0 %v1888_v15 }
  0x6b   : > { %1751 = vmatpush3.bf16.msra.mxu0 %v1862_v38 }
  0x6e   : > { %1753 = vmatmul.mubr.bf16.vlgmr.msra.gmra.mxu0 %v529_v34 }
  0xee   : > { %v1655_v39 = vpop.f32.mrf.mxu0 }
  0xef   : > { %v1677_v43 = vpop.f32.mrf.mxu1 }
  0xf0   : > { %v1656_v40 = vpop.f32.mrf.mxu0 }
  0xf1   : > { %v1678_v44 = vpop.f32.mrf.mxu1  ;;  %v1657_v55 = vadd.f32 %v1656_v40, %v1655_v39 }
  0xf2   : > { %v1658_v41 = vpop.f32.mrf.mxu0  ;;  %v1679_v56 = vadd.f32 %v1678_v44, %v1677_v43 }
  0xf3   : > { %v1680_v45 = vpop.f32.mrf.mxu1 }
  0xf4   : > { %v1659_v42 = vpop.f32.mrf.mxu0  ;;  %v1183_v58 = vadd.f32 %v1679_v56, %v1657_v55 }
  0xf5   : > { %v1681_v46 = vpop.f32.mrf.mxu1 }
 0x10e   : > { %v1699_v48 = vpop.f32.mrf.mxu0 }
 0x10f   : > { %v1721_v47 = vpop.f32.mrf.mxu1 }
 0x110   : > { %v1700_v50 = vpop.f32.mrf.mxu0 }
 0x111   : > { %v1722_v49 = vpop.f32.mrf.mxu1  ;;  %v1701_v57 = vadd.f32 %v1700_v50, %v1699_v48 }
 0x112   : > { %v1702_v52 = vpop.f32.mrf.mxu0  ;;  %v1723_v60 = vadd.f32 %v1722_v49, %v1721_v47 }
 0x113   : > { %v1724_v51 = vpop.f32.mrf.mxu1  ;;  %v1224_v59 = vadd.f32 %v1701_v57, %v1183_v58 }
 0x114   : > { %v1703_v54 = vpop.f32.mrf.mxu0 }
 0x115   : > { %v1725_v53 = vpop.f32.mrf.mxu1  ;;  %v1265_v61 = vadd.f32 %v1723_v60, %v1224_v59 }
 0x12e   : > { %v1305_v62 = vpop.f32.mrf.mxu0 }
 0x12f   : > { %v1306_v1 = vadd.f32 %v1305_v62, %v1265_v61 }
 0x130   : > { %v1754_v3 = vpop.f32.mrf.mxu0 }
 0x131   : > { %v1319_v4 = vmul.f32 %v1626_v63, %v1306_v1 }
 0x132   : > { %v1308_v6 = vpop.f32.mrf.mxu0 }
 0x133   : > { %v1328_v7 = vadd.f32 %v1627_v2, %v1319_v4 }
 0x134   : > { %v1755_v8 = vpop.f32.mrf.mxu0 }
 0x135   : > { %v1330_v9 = vmul.f32 0.2, %v1328_v7 }
 0x137   : > { %v1332_v10 = vmax.f32 %v1328_v7, %v1330_v9 }
 0x139   : > { %v1339_v11 = vsel %vm1337_vm2, %v1332_v10, 0.0 }
 0x13a   : > { %v1637_v12 = vpack.c.bf16 %v1888_v15, %v1339_v11 }
 0x13c   : > { %1638 = vst [vmem:[%s420_s11] sm:$0xff] %v1637_v12  }
 0x13d PF: > { %s17_s26 = sadd.s32 1, %s1886_s26   ;;  %s2248_s24 = smov %s1882_s25 }
 0x13e   : > { %p14_p5 = scmp.ge.s32.totalorder %s17_s26, 4   ;;  %s2249_s25 = smov %s2251_s27 }
 0x140   :  { %16 = sbr.rel (!%p14_p5) target bundleno = 2 (0x2), region = 100 }

// kernel: _lambda_.17
= control target key start
LH: loop header
LB: loop body
LE: loop exit
PB: predicated region body
PF: predicated region fallthrough
CT: control target
= control target key end

     0   :  { %s1702_s15 = smov 0   ;;  %s1704_s16 = smov 0   ;;  %s1995_s0 = inlined_call_operand.vmem [shape: bf16[2,3,18,128], index: 0, kind: input, shape index: {}]   ;;  %s1996_s1 = inlined_call_operand.vmem [shape: bf16[1152,128], index: 1, kind: input, shape index: {}]   ;;  %s1997_s2 = inlined_call_operand.vmem [shape: f32[1,128], index: 2, kind: input, shape index: {}]   ;;  %s1998_s3 = inlined_call_operand.vmem [shape: f32[1,128], index: 3, kind: input, shape index: {}]   ;;  %s1999_s4 = inlined_call_operand.vmem [shape: bf16[2,1,16,128], index: 4, kind: output, shape index: {}]  }
   0x1   :  { %s1706_s17 = smov 0  }
   0x2 LB: > { %s29_s18 = sadd.s32 1, %s1669_s16  ;;  %p1334_p0 = scmp.ge.s32.totalorder %s1673_s17, 1  ;;  %s1673_s17 = sphi %s1706_s17, %s14_s17   ;;  %s1669_s16 = sphi %s1704_s16, %s2001_s16   ;;  %s1665_s15 = sphi %s1702_s15, %s2000_s15  }
   0x3   : > { %p31_p1 = scmp.ge.s32.totalorder %s29_s18, 2  ;;  %p210_p2 = scmp.lt.s32.totalorder %s1673_s17, 3 }
   0x5   : > { %s2003_s18 = smov (%p31_p1, %s29_s18), 0  ;;  %p211_p3 = pnand %p1334_p0, %p210_p2 }
   0x6   : > { %p253_p4 = scmp.lt.s32.totalorder (!%p211_p3), %s1665_s15, 1 }
   0x7   : > { %214 = sbr.rel (%p211_p3) target bundleno = 313 (0x139), region = 36 }
   0xc   : > { %v1573_v0 = vld [vmem:[%s1996_s1 + $0x78] sm:$0xff]   ;;  %v1577_v4 = vld [vmem:[%s1996_s1 + $0x70] sm:$0xff]   ;;  %v1581_v8 = vld [vmem:[%s1996_s1 + $0x68] sm:$0xff]   ;;  %s2005_s15 = smov (!%p253_p4, %s1665_s15), 1  ;;  %vm302_vm0 = vsmask.f32 7424 }
   0xd   : > { %v1574_v1 = vld [vmem:[%s1996_s1 + $0xf8] sm:$0xff]   ;;  %1429 = vmatprep.subr.bf16.mxu0 %v1573_v0  ;;  %v1578_v5 = vld [vmem:[%s1996_s1 + $0xf0] sm:$0xff]   ;;  %v1582_v9 = vld [vmem:[%s1996_s1 + $0xe8] sm:$0xff]   ;;  %s1546_s29 = smul.u32 36, %s2005_s15  ;;  %vm316_vm1 = vcmask 1046528   ;;  %vm1676_vm2 = vmmov 0  }
   0xe   : > { %v1575_v2 = vld [vmem:[%s1996_s1 + $0x38] sm:$0xff]   ;;  %1451 = vmatprep.subr.bf16.mxu1 %v1574_v1  ;;  %v1579_v6 = vld [vmem:[%s1996_s1 + $0x30] sm:$0xff]   ;;  %v1583_v10 = vld [vmem:[%s1996_s1 + $0x28] sm:$0xff]   ;;  %s1422_s20 = sshll.u32 %s2005_s15, 3 }
   0xf   : > { %v1576_v3 = vld [vmem:[%s1996_s1 + $0xb8] sm:$0xff]   ;;  %1430 = vmatpush3.bf16.msra.mxu0 %v1575_v2  ;;  %v1580_v7 = vld [vmem:[%s1996_s1 + $0xb0] sm:$0xff]   ;;  %v1584_v11 = vld [vmem:[%s1996_s1 + $0xa8] sm:$0xff]   ;;  %s1823_s14 = scalar_lea.vmem %s1995_s0, %s1546_s29  ;;  %s279_s23 = scalar_lea.vmem %s1999_s4, %s1422_s20 }
  0x10   : > { %1452 = vmatpush3.bf16.msra.mxu1 %v1576_v3  ;;  %1431 = vmatprep.subr.bf16.mxu0 %v1577_v4  ;;  %v1585_v12 = vld [vmem:[%s1996_s1 + $0x60] sm:$0xff]   ;;  %v1589_v16 = vld [vmem:[%s1996_s1 + $0x58] sm:$0xff]   ;;  %v1593_v20 = vld [vmem:[%s1996_s1 + $0x50] sm:$0xff]  }
  0x11   : > { %1453 = vmatprep.subr.bf16.mxu1 %v1578_v5  ;;  %v1586_v13 = vld [vmem:[%s1996_s1 + $0xe0] sm:$0xff]   ;;  %v1590_v17 = vld [vmem:[%s1996_s1 + $0xd8] sm:$0xff]   ;;  %v1594_v21 = vld [vmem:[%s1996_s1 + $0xd0] sm:$0xff]  }
  0x12   : > { %v1587_v14 = vld [vmem:[%s1996_s1 + $0x20] sm:$0xff]   ;;  %v1591_v18 = vld [vmem:[%s1996_s1 + $0x18] sm:$0xff]   ;;  %v1595_v22 = vld [vmem:[%s1996_s1 + $0x10] sm:$0xff]  }
  0x13   : > { %1432 = vmatpush3.bf16.msra.mxu0 %v1579_v6  ;;  %v1588_v15 = vld [vmem:[%s1996_s1 + $0xa0] sm:$0xff]   ;;  %v1592_v19 = vld [vmem:[%s1996_s1 + $0x98] sm:$0xff]   ;;  %v1596_v23 = vld [vmem:[%s1996_s1 + $0x90] sm:$0xff]  }
  0x14   : > { %1454 = vmatpush3.bf16.msra.mxu1 %v1580_v7  ;;  %1433 = vmatprep.subr.bf16.mxu0 %v1581_v8  ;;  %v1597_v24 = vld [vmem:[%s1996_s1 + $0x48] sm:$0xff]   ;;  %v1601_v28 = vld [vmem:[%s1996_s1 + $0x40] sm:$0xff]   ;;  %v1608_v40 = vld [vmem:[%s1996_s1 + $0x178] sm:$0xff]  }
  0x15   : > { %1455 = vmatprep.subr.bf16.mxu1 %v1582_v9  ;;  %v1598_v25 = vld [vmem:[%s1996_s1 + $0xc8] sm:$0xff]   ;;  %v1602_v29 = vld [vmem:[%s1996_s1 + $0xc0] sm:$0xff]   ;;  %v1610_v43 = vld [vmem:[%s1996_s1 + $0x1f8] sm:$0xff]  }
  0x16   : > { %v1599_v26 = vld [vmem:[%s1996_s1 + $0x8] sm:$0xff]   ;;  %v1603_v30 = vld [vmem:[%s1996_s1] sm:$0xff]   ;;  %v1611_v46 = vld [vmem:[%s1996_s1 + $0x1b8] sm:$0xff]  }
  0x17   : > { %1434 = vmatpush3.bf16.msra.mxu0 %v1583_v10  ;;  %v1600_v27 = vld [vmem:[%s1996_s1 + $0x88] sm:$0xff]   ;;  %v1604_v31 = vld [vmem:[%s1996_s1 + $0x80] sm:$0xff]   ;;  %v1609_v47 = vld [vmem:[%s1996_s1 + $0x138] sm:$0xff]  }
  0x18   : > { %1456 = vmatpush3.bf16.msra.mxu1 %v1584_v11  ;;  %1435 = vmatprep.subr.bf16.mxu0 %v1585_v12  ;;  %v1605_v32 = vld [vmem:[%s1823_s14] sm:$0xff]   ;;  %v1606_v33 = vld [vmem:[%s1823_s14 + $0x8] ss:$0 sps:$4 sm:$0x11]   ;;  %v1831_v34 = vld [vmem:[%s1823_s14 + $0xc] sm:$0xff]  }
  0x19   : > { %1457 = vmatprep.subr.bf16.mxu1 %v1586_v13  ;;  %v304_v35 = vshrl.u32 %v1605_v32, 16  ;;  %v306_v36 = vshll.u32 %v1605_v32, 16  ;;  %v311_v37 = vshll.u32 %v1606_v33, 16  ;;  %v317_v38 = vrot.slane %v1605_v32, 1  ;;  %1022 = vmatprep.mubr.bf16.mxu1 %v1831_v34  ;;  %v1612_v49 = vld [vmem:[%s1996_s1 + $0x170] sm:$0xff]   ;;  %v1616_v53 = vld [vmem:[%s1996_s1 + $0x168] sm:$0xff]  }
  0x1a   : > { %v318_v39 = vrot.slane %v1606_v33, 1  ;;  %v1614_v50 = vld [vmem:[%s1996_s1 + $0x1f0] sm:$0xff]   ;;  %v1618_v54 = vld [vmem:[%s1996_s1 + $0x1e8] sm:$0xff]   ;;  %v1620_v57 = vld [vmem:[%s1996_s1 + $0x160] sm:$0xff]   ;;  %v333_v6 = vshll.u32 %v1831_v34, 16  ;;  %v331_v10 = vshrl.u32 %v1831_v34, 16 }
  0x1b   : > { %1436 = vmatpush3.bf16.msra.mxu0 %v1587_v14  ;;  %v308_v41 = vrot.slane %v306_v36, 1  ;;  %v313_v42 = vrot.slane %v311_v37, 1  ;;  %v1615_v51 = vld [vmem:[%s1996_s1 + $0x1b0] sm:$0xff]   ;;  %v1619_v55 = vld [vmem:[%s1996_s1 + $0x1a8] sm:$0xff]   ;;  %v1622_v58 = vld [vmem:[%s1996_s1 + $0x1e0] sm:$0xff]  }
  0x1c   : > { %1458 = vmatpush3.bf16.msra.mxu1 %v1588_v15  ;;  %1437 = vmatprep.subr.bf16.mxu0 %v1589_v16  ;;  %v319_v44 = vsel %vm316_vm1, %v317_v38, %v318_v39  ;;  %v1613_v52 = vld [vmem:[%s1996_s1 + $0x130] sm:$0xff]   ;;  %v1617_v56 = vld [vmem:[%s1996_s1 + $0x128] sm:$0xff]   ;;  %v1623_v59 = vld [vmem:[%s1996_s1 + $0x1a0] sm:$0xff]   ;;  %v335_v12 = vrot.slane %v333_v6, 1  ;;  %v343_v15 = vrot.slane %v1831_v34, 1 }
  0x1d   : > { %1459 = vmatprep.subr.bf16.mxu1 %v1590_v17  ;;  %v309_v45 = vor.u32 %v308_v41, %v304_v35  ;;  %v1621_v60 = vld [vmem:[%s1996_s1 + $0x120] sm:$0xff]   ;;  %v1624_v61 = vld [vmem:[%s1996_s1 + $0x158] sm:$0xff]   ;;  %v1628_v1 = vld [vmem:[%s1996_s1 + $0x150] sm:$0xff]  }
  0x1e   : > { %v1626_v62 = vld [vmem:[%s1996_s1 + $0x1d8] sm:$0xff]   ;;  %v1630_v2 = vld [vmem:[%s1996_s1 + $0x1d0] sm:$0xff]   ;;  %v1632_v5 = vld [vmem:[%s1996_s1 + $0x148] sm:$0xff]  }
  0x1f   : > { %1438 = vmatpush3.bf16.msra.mxu0 %v1591_v18  ;;  %v314_v48 = vsel %vm302_vm0, %v309_v45, %v313_v42  ;;  %v1627_v63 = vld [vmem:[%s1996_s1 + $0x198] sm:$0xff]   ;;  %v1631_v3 = vld [vmem:[%s1996_s1 + $0x190] sm:$0xff]   ;;  %v1634_v7 = vld [vmem:[%s1996_s1 + $0x1c8] sm:$0xff]  }
  0x20   : > { %1460 = vmatpush3.bf16.msra.mxu1 %v1592_v19  ;;  %1439 = vmatprep.subr.bf16.mxu0 %v1593_v20  ;;  %v1625_v0 = vld [vmem:[%s1996_s1 + $0x118] sm:$0xff]   ;;  %v1629_v4 = vld [vmem:[%s1996_s1 + $0x110] sm:$0xff]   ;;  %v1635_v8 = vld [vmem:[%s1996_s1 + $0x188] sm:$0xff]   ;;  %v336_v19 = vor.u32 %v335_v12, %v331_v10 }
  0x21   : > { %1461 = vmatprep.subr.bf16.mxu1 %v1594_v21  ;;  %981 = vmatprep.mubr.bf16.mxu0 %v314_v48  ;;  %v1633_v9 = vld [vmem:[%s1996_s1 + $0x108] sm:$0xff]   ;;  %v1636_v11 = vld [vmem:[%s1996_s1 + $0x140] sm:$0xff]   ;;  %v1639_v16 = vld [vmem:[%s1823_s14 + $0x14] ss:$0 sps:$4 sm:$0x11]  }
  0x22   : > { %v1637_v13 = vld [vmem:[%s1996_s1 + $0x100] sm:$0xff]   ;;  %v344_v18 = vrot.slane %v1639_v16, 1  ;;  %v338_v20 = vshll.u32 %v1639_v16, 16  ;;  %v1641_v21 = vld [vmem:[%s1823_s14 + $0x18] sm:$0xff]   ;;  %v1644_v33 = vld [vmem:[%s1996_s1 + $0x230] sm:$0xff]  }
  0x23   : > { %1440 = vmatpush3.bf16.msra.mxu0 %v1595_v22  ;;  %v1638_v14 = vld [vmem:[%s1996_s1 + $0x1c0] sm:$0xff]   ;;  %v1645_v36 = vld [vmem:[%s1996_s1 + $0x228] sm:$0xff]   ;;  %v1647_v38 = vld [vmem:[%s1996_s1 + $0x218] sm:$0xff]   ;;  %v369_v42 = vrot.slane %v1641_v21, 1 }
  0x24   : > { %1462 = vmatpush3.bf16.msra.mxu1 %v1596_v23  ;;  %1441 = vmatprep.subr.bf16.mxu0 %v1597_v24  ;;  %v1640_v17 = vld [vmem:[%s1996_s1 + $0x180] sm:$0xff]   ;;  %v345_v23 = vsel %vm316_vm1, %v343_v15, %v344_v18  ;;  %v340_v24 = vrot.slane %v338_v20, 1  ;;  %v1648_v39 = vld [vmem:[%s1996_s1 + $0x210] sm:$0xff]  }
  0x25   : > { %1463 = vmatprep.subr.bf16.mxu1 %v1598_v25  ;;  %v1642_v22 = vld [vmem:[%s1823_s14 + $0x20] ss:$0 sps:$4 sm:$0x11]   ;;  %v357_v25 = vshrl.u32 %v1641_v21, 16 }
  0x26   : > { %v1646_v37 = vld [vmem:[%s1996_s1 + $0x220] sm:$0xff]  }
  0x27   : > { %1442 = vmatpush3.bf16.msra.mxu0 %v1599_v26  ;;  %v359_v26 = vshll.u32 %v1641_v21, 16  ;;  %v1650_v41 = vld [vmem:[%s1996_s1 + $0x200] sm:$0xff]  }
  0x28   : > { %1464 = vmatpush3.bf16.msra.mxu1 %v1600_v27  ;;  %1443 = vmatprep.subr.bf16.mxu0 %v1601_v28  ;;  %v364_v27 = vshll.u32 %v1642_v22, 16  ;;  %v1643_v28 = vld [vmem:[%s1996_s1 + $0x238] sm:$0xff]   ;;  %v1416_v6 = vld [vmem:[%s1997_s2] ss:$0 sm:$0xff] }
  0x29   : > { %1465 = vmatprep.subr.bf16.mxu1 %v1602_v29  ;;  %v341_v29 = vsel %vm302_vm0, %v336_v19, %v340_v24 }
  0x2b   : > { %1444 = vmatpush3.bf16.msra.mxu0 %v1603_v30  ;;  %v1675_v30 = vmov 0.0  }
  0x2c   : > { %1466 = vmatpush3.bf16.msra.mxu1 %v1604_v31  ;;  %1473 = vmatprep.subr.bf16.mxu0 %v1608_v40  ;;  %v361_v31 = vrot.slane %v359_v26, 1  ;;  %v1649_v40 = vld [vmem:[%s1996_s1 + $0x208] sm:$0xff]  }
  0x2d   : > { %1495 = vmatprep.subr.bf16.mxu1 %v1610_v43  ;;  %v370_v43 = vrot.slane %v1642_v22, 1 }
  0x2e   : > { %982 = vmatmul.mubr.bf16.vlgmr.msra.gmra.mxu0 %v1605_v32  ;;  %v366_v32 = vrot.slane %v364_v27, 1  ;;  %v362_v34 = vor.u32 %v361_v31, %v357_v25 }
  0x2f   : > { %1023 = vmatmul.mubr.bf16.vlgmr.msra.gmra.mxu1 %v319_v44  ;;  %1474 = vmatpush3.bf16.msra.mxu0 %v1609_v47  ;;  %v371_v44 = vsel %vm316_vm1, %v369_v42, %v370_v43 }
  0x30   : > { %1496 = vmatpush3.bf16.msra.mxu1 %v1611_v46  ;;  %1475 = vmatprep.subr.bf16.mxu0 %v1612_v49  ;;  %v367_v35 = vsel %vm302_vm0, %v362_v34, %v366_v32 }
  0x31   : > { %1497 = vmatprep.subr.bf16.mxu1 %v1614_v50  ;;  %1063 = vmatprep.mubr.bf16.mxu0 %v345_v23 }
  0x32   : > { %1104 = vmatprep.mubr.bf16.mxu1 %v367_v35 }
  0x33   : > { %1476 = vmatpush3.bf16.msra.mxu0 %v1613_v52 }
  0x34   : > { %1498 = vmatpush3.bf16.msra.mxu1 %v1615_v51  ;;  %1477 = vmatprep.subr.bf16.mxu0 %v1616_v53 }
  0x35   : > { %1499 = vmatprep.subr.bf16.mxu1 %v1618_v54 }
  0x37   : > { %1478 = vmatpush3.bf16.msra.mxu0 %v1617_v56 }
  0x38   : > { %1500 = vmatpush3.bf16.msra.mxu1 %v1619_v55  ;;  %1479 = vmatprep.subr.bf16.mxu0 %v1620_v57 }
  0x39   : > { %1501 = vmatprep.subr.bf16.mxu1 %v1622_v58 }
  0x3b   : > { %1480 = vmatpush3.bf16.msra.mxu0 %v1621_v60 }
  0x3c   : > { %1502 = vmatpush3.bf16.msra.mxu1 %v1623_v59  ;;  %1481 = vmatprep.subr.bf16.mxu0 %v1624_v61 }
  0x3d   : > { %1503 = vmatprep.subr.bf16.mxu1 %v1626_v62 }
  0x3f   : > { %1482 = vmatpush3.bf16.msra.mxu0 %v1625_v0 }
  0x40   : > { %1504 = vmatpush3.bf16.msra.mxu1 %v1627_v63  ;;  %1483 = vmatprep.subr.bf16.mxu0 %v1628_v1 }
  0x41   : > { %1505 = vmatprep.subr.bf16.mxu1 %v1630_v2 }
  0x43   : > { %1484 = vmatpush3.bf16.msra.mxu0 %v1629_v4 }
  0x44   : > { %1506 = vmatpush3.bf16.msra.mxu1 %v1631_v3  ;;  %1485 = vmatprep.subr.bf16.mxu0 %v1632_v5  ;;  %v1172_v3 = vlaneseq }
  0x45   : > { %1507 = vmatprep.subr.bf16.mxu1 %v1634_v7 }
  0x46   : > { %v1173_v7 = vshrl.u32 %v1172_v3, 7 }
  0x47   : > { %1486 = vmatpush3.bf16.msra.mxu0 %v1633_v9  ;;  %v1417_v9 = vld [vmem:[%s1998_s3] ss:$0 sm:$0xff] }
  0x48   : > { %1508 = vmatpush3.bf16.msra.mxu1 %v1635_v8  ;;  %1487 = vmatprep.subr.bf16.mxu0 %v1636_v11  ;;  %vm1175_vm3 = vcmp.lt.s32.totalorder %v1173_v7, 1 }
  0x49   : > { %1509 = vmatprep.subr.bf16.mxu1 %v1638_v14 }
  0x4b   : > { %1488 = vmatpush3.bf16.msra.mxu0 %v1637_v13 }
  0x4c   : > { %1510 = vmatpush3.bf16.msra.mxu1 %v1640_v17  ;;  %1526 = vmatprep.subr.bf16.mxu0 %v1675_v30 }
  0x4e   : > { %1064 = vmatmul.mubr.bf16.vlgmr.msra.gmra.mxu0 %v341_v29 }
  0x4f   : > { %1527 = vmatpush3.bf16.msra.mxu0 %v1643_v28  ;;  %1542 = vmatprep.mubr.msk.bf16.mxu0 %vm1676_vm2, %v1675_v30 }
  0x50   : > { %1528 = vmatprep.subr.bf16.mxu0 %v1675_v30  ;;  %1105 = vmatmul.mubr.bf16.vlgmr.msra.gmra.mxu1 %v1641_v21 }
  0x53   : > { %1529 = vmatpush3.bf16.msra.mxu0 %v1644_v33 }
  0x54   : > { %1530 = vmatprep.subr.bf16.mxu0 %v1675_v30 }
  0x57   : > { %1531 = vmatpush3.bf16.msra.mxu0 %v1645_v36 }
  0x58   : > { %1532 = vmatprep.subr.bf16.mxu0 %v1675_v30 }
  0x5b   : > { %1533 = vmatpush3.bf16.msra.mxu0 %v1646_v37 }
  0x5c   : > { %1534 = vmatprep.subr.bf16.mxu0 %v1675_v30 }
  0x5f   : > { %1535 = vmatpush3.bf16.msra.mxu0 %v1647_v38 }
  0x60   : > { %1536 = vmatprep.subr.bf16.mxu0 %v1675_v30 }
  0x63   : > { %1537 = vmatpush3.bf16.msra.mxu0 %v1648_v39 }
  0x64   : > { %1538 = vmatprep.subr.bf16.mxu0 %v1675_v30 }
  0x67   : > { %1539 = vmatpush3.bf16.msra.mxu0 %v1649_v40 }
  0x68   : > { %1540 = vmatprep.subr.bf16.mxu0 %v1675_v30 }
  0x6b   : > { %1541 = vmatpush3.bf16.msra.mxu0 %v1650_v41 }
  0x6e   : > { %1543 = vmatmul.mubr.bf16.vlgmr.msra.gmra.mxu0 %v371_v44 }
  0xee   : > { %v1445_v47 = vpop.f32.mrf.mxu0 }
  0xef   : > { %v1467_v45 = vpop.f32.mrf.mxu1 }
  0xf0   : > { %v1446_v49 = vpop.f32.mrf.mxu0 }
  0xf1   : > { %v1468_v46 = vpop.f32.mrf.mxu1  ;;  %v1447_v61 = vadd.f32 %v1446_v49, %v1445_v47 }
  0xf2   : > { %v1448_v51 = vpop.f32.mrf.mxu0  ;;  %v1469_v62 = vadd.f32 %v1468_v46, %v1467_v45 }
  0xf3   : > { %v1470_v48 = vpop.f32.mrf.mxu1 }
  0xf4   : > { %v1449_v52 = vpop.f32.mrf.mxu0  ;;  %v1025_v0 = vadd.f32 %v1469_v62, %v1447_v61 }
  0xf5   : > { %v1471_v50 = vpop.f32.mrf.mxu1 }
 0x10e   : > { %v1489_v53 = vpop.f32.mrf.mxu0 }
 0x110   : > { %v1490_v54 = vpop.f32.mrf.mxu0  ;;  %v1511_v55 = vpop.f32.mrf.mxu1 }
 0x111   : > { %v1491_v63 = vadd.f32 %v1490_v54, %v1489_v53 }
 0x112   : > { %v1492_v56 = vpop.f32.mrf.mxu0  ;;  %v1512_v57 = vpop.f32.mrf.mxu1 }
 0x113   : > { %v1066_v1 = vadd.f32 %v1491_v63, %v1025_v0  ;;  %v1513_v2 = vadd.f32 %v1512_v57, %v1511_v55 }
 0x114   : > { %v1493_v58 = vpop.f32.mrf.mxu0  ;;  %v1514_v59 = vpop.f32.mrf.mxu1 }
 0x115   : > { %v1107_v4 = vadd.f32 %v1513_v2, %v1066_v1 }
 0x116   : > { %v1515_v60 = vpop.f32.mrf.mxu1 }
 0x12e   : > { %v1147_v5 = vpop.f32.mrf.mxu0 }
 0x12f   : > { %v1148_v8 = vadd.f32 %v1147_v5, %v1107_v4 }
 0x130   : > { %v1544_v10 = vpop.f32.mrf.mxu0 }
 0x131   : > { %v1161_v11 = vmul.f32 %v1416_v6, %v1148_v8 }
 0x132   : > { %v1150_v12 = vpop.f32.mrf.mxu0 }
 0x133   : > { %v1170_v13 = vadd.f32 %v1417_v9, %v1161_v11 }
 0x134   : > { %v1545_v14 = vpop.f32.mrf.mxu0 }
 0x135   : > { %v1177_v15 = vsel %vm1175_vm3, %v1170_v13, 0.0 }
 0x136   : > { %v1427_v16 = vpack.c.bf16 %v1675_v30, %v1177_v15 }
 0x138   : > { %1428 = vst [vmem:[%s279_s23] sm:$0xff] %v1427_v16  }
 0x139 PF: > { %s14_s17 = sadd.s32 1, %s1673_s17   ;;  %s2000_s15 = smov %s1669_s16 }
 0x13a   : > { %p11_p5 = scmp.ge.s32.totalorder %s14_s17, 4   ;;  %s2001_s16 = smov %s2003_s18 }
 0x13c   :  { %13 = sbr.rel (!%p11_p5) target bundleno = 2 (0x2), region = 76 }

</bundles_post_ra>
